<compile_context>
chip_gen: v5e
topology: v5e:2x2
jax: 0.10.0
libtpu: 0.0.40
codegen_flags: <defaults>
</compile_context>

<pallas_src>
import functools

import jax
import jax.numpy as jnp
from jax import lax
from jax.experimental import pallas as pl
from jax.experimental.pallas import tpu as pltpu

# ----------------------- small hyper-params (module-consistent) -----------------------
INPUT_SIZE = 28        # features per timestep
SEQUENCE_LENGTH = 28   # timesteps
HIDDEN_SIZE = 32       # small stand-in for the module's 256; 4H = 128 lanes
NUM_CLASSES = 10
NUM_LAYERS = 2         # hard-wired to 2 in the kernel (matches the module)
BATCH = 4


# ------------------------------------ Pallas kernel ------------------------------------
def lstm_fc_kernel(x_ref, wih0_ref, whh0_ref, b0_ref,
                   w1_ref, b1_ref, wfc_ref, bfc_ref,
                   out_ref,
                   xg_s,
                   *, seq_len, n_pad, hidden):
    H = hidden
    N = n_pad
    C_pad = out_ref.shape[1]

    # ---- pre-pass: hoisted layer-0 input projection for ALL timesteps at once ----
    # x_ref: (T*N, D) time-major-flattened;  wih0_ref: (D, 4H);  b0 = b_ih0 + b_hh0.
    xg_s[...] = (jnp.dot(x_ref[...], wih0_ref[...],
                         preferred_element_type=jnp.float32)
                 + b0_ref[...])

    def gates_to_hc(gates, c_prev):
        # Batch the transcendentals over the whole (N, 4H) vreg, then slice.
        sig = jax.nn.sigmoid(gates)          # one EUP pass (i, f, o lanes used)
        tg = jnp.tanh(gates)                 # one EUP pass (g lanes used)
        i = sig[:, 0 * H:1 * H]
        f = sig[:, 1 * H:2 * H]
        g = tg[:, 2 * H:3 * H]
        o = sig[:, 3 * H:4 * H]
        c_new = f * c_prev + i * g
        h_new = o * jnp.tanh(c_new)
        return h_new, c_new

    def step(t, carry):
        h0, c0, h1, c1, acc = carry
        base = pl.multiple_of(t * N, N)
        xg_t = xg_s[pl.ds(base, N), :]                         # (N, 4H) precomputed
        # layer 0: only the recurrent matmul remains in the loop
        gates0 = xg_t + jnp.dot(h0, whh0_ref[...],
                                preferred_element_type=jnp.float32)
        h0n, c0n = gates_to_hc(gates0, c0)
        # layer 1: fused [W_ih1^T ; W_hh1^T] -> single matmul per step
        inp1 = jnp.concatenate([h0n, h1], axis=1)              # (N, 2H)
        gates1 = (jnp.dot(inp1, w1_ref[...],
                          preferred_element_type=jnp.float32)
                  + b1_ref[...])
        h1n, c1n = gates_to_hc(gates1, c1)
        # fc over flattened (N, T*H): accumulate this timestep's W_fc slab.
        acc = acc + jnp.dot(h1n, wfc_ref[t],
                            preferred_element_type=jnp.float32)
        return h0n, c0n, h1n, c1n, acc

    zeros_h = jnp.zeros((N, H), jnp.float32)
    acc0 = jnp.zeros((N, C_pad), jnp.float32)
    _, _, _, _, acc = lax.fori_loop(
        0, seq_len, step,
        (zeros_h, zeros_h, zeros_h, zeros_h, acc0),
        unroll=True)

    out_ref[...] = (acc + bfc_ref[...]).astype(out_ref.dtype)


# --------------------------------------- wrapper ---------------------------------------
def rnn_lstm_forward(x, params):
    """x: (N, T, D) float32 -> logits (N, NUM_CLASSES) float32."""
    N, T, D = x.shape
    H = HIDDEN_SIZE
    C = NUM_CLASSES
    N_pad = max(8, ((N + 7) // 8) * 8)     # sublane-dense batch
    C_pad = 128                            # lane-dense logits

    # pad batch to sublane multiple, go time-major, flatten (T, N_pad, D) -> (T*N_pad, D)
    x_p = jnp.zeros((N_pad, T, D), jnp.float32).at[:N].set(x.astype(jnp.float32))
    x_flat = jnp.transpose(x_p, (1, 0, 2)).reshape(T * N_pad, D)

    wih0_t = params["w_ih0"].T                                    # (D, 4H)
    whh0_t = params["w_hh0"].T                                    # (H, 4H)
    b0 = (params["b_ih0"] + params["b_hh0"]).reshape(1, 4 * H)
    # fused layer-1 weight: [W_ih1^T ; W_hh1^T] -> (2H, 4H)
    w1 = jnp.concatenate([params["w_ih1"].T, params["w_hh1"].T], axis=0)
    b1 = (params["b_ih1"] + params["b_hh1"]).reshape(1, 4 * H)
    # fc weight (C, T*H) -> per-timestep slabs (T, H, C), padded lane-dense to C_pad
    wfc = jnp.transpose(params["w_fc"].reshape(C, T, H), (1, 2, 0))   # (T, H, C)
    wfc = jnp.zeros((T, H, C_pad), jnp.float32).at[:, :, :C].set(wfc)
    bfc = jnp.zeros((1, C_pad), jnp.float32).at[0, :C].set(params["b_fc"])

    kernel = functools.partial(lstm_fc_kernel, seq_len=T, n_pad=N_pad, hidden=H)
    vmem = pl.BlockSpec(memory_space=pltpu.MemorySpace.VMEM)

    out = pl.pallas_call(
        kernel,
        out_shape=jax.ShapeDtypeStruct((N_pad, C_pad), jnp.float32),
        in_specs=[vmem] * 8,
        out_specs=vmem,
        scratch_shapes=[
            pltpu.VMEM((T * N_pad, 4 * H), jnp.float32),   # hoisted x @ W_ih0^T + b0
        ],
    )(x_flat, wih0_t, whh0_t, b0, w1, b1, wfc, bfc)

    return out[:N, :C]


# --------------------------- deterministic parameter init ---------------------------
def init_params(key):
    H, D, T, C = HIDDEN_SIZE, INPUT_SIZE, SEQUENCE_LENGTH, NUM_CLASSES
    k = 1.0 / jnp.sqrt(jnp.float32(H))
    names_shapes = [
        ("w_ih0", (4 * H, D)), ("w_hh0", (4 * H, H)),
        ("b_ih0", (4 * H,)), ("b_hh0", (4 * H,)),
        ("w_ih1", (4 * H, H)), ("w_hh1", (4 * H, H)),
        ("b_ih1", (4 * H,)), ("b_hh1", (4 * H,)),
        ("w_fc", (C, T * H)), ("b_fc", (C,)),
    ]
    params = {}
    keys = jax.random.split(key, len(names_shapes))
    for sub, (name, shape) in zip(keys, names_shapes):
        params[name] = jax.random.uniform(
            sub, shape, dtype=jnp.float32, minval=-k, maxval=k)
    return params


# -------------------------------- pure-JAX reference --------------------------------
def reference_forward(x, params):
    H = HIDDEN_SIZE
    N, T, D = x.shape

    def cell(x_t, h, c, wih, whh, bih, bhh):
        gates = x_t @ wih.T + bih + h @ whh.T + bhh
        i = jax.nn.sigmoid(gates[:, 0 * H:1 * H])
        f = jax.nn.sigmoid(gates[:, 1 * H:2 * H])
        g = jnp.tanh(gates[:, 2 * H:3 * H])
        o = jax.nn.sigmoid(gates[:, 3 * H:4 * H])
        c_new = f * c + i * g
        return o * jnp.tanh(c_new), c_new

    h0 = jnp.zeros((N, H), jnp.float32)
    c0 = jnp.zeros((N, H), jnp.float32)
    h1 = jnp.zeros((N, H), jnp.float32)
    c1 = jnp.zeros((N, H), jnp.float32)
    outs = []
    for t in range(T):
        h0, c0 = cell(x[:, t, :], h0, c0,
                      params["w_ih0"], params["w_hh0"],
                      params["b_ih0"], params["b_hh0"])
        h1, c1 = cell(h0, h1, c1,
                      params["w_ih1"], params["w_hh1"],
                      params["b_ih1"], params["b_hh1"])
        outs.append(h1)
    out = jnp.stack(outs, axis=1).reshape(N, -1)   # (N, T*H)
    return out @ params["w_fc"].T + params["b_fc"]


# --------------------------------------- main ---------------------------------------
if __name__ == "__main__":
    key = jax.random.PRNGKey(0)
    k_x, k_p = jax.random.split(key)
    x = jax.random.normal(
        k_x, (BATCH, SEQUENCE_LENGTH, INPUT_SIZE), dtype=jnp.float32)
    params = init_params(k_p)

    logits = rnn_lstm_forward(x, params)
    logits = jax.block_until_ready(logits)

    ref = reference_forward(x, params)
    assert logits.shape == (BATCH, NUM_CLASSES)
    assert jnp.allclose(logits, ref, atol=1e-4, rtol=1e-4), (
        "Pallas kernel output mismatch vs reference")

    print("KERNEL_OK")
</pallas_src>

<mosaic_0001>
module attributes {stable_mosaic.version = 11 : i64} {
  func.func @lstm_fc_kernel(%arg0: memref<224x28xf32, #tpu.memory_space<vmem>>, %arg1: memref<28x128xf32, #tpu.memory_space<vmem>>, %arg2: memref<32x128xf32, #tpu.memory_space<vmem>>, %arg3: memref<1x128xf32, #tpu.memory_space<vmem>>, %arg4: memref<64x128xf32, #tpu.memory_space<vmem>>, %arg5: memref<1x128xf32, #tpu.memory_space<vmem>>, %arg6: memref<28x32x128xf32, #tpu.memory_space<vmem>>, %arg7: memref<1x128xf32, #tpu.memory_space<vmem>>, %arg8: memref<8x128xf32, #tpu.memory_space<vmem>>, %arg9: memref<224x128xf32, #tpu.memory_space<vmem>>) attributes {dimension_semantics = [], scalar_prefetch = 0 : i64, scratch_operands = 1 : i64, tpu.core_type = #tpu.core_type<tc>} {
    %c0 = arith.constant 0 : index
    %c0_0 = arith.constant 0 : index
    %0 = vector.load %arg0[%c0, %c0_0] : memref<224x28xf32, #tpu.memory_space<vmem>>, vector<224x28xf32>
    %c0_1 = arith.constant 0 : index
    %c0_2 = arith.constant 0 : index
    %1 = vector.load %arg1[%c0_1, %c0_2] : memref<28x128xf32, #tpu.memory_space<vmem>>, vector<28x128xf32>
    %cst = arith.constant dense<0.000000e+00> : vector<224x128xf32>
    %2 = tpu.matmul %0, %1, %cst {dimension_numbers = #tpu.dot_dimension_numbers<[1], [0], [0], [1], [0, 0, 1, 1], [], []>} : vector<224x28xf32>, vector<28x128xf32>, vector<224x128xf32> -> vector<224x128xf32>
    %c0_3 = arith.constant 0 : index
    %c0_4 = arith.constant 0 : index
    %3 = vector.load %arg3[%c0_3, %c0_4] : memref<1x128xf32, #tpu.memory_space<vmem>>, vector<1x128xf32>
    %4 = vector.broadcast %3 : vector<1x128xf32> to vector<224x128xf32>
    %5 = arith.addf %2, %4 : vector<224x128xf32>
    %c0_5 = arith.constant 0 : index
    %c0_6 = arith.constant 0 : index
    %6 = vector.load %arg9[%c0_5, %c0_6] : memref<224x128xf32, #tpu.memory_space<vmem>>, vector<224x128xf32>
    tpu.vector_store %arg9[%c0_5, %c0_6], %5 {strides = array<i32>} : memref<224x128xf32, #tpu.memory_space<vmem>>, vector<224x128xf32>,
    %cst_7 = arith.constant 0.000000e+00 : f32
    %7 = vector.broadcast %cst_7 : f32 to vector<8x32xf32>
    %cst_8 = arith.constant 0.000000e+00 : f32
    %8 = vector.broadcast %cst_8 : f32 to vector<8x128xf32>
    %c0_i32 = arith.constant 0 : i32
    %c8_i32 = arith.constant 8 : i32
    %9 = arith.muli %c0_i32, %c8_i32 : i32
    %10 = tpu.assume_multiple %9, 8 : i32
    %11 = arith.index_cast %10 : i32 to index
    %c0_9 = arith.constant 0 : index
    %12 = vector.load %arg9[%11, %c0_9] : memref<224x128xf32, #tpu.memory_space<vmem>>, vector<8x128xf32>
    %c0_10 = arith.constant 0 : index
    %c0_11 = arith.constant 0 : index
    %13 = vector.load %arg2[%c0_10, %c0_11] : memref<32x128xf32, #tpu.memory_space<vmem>>, vector<32x128xf32>
    %cst_12 = arith.constant dense<0.000000e+00> : vector<8x128xf32>
    %14 = tpu.matmul %7, %13, %cst_12 {dimension_numbers = #tpu.dot_dimension_numbers<[1], [0], [0], [1], [0, 0, 1, 1], [], []>} : vector<8x32xf32>, vector<32x128xf32>, vector<8x128xf32> -> vector<8x128xf32>
    %15 = arith.addf %12, %14 : vector<8x128xf32>
    %16 = arith.negf %15 : vector<8x128xf32>
    %17 = math.exp %16 : vector<8x128xf32>
    %cst_13 = arith.constant 1.000000e+00 : f32
    %18 = vector.broadcast %cst_13 : f32 to vector<8x128xf32>
    %19 = arith.addf %18, %17 : vector<8x128xf32>
    %20 = arith.divf %18, %19 : vector<8x128xf32>
    %21 = math.tanh %15 : vector<8x128xf32>
    %22 = vector.extract_strided_slice %20 {offsets = [0, 0], sizes = [8, 32], strides = [1, 1]} : vector<8x128xf32> to vector<8x32xf32>
    %23 = vector.extract_strided_slice %20 {offsets = [0, 32], sizes = [8, 32], strides = [1, 1]} : vector<8x128xf32> to vector<8x32xf32>
    %24 = vector.extract_strided_slice %21 {offsets = [0, 64], sizes = [8, 32], strides = [1, 1]} : vector<8x128xf32> to vector<8x32xf32>
    %25 = vector.extract_strided_slice %20 {offsets = [0, 96], sizes = [8, 32], strides = [1, 1]} : vector<8x128xf32> to vector<8x32xf32>
    %26 = arith.mulf %23, %7 : vector<8x32xf32>
    %27 = arith.mulf %22, %24 : vector<8x32xf32>
    %28 = arith.addf %26, %27 : vector<8x32xf32>
    %29 = math.tanh %28 : vector<8x32xf32>
    %30 = arith.mulf %25, %29 : vector<8x32xf32>
    %31 = tpu.concatenate %30, %7 in 1 : vector<8x32xf32>, vector<8x32xf32> -> vector<8x64xf32>
    %c0_14 = arith.constant 0 : index
    %c0_15 = arith.constant 0 : index
    %32 = vector.load %arg4[%c0_14, %c0_15] : memref<64x128xf32, #tpu.memory_space<vmem>>, vector<64x128xf32>
    %cst_16 = arith.constant dense<0.000000e+00> : vector<8x128xf32>
    %33 = tpu.matmul %31, %32, %cst_16 {dimension_numbers = #tpu.dot_dimension_numbers<[1], [0], [0], [1], [0, 0, 1, 1], [], []>} : vector<8x64xf32>, vector<64x128xf32>, vector<8x128xf32> -> vector<8x128xf32>
    %c0_17 = arith.constant 0 : index
    %c0_18 = arith.constant 0 : index
    %34 = vector.load %arg5[%c0_17, %c0_18] : memref<1x128xf32, #tpu.memory_space<vmem>>, vector<1x128xf32>
    %35 = vector.broadcast %34 : vector<1x128xf32> to vector<8x128xf32>
    %36 = arith.addf %33, %35 : vector<8x128xf32>
    %37 = arith.negf %36 : vector<8x128xf32>
    %38 = math.exp %37 : vector<8x128xf32>
    %cst_19 = arith.constant 1.000000e+00 : f32
    %39 = vector.broadcast %cst_19 : f32 to vector<8x128xf32>
    %40 = arith.addf %39, %38 : vector<8x128xf32>
    %41 = arith.divf %39, %40 : vector<8x128xf32>
    %42 = math.tanh %36 : vector<8x128xf32>
    %43 = vector.extract_strided_slice %41 {offsets = [0, 0], sizes = [8, 32], strides = [1, 1]} : vector<8x128xf32> to vector<8x32xf32>
    %44 = vector.extract_strided_slice %41 {offsets = [0, 32], sizes = [8, 32], strides = [1, 1]} : vector<8x128xf32> to vector<8x32xf32>
    %45 = vector.extract_strided_slice %42 {offsets = [0, 64], sizes = [8, 32], strides = [1, 1]} : vector<8x128xf32> to vector<8x32xf32>
    %46 = vector.extract_strided_slice %41 {offsets = [0, 96], sizes = [8, 32], strides = [1, 1]} : vector<8x128xf32> to vector<8x32xf32>
    %47 = arith.mulf %44, %7 : vector<8x32xf32>
    %48 = arith.mulf %43, %45 : vector<8x32xf32>
    %49 = arith.addf %47, %48 : vector<8x32xf32>
    %50 = math.tanh %49 : vector<8x32xf32>
    %51 = arith.mulf %46, %50 : vector<8x32xf32>
    %52 = arith.index_cast %c0_i32 : i32 to index
    %c0_20 = arith.constant 0 : index
    %c0_21 = arith.constant 0 : index
    %53 = vector.load %arg6[%52, %c0_20, %c0_21] : memref<28x32x128xf32, #tpu.memory_space<vmem>>, vector<1x32x128xf32>
    %54 = vector.shape_cast %53 : vector<1x32x128xf32> to vector<32x128xf32>
    %cst_22 = arith.constant dense<0.000000e+00> : vector<8x128xf32>
    %55 = tpu.matmul %51, %54, %cst_22 {dimension_numbers = #tpu.dot_dimension_numbers<[1], [0], [0], [1], [0, 0, 1, 1], [], []>} : vector<8x32xf32>, vector<32x128xf32>, vector<8x128xf32> -> vector<8x128xf32>
    %56 = arith.addf %8, %55 : vector<8x128xf32>
    %c1_i32 = arith.constant 1 : i32
    %c8_i32_23 = arith.constant 8 : i32
    %57 = arith.muli %c1_i32, %c8_i32_23 : i32
    %58 = tpu.assume_multiple %57, 8 : i32
    %59 = arith.index_cast %58 : i32 to index
    %c0_24 = arith.constant 0 : index
    %60 = vector.load %arg9[%59, %c0_24] : memref<224x128xf32, #tpu.memory_space<vmem>>, vector<8x128xf32>
    %c0_25 = arith.constant 0 : index
    %c0_26 = arith.constant 0 : index
    %61 = vector.load %arg2[%c0_25, %c0_26] : memref<32x128xf32, #tpu.memory_space<vmem>>, vector<32x128xf32>
    %cst_27 = arith.constant dense<0.000000e+00> : vector<8x128xf32>
    %62 = tpu.matmul %30, %61, %cst_27 {dimension_numbers = #tpu.dot_dimension_numbers<[1], [0], [0], [1], [0, 0, 1, 1], [], []>} : vector<8x32xf32>, vector<32x128xf32>, vector<8x128xf32> -> vector<8x128xf32>
    %63 = arith.addf %60, %62 : vector<8x128xf32>
    %64 = arith.negf %63 : vector<8x128xf32>
    %65 = math.exp %64 : vector<8x128xf32>
    %cst_28 = arith.constant 1.000000e+00 : f32
    %66 = vector.broadcast %cst_28 : f32 to vector<8x128xf32>
    %67 = arith.addf %66, %65 : vector<8x128xf32>
    %68 = arith.divf %66, %67 : vector<8x128xf32>
    %69 = math.tanh %63 : vector<8x128xf32>
    %70 = vector.extract_strided_slice %68 {offsets = [0, 0], sizes = [8, 32], strides = [1, 1]} : vector<8x128xf32> to vector<8x32xf32>
    %71 = vector.extract_strided_slice %68 {offsets = [0, 32], sizes = [8, 32], strides = [1, 1]} : vector<8x128xf32> to vector<8x32xf32>
    %72 = vector.extract_strided_slice %69 {offsets = [0, 64], sizes = [8, 32], strides = [1, 1]} : vector<8x128xf32> to vector<8x32xf32>
    %73 = vector.extract_strided_slice %68 {offsets = [0, 96], sizes = [8, 32], strides = [1, 1]} : vector<8x128xf32> to vector<8x32xf32>
    %74 = arith.mulf %71, %28 : vector<8x32xf32>
    %75 = arith.mulf %70, %72 : vector<8x32xf32>
    %76 = arith.addf %74, %75 : vector<8x32xf32>
    %77 = math.tanh %76 : vector<8x32xf32>
    %78 = arith.mulf %73, %77 : vector<8x32xf32>
    %79 = tpu.concatenate %78, %51 in 1 : vector<8x32xf32>, vector<8x32xf32> -> vector<8x64xf32>
    %c0_29 = arith.constant 0 : index
    %c0_30 = arith.constant 0 : index
    %80 = vector.load %arg4[%c0_29, %c0_30] : memref<64x128xf32, #tpu.memory_space<vmem>>, vector<64x128xf32>
    %cst_31 = arith.constant dense<0.000000e+00> : vector<8x128xf32>
    %81 = tpu.matmul %79, %80, %cst_31 {dimension_numbers = #tpu.dot_dimension_numbers<[1], [0], [0], [1], [0, 0, 1, 1], [], []>} : vector<8x64xf32>, vector<64x128xf32>, vector<8x128xf32> -> vector<8x128xf32>
    %c0_32 = arith.constant 0 : index
    %c0_33 = arith.constant 0 : index
    %82 = vector.load %arg5[%c0_32, %c0_33] : memref<1x128xf32, #tpu.memory_space<vmem>>, vector<1x128xf32>
    %83 = vector.broadcast %82 : vector<1x128xf32> to vector<8x128xf32>
    %84 = arith.addf %81, %83 : vector<8x128xf32>
    %85 = arith.negf %84 : vector<8x128xf32>
    %86 = math.exp %85 : vector<8x128xf32>
    %cst_34 = arith.constant 1.000000e+00 : f32
    %87 = vector.broadcast %cst_34 : f32 to vector<8x128xf32>
    %88 = arith.addf %87, %86 : vector<8x128xf32>
    %89 = arith.divf %87, %88 : vector<8x128xf32>
    %90 = math.tanh %84 : vector<8x128xf32>
    %91 = vector.extract_strided_slice %89 {offsets = [0, 0], sizes = [8, 32], strides = [1, 1]} : vector<8x128xf32> to vector<8x32xf32>
    %92 = vector.extract_strided_slice %89 {offsets = [0, 32], sizes = [8, 32], strides = [1, 1]} : vector<8x128xf32> to vector<8x32xf32>
    %93 = vector.extract_strided_slice %90 {offsets = [0, 64], sizes = [8, 32], strides = [1, 1]} : vector<8x128xf32> to vector<8x32xf32>
    %94 = vector.extract_strided_slice %89 {offsets = [0, 96], sizes = [8, 32], strides = [1, 1]} : vector<8x128xf32> to vector<8x32xf32>
    %95 = arith.mulf %92, %49 : vector<8x32xf32>
    %96 = arith.mulf %91, %93 : vector<8x32xf32>
    %97 = arith.addf %95, %96 : vector<8x32xf32>
    %98 = math.tanh %97 : vector<8x32xf32>
    %99 = arith.mulf %94, %98 : vector<8x32xf32>
    %100 = arith.index_cast %c1_i32 : i32 to index
    %c0_35 = arith.constant 0 : index
    %c0_36 = arith.constant 0 : index
    %101 = vector.load %arg6[%100, %c0_35, %c0_36] : memref<28x32x128xf32, #tpu.memory_space<vmem>>, vector<1x32x128xf32>
    %102 = vector.shape_cast %101 : vector<1x32x128xf32> to vector<32x128xf32>
    %cst_37 = arith.constant dense<0.000000e+00> : vector<8x128xf32>
    %103 = tpu.matmul %99, %102, %cst_37 {dimension_numbers = #tpu.dot_dimension_numbers<[1], [0], [0], [1], [0, 0, 1, 1], [], []>} : vector<8x32xf32>, vector<32x128xf32>, vector<8x128xf32> -> vector<8x128xf32>
    %104 = arith.addf %56, %103 : vector<8x128xf32>
    %c2_i32 = arith.constant 2 : i32
    %c8_i32_38 = arith.constant 8 : i32
    %105 = arith.muli %c2_i32, %c8_i32_38 : i32
    %106 = tpu.assume_multiple %105, 8 : i32
    %107 = arith.index_cast %106 : i32 to index
    %c0_39 = arith.constant 0 : index
    %108 = vector.load %arg9[%107, %c0_39] : memref<224x128xf32, #tpu.memory_space<vmem>>, vector<8x128xf32>
    %c0_40 = arith.constant 0 : index
    %c0_41 = arith.constant 0 : index
    %109 = vector.load %arg2[%c0_40, %c0_41] : memref<32x128xf32, #tpu.memory_space<vmem>>, vector<32x128xf32>
    %cst_42 = arith.constant dense<0.000000e+00> : vector<8x128xf32>
    %110 = tpu.matmul %78, %109, %cst_42 {dimension_numbers = #tpu.dot_dimension_numbers<[1], [0], [0], [1], [0, 0, 1, 1], [], []>} : vector<8x32xf32>, vector<32x128xf32>, vector<8x128xf32> -> vector<8x128xf32>
    %111 = arith.addf %108, %110 : vector<8x128xf32>
    %112 = arith.negf %111 : vector<8x128xf32>
    %113 = math.exp %112 : vector<8x128xf32>
    %cst_43 = arith.constant 1.000000e+00 : f32
    %114 = vector.broadcast %cst_43 : f32 to vector<8x128xf32>
    %115 = arith.addf %114, %113 : vector<8x128xf32>
    %116 = arith.divf %114, %115 : vector<8x128xf32>
    %117 = math.tanh %111 : vector<8x128xf32>
    %118 = vector.extract_strided_slice %116 {offsets = [0, 0], sizes = [8, 32], strides = [1, 1]} : vector<8x128xf32> to vector<8x32xf32>
    %119 = vector.extract_strided_slice %116 {offsets = [0, 32], sizes = [8, 32], strides = [1, 1]} : vector<8x128xf32> to vector<8x32xf32>
    %120 = vector.extract_strided_slice %117 {offsets = [0, 64], sizes = [8, 32], strides = [1, 1]} : vector<8x128xf32> to vector<8x32xf32>
    %121 = vector.extract_strided_slice %116 {offsets = [0, 96], sizes = [8, 32], strides = [1, 1]} : vector<8x128xf32> to vector<8x32xf32>
    %122 = arith.mulf %119, %76 : vector<8x32xf32>
    %123 = arith.mulf %118, %120 : vector<8x32xf32>
    %124 = arith.addf %122, %123 : vector<8x32xf32>
    %125 = math.tanh %124 : vector<8x32xf32>
    %126 = arith.mulf %121, %125 : vector<8x32xf32>
    %127 = tpu.concatenate %126, %99 in 1 : vector<8x32xf32>, vector<8x32xf32> -> vector<8x64xf32>
    %c0_44 = arith.constant 0 : index
    %c0_45 = arith.constant 0 : index
    %128 = vector.load %arg4[%c0_44, %c0_45] : memref<64x128xf32, #tpu.memory_space<vmem>>, vector<64x128xf32>
    %cst_46 = arith.constant dense<0.000000e+00> : vector<8x128xf32>
    %129 = tpu.matmul %127, %128, %cst_46 {dimension_numbers = #tpu.dot_dimension_numbers<[1], [0], [0], [1], [0, 0, 1, 1], [], []>} : vector<8x64xf32>, vector<64x128xf32>, vector<8x128xf32> -> vector<8x128xf32>
    %c0_47 = arith.constant 0 : index
    %c0_48 = arith.constant 0 : index
    %130 = vector.load %arg5[%c0_47, %c0_48] : memref<1x128xf32, #tpu.memory_space<vmem>>, vector<1x128xf32>
    %131 = vector.broadcast %130 : vector<1x128xf32> to vector<8x128xf32>
    %132 = arith.addf %129, %131 : vector<8x128xf32>
    %133 = arith.negf %132 : vector<8x128xf32>
    %134 = math.exp %133 : vector<8x128xf32>
    %cst_49 = arith.constant 1.000000e+00 : f32
    %135 = vector.broadcast %cst_49 : f32 to vector<8x128xf32>
    %136 = arith.addf %135, %134 : vector<8x128xf32>
    %137 = arith.divf %135, %136 : vector<8x128xf32>
    %138 = math.tanh %132 : vector<8x128xf32>
    %139 = vector.extract_strided_slice %137 {offsets = [0, 0], sizes = [8, 32], strides = [1, 1]} : vector<8x128xf32> to vector<8x32xf32>
    %140 = vector.extract_strided_slice %137 {offsets = [0, 32], sizes = [8, 32], strides = [1, 1]} : vector<8x128xf32> to vector<8x32xf32>
    %141 = vector.extract_strided_slice %138 {offsets = [0, 64], sizes = [8, 32], strides = [1, 1]} : vector<8x128xf32> to vector<8x32xf32>
    %142 = vector.extract_strided_slice %137 {offsets = [0, 96], sizes = [8, 32], strides = [1, 1]} : vector<8x128xf32> to vector<8x32xf32>
    %143 = arith.mulf %140, %97 : vector<8x32xf32>
    %144 = arith.mulf %139, %141 : vector<8x32xf32>
    %145 = arith.addf %143, %144 : vector<8x32xf32>
    %146 = math.tanh %145 : vector<8x32xf32>
    %147 = arith.mulf %142, %146 : vector<8x32xf32>
    %148 = arith.index_cast %c2_i32 : i32 to index
    %c0_50 = arith.constant 0 : index
    %c0_51 = arith.constant 0 : index
    %149 = vector.load %arg6[%148, %c0_50, %c0_51] : memref<28x32x128xf32, #tpu.memory_space<vmem>>, vector<1x32x128xf32>
    %150 = vector.shape_cast %149 : vector<1x32x128xf32> to vector<32x128xf32>
    %cst_52 = arith.constant dense<0.000000e+00> : vector<8x128xf32>
    %151 = tpu.matmul %147, %150, %cst_52 {dimension_numbers = #tpu.dot_dimension_numbers<[1], [0], [0], [1], [0, 0, 1, 1], [], []>} : vector<8x32xf32>, vector<32x128xf32>, vector<8x128xf32> -> vector<8x128xf32>
    %152 = arith.addf %104, %151 : vector<8x128xf32>
    %c3_i32 = arith.constant 3 : i32
    %c8_i32_53 = arith.constant 8 : i32
    %153 = arith.muli %c3_i32, %c8_i32_53 : i32
    %154 = tpu.assume_multiple %153, 8 : i32
    %155 = arith.index_cast %154 : i32 to index
    %c0_54 = arith.constant 0 : index
    %156 = vector.load %arg9[%155, %c0_54] : memref<224x128xf32, #tpu.memory_space<vmem>>, vector<8x128xf32>
    %c0_55 = arith.constant 0 : index
    %c0_56 = arith.constant 0 : index
    %157 = vector.load %arg2[%c0_55, %c0_56] : memref<32x128xf32, #tpu.memory_space<vmem>>, vector<32x128xf32>
    %cst_57 = arith.constant dense<0.000000e+00> : vector<8x128xf32>
    %158 = tpu.matmul %126, %157, %cst_57 {dimension_numbers = #tpu.dot_dimension_numbers<[1], [0], [0], [1], [0, 0, 1, 1], [], []>} : vector<8x32xf32>, vector<32x128xf32>, vector<8x128xf32> -> vector<8x128xf32>
    %159 = arith.addf %156, %158 : vector<8x128xf32>
    %160 = arith.negf %159 : vector<8x128xf32>
    %161 = math.exp %160 : vector<8x128xf32>
    %cst_58 = arith.constant 1.000000e+00 : f32
    %162 = vector.broadcast %cst_58 : f32 to vector<8x128xf32>
    %163 = arith.addf %162, %161 : vector<8x128xf32>
    %164 = arith.divf %162, %163 : vector<8x128xf32>
    %165 = math.tanh %159 : vector<8x128xf32>
    %166 = vector.extract_strided_slice %164 {offsets = [0, 0], sizes = [8, 32], strides = [1, 1]} : vector<8x128xf32> to vector<8x32xf32>
    %167 = vector.extract_strided_slice %164 {offsets = [0, 32], sizes = [8, 32], strides = [1, 1]} : vector<8x128xf32> to vector<8x32xf32>
    %168 = vector.extract_strided_slice %165 {offsets = [0, 64], sizes = [8, 32], strides = [1, 1]} : vector<8x128xf32> to vector<8x32xf32>
    %169 = vector.extract_strided_slice %164 {offsets = [0, 96], sizes = [8, 32], strides = [1, 1]} : vector<8x128xf32> to vector<8x32xf32>
    %170 = arith.mulf %167, %124 : vector<8x32xf32>
    %171 = arith.mulf %166, %168 : vector<8x32xf32>
    %172 = arith.addf %170, %171 : vector<8x32xf32>
    %173 = math.tanh %172 : vector<8x32xf32>
    %174 = arith.mulf %169, %173 : vector<8x32xf32>
    %175 = tpu.concatenate %174, %147 in 1 : vector<8x32xf32>, vector<8x32xf32> -> vector<8x64xf32>
    %c0_59 = arith.constant 0 : index
    %c0_60 = arith.constant 0 : index
    %176 = vector.load %arg4[%c0_59, %c0_60] : memref<64x128xf32, #tpu.memory_space<vmem>>, vector<64x128xf32>
    %cst_61 = arith.constant dense<0.000000e+00> : vector<8x128xf32>
    %177 = tpu.matmul %175, %176, %cst_61 {dimension_numbers = #tpu.dot_dimension_numbers<[1], [0], [0], [1], [0, 0, 1, 1], [], []>} : vector<8x64xf32>, vector<64x128xf32>, vector<8x128xf32> -> vector<8x128xf32>
    %c0_62 = arith.constant 0 : index
    %c0_63 = arith.constant 0 : index
    %178 = vector.load %arg5[%c0_62, %c0_63] : memref<1x128xf32, #tpu.memory_space<vmem>>, vector<1x128xf32>
    %179 = vector.broadcast %178 : vector<1x128xf32> to vector<8x128xf32>
    %180 = arith.addf %177, %179 : vector<8x128xf32>
    %181 = arith.negf %180 : vector<8x128xf32>
    %182 = math.exp %181 : vector<8x128xf32>
    %cst_64 = arith.constant 1.000000e+00 : f32
    %183 = vector.broadcast %cst_64 : f32 to vector<8x128xf32>
    %184 = arith.addf %183, %182 : vector<8x128xf32>
    %185 = arith.divf %183, %184 : vector<8x128xf32>
    %186 = math.tanh %180 : vector<8x128xf32>
    %187 = vector.extract_strided_slice %185 {offsets = [0, 0], sizes = [8, 32], strides = [1, 1]} : vector<8x128xf32> to vector<8x32xf32>
    %188 = vector.extract_strided_slice %185 {offsets = [0, 32], sizes = [8, 32], strides = [1, 1]} : vector<8x128xf32> to vector<8x32xf32>
    %189 = vector.extract_strided_slice %186 {offsets = [0, 64], sizes = [8, 32], strides = [1, 1]} : vector<8x128xf32> to vector<8x32xf32>
    %190 = vector.extract_strided_slice %185 {offsets = [0, 96], sizes = [8, 32], strides = [1, 1]} : vector<8x128xf32> to vector<8x32xf32>
    %191 = arith.mulf %188, %145 : vector<8x32xf32>
    %192 = arith.mulf %187, %189 : vector<8x32xf32>
    %193 = arith.addf %191, %192 : vector<8x32xf32>
    %194 = math.tanh %193 : vector<8x32xf32>
    %195 = arith.mulf %190, %194 : vector<8x32xf32>
    %196 = arith.index_cast %c3_i32 : i32 to index
    %c0_65 = arith.constant 0 : index
    %c0_66 = arith.constant 0 : index
    %197 = vector.load %arg6[%196, %c0_65, %c0_66] : memref<28x32x128xf32, #tpu.memory_space<vmem>>, vector<1x32x128xf32>
    %198 = vector.shape_cast %197 : vector<1x32x128xf32> to vector<32x128xf32>
    %cst_67 = arith.constant dense<0.000000e+00> : vector<8x128xf32>
    %199 = tpu.matmul %195, %198, %cst_67 {dimension_numbers = #tpu.dot_dimension_numbers<[1], [0], [0], [1], [0, 0, 1, 1], [], []>} : vector<8x32xf32>, vector<32x128xf32>, vector<8x128xf32> -> vector<8x128xf32>
    %200 = arith.addf %152, %199 : vector<8x128xf32>
    %c4_i32 = arith.constant 4 : i32
    %c8_i32_68 = arith.constant 8 : i32
    %201 = arith.muli %c4_i32, %c8_i32_68 : i32
    %202 = tpu.assume_multiple %201, 8 : i32
    %203 = arith.index_cast %202 : i32 to index
    %c0_69 = arith.constant 0 : index
    %204 = vector.load %arg9[%203, %c0_69] : memref<224x128xf32, #tpu.memory_space<vmem>>, vector<8x128xf32>
    %c0_70 = arith.constant 0 : index
    %c0_71 = arith.constant 0 : index
    %205 = vector.load %arg2[%c0_70, %c0_71] : memref<32x128xf32, #tpu.memory_space<vmem>>, vector<32x128xf32>
    %cst_72 = arith.constant dense<0.000000e+00> : vector<8x128xf32>
    %206 = tpu.matmul %174, %205, %cst_72 {dimension_numbers = #tpu.dot_dimension_numbers<[1], [0], [0], [1], [0, 0, 1, 1], [], []>} : vector<8x32xf32>, vector<32x128xf32>, vector<8x128xf32> -> vector<8x128xf32>
    %207 = arith.addf %204, %206 : vector<8x128xf32>
    %208 = arith.negf %207 : vector<8x128xf32>
    %209 = math.exp %208 : vector<8x128xf32>
    %cst_73 = arith.constant 1.000000e+00 : f32
    %210 = vector.broadcast %cst_73 : f32 to vector<8x128xf32>
    %211 = arith.addf %210, %209 : vector<8x128xf32>
    %212 = arith.divf %210, %211 : vector<8x128xf32>
    %213 = math.tanh %207 : vector<8x128xf32>
    %214 = vector.extract_strided_slice %212 {offsets = [0, 0], sizes = [8, 32], strides = [1, 1]} : vector<8x128xf32> to vector<8x32xf32>
    %215 = vector.extract_strided_slice %212 {offsets = [0, 32], sizes = [8, 32], strides = [1, 1]} : vector<8x128xf32> to vector<8x32xf32>
    %216 = vector.extract_strided_slice %213 {offsets = [0, 64], sizes = [8, 32], strides = [1, 1]} : vector<8x128xf32> to vector<8x32xf32>
    %217 = vector.extract_strided_slice %212 {offsets = [0, 96], sizes = [8, 32], strides = [1, 1]} : vector<8x128xf32> to vector<8x32xf32>
    %218 = arith.mulf %215, %172 : vector<8x32xf32>
    %219 = arith.mulf %214, %216 : vector<8x32xf32>
    %220 = arith.addf %218, %219 : vector<8x32xf32>
    %221 = math.tanh %220 : vector<8x32xf32>
    %222 = arith.mulf %217, %221 : vector<8x32xf32>
    %223 = tpu.concatenate %222, %195 in 1 : vector<8x32xf32>, vector<8x32xf32> -> vector<8x64xf32>
    %c0_74 = arith.constant 0 : index
    %c0_75 = arith.constant 0 : index
    %224 = vector.load %arg4[%c0_74, %c0_75] : memref<64x128xf32, #tpu.memory_space<vmem>>, vector<64x128xf32>
    %cst_76 = arith.constant dense<0.000000e+00> : vector<8x128xf32>
    %225 = tpu.matmul %223, %224, %cst_76 {dimension_numbers = #tpu.dot_dimension_numbers<[1], [0], [0], [1], [0, 0, 1, 1], [], []>} : vector<8x64xf32>, vector<64x128xf32>, vector<8x128xf32> -> vector<8x128xf32>
    %c0_77 = arith.constant 0 : index
    %c0_78 = arith.constant 0 : index
    %226 = vector.load %arg5[%c0_77, %c0_78] : memref<1x128xf32, #tpu.memory_space<vmem>>, vector<1x128xf32>
    %227 = vector.broadcast %226 : vector<1x128xf32> to vector<8x128xf32>
    %228 = arith.addf %225, %227 : vector<8x128xf32>
    %229 = arith.negf %228 : vector<8x128xf32>
    %230 = math.exp %229 : vector<8x128xf32>
    %cst_79 = arith.constant 1.000000e+00 : f32
    %231 = vector.broadcast %cst_79 : f32 to vector<8x128xf32>
    %232 = arith.addf %231, %230 : vector<8x128xf32>
    %233 = arith.divf %231, %232 : vector<8x128xf32>
    %234 = math.tanh %228 : vector<8x128xf32>
    %235 = vector.extract_strided_slice %233 {offsets = [0, 0], sizes = [8, 32], strides = [1, 1]} : vector<8x128xf32> to vector<8x32xf32>
    %236 = vector.extract_strided_slice %233 {offsets = [0, 32], sizes = [8, 32], strides = [1, 1]} : vector<8x128xf32> to vector<8x32xf32>
    %237 = vector.extract_strided_slice %234 {offsets = [0, 64], sizes = [8, 32], strides = [1, 1]} : vector<8x128xf32> to vector<8x32xf32>
    %238 = vector.extract_strided_slice %233 {offsets = [0, 96], sizes = [8, 32], strides = [1, 1]} : vector<8x128xf32> to vector<8x32xf32>
    %239 = arith.mulf %236, %193 : vector<8x32xf32>
    %240 = arith.mulf %235, %237 : vector<8x32xf32>
    %241 = arith.addf %239, %240 : vector<8x32xf32>
    %242 = math.tanh %241 : vector<8x32xf32>
    %243 = arith.mulf %238, %242 : vector<8x32xf32>
    %244 = arith.index_cast %c4_i32 : i32 to index
    %c0_80 = arith.constant 0 : index
    %c0_81 = arith.constant 0 : index
    %245 = vector.load %arg6[%244, %c0_80, %c0_81] : memref<28x32x128xf32, #tpu.memory_space<vmem>>, vector<1x32x128xf32>
    %246 = vector.shape_cast %245 : vector<1x32x128xf32> to vector<32x128xf32>
    %cst_82 = arith.constant dense<0.000000e+00> : vector<8x128xf32>
    %247 = tpu.matmul %243, %246, %cst_82 {dimension_numbers = #tpu.dot_dimension_numbers<[1], [0], [0], [1], [0, 0, 1, 1], [], []>} : vector<8x32xf32>, vector<32x128xf32>, vector<8x128xf32> -> vector<8x128xf32>
    %248 = arith.addf %200, %247 : vector<8x128xf32>
    %c5_i32 = arith.constant 5 : i32
    %c8_i32_83 = arith.constant 8 : i32
    %249 = arith.muli %c5_i32, %c8_i32_83 : i32
    %250 = tpu.assume_multiple %249, 8 : i32
    %251 = arith.index_cast %250 : i32 to index
    %c0_84 = arith.constant 0 : index
    %252 = vector.load %arg9[%251, %c0_84] : memref<224x128xf32, #tpu.memory_space<vmem>>, vector<8x128xf32>
    %c0_85 = arith.constant 0 : index
    %c0_86 = arith.constant 0 : index
    %253 = vector.load %arg2[%c0_85, %c0_86] : memref<32x128xf32, #tpu.memory_space<vmem>>, vector<32x128xf32>
    %cst_87 = arith.constant dense<0.000000e+00> : vector<8x128xf32>
    %254 = tpu.matmul %222, %253, %cst_87 {dimension_numbers = #tpu.dot_dimension_numbers<[1], [0], [0], [1], [0, 0, 1, 1], [], []>} : vector<8x32xf32>, vector<32x128xf32>, vector<8x128xf32> -> vector<8x128xf32>
    %255 = arith.addf %252, %254 : vector<8x128xf32>
    %256 = arith.negf %255 : vector<8x128xf32>
    %257 = math.exp %256 : vector<8x128xf32>
    %cst_88 = arith.constant 1.000000e+00 : f32
    %258 = vector.broadcast %cst_88 : f32 to vector<8x128xf32>
    %259 = arith.addf %258, %257 : vector<8x128xf32>
    %260 = arith.divf %258, %259 : vector<8x128xf32>
    %261 = math.tanh %255 : vector<8x128xf32>
    %262 = vector.extract_strided_slice %260 {offsets = [0, 0], sizes = [8, 32], strides = [1, 1]} : vector<8x128xf32> to vector<8x32xf32>
    %263 = vector.extract_strided_slice %260 {offsets = [0, 32], sizes = [8, 32], strides = [1, 1]} : vector<8x128xf32> to vector<8x32xf32>
    %264 = vector.extract_strided_slice %261 {offsets = [0, 64], sizes = [8, 32], strides = [1, 1]} : vector<8x128xf32> to vector<8x32xf32>
    %265 = vector.extract_strided_slice %260 {offsets = [0, 96], sizes = [8, 32], strides = [1, 1]} : vector<8x128xf32> to vector<8x32xf32>
    %266 = arith.mulf %263, %220 : vector<8x32xf32>
    %267 = arith.mulf %262, %264 : vector<8x32xf32>
    %268 = arith.addf %266, %267 : vector<8x32xf32>
    %269 = math.tanh %268 : vector<8x32xf32>
    %270 = arith.mulf %265, %269 : vector<8x32xf32>
    %271 = tpu.concatenate %270, %243 in 1 : vector<8x32xf32>, vector<8x32xf32> -> vector<8x64xf32>
    %c0_89 = arith.constant 0 : index
    %c0_90 = arith.constant 0 : index
    %272 = vector.load %arg4[%c0_89, %c0_90] : memref<64x128xf32, #tpu.memory_space<vmem>>, vector<64x128xf32>
    %cst_91 = arith.constant dense<0.000000e+00> : vector<8x128xf32>
    %273 = tpu.matmul %271, %272, %cst_91 {dimension_numbers = #tpu.dot_dimension_numbers<[1], [0], [0], [1], [0, 0, 1, 1], [], []>} : vector<8x64xf32>, vector<64x128xf32>, vector<8x128xf32> -> vector<8x128xf32>
    %c0_92 = arith.constant 0 : index
    %c0_93 = arith.constant 0 : index
    %274 = vector.load %arg5[%c0_92, %c0_93] : memref<1x128xf32, #tpu.memory_space<vmem>>, vector<1x128xf32>
    %275 = vector.broadcast %274 : vector<1x128xf32> to vector<8x128xf32>
    %276 = arith.addf %273, %275 : vector<8x128xf32>
    %277 = arith.negf %276 : vector<8x128xf32>
    %278 = math.exp %277 : vector<8x128xf32>
    %cst_94 = arith.constant 1.000000e+00 : f32
    %279 = vector.broadcast %cst_94 : f32 to vector<8x128xf32>
    %280 = arith.addf %279, %278 : vector<8x128xf32>
    %281 = arith.divf %279, %280 : vector<8x128xf32>
    %282 = math.tanh %276 : vector<8x128xf32>
    %283 = vector.extract_strided_slice %281 {offsets = [0, 0], sizes = [8, 32], strides = [1, 1]} : vector<8x128xf32> to vector<8x32xf32>
    %284 = vector.extract_strided_slice %281 {offsets = [0, 32], sizes = [8, 32], strides = [1, 1]} : vector<8x128xf32> to vector<8x32xf32>
    %285 = vector.extract_strided_slice %282 {offsets = [0, 64], sizes = [8, 32], strides = [1, 1]} : vector<8x128xf32> to vector<8x32xf32>
    %286 = vector.extract_strided_slice %281 {offsets = [0, 96], sizes = [8, 32], strides = [1, 1]} : vector<8x128xf32> to vector<8x32xf32>
    %287 = arith.mulf %284, %241 : vector<8x32xf32>
    %288 = arith.mulf %283, %285 : vector<8x32xf32>
    %289 = arith.addf %287, %288 : vector<8x32xf32>
    %290 = math.tanh %289 : vector<8x32xf32>
    %291 = arith.mulf %286, %290 : vector<8x32xf32>
    %292 = arith.index_cast %c5_i32 : i32 to index
    %c0_95 = arith.constant 0 : index
    %c0_96 = arith.constant 0 : index
    %293 = vector.load %arg6[%292, %c0_95, %c0_96] : memref<28x32x128xf32, #tpu.memory_space<vmem>>, vector<1x32x128xf32>
    %294 = vector.shape_cast %293 : vector<1x32x128xf32> to vector<32x128xf32>
    %cst_97 = arith.constant dense<0.000000e+00> : vector<8x128xf32>
    %295 = tpu.matmul %291, %294, %cst_97 {dimension_numbers = #tpu.dot_dimension_numbers<[1], [0], [0], [1], [0, 0, 1, 1], [], []>} : vector<8x32xf32>, vector<32x128xf32>, vector<8x128xf32> -> vector<8x128xf32>
    %296 = arith.addf %248, %295 : vector<8x128xf32>
    %c6_i32 = arith.constant 6 : i32
    %c8_i32_98 = arith.constant 8 : i32
    %297 = arith.muli %c6_i32, %c8_i32_98 : i32
    %298 = tpu.assume_multiple %297, 8 : i32
    %299 = arith.index_cast %298 : i32 to index
    %c0_99 = arith.constant 0 : index
    %300 = vector.load %arg9[%299, %c0_99] : memref<224x128xf32, #tpu.memory_space<vmem>>, vector<8x128xf32>
    %c0_100 = arith.constant 0 : index
    %c0_101 = arith.constant 0 : index
    %301 = vector.load %arg2[%c0_100, %c0_101] : memref<32x128xf32, #tpu.memory_space<vmem>>, vector<32x128xf32>
    %cst_102 = arith.constant dense<0.000000e+00> : vector<8x128xf32>
    %302 = tpu.matmul %270, %301, %cst_102 {dimension_numbers = #tpu.dot_dimension_numbers<[1], [0], [0], [1], [0, 0, 1, 1], [], []>} : vector<8x32xf32>, vector<32x128xf32>, vector<8x128xf32> -> vector<8x128xf32>
    %303 = arith.addf %300, %302 : vector<8x128xf32>
    %304 = arith.negf %303 : vector<8x128xf32>
    %305 = math.exp %304 : vector<8x128xf32>
    %cst_103 = arith.constant 1.000000e+00 : f32
    %306 = vector.broadcast %cst_103 : f32 to vector<8x128xf32>
    %307 = arith.addf %306, %305 : vector<8x128xf32>
    %308 = arith.divf %306, %307 : vector<8x128xf32>
    %309 = math.tanh %303 : vector<8x128xf32>
    %310 = vector.extract_strided_slice %308 {offsets = [0, 0], sizes = [8, 32], strides = [1, 1]} : vector<8x128xf32> to vector<8x32xf32>
    %311 = vector.extract_strided_slice %308 {offsets = [0, 32], sizes = [8, 32], strides = [1, 1]} : vector<8x128xf32> to vector<8x32xf32>
    %312 = vector.extract_strided_slice %309 {offsets = [0, 64], sizes = [8, 32], strides = [1, 1]} : vector<8x128xf32> to vector<8x32xf32>
    %313 = vector.extract_strided_slice %308 {offsets = [0, 96], sizes = [8, 32], strides = [1, 1]} : vector<8x128xf32> to vector<8x32xf32>
    %314 = arith.mulf %311, %268 : vector<8x32xf32>
    %315 = arith.mulf %310, %312 : vector<8x32xf32>
    %316 = arith.addf %314, %315 : vector<8x32xf32>
    %317 = math.tanh %316 : vector<8x32xf32>
    %318 = arith.mulf %313, %317 : vector<8x32xf32>
    %319 = tpu.concatenate %318, %291 in 1 : vector<8x32xf32>, vector<8x32xf32> -> vector<8x64xf32>
    %c0_104 = arith.constant 0 : index
    %c0_105 = arith.constant 0 : index
    %320 = vector.load %arg4[%c0_104, %c0_105] : memref<64x128xf32, #tpu.memory_space<vmem>>, vector<64x128xf32>
    %cst_106 = arith.constant dense<0.000000e+00> : vector<8x128xf32>
    %321 = tpu.matmul %319, %320, %cst_106 {dimension_numbers = #tpu.dot_dimension_numbers<[1], [0], [0], [1], [0, 0, 1, 1], [], []>} : vector<8x64xf32>, vector<64x128xf32>, vector<8x128xf32> -> vector<8x128xf32>
    %c0_107 = arith.constant 0 : index
    %c0_108 = arith.constant 0 : index
    %322 = vector.load %arg5[%c0_107, %c0_108] : memref<1x128xf32, #tpu.memory_space<vmem>>, vector<1x128xf32>
    %323 = vector.broadcast %322 : vector<1x128xf32> to vector<8x128xf32>
    %324 = arith.addf %321, %323 : vector<8x128xf32>
    %325 = arith.negf %324 : vector<8x128xf32>
    %326 = math.exp %325 : vector<8x128xf32>
    %cst_109 = arith.constant 1.000000e+00 : f32
    %327 = vector.broadcast %cst_109 : f32 to vector<8x128xf32>
    %328 = arith.addf %327, %326 : vector<8x128xf32>
    %329 = arith.divf %327, %328 : vector<8x128xf32>
    %330 = math.tanh %324 : vector<8x128xf32>
    %331 = vector.extract_strided_slice %329 {offsets = [0, 0], sizes = [8, 32], strides = [1, 1]} : vector<8x128xf32> to vector<8x32xf32>
    %332 = vector.extract_strided_slice %329 {offsets = [0, 32], sizes = [8, 32], strides = [1, 1]} : vector<8x128xf32> to vector<8x32xf32>
    %333 = vector.extract_strided_slice %330 {offsets = [0, 64], sizes = [8, 32], strides = [1, 1]} : vector<8x128xf32> to vector<8x32xf32>
    %334 = vector.extract_strided_slice %329 {offsets = [0, 96], sizes = [8, 32], strides = [1, 1]} : vector<8x128xf32> to vector<8x32xf32>
    %335 = arith.mulf %332, %289 : vector<8x32xf32>
    %336 = arith.mulf %331, %333 : vector<8x32xf32>
    %337 = arith.addf %335, %336 : vector<8x32xf32>
    %338 = math.tanh %337 : vector<8x32xf32>
    %339 = arith.mulf %334, %338 : vector<8x32xf32>
    %340 = arith.index_cast %c6_i32 : i32 to index
    %c0_110 = arith.constant 0 : index
    %c0_111 = arith.constant 0 : index
    %341 = vector.load %arg6[%340, %c0_110, %c0_111] : memref<28x32x128xf32, #tpu.memory_space<vmem>>, vector<1x32x128xf32>
    %342 = vector.shape_cast %341 : vector<1x32x128xf32> to vector<32x128xf32>
    %cst_112 = arith.constant dense<0.000000e+00> : vector<8x128xf32>
    %343 = tpu.matmul %339, %342, %cst_112 {dimension_numbers = #tpu.dot_dimension_numbers<[1], [0], [0], [1], [0, 0, 1, 1], [], []>} : vector<8x32xf32>, vector<32x128xf32>, vector<8x128xf32> -> vector<8x128xf32>
    %344 = arith.addf %296, %343 : vector<8x128xf32>
    %c7_i32 = arith.constant 7 : i32
    %c8_i32_113 = arith.constant 8 : i32
    %345 = arith.muli %c7_i32, %c8_i32_113 : i32
    %346 = tpu.assume_multiple %345, 8 : i32
    %347 = arith.index_cast %346 : i32 to index
    %c0_114 = arith.constant 0 : index
    %348 = vector.load %arg9[%347, %c0_114] : memref<224x128xf32, #tpu.memory_space<vmem>>, vector<8x128xf32>
    %c0_115 = arith.constant 0 : index
    %c0_116 = arith.constant 0 : index
    %349 = vector.load %arg2[%c0_115, %c0_116] : memref<32x128xf32, #tpu.memory_space<vmem>>, vector<32x128xf32>
    %cst_117 = arith.constant dense<0.000000e+00> : vector<8x128xf32>
    %350 = tpu.matmul %318, %349, %cst_117 {dimension_numbers = #tpu.dot_dimension_numbers<[1], [0], [0], [1], [0, 0, 1, 1], [], []>} : vector<8x32xf32>, vector<32x128xf32>, vector<8x128xf32> -> vector<8x128xf32>
    %351 = arith.addf %348, %350 : vector<8x128xf32>
    %352 = arith.negf %351 : vector<8x128xf32>
    %353 = math.exp %352 : vector<8x128xf32>
    %cst_118 = arith.constant 1.000000e+00 : f32
    %354 = vector.broadcast %cst_118 : f32 to vector<8x128xf32>
    %355 = arith.addf %354, %353 : vector<8x128xf32>
    %356 = arith.divf %354, %355 : vector<8x128xf32>
    %357 = math.tanh %351 : vector<8x128xf32>
    %358 = vector.extract_strided_slice %356 {offsets = [0, 0], sizes = [8, 32], strides = [1, 1]} : vector<8x128xf32> to vector<8x32xf32>
    %359 = vector.extract_strided_slice %356 {offsets = [0, 32], sizes = [8, 32], strides = [1, 1]} : vector<8x128xf32> to vector<8x32xf32>
    %360 = vector.extract_strided_slice %357 {offsets = [0, 64], sizes = [8, 32], strides = [1, 1]} : vector<8x128xf32> to vector<8x32xf32>
    %361 = vector.extract_strided_slice %356 {offsets = [0, 96], sizes = [8, 32], strides = [1, 1]} : vector<8x128xf32> to vector<8x32xf32>
    %362 = arith.mulf %359, %316 : vector<8x32xf32>
    %363 = arith.mulf %358, %360 : vector<8x32xf32>
    %364 = arith.addf %362, %363 : vector<8x32xf32>
    %365 = math.tanh %364 : vector<8x32xf32>
    %366 = arith.mulf %361, %365 : vector<8x32xf32>
    %367 = tpu.concatenate %366, %339 in 1 : vector<8x32xf32>, vector<8x32xf32> -> vector<8x64xf32>
    %c0_119 = arith.constant 0 : index
    %c0_120 = arith.constant 0 : index
    %368 = vector.load %arg4[%c0_119, %c0_120] : memref<64x128xf32, #tpu.memory_space<vmem>>, vector<64x128xf32>
    %cst_121 = arith.constant dense<0.000000e+00> : vector<8x128xf32>
    %369 = tpu.matmul %367, %368, %cst_121 {dimension_numbers = #tpu.dot_dimension_numbers<[1], [0], [0], [1], [0, 0, 1, 1], [], []>} : vector<8x64xf32>, vector<64x128xf32>, vector<8x128xf32> -> vector<8x128xf32>
    %c0_122 = arith.constant 0 : index
    %c0_123 = arith.constant 0 : index
    %370 = vector.load %arg5[%c0_122, %c0_123] : memref<1x128xf32, #tpu.memory_space<vmem>>, vector<1x128xf32>
    %371 = vector.broadcast %370 : vector<1x128xf32> to vector<8x128xf32>
    %372 = arith.addf %369, %371 : vector<8x128xf32>
    %373 = arith.negf %372 : vector<8x128xf32>
    %374 = math.exp %373 : vector<8x128xf32>
    %cst_124 = arith.constant 1.000000e+00 : f32
    %375 = vector.broadcast %cst_124 : f32 to vector<8x128xf32>
    %376 = arith.addf %375, %374 : vector<8x128xf32>
    %377 = arith.divf %375, %376 : vector<8x128xf32>
    %378 = math.tanh %372 : vector<8x128xf32>
    %379 = vector.extract_strided_slice %377 {offsets = [0, 0], sizes = [8, 32], strides = [1, 1]} : vector<8x128xf32> to vector<8x32xf32>
    %380 = vector.extract_strided_slice %377 {offsets = [0, 32], sizes = [8, 32], strides = [1, 1]} : vector<8x128xf32> to vector<8x32xf32>
    %381 = vector.extract_strided_slice %378 {offsets = [0, 64], sizes = [8, 32], strides = [1, 1]} : vector<8x128xf32> to vector<8x32xf32>
    %382 = vector.extract_strided_slice %377 {offsets = [0, 96], sizes = [8, 32], strides = [1, 1]} : vector<8x128xf32> to vector<8x32xf32>
    %383 = arith.mulf %380, %337 : vector<8x32xf32>
    %384 = arith.mulf %379, %381 : vector<8x32xf32>
    %385 = arith.addf %383, %384 : vector<8x32xf32>
    %386 = math.tanh %385 : vector<8x32xf32>
    %387 = arith.mulf %382, %386 : vector<8x32xf32>
    %388 = arith.index_cast %c7_i32 : i32 to index
    %c0_125 = arith.constant 0 : index
    %c0_126 = arith.constant 0 : index
    %389 = vector.load %arg6[%388, %c0_125, %c0_126] : memref<28x32x128xf32, #tpu.memory_space<vmem>>, vector<1x32x128xf32>
    %390 = vector.shape_cast %389 : vector<1x32x128xf32> to vector<32x128xf32>
    %cst_127 = arith.constant dense<0.000000e+00> : vector<8x128xf32>
    %391 = tpu.matmul %387, %390, %cst_127 {dimension_numbers = #tpu.dot_dimension_numbers<[1], [0], [0], [1], [0, 0, 1, 1], [], []>} : vector<8x32xf32>, vector<32x128xf32>, vector<8x128xf32> -> vector<8x128xf32>
    %392 = arith.addf %344, %391 : vector<8x128xf32>
    %c8_i32_128 = arith.constant 8 : i32
    %c8_i32_129 = arith.constant 8 : i32
    %393 = arith.muli %c8_i32_128, %c8_i32_129 : i32
    %394 = tpu.assume_multiple %393, 8 : i32
    %395 = arith.index_cast %394 : i32 to index
    %c0_130 = arith.constant 0 : index
    %396 = vector.load %arg9[%395, %c0_130] : memref<224x128xf32, #tpu.memory_space<vmem>>, vector<8x128xf32>
    %c0_131 = arith.constant 0 : index
    %c0_132 = arith.constant 0 : index
    %397 = vector.load %arg2[%c0_131, %c0_132] : memref<32x128xf32, #tpu.memory_space<vmem>>, vector<32x128xf32>
    %cst_133 = arith.constant dense<0.000000e+00> : vector<8x128xf32>
    %398 = tpu.matmul %366, %397, %cst_133 {dimension_numbers = #tpu.dot_dimension_numbers<[1], [0], [0], [1], [0, 0, 1, 1], [], []>} : vector<8x32xf32>, vector<32x128xf32>, vector<8x128xf32> -> vector<8x128xf32>
    %399 = arith.addf %396, %398 : vector<8x128xf32>
    %400 = arith.negf %399 : vector<8x128xf32>
    %401 = math.exp %400 : vector<8x128xf32>
    %cst_134 = arith.constant 1.000000e+00 : f32
    %402 = vector.broadcast %cst_134 : f32 to vector<8x128xf32>
    %403 = arith.addf %402, %401 : vector<8x128xf32>
    %404 = arith.divf %402, %403 : vector<8x128xf32>
    %405 = math.tanh %399 : vector<8x128xf32>
    %406 = vector.extract_strided_slice %404 {offsets = [0, 0], sizes = [8, 32], strides = [1, 1]} : vector<8x128xf32> to vector<8x32xf32>
    %407 = vector.extract_strided_slice %404 {offsets = [0, 32], sizes = [8, 32], strides = [1, 1]} : vector<8x128xf32> to vector<8x32xf32>
    %408 = vector.extract_strided_slice %405 {offsets = [0, 64], sizes = [8, 32], strides = [1, 1]} : vector<8x128xf32> to vector<8x32xf32>
    %409 = vector.extract_strided_slice %404 {offsets = [0, 96], sizes = [8, 32], strides = [1, 1]} : vector<8x128xf32> to vector<8x32xf32>
    %410 = arith.mulf %407, %364 : vector<8x32xf32>
    %411 = arith.mulf %406, %408 : vector<8x32xf32>
    %412 = arith.addf %410, %411 : vector<8x32xf32>
    %413 = math.tanh %412 : vector<8x32xf32>
    %414 = arith.mulf %409, %413 : vector<8x32xf32>
    %415 = tpu.concatenate %414, %387 in 1 : vector<8x32xf32>, vector<8x32xf32> -> vector<8x64xf32>
    %c0_135 = arith.constant 0 : index
    %c0_136 = arith.constant 0 : index
    %416 = vector.load %arg4[%c0_135, %c0_136] : memref<64x128xf32, #tpu.memory_space<vmem>>, vector<64x128xf32>
    %cst_137 = arith.constant dense<0.000000e+00> : vector<8x128xf32>
    %417 = tpu.matmul %415, %416, %cst_137 {dimension_numbers = #tpu.dot_dimension_numbers<[1], [0], [0], [1], [0, 0, 1, 1], [], []>} : vector<8x64xf32>, vector<64x128xf32>, vector<8x128xf32> -> vector<8x128xf32>
    %c0_138 = arith.constant 0 : index
    %c0_139 = arith.constant 0 : index
    %418 = vector.load %arg5[%c0_138, %c0_139] : memref<1x128xf32, #tpu.memory_space<vmem>>, vector<1x128xf32>
    %419 = vector.broadcast %418 : vector<1x128xf32> to vector<8x128xf32>
    %420 = arith.addf %417, %419 : vector<8x128xf32>
    %421 = arith.negf %420 : vector<8x128xf32>
    %422 = math.exp %421 : vector<8x128xf32>
    %cst_140 = arith.constant 1.000000e+00 : f32
    %423 = vector.broadcast %cst_140 : f32 to vector<8x128xf32>
    %424 = arith.addf %423, %422 : vector<8x128xf32>
    %425 = arith.divf %423, %424 : vector<8x128xf32>
    %426 = math.tanh %420 : vector<8x128xf32>
    %427 = vector.extract_strided_slice %425 {offsets = [0, 0], sizes = [8, 32], strides = [1, 1]} : vector<8x128xf32> to vector<8x32xf32>
    %428 = vector.extract_strided_slice %425 {offsets = [0, 32], sizes = [8, 32], strides = [1, 1]} : vector<8x128xf32> to vector<8x32xf32>
    %429 = vector.extract_strided_slice %426 {offsets = [0, 64], sizes = [8, 32], strides = [1, 1]} : vector<8x128xf32> to vector<8x32xf32>
    %430 = vector.extract_strided_slice %425 {offsets = [0, 96], sizes = [8, 32], strides = [1, 1]} : vector<8x128xf32> to vector<8x32xf32>
    %431 = arith.mulf %428, %385 : vector<8x32xf32>
    %432 = arith.mulf %427, %429 : vector<8x32xf32>
    %433 = arith.addf %431, %432 : vector<8x32xf32>
    %434 = math.tanh %433 : vector<8x32xf32>
    %435 = arith.mulf %430, %434 : vector<8x32xf32>
    %436 = arith.index_cast %c8_i32_128 : i32 to index
    %c0_141 = arith.constant 0 : index
    %c0_142 = arith.constant 0 : index
    %437 = vector.load %arg6[%436, %c0_141, %c0_142] : memref<28x32x128xf32, #tpu.memory_space<vmem>>, vector<1x32x128xf32>
    %438 = vector.shape_cast %437 : vector<1x32x128xf32> to vector<32x128xf32>
    %cst_143 = arith.constant dense<0.000000e+00> : vector<8x128xf32>
    %439 = tpu.matmul %435, %438, %cst_143 {dimension_numbers = #tpu.dot_dimension_numbers<[1], [0], [0], [1], [0, 0, 1, 1], [], []>} : vector<8x32xf32>, vector<32x128xf32>, vector<8x128xf32> -> vector<8x128xf32>
    %440 = arith.addf %392, %439 : vector<8x128xf32>
    %c9_i32 = arith.constant 9 : i32
    %c8_i32_144 = arith.constant 8 : i32
    %441 = arith.muli %c9_i32, %c8_i32_144 : i32
    %442 = tpu.assume_multiple %441, 8 : i32
    %443 = arith.index_cast %442 : i32 to index
    %c0_145 = arith.constant 0 : index
    %444 = vector.load %arg9[%443, %c0_145] : memref<224x128xf32, #tpu.memory_space<vmem>>, vector<8x128xf32>
    %c0_146 = arith.constant 0 : index
    %c0_147 = arith.constant 0 : index
    %445 = vector.load %arg2[%c0_146, %c0_147] : memref<32x128xf32, #tpu.memory_space<vmem>>, vector<32x128xf32>
    %cst_148 = arith.constant dense<0.000000e+00> : vector<8x128xf32>
    %446 = tpu.matmul %414, %445, %cst_148 {dimension_numbers = #tpu.dot_dimension_numbers<[1], [0], [0], [1], [0, 0, 1, 1], [], []>} : vector<8x32xf32>, vector<32x128xf32>, vector<8x128xf32> -> vector<8x128xf32>
    %447 = arith.addf %444, %446 : vector<8x128xf32>
    %448 = arith.negf %447 : vector<8x128xf32>
    %449 = math.exp %448 : vector<8x128xf32>
    %cst_149 = arith.constant 1.000000e+00 : f32
    %450 = vector.broadcast %cst_149 : f32 to vector<8x128xf32>
    %451 = arith.addf %450, %449 : vector<8x128xf32>
    %452 = arith.divf %450, %451 : vector<8x128xf32>
    %453 = math.tanh %447 : vector<8x128xf32>
    %454 = vector.extract_strided_slice %452 {offsets = [0, 0], sizes = [8, 32], strides = [1, 1]} : vector<8x128xf32> to vector<8x32xf32>
    %455 = vector.extract_strided_slice %452 {offsets = [0, 32], sizes = [8, 32], strides = [1, 1]} : vector<8x128xf32> to vector<8x32xf32>
    %456 = vector.extract_strided_slice %453 {offsets = [0, 64], sizes = [8, 32], strides = [1, 1]} : vector<8x128xf32> to vector<8x32xf32>
    %457 = vector.extract_strided_slice %452 {offsets = [0, 96], sizes = [8, 32], strides = [1, 1]} : vector<8x128xf32> to vector<8x32xf32>
    %458 = arith.mulf %455, %412 : vector<8x32xf32>
    %459 = arith.mulf %454, %456 : vector<8x32xf32>
    %460 = arith.addf %458, %459 : vector<8x32xf32>
    %461 = math.tanh %460 : vector<8x32xf32>
    %462 = arith.mulf %457, %461 : vector<8x32xf32>
    %463 = tpu.concatenate %462, %435 in 1 : vector<8x32xf32>, vector<8x32xf32> -> vector<8x64xf32>
    %c0_150 = arith.constant 0 : index
    %c0_151 = arith.constant 0 : index
    %464 = vector.load %arg4[%c0_150, %c0_151] : memref<64x128xf32, #tpu.memory_space<vmem>>, vector<64x128xf32>
    %cst_152 = arith.constant dense<0.000000e+00> : vector<8x128xf32>
    %465 = tpu.matmul %463, %464, %cst_152 {dimension_numbers = #tpu.dot_dimension_numbers<[1], [0], [0], [1], [0, 0, 1, 1], [], []>} : vector<8x64xf32>, vector<64x128xf32>, vector<8x128xf32> -> vector<8x128xf32>
    %c0_153 = arith.constant 0 : index
    %c0_154 = arith.constant 0 : index
    %466 = vector.load %arg5[%c0_153, %c0_154] : memref<1x128xf32, #tpu.memory_space<vmem>>, vector<1x128xf32>
    %467 = vector.broadcast %466 : vector<1x128xf32> to vector<8x128xf32>
    %468 = arith.addf %465, %467 : vector<8x128xf32>
    %469 = arith.negf %468 : vector<8x128xf32>
    %470 = math.exp %469 : vector<8x128xf32>
    %cst_155 = arith.constant 1.000000e+00 : f32
    %471 = vector.broadcast %cst_155 : f32 to vector<8x128xf32>
    %472 = arith.addf %471, %470 : vector<8x128xf32>
    %473 = arith.divf %471, %472 : vector<8x128xf32>
    %474 = math.tanh %468 : vector<8x128xf32>
    %475 = vector.extract_strided_slice %473 {offsets = [0, 0], sizes = [8, 32], strides = [1, 1]} : vector<8x128xf32> to vector<8x32xf32>
    %476 = vector.extract_strided_slice %473 {offsets = [0, 32], sizes = [8, 32], strides = [1, 1]} : vector<8x128xf32> to vector<8x32xf32>
    %477 = vector.extract_strided_slice %474 {offsets = [0, 64], sizes = [8, 32], strides = [1, 1]} : vector<8x128xf32> to vector<8x32xf32>
    %478 = vector.extract_strided_slice %473 {offsets = [0, 96], sizes = [8, 32], strides = [1, 1]} : vector<8x128xf32> to vector<8x32xf32>
    %479 = arith.mulf %476, %433 : vector<8x32xf32>
    %480 = arith.mulf %475, %477 : vector<8x32xf32>
    %481 = arith.addf %479, %480 : vector<8x32xf32>
    %482 = math.tanh %481 : vector<8x32xf32>
    %483 = arith.mulf %478, %482 : vector<8x32xf32>
    %484 = arith.index_cast %c9_i32 : i32 to index
    %c0_156 = arith.constant 0 : index
    %c0_157 = arith.constant 0 : index
    %485 = vector.load %arg6[%484, %c0_156, %c0_157] : memref<28x32x128xf32, #tpu.memory_space<vmem>>, vector<1x32x128xf32>
    %486 = vector.shape_cast %485 : vector<1x32x128xf32> to vector<32x128xf32>
    %cst_158 = arith.constant dense<0.000000e+00> : vector<8x128xf32>
    %487 = tpu.matmul %483, %486, %cst_158 {dimension_numbers = #tpu.dot_dimension_numbers<[1], [0], [0], [1], [0, 0, 1, 1], [], []>} : vector<8x32xf32>, vector<32x128xf32>, vector<8x128xf32> -> vector<8x128xf32>
    %488 = arith.addf %440, %487 : vector<8x128xf32>
    %c10_i32 = arith.constant 10 : i32
    %c8_i32_159 = arith.constant 8 : i32
    %489 = arith.muli %c10_i32, %c8_i32_159 : i32
    %490 = tpu.assume_multiple %489, 8 : i32
    %491 = arith.index_cast %490 : i32 to index
    %c0_160 = arith.constant 0 : index
    %492 = vector.load %arg9[%491, %c0_160] : memref<224x128xf32, #tpu.memory_space<vmem>>, vector<8x128xf32>
    %c0_161 = arith.constant 0 : index
    %c0_162 = arith.constant 0 : index
    %493 = vector.load %arg2[%c0_161, %c0_162] : memref<32x128xf32, #tpu.memory_space<vmem>>, vector<32x128xf32>
    %cst_163 = arith.constant dense<0.000000e+00> : vector<8x128xf32>
    %494 = tpu.matmul %462, %493, %cst_163 {dimension_numbers = #tpu.dot_dimension_numbers<[1], [0], [0], [1], [0, 0, 1, 1], [], []>} : vector<8x32xf32>, vector<32x128xf32>, vector<8x128xf32> -> vector<8x128xf32>
    %495 = arith.addf %492, %494 : vector<8x128xf32>
    %496 = arith.negf %495 : vector<8x128xf32>
    %497 = math.exp %496 : vector<8x128xf32>
    %cst_164 = arith.constant 1.000000e+00 : f32
    %498 = vector.broadcast %cst_164 : f32 to vector<8x128xf32>
    %499 = arith.addf %498, %497 : vector<8x128xf32>
    %500 = arith.divf %498, %499 : vector<8x128xf32>
    %501 = math.tanh %495 : vector<8x128xf32>
    %502 = vector.extract_strided_slice %500 {offsets = [0, 0], sizes = [8, 32], strides = [1, 1]} : vector<8x128xf32> to vector<8x32xf32>
    %503 = vector.extract_strided_slice %500 {offsets = [0, 32], sizes = [8, 32], strides = [1, 1]} : vector<8x128xf32> to vector<8x32xf32>
    %504 = vector.extract_strided_slice %501 {offsets = [0, 64], sizes = [8, 32], strides = [1, 1]} : vector<8x128xf32> to vector<8x32xf32>
    %505 = vector.extract_strided_slice %500 {offsets = [0, 96], sizes = [8, 32], strides = [1, 1]} : vector<8x128xf32> to vector<8x32xf32>
    %506 = arith.mulf %503, %460 : vector<8x32xf32>
    %507 = arith.mulf %502, %504 : vector<8x32xf32>
    %508 = arith.addf %506, %507 : vector<8x32xf32>
    %509 = math.tanh %508 : vector<8x32xf32>
    %510 = arith.mulf %505, %509 : vector<8x32xf32>
    %511 = tpu.concatenate %510, %483 in 1 : vector<8x32xf32>, vector<8x32xf32> -> vector<8x64xf32>
    %c0_165 = arith.constant 0 : index
    %c0_166 = arith.constant 0 : index
    %512 = vector.load %arg4[%c0_165, %c0_166] : memref<64x128xf32, #tpu.memory_space<vmem>>, vector<64x128xf32>
    %cst_167 = arith.constant dense<0.000000e+00> : vector<8x128xf32>
    %513 = tpu.matmul %511, %512, %cst_167 {dimension_numbers = #tpu.dot_dimension_numbers<[1], [0], [0], [1], [0, 0, 1, 1], [], []>} : vector<8x64xf32>, vector<64x128xf32>, vector<8x128xf32> -> vector<8x128xf32>
    %c0_168 = arith.constant 0 : index
    %c0_169 = arith.constant 0 : index
    %514 = vector.load %arg5[%c0_168, %c0_169] : memref<1x128xf32, #tpu.memory_space<vmem>>, vector<1x128xf32>
    %515 = vector.broadcast %514 : vector<1x128xf32> to vector<8x128xf32>
    %516 = arith.addf %513, %515 : vector<8x128xf32>
    %517 = arith.negf %516 : vector<8x128xf32>
    %518 = math.exp %517 : vector<8x128xf32>
    %cst_170 = arith.constant 1.000000e+00 : f32
    %519 = vector.broadcast %cst_170 : f32 to vector<8x128xf32>
    %520 = arith.addf %519, %518 : vector<8x128xf32>
    %521 = arith.divf %519, %520 : vector<8x128xf32>
    %522 = math.tanh %516 : vector<8x128xf32>
    %523 = vector.extract_strided_slice %521 {offsets = [0, 0], sizes = [8, 32], strides = [1, 1]} : vector<8x128xf32> to vector<8x32xf32>
    %524 = vector.extract_strided_slice %521 {offsets = [0, 32], sizes = [8, 32], strides = [1, 1]} : vector<8x128xf32> to vector<8x32xf32>
    %525 = vector.extract_strided_slice %522 {offsets = [0, 64], sizes = [8, 32], strides = [1, 1]} : vector<8x128xf32> to vector<8x32xf32>
    %526 = vector.extract_strided_slice %521 {offsets = [0, 96], sizes = [8, 32], strides = [1, 1]} : vector<8x128xf32> to vector<8x32xf32>
    %527 = arith.mulf %524, %481 : vector<8x32xf32>
    %528 = arith.mulf %523, %525 : vector<8x32xf32>
    %529 = arith.addf %527, %528 : vector<8x32xf32>
    %530 = math.tanh %529 : vector<8x32xf32>
    %531 = arith.mulf %526, %530 : vector<8x32xf32>
    %532 = arith.index_cast %c10_i32 : i32 to index
    %c0_171 = arith.constant 0 : index
    %c0_172 = arith.constant 0 : index
    %533 = vector.load %arg6[%532, %c0_171, %c0_172] : memref<28x32x128xf32, #tpu.memory_space<vmem>>, vector<1x32x128xf32>
    %534 = vector.shape_cast %533 : vector<1x32x128xf32> to vector<32x128xf32>
    %cst_173 = arith.constant dense<0.000000e+00> : vector<8x128xf32>
    %535 = tpu.matmul %531, %534, %cst_173 {dimension_numbers = #tpu.dot_dimension_numbers<[1], [0], [0], [1], [0, 0, 1, 1], [], []>} : vector<8x32xf32>, vector<32x128xf32>, vector<8x128xf32> -> vector<8x128xf32>
    %536 = arith.addf %488, %535 : vector<8x128xf32>
    %c11_i32 = arith.constant 11 : i32
    %c8_i32_174 = arith.constant 8 : i32
    %537 = arith.muli %c11_i32, %c8_i32_174 : i32
    %538 = tpu.assume_multiple %537, 8 : i32
    %539 = arith.index_cast %538 : i32 to index
    %c0_175 = arith.constant 0 : index
    %540 = vector.load %arg9[%539, %c0_175] : memref<224x128xf32, #tpu.memory_space<vmem>>, vector<8x128xf32>
    %c0_176 = arith.constant 0 : index
    %c0_177 = arith.constant 0 : index
    %541 = vector.load %arg2[%c0_176, %c0_177] : memref<32x128xf32, #tpu.memory_space<vmem>>, vector<32x128xf32>
    %cst_178 = arith.constant dense<0.000000e+00> : vector<8x128xf32>
    %542 = tpu.matmul %510, %541, %cst_178 {dimension_numbers = #tpu.dot_dimension_numbers<[1], [0], [0], [1], [0, 0, 1, 1], [], []>} : vector<8x32xf32>, vector<32x128xf32>, vector<8x128xf32> -> vector<8x128xf32>
    %543 = arith.addf %540, %542 : vector<8x128xf32>
    %544 = arith.negf %543 : vector<8x128xf32>
    %545 = math.exp %544 : vector<8x128xf32>
    %cst_179 = arith.constant 1.000000e+00 : f32
    %546 = vector.broadcast %cst_179 : f32 to vector<8x128xf32>
    %547 = arith.addf %546, %545 : vector<8x128xf32>
    %548 = arith.divf %546, %547 : vector<8x128xf32>
    %549 = math.tanh %543 : vector<8x128xf32>
    %550 = vector.extract_strided_slice %548 {offsets = [0, 0], sizes = [8, 32], strides = [1, 1]} : vector<8x128xf32> to vector<8x32xf32>
    %551 = vector.extract_strided_slice %548 {offsets = [0, 32], sizes = [8, 32], strides = [1, 1]} : vector<8x128xf32> to vector<8x32xf32>
    %552 = vector.extract_strided_slice %549 {offsets = [0, 64], sizes = [8, 32], strides = [1, 1]} : vector<8x128xf32> to vector<8x32xf32>
    %553 = vector.extract_strided_slice %548 {offsets = [0, 96], sizes = [8, 32], strides = [1, 1]} : vector<8x128xf32> to vector<8x32xf32>
    %554 = arith.mulf %551, %508 : vector<8x32xf32>
    %555 = arith.mulf %550, %552 : vector<8x32xf32>
    %556 = arith.addf %554, %555 : vector<8x32xf32>
    %557 = math.tanh %556 : vector<8x32xf32>
    %558 = arith.mulf %553, %557 : vector<8x32xf32>
    %559 = tpu.concatenate %558, %531 in 1 : vector<8x32xf32>, vector<8x32xf32> -> vector<8x64xf32>
    %c0_180 = arith.constant 0 : index
    %c0_181 = arith.constant 0 : index
    %560 = vector.load %arg4[%c0_180, %c0_181] : memref<64x128xf32, #tpu.memory_space<vmem>>, vector<64x128xf32>
    %cst_182 = arith.constant dense<0.000000e+00> : vector<8x128xf32>
    %561 = tpu.matmul %559, %560, %cst_182 {dimension_numbers = #tpu.dot_dimension_numbers<[1], [0], [0], [1], [0, 0, 1, 1], [], []>} : vector<8x64xf32>, vector<64x128xf32>, vector<8x128xf32> -> vector<8x128xf32>
    %c0_183 = arith.constant 0 : index
    %c0_184 = arith.constant 0 : index
    %562 = vector.load %arg5[%c0_183, %c0_184] : memref<1x128xf32, #tpu.memory_space<vmem>>, vector<1x128xf32>
    %563 = vector.broadcast %562 : vector<1x128xf32> to vector<8x128xf32>
    %564 = arith.addf %561, %563 : vector<8x128xf32>
    %565 = arith.negf %564 : vector<8x128xf32>
    %566 = math.exp %565 : vector<8x128xf32>
    %cst_185 = arith.constant 1.000000e+00 : f32
    %567 = vector.broadcast %cst_185 : f32 to vector<8x128xf32>
    %568 = arith.addf %567, %566 : vector<8x128xf32>
    %569 = arith.divf %567, %568 : vector<8x128xf32>
    %570 = math.tanh %564 : vector<8x128xf32>
    %571 = vector.extract_strided_slice %569 {offsets = [0, 0], sizes = [8, 32], strides = [1, 1]} : vector<8x128xf32> to vector<8x32xf32>
    %572 = vector.extract_strided_slice %569 {offsets = [0, 32], sizes = [8, 32], strides = [1, 1]} : vector<8x128xf32> to vector<8x32xf32>
    %573 = vector.extract_strided_slice %570 {offsets = [0, 64], sizes = [8, 32], strides = [1, 1]} : vector<8x128xf32> to vector<8x32xf32>
    %574 = vector.extract_strided_slice %569 {offsets = [0, 96], sizes = [8, 32], strides = [1, 1]} : vector<8x128xf32> to vector<8x32xf32>
    %575 = arith.mulf %572, %529 : vector<8x32xf32>
    %576 = arith.mulf %571, %573 : vector<8x32xf32>
    %577 = arith.addf %575, %576 : vector<8x32xf32>
    %578 = math.tanh %577 : vector<8x32xf32>
    %579 = arith.mulf %574, %578 : vector<8x32xf32>
    %580 = arith.index_cast %c11_i32 : i32 to index
    %c0_186 = arith.constant 0 : index
    %c0_187 = arith.constant 0 : index
    %581 = vector.load %arg6[%580, %c0_186, %c0_187] : memref<28x32x128xf32, #tpu.memory_space<vmem>>, vector<1x32x128xf32>
    %582 = vector.shape_cast %581 : vector<1x32x128xf32> to vector<32x128xf32>
    %cst_188 = arith.constant dense<0.000000e+00> : vector<8x128xf32>
    %583 = tpu.matmul %579, %582, %cst_188 {dimension_numbers = #tpu.dot_dimension_numbers<[1], [0], [0], [1], [0, 0, 1, 1], [], []>} : vector<8x32xf32>, vector<32x128xf32>, vector<8x128xf32> -> vector<8x128xf32>
    %584 = arith.addf %536, %583 : vector<8x128xf32>
    %c12_i32 = arith.constant 12 : i32
    %c8_i32_189 = arith.constant 8 : i32
    %585 = arith.muli %c12_i32, %c8_i32_189 : i32
    %586 = tpu.assume_multiple %585, 8 : i32
    %587 = arith.index_cast %586 : i32 to index
    %c0_190 = arith.constant 0 : index
    %588 = vector.load %arg9[%587, %c0_190] : memref<224x128xf32, #tpu.memory_space<vmem>>, vector<8x128xf32>
    %c0_191 = arith.constant 0 : index
    %c0_192 = arith.constant 0 : index
    %589 = vector.load %arg2[%c0_191, %c0_192] : memref<32x128xf32, #tpu.memory_space<vmem>>, vector<32x128xf32>
    %cst_193 = arith.constant dense<0.000000e+00> : vector<8x128xf32>
    %590 = tpu.matmul %558, %589, %cst_193 {dimension_numbers = #tpu.dot_dimension_numbers<[1], [0], [0], [1], [0, 0, 1, 1], [], []>} : vector<8x32xf32>, vector<32x128xf32>, vector<8x128xf32> -> vector<8x128xf32>
    %591 = arith.addf %588, %590 : vector<8x128xf32>
    %592 = arith.negf %591 : vector<8x128xf32>
    %593 = math.exp %592 : vector<8x128xf32>
    %cst_194 = arith.constant 1.000000e+00 : f32
    %594 = vector.broadcast %cst_194 : f32 to vector<8x128xf32>
    %595 = arith.addf %594, %593 : vector<8x128xf32>
    %596 = arith.divf %594, %595 : vector<8x128xf32>
    %597 = math.tanh %591 : vector<8x128xf32>
    %598 = vector.extract_strided_slice %596 {offsets = [0, 0], sizes = [8, 32], strides = [1, 1]} : vector<8x128xf32> to vector<8x32xf32>
    %599 = vector.extract_strided_slice %596 {offsets = [0, 32], sizes = [8, 32], strides = [1, 1]} : vector<8x128xf32> to vector<8x32xf32>
    %600 = vector.extract_strided_slice %597 {offsets = [0, 64], sizes = [8, 32], strides = [1, 1]} : vector<8x128xf32> to vector<8x32xf32>
    %601 = vector.extract_strided_slice %596 {offsets = [0, 96], sizes = [8, 32], strides = [1, 1]} : vector<8x128xf32> to vector<8x32xf32>
    %602 = arith.mulf %599, %556 : vector<8x32xf32>
    %603 = arith.mulf %598, %600 : vector<8x32xf32>
    %604 = arith.addf %602, %603 : vector<8x32xf32>
    %605 = math.tanh %604 : vector<8x32xf32>
    %606 = arith.mulf %601, %605 : vector<8x32xf32>
    %607 = tpu.concatenate %606, %579 in 1 : vector<8x32xf32>, vector<8x32xf32> -> vector<8x64xf32>
    %c0_195 = arith.constant 0 : index
    %c0_196 = arith.constant 0 : index
    %608 = vector.load %arg4[%c0_195, %c0_196] : memref<64x128xf32, #tpu.memory_space<vmem>>, vector<64x128xf32>
    %cst_197 = arith.constant dense<0.000000e+00> : vector<8x128xf32>
    %609 = tpu.matmul %607, %608, %cst_197 {dimension_numbers = #tpu.dot_dimension_numbers<[1], [0], [0], [1], [0, 0, 1, 1], [], []>} : vector<8x64xf32>, vector<64x128xf32>, vector<8x128xf32> -> vector<8x128xf32>
    %c0_198 = arith.constant 0 : index
    %c0_199 = arith.constant 0 : index
    %610 = vector.load %arg5[%c0_198, %c0_199] : memref<1x128xf32, #tpu.memory_space<vmem>>, vector<1x128xf32>
    %611 = vector.broadcast %610 : vector<1x128xf32> to vector<8x128xf32>
    %612 = arith.addf %609, %611 : vector<8x128xf32>
    %613 = arith.negf %612 : vector<8x128xf32>
    %614 = math.exp %613 : vector<8x128xf32>
    %cst_200 = arith.constant 1.000000e+00 : f32
    %615 = vector.broadcast %cst_200 : f32 to vector<8x128xf32>
    %616 = arith.addf %615, %614 : vector<8x128xf32>
    %617 = arith.divf %615, %616 : vector<8x128xf32>
    %618 = math.tanh %612 : vector<8x128xf32>
    %619 = vector.extract_strided_slice %617 {offsets = [0, 0], sizes = [8, 32], strides = [1, 1]} : vector<8x128xf32> to vector<8x32xf32>
    %620 = vector.extract_strided_slice %617 {offsets = [0, 32], sizes = [8, 32], strides = [1, 1]} : vector<8x128xf32> to vector<8x32xf32>
    %621 = vector.extract_strided_slice %618 {offsets = [0, 64], sizes = [8, 32], strides = [1, 1]} : vector<8x128xf32> to vector<8x32xf32>
    %622 = vector.extract_strided_slice %617 {offsets = [0, 96], sizes = [8, 32], strides = [1, 1]} : vector<8x128xf32> to vector<8x32xf32>
    %623 = arith.mulf %620, %577 : vector<8x32xf32>
    %624 = arith.mulf %619, %621 : vector<8x32xf32>
    %625 = arith.addf %623, %624 : vector<8x32xf32>
    %626 = math.tanh %625 : vector<8x32xf32>
    %627 = arith.mulf %622, %626 : vector<8x32xf32>
    %628 = arith.index_cast %c12_i32 : i32 to index
    %c0_201 = arith.constant 0 : index
    %c0_202 = arith.constant 0 : index
    %629 = vector.load %arg6[%628, %c0_201, %c0_202] : memref<28x32x128xf32, #tpu.memory_space<vmem>>, vector<1x32x128xf32>
    %630 = vector.shape_cast %629 : vector<1x32x128xf32> to vector<32x128xf32>
    %cst_203 = arith.constant dense<0.000000e+00> : vector<8x128xf32>
    %631 = tpu.matmul %627, %630, %cst_203 {dimension_numbers = #tpu.dot_dimension_numbers<[1], [0], [0], [1], [0, 0, 1, 1], [], []>} : vector<8x32xf32>, vector<32x128xf32>, vector<8x128xf32> -> vector<8x128xf32>
    %632 = arith.addf %584, %631 : vector<8x128xf32>
    %c13_i32 = arith.constant 13 : i32
    %c8_i32_204 = arith.constant 8 : i32
    %633 = arith.muli %c13_i32, %c8_i32_204 : i32
    %634 = tpu.assume_multiple %633, 8 : i32
    %635 = arith.index_cast %634 : i32 to index
    %c0_205 = arith.constant 0 : index
    %636 = vector.load %arg9[%635, %c0_205] : memref<224x128xf32, #tpu.memory_space<vmem>>, vector<8x128xf32>
    %c0_206 = arith.constant 0 : index
    %c0_207 = arith.constant 0 : index
    %637 = vector.load %arg2[%c0_206, %c0_207] : memref<32x128xf32, #tpu.memory_space<vmem>>, vector<32x128xf32>
    %cst_208 = arith.constant dense<0.000000e+00> : vector<8x128xf32>
    %638 = tpu.matmul %606, %637, %cst_208 {dimension_numbers = #tpu.dot_dimension_numbers<[1], [0], [0], [1], [0, 0, 1, 1], [], []>} : vector<8x32xf32>, vector<32x128xf32>, vector<8x128xf32> -> vector<8x128xf32>
    %639 = arith.addf %636, %638 : vector<8x128xf32>
    %640 = arith.negf %639 : vector<8x128xf32>
    %641 = math.exp %640 : vector<8x128xf32>
    %cst_209 = arith.constant 1.000000e+00 : f32
    %642 = vector.broadcast %cst_209 : f32 to vector<8x128xf32>
    %643 = arith.addf %642, %641 : vector<8x128xf32>
    %644 = arith.divf %642, %643 : vector<8x128xf32>
    %645 = math.tanh %639 : vector<8x128xf32>
    %646 = vector.extract_strided_slice %644 {offsets = [0, 0], sizes = [8, 32], strides = [1, 1]} : vector<8x128xf32> to vector<8x32xf32>
    %647 = vector.extract_strided_slice %644 {offsets = [0, 32], sizes = [8, 32], strides = [1, 1]} : vector<8x128xf32> to vector<8x32xf32>
    %648 = vector.extract_strided_slice %645 {offsets = [0, 64], sizes = [8, 32], strides = [1, 1]} : vector<8x128xf32> to vector<8x32xf32>
    %649 = vector.extract_strided_slice %644 {offsets = [0, 96], sizes = [8, 32], strides = [1, 1]} : vector<8x128xf32> to vector<8x32xf32>
    %650 = arith.mulf %647, %604 : vector<8x32xf32>
    %651 = arith.mulf %646, %648 : vector<8x32xf32>
    %652 = arith.addf %650, %651 : vector<8x32xf32>
    %653 = math.tanh %652 : vector<8x32xf32>
    %654 = arith.mulf %649, %653 : vector<8x32xf32>
    %655 = tpu.concatenate %654, %627 in 1 : vector<8x32xf32>, vector<8x32xf32> -> vector<8x64xf32>
    %c0_210 = arith.constant 0 : index
    %c0_211 = arith.constant 0 : index
    %656 = vector.load %arg4[%c0_210, %c0_211] : memref<64x128xf32, #tpu.memory_space<vmem>>, vector<64x128xf32>
    %cst_212 = arith.constant dense<0.000000e+00> : vector<8x128xf32>
    %657 = tpu.matmul %655, %656, %cst_212 {dimension_numbers = #tpu.dot_dimension_numbers<[1], [0], [0], [1], [0, 0, 1, 1], [], []>} : vector<8x64xf32>, vector<64x128xf32>, vector<8x128xf32> -> vector<8x128xf32>
    %c0_213 = arith.constant 0 : index
    %c0_214 = arith.constant 0 : index
    %658 = vector.load %arg5[%c0_213, %c0_214] : memref<1x128xf32, #tpu.memory_space<vmem>>, vector<1x128xf32>
    %659 = vector.broadcast %658 : vector<1x128xf32> to vector<8x128xf32>
    %660 = arith.addf %657, %659 : vector<8x128xf32>
    %661 = arith.negf %660 : vector<8x128xf32>
    %662 = math.exp %661 : vector<8x128xf32>
    %cst_215 = arith.constant 1.000000e+00 : f32
    %663 = vector.broadcast %cst_215 : f32 to vector<8x128xf32>
    %664 = arith.addf %663, %662 : vector<8x128xf32>
    %665 = arith.divf %663, %664 : vector<8x128xf32>
    %666 = math.tanh %660 : vector<8x128xf32>
    %667 = vector.extract_strided_slice %665 {offsets = [0, 0], sizes = [8, 32], strides = [1, 1]} : vector<8x128xf32> to vector<8x32xf32>
    %668 = vector.extract_strided_slice %665 {offsets = [0, 32], sizes = [8, 32], strides = [1, 1]} : vector<8x128xf32> to vector<8x32xf32>
    %669 = vector.extract_strided_slice %666 {offsets = [0, 64], sizes = [8, 32], strides = [1, 1]} : vector<8x128xf32> to vector<8x32xf32>
    %670 = vector.extract_strided_slice %665 {offsets = [0, 96], sizes = [8, 32], strides = [1, 1]} : vector<8x128xf32> to vector<8x32xf32>
    %671 = arith.mulf %668, %625 : vector<8x32xf32>
    %672 = arith.mulf %667, %669 : vector<8x32xf32>
    %673 = arith.addf %671, %672 : vector<8x32xf32>
    %674 = math.tanh %673 : vector<8x32xf32>
    %675 = arith.mulf %670, %674 : vector<8x32xf32>
    %676 = arith.index_cast %c13_i32 : i32 to index
    %c0_216 = arith.constant 0 : index
    %c0_217 = arith.constant 0 : index
    %677 = vector.load %arg6[%676, %c0_216, %c0_217] : memref<28x32x128xf32, #tpu.memory_space<vmem>>, vector<1x32x128xf32>
    %678 = vector.shape_cast %677 : vector<1x32x128xf32> to vector<32x128xf32>
    %cst_218 = arith.constant dense<0.000000e+00> : vector<8x128xf32>
    %679 = tpu.matmul %675, %678, %cst_218 {dimension_numbers = #tpu.dot_dimension_numbers<[1], [0], [0], [1], [0, 0, 1, 1], [], []>} : vector<8x32xf32>, vector<32x128xf32>, vector<8x128xf32> -> vector<8x128xf32>
    %680 = arith.addf %632, %679 : vector<8x128xf32>
    %c14_i32 = arith.constant 14 : i32
    %c8_i32_219 = arith.constant 8 : i32
    %681 = arith.muli %c14_i32, %c8_i32_219 : i32
    %682 = tpu.assume_multiple %681, 8 : i32
    %683 = arith.index_cast %682 : i32 to index
    %c0_220 = arith.constant 0 : index
    %684 = vector.load %arg9[%683, %c0_220] : memref<224x128xf32, #tpu.memory_space<vmem>>, vector<8x128xf32>
    %c0_221 = arith.constant 0 : index
    %c0_222 = arith.constant 0 : index
    %685 = vector.load %arg2[%c0_221, %c0_222] : memref<32x128xf32, #tpu.memory_space<vmem>>, vector<32x128xf32>
    %cst_223 = arith.constant dense<0.000000e+00> : vector<8x128xf32>
    %686 = tpu.matmul %654, %685, %cst_223 {dimension_numbers = #tpu.dot_dimension_numbers<[1], [0], [0], [1], [0, 0, 1, 1], [], []>} : vector<8x32xf32>, vector<32x128xf32>, vector<8x128xf32> -> vector<8x128xf32>
    %687 = arith.addf %684, %686 : vector<8x128xf32>
    %688 = arith.negf %687 : vector<8x128xf32>
    %689 = math.exp %688 : vector<8x128xf32>
    %cst_224 = arith.constant 1.000000e+00 : f32
    %690 = vector.broadcast %cst_224 : f32 to vector<8x128xf32>
    %691 = arith.addf %690, %689 : vector<8x128xf32>
    %692 = arith.divf %690, %691 : vector<8x128xf32>
    %693 = math.tanh %687 : vector<8x128xf32>
    %694 = vector.extract_strided_slice %692 {offsets = [0, 0], sizes = [8, 32], strides = [1, 1]} : vector<8x128xf32> to vector<8x32xf32>
    %695 = vector.extract_strided_slice %692 {offsets = [0, 32], sizes = [8, 32], strides = [1, 1]} : vector<8x128xf32> to vector<8x32xf32>
    %696 = vector.extract_strided_slice %693 {offsets = [0, 64], sizes = [8, 32], strides = [1, 1]} : vector<8x128xf32> to vector<8x32xf32>
    %697 = vector.extract_strided_slice %692 {offsets = [0, 96], sizes = [8, 32], strides = [1, 1]} : vector<8x128xf32> to vector<8x32xf32>
    %698 = arith.mulf %695, %652 : vector<8x32xf32>
    %699 = arith.mulf %694, %696 : vector<8x32xf32>
    %700 = arith.addf %698, %699 : vector<8x32xf32>
    %701 = math.tanh %700 : vector<8x32xf32>
    %702 = arith.mulf %697, %701 : vector<8x32xf32>
    %703 = tpu.concatenate %702, %675 in 1 : vector<8x32xf32>, vector<8x32xf32> -> vector<8x64xf32>
    %c0_225 = arith.constant 0 : index
    %c0_226 = arith.constant 0 : index
    %704 = vector.load %arg4[%c0_225, %c0_226] : memref<64x128xf32, #tpu.memory_space<vmem>>, vector<64x128xf32>
    %cst_227 = arith.constant dense<0.000000e+00> : vector<8x128xf32>
    %705 = tpu.matmul %703, %704, %cst_227 {dimension_numbers = #tpu.dot_dimension_numbers<[1], [0], [0], [1], [0, 0, 1, 1], [], []>} : vector<8x64xf32>, vector<64x128xf32>, vector<8x128xf32> -> vector<8x128xf32>
    %c0_228 = arith.constant 0 : index
    %c0_229 = arith.constant 0 : index
    %706 = vector.load %arg5[%c0_228, %c0_229] : memref<1x128xf32, #tpu.memory_space<vmem>>, vector<1x128xf32>
    %707 = vector.broadcast %706 : vector<1x128xf32> to vector<8x128xf32>
    %708 = arith.addf %705, %707 : vector<8x128xf32>
    %709 = arith.negf %708 : vector<8x128xf32>
    %710 = math.exp %709 : vector<8x128xf32>
    %cst_230 = arith.constant 1.000000e+00 : f32
    %711 = vector.broadcast %cst_230 : f32 to vector<8x128xf32>
    %712 = arith.addf %711, %710 : vector<8x128xf32>
    %713 = arith.divf %711, %712 : vector<8x128xf32>
    %714 = math.tanh %708 : vector<8x128xf32>
    %715 = vector.extract_strided_slice %713 {offsets = [0, 0], sizes = [8, 32], strides = [1, 1]} : vector<8x128xf32> to vector<8x32xf32>
    %716 = vector.extract_strided_slice %713 {offsets = [0, 32], sizes = [8, 32], strides = [1, 1]} : vector<8x128xf32> to vector<8x32xf32>
    %717 = vector.extract_strided_slice %714 {offsets = [0, 64], sizes = [8, 32], strides = [1, 1]} : vector<8x128xf32> to vector<8x32xf32>
    %718 = vector.extract_strided_slice %713 {offsets = [0, 96], sizes = [8, 32], strides = [1, 1]} : vector<8x128xf32> to vector<8x32xf32>
    %719 = arith.mulf %716, %673 : vector<8x32xf32>
    %720 = arith.mulf %715, %717 : vector<8x32xf32>
    %721 = arith.addf %719, %720 : vector<8x32xf32>
    %722 = math.tanh %721 : vector<8x32xf32>
    %723 = arith.mulf %718, %722 : vector<8x32xf32>
    %724 = arith.index_cast %c14_i32 : i32 to index
    %c0_231 = arith.constant 0 : index
    %c0_232 = arith.constant 0 : index
    %725 = vector.load %arg6[%724, %c0_231, %c0_232] : memref<28x32x128xf32, #tpu.memory_space<vmem>>, vector<1x32x128xf32>
    %726 = vector.shape_cast %725 : vector<1x32x128xf32> to vector<32x128xf32>
    %cst_233 = arith.constant dense<0.000000e+00> : vector<8x128xf32>
    %727 = tpu.matmul %723, %726, %cst_233 {dimension_numbers = #tpu.dot_dimension_numbers<[1], [0], [0], [1], [0, 0, 1, 1], [], []>} : vector<8x32xf32>, vector<32x128xf32>, vector<8x128xf32> -> vector<8x128xf32>
    %728 = arith.addf %680, %727 : vector<8x128xf32>
    %c15_i32 = arith.constant 15 : i32
    %c8_i32_234 = arith.constant 8 : i32
    %729 = arith.muli %c15_i32, %c8_i32_234 : i32
    %730 = tpu.assume_multiple %729, 8 : i32
    %731 = arith.index_cast %730 : i32 to index
    %c0_235 = arith.constant 0 : index
    %732 = vector.load %arg9[%731, %c0_235] : memref<224x128xf32, #tpu.memory_space<vmem>>, vector<8x128xf32>
    %c0_236 = arith.constant 0 : index
    %c0_237 = arith.constant 0 : index
    %733 = vector.load %arg2[%c0_236, %c0_237] : memref<32x128xf32, #tpu.memory_space<vmem>>, vector<32x128xf32>
    %cst_238 = arith.constant dense<0.000000e+00> : vector<8x128xf32>
    %734 = tpu.matmul %702, %733, %cst_238 {dimension_numbers = #tpu.dot_dimension_numbers<[1], [0], [0], [1], [0, 0, 1, 1], [], []>} : vector<8x32xf32>, vector<32x128xf32>, vector<8x128xf32> -> vector<8x128xf32>
    %735 = arith.addf %732, %734 : vector<8x128xf32>
    %736 = arith.negf %735 : vector<8x128xf32>
    %737 = math.exp %736 : vector<8x128xf32>
    %cst_239 = arith.constant 1.000000e+00 : f32
    %738 = vector.broadcast %cst_239 : f32 to vector<8x128xf32>
    %739 = arith.addf %738, %737 : vector<8x128xf32>
    %740 = arith.divf %738, %739 : vector<8x128xf32>
    %741 = math.tanh %735 : vector<8x128xf32>
    %742 = vector.extract_strided_slice %740 {offsets = [0, 0], sizes = [8, 32], strides = [1, 1]} : vector<8x128xf32> to vector<8x32xf32>
    %743 = vector.extract_strided_slice %740 {offsets = [0, 32], sizes = [8, 32], strides = [1, 1]} : vector<8x128xf32> to vector<8x32xf32>
    %744 = vector.extract_strided_slice %741 {offsets = [0, 64], sizes = [8, 32], strides = [1, 1]} : vector<8x128xf32> to vector<8x32xf32>
    %745 = vector.extract_strided_slice %740 {offsets = [0, 96], sizes = [8, 32], strides = [1, 1]} : vector<8x128xf32> to vector<8x32xf32>
    %746 = arith.mulf %743, %700 : vector<8x32xf32>
    %747 = arith.mulf %742, %744 : vector<8x32xf32>
    %748 = arith.addf %746, %747 : vector<8x32xf32>
    %749 = math.tanh %748 : vector<8x32xf32>
    %750 = arith.mulf %745, %749 : vector<8x32xf32>
    %751 = tpu.concatenate %750, %723 in 1 : vector<8x32xf32>, vector<8x32xf32> -> vector<8x64xf32>
    %c0_240 = arith.constant 0 : index
    %c0_241 = arith.constant 0 : index
    %752 = vector.load %arg4[%c0_240, %c0_241] : memref<64x128xf32, #tpu.memory_space<vmem>>, vector<64x128xf32>
    %cst_242 = arith.constant dense<0.000000e+00> : vector<8x128xf32>
    %753 = tpu.matmul %751, %752, %cst_242 {dimension_numbers = #tpu.dot_dimension_numbers<[1], [0], [0], [1], [0, 0, 1, 1], [], []>} : vector<8x64xf32>, vector<64x128xf32>, vector<8x128xf32> -> vector<8x128xf32>
    %c0_243 = arith.constant 0 : index
    %c0_244 = arith.constant 0 : index
    %754 = vector.load %arg5[%c0_243, %c0_244] : memref<1x128xf32, #tpu.memory_space<vmem>>, vector<1x128xf32>
    %755 = vector.broadcast %754 : vector<1x128xf32> to vector<8x128xf32>
    %756 = arith.addf %753, %755 : vector<8x128xf32>
    %757 = arith.negf %756 : vector<8x128xf32>
    %758 = math.exp %757 : vector<8x128xf32>
    %cst_245 = arith.constant 1.000000e+00 : f32
    %759 = vector.broadcast %cst_245 : f32 to vector<8x128xf32>
    %760 = arith.addf %759, %758 : vector<8x128xf32>
    %761 = arith.divf %759, %760 : vector<8x128xf32>
    %762 = math.tanh %756 : vector<8x128xf32>
    %763 = vector.extract_strided_slice %761 {offsets = [0, 0], sizes = [8, 32], strides = [1, 1]} : vector<8x128xf32> to vector<8x32xf32>
    %764 = vector.extract_strided_slice %761 {offsets = [0, 32], sizes = [8, 32], strides = [1, 1]} : vector<8x128xf32> to vector<8x32xf32>
    %765 = vector.extract_strided_slice %762 {offsets = [0, 64], sizes = [8, 32], strides = [1, 1]} : vector<8x128xf32> to vector<8x32xf32>
    %766 = vector.extract_strided_slice %761 {offsets = [0, 96], sizes = [8, 32], strides = [1, 1]} : vector<8x128xf32> to vector<8x32xf32>
    %767 = arith.mulf %764, %721 : vector<8x32xf32>
    %768 = arith.mulf %763, %765 : vector<8x32xf32>
    %769 = arith.addf %767, %768 : vector<8x32xf32>
    %770 = math.tanh %769 : vector<8x32xf32>
    %771 = arith.mulf %766, %770 : vector<8x32xf32>
    %772 = arith.index_cast %c15_i32 : i32 to index
    %c0_246 = arith.constant 0 : index
    %c0_247 = arith.constant 0 : index
    %773 = vector.load %arg6[%772, %c0_246, %c0_247] : memref<28x32x128xf32, #tpu.memory_space<vmem>>, vector<1x32x128xf32>
    %774 = vector.shape_cast %773 : vector<1x32x128xf32> to vector<32x128xf32>
    %cst_248 = arith.constant dense<0.000000e+00> : vector<8x128xf32>
    %775 = tpu.matmul %771, %774, %cst_248 {dimension_numbers = #tpu.dot_dimension_numbers<[1], [0], [0], [1], [0, 0, 1, 1], [], []>} : vector<8x32xf32>, vector<32x128xf32>, vector<8x128xf32> -> vector<8x128xf32>
    %776 = arith.addf %728, %775 : vector<8x128xf32>
    %c16_i32 = arith.constant 16 : i32
    %c8_i32_249 = arith.constant 8 : i32
    %777 = arith.muli %c16_i32, %c8_i32_249 : i32
    %778 = tpu.assume_multiple %777, 8 : i32
    %779 = arith.index_cast %778 : i32 to index
    %c0_250 = arith.constant 0 : index
    %780 = vector.load %arg9[%779, %c0_250] : memref<224x128xf32, #tpu.memory_space<vmem>>, vector<8x128xf32>
    %c0_251 = arith.constant 0 : index
    %c0_252 = arith.constant 0 : index
    %781 = vector.load %arg2[%c0_251, %c0_252] : memref<32x128xf32, #tpu.memory_space<vmem>>, vector<32x128xf32>
    %cst_253 = arith.constant dense<0.000000e+00> : vector<8x128xf32>
    %782 = tpu.matmul %750, %781, %cst_253 {dimension_numbers = #tpu.dot_dimension_numbers<[1], [0], [0], [1], [0, 0, 1, 1], [], []>} : vector<8x32xf32>, vector<32x128xf32>, vector<8x128xf32> -> vector<8x128xf32>
    %783 = arith.addf %780, %782 : vector<8x128xf32>
    %784 = arith.negf %783 : vector<8x128xf32>
    %785 = math.exp %784 : vector<8x128xf32>
    %cst_254 = arith.constant 1.000000e+00 : f32
    %786 = vector.broadcast %cst_254 : f32 to vector<8x128xf32>
    %787 = arith.addf %786, %785 : vector<8x128xf32>
    %788 = arith.divf %786, %787 : vector<8x128xf32>
    %789 = math.tanh %783 : vector<8x128xf32>
    %790 = vector.extract_strided_slice %788 {offsets = [0, 0], sizes = [8, 32], strides = [1, 1]} : vector<8x128xf32> to vector<8x32xf32>
    %791 = vector.extract_strided_slice %788 {offsets = [0, 32], sizes = [8, 32], strides = [1, 1]} : vector<8x128xf32> to vector<8x32xf32>
    %792 = vector.extract_strided_slice %789 {offsets = [0, 64], sizes = [8, 32], strides = [1, 1]} : vector<8x128xf32> to vector<8x32xf32>
    %793 = vector.extract_strided_slice %788 {offsets = [0, 96], sizes = [8, 32], strides = [1, 1]} : vector<8x128xf32> to vector<8x32xf32>
    %794 = arith.mulf %791, %748 : vector<8x32xf32>
    %795 = arith.mulf %790, %792 : vector<8x32xf32>
    %796 = arith.addf %794, %795 : vector<8x32xf32>
    %797 = math.tanh %796 : vector<8x32xf32>
    %798 = arith.mulf %793, %797 : vector<8x32xf32>
    %799 = tpu.concatenate %798, %771 in 1 : vector<8x32xf32>, vector<8x32xf32> -> vector<8x64xf32>
    %c0_255 = arith.constant 0 : index
    %c0_256 = arith.constant 0 : index
    %800 = vector.load %arg4[%c0_255, %c0_256] : memref<64x128xf32, #tpu.memory_space<vmem>>, vector<64x128xf32>
    %cst_257 = arith.constant dense<0.000000e+00> : vector<8x128xf32>
    %801 = tpu.matmul %799, %800, %cst_257 {dimension_numbers = #tpu.dot_dimension_numbers<[1], [0], [0], [1], [0, 0, 1, 1], [], []>} : vector<8x64xf32>, vector<64x128xf32>, vector<8x128xf32> -> vector<8x128xf32>
    %c0_258 = arith.constant 0 : index
    %c0_259 = arith.constant 0 : index
    %802 = vector.load %arg5[%c0_258, %c0_259] : memref<1x128xf32, #tpu.memory_space<vmem>>, vector<1x128xf32>
    %803 = vector.broadcast %802 : vector<1x128xf32> to vector<8x128xf32>
    %804 = arith.addf %801, %803 : vector<8x128xf32>
    %805 = arith.negf %804 : vector<8x128xf32>
    %806 = math.exp %805 : vector<8x128xf32>
    %cst_260 = arith.constant 1.000000e+00 : f32
    %807 = vector.broadcast %cst_260 : f32 to vector<8x128xf32>
    %808 = arith.addf %807, %806 : vector<8x128xf32>
    %809 = arith.divf %807, %808 : vector<8x128xf32>
    %810 = math.tanh %804 : vector<8x128xf32>
    %811 = vector.extract_strided_slice %809 {offsets = [0, 0], sizes = [8, 32], strides = [1, 1]} : vector<8x128xf32> to vector<8x32xf32>
    %812 = vector.extract_strided_slice %809 {offsets = [0, 32], sizes = [8, 32], strides = [1, 1]} : vector<8x128xf32> to vector<8x32xf32>
    %813 = vector.extract_strided_slice %810 {offsets = [0, 64], sizes = [8, 32], strides = [1, 1]} : vector<8x128xf32> to vector<8x32xf32>
    %814 = vector.extract_strided_slice %809 {offsets = [0, 96], sizes = [8, 32], strides = [1, 1]} : vector<8x128xf32> to vector<8x32xf32>
    %815 = arith.mulf %812, %769 : vector<8x32xf32>
    %816 = arith.mulf %811, %813 : vector<8x32xf32>
    %817 = arith.addf %815, %816 : vector<8x32xf32>
    %818 = math.tanh %817 : vector<8x32xf32>
    %819 = arith.mulf %814, %818 : vector<8x32xf32>
    %820 = arith.index_cast %c16_i32 : i32 to index
    %c0_261 = arith.constant 0 : index
    %c0_262 = arith.constant 0 : index
    %821 = vector.load %arg6[%820, %c0_261, %c0_262] : memref<28x32x128xf32, #tpu.memory_space<vmem>>, vector<1x32x128xf32>
    %822 = vector.shape_cast %821 : vector<1x32x128xf32> to vector<32x128xf32>
    %cst_263 = arith.constant dense<0.000000e+00> : vector<8x128xf32>
    %823 = tpu.matmul %819, %822, %cst_263 {dimension_numbers = #tpu.dot_dimension_numbers<[1], [0], [0], [1], [0, 0, 1, 1], [], []>} : vector<8x32xf32>, vector<32x128xf32>, vector<8x128xf32> -> vector<8x128xf32>
    %824 = arith.addf %776, %823 : vector<8x128xf32>
    %c17_i32 = arith.constant 17 : i32
    %c8_i32_264 = arith.constant 8 : i32
    %825 = arith.muli %c17_i32, %c8_i32_264 : i32
    %826 = tpu.assume_multiple %825, 8 : i32
    %827 = arith.index_cast %826 : i32 to index
    %c0_265 = arith.constant 0 : index
    %828 = vector.load %arg9[%827, %c0_265] : memref<224x128xf32, #tpu.memory_space<vmem>>, vector<8x128xf32>
    %c0_266 = arith.constant 0 : index
    %c0_267 = arith.constant 0 : index
    %829 = vector.load %arg2[%c0_266, %c0_267] : memref<32x128xf32, #tpu.memory_space<vmem>>, vector<32x128xf32>
    %cst_268 = arith.constant dense<0.000000e+00> : vector<8x128xf32>
    %830 = tpu.matmul %798, %829, %cst_268 {dimension_numbers = #tpu.dot_dimension_numbers<[1], [0], [0], [1], [0, 0, 1, 1], [], []>} : vector<8x32xf32>, vector<32x128xf32>, vector<8x128xf32> -> vector<8x128xf32>
    %831 = arith.addf %828, %830 : vector<8x128xf32>
    %832 = arith.negf %831 : vector<8x128xf32>
    %833 = math.exp %832 : vector<8x128xf32>
    %cst_269 = arith.constant 1.000000e+00 : f32
    %834 = vector.broadcast %cst_269 : f32 to vector<8x128xf32>
    %835 = arith.addf %834, %833 : vector<8x128xf32>
    %836 = arith.divf %834, %835 : vector<8x128xf32>
    %837 = math.tanh %831 : vector<8x128xf32>
    %838 = vector.extract_strided_slice %836 {offsets = [0, 0], sizes = [8, 32], strides = [1, 1]} : vector<8x128xf32> to vector<8x32xf32>
    %839 = vector.extract_strided_slice %836 {offsets = [0, 32], sizes = [8, 32], strides = [1, 1]} : vector<8x128xf32> to vector<8x32xf32>
    %840 = vector.extract_strided_slice %837 {offsets = [0, 64], sizes = [8, 32], strides = [1, 1]} : vector<8x128xf32> to vector<8x32xf32>
    %841 = vector.extract_strided_slice %836 {offsets = [0, 96], sizes = [8, 32], strides = [1, 1]} : vector<8x128xf32> to vector<8x32xf32>
    %842 = arith.mulf %839, %796 : vector<8x32xf32>
    %843 = arith.mulf %838, %840 : vector<8x32xf32>
    %844 = arith.addf %842, %843 : vector<8x32xf32>
    %845 = math.tanh %844 : vector<8x32xf32>
    %846 = arith.mulf %841, %845 : vector<8x32xf32>
    %847 = tpu.concatenate %846, %819 in 1 : vector<8x32xf32>, vector<8x32xf32> -> vector<8x64xf32>
    %c0_270 = arith.constant 0 : index
    %c0_271 = arith.constant 0 : index
    %848 = vector.load %arg4[%c0_270, %c0_271] : memref<64x128xf32, #tpu.memory_space<vmem>>, vector<64x128xf32>
    %cst_272 = arith.constant dense<0.000000e+00> : vector<8x128xf32>
    %849 = tpu.matmul %847, %848, %cst_272 {dimension_numbers = #tpu.dot_dimension_numbers<[1], [0], [0], [1], [0, 0, 1, 1], [], []>} : vector<8x64xf32>, vector<64x128xf32>, vector<8x128xf32> -> vector<8x128xf32>
    %c0_273 = arith.constant 0 : index
    %c0_274 = arith.constant 0 : index
    %850 = vector.load %arg5[%c0_273, %c0_274] : memref<1x128xf32, #tpu.memory_space<vmem>>, vector<1x128xf32>
    %851 = vector.broadcast %850 : vector<1x128xf32> to vector<8x128xf32>
    %852 = arith.addf %849, %851 : vector<8x128xf32>
    %853 = arith.negf %852 : vector<8x128xf32>
    %854 = math.exp %853 : vector<8x128xf32>
    %cst_275 = arith.constant 1.000000e+00 : f32
    %855 = vector.broadcast %cst_275 : f32 to vector<8x128xf32>
    %856 = arith.addf %855, %854 : vector<8x128xf32>
    %857 = arith.divf %855, %856 : vector<8x128xf32>
    %858 = math.tanh %852 : vector<8x128xf32>
    %859 = vector.extract_strided_slice %857 {offsets = [0, 0], sizes = [8, 32], strides = [1, 1]} : vector<8x128xf32> to vector<8x32xf32>
    %860 = vector.extract_strided_slice %857 {offsets = [0, 32], sizes = [8, 32], strides = [1, 1]} : vector<8x128xf32> to vector<8x32xf32>
    %861 = vector.extract_strided_slice %858 {offsets = [0, 64], sizes = [8, 32], strides = [1, 1]} : vector<8x128xf32> to vector<8x32xf32>
    %862 = vector.extract_strided_slice %857 {offsets = [0, 96], sizes = [8, 32], strides = [1, 1]} : vector<8x128xf32> to vector<8x32xf32>
    %863 = arith.mulf %860, %817 : vector<8x32xf32>
    %864 = arith.mulf %859, %861 : vector<8x32xf32>
    %865 = arith.addf %863, %864 : vector<8x32xf32>
    %866 = math.tanh %865 : vector<8x32xf32>
    %867 = arith.mulf %862, %866 : vector<8x32xf32>
    %868 = arith.index_cast %c17_i32 : i32 to index
    %c0_276 = arith.constant 0 : index
    %c0_277 = arith.constant 0 : index
    %869 = vector.load %arg6[%868, %c0_276, %c0_277] : memref<28x32x128xf32, #tpu.memory_space<vmem>>, vector<1x32x128xf32>
    %870 = vector.shape_cast %869 : vector<1x32x128xf32> to vector<32x128xf32>
    %cst_278 = arith.constant dense<0.000000e+00> : vector<8x128xf32>
    %871 = tpu.matmul %867, %870, %cst_278 {dimension_numbers = #tpu.dot_dimension_numbers<[1], [0], [0], [1], [0, 0, 1, 1], [], []>} : vector<8x32xf32>, vector<32x128xf32>, vector<8x128xf32> -> vector<8x128xf32>
    %872 = arith.addf %824, %871 : vector<8x128xf32>
    %c18_i32 = arith.constant 18 : i32
    %c8_i32_279 = arith.constant 8 : i32
    %873 = arith.muli %c18_i32, %c8_i32_279 : i32
    %874 = tpu.assume_multiple %873, 8 : i32
    %875 = arith.index_cast %874 : i32 to index
    %c0_280 = arith.constant 0 : index
    %876 = vector.load %arg9[%875, %c0_280] : memref<224x128xf32, #tpu.memory_space<vmem>>, vector<8x128xf32>
    %c0_281 = arith.constant 0 : index
    %c0_282 = arith.constant 0 : index
    %877 = vector.load %arg2[%c0_281, %c0_282] : memref<32x128xf32, #tpu.memory_space<vmem>>, vector<32x128xf32>
    %cst_283 = arith.constant dense<0.000000e+00> : vector<8x128xf32>
    %878 = tpu.matmul %846, %877, %cst_283 {dimension_numbers = #tpu.dot_dimension_numbers<[1], [0], [0], [1], [0, 0, 1, 1], [], []>} : vector<8x32xf32>, vector<32x128xf32>, vector<8x128xf32> -> vector<8x128xf32>
    %879 = arith.addf %876, %878 : vector<8x128xf32>
    %880 = arith.negf %879 : vector<8x128xf32>
    %881 = math.exp %880 : vector<8x128xf32>
    %cst_284 = arith.constant 1.000000e+00 : f32
    %882 = vector.broadcast %cst_284 : f32 to vector<8x128xf32>
    %883 = arith.addf %882, %881 : vector<8x128xf32>
    %884 = arith.divf %882, %883 : vector<8x128xf32>
    %885 = math.tanh %879 : vector<8x128xf32>
    %886 = vector.extract_strided_slice %884 {offsets = [0, 0], sizes = [8, 32], strides = [1, 1]} : vector<8x128xf32> to vector<8x32xf32>
    %887 = vector.extract_strided_slice %884 {offsets = [0, 32], sizes = [8, 32], strides = [1, 1]} : vector<8x128xf32> to vector<8x32xf32>
    %888 = vector.extract_strided_slice %885 {offsets = [0, 64], sizes = [8, 32], strides = [1, 1]} : vector<8x128xf32> to vector<8x32xf32>
    %889 = vector.extract_strided_slice %884 {offsets = [0, 96], sizes = [8, 32], strides = [1, 1]} : vector<8x128xf32> to vector<8x32xf32>
    %890 = arith.mulf %887, %844 : vector<8x32xf32>
    %891 = arith.mulf %886, %888 : vector<8x32xf32>
    %892 = arith.addf %890, %891 : vector<8x32xf32>
    %893 = math.tanh %892 : vector<8x32xf32>
    %894 = arith.mulf %889, %893 : vector<8x32xf32>
    %895 = tpu.concatenate %894, %867 in 1 : vector<8x32xf32>, vector<8x32xf32> -> vector<8x64xf32>
    %c0_285 = arith.constant 0 : index
    %c0_286 = arith.constant 0 : index
    %896 = vector.load %arg4[%c0_285, %c0_286] : memref<64x128xf32, #tpu.memory_space<vmem>>, vector<64x128xf32>
    %cst_287 = arith.constant dense<0.000000e+00> : vector<8x128xf32>
    %897 = tpu.matmul %895, %896, %cst_287 {dimension_numbers = #tpu.dot_dimension_numbers<[1], [0], [0], [1], [0, 0, 1, 1], [], []>} : vector<8x64xf32>, vector<64x128xf32>, vector<8x128xf32> -> vector<8x128xf32>
    %c0_288 = arith.constant 0 : index
    %c0_289 = arith.constant 0 : index
    %898 = vector.load %arg5[%c0_288, %c0_289] : memref<1x128xf32, #tpu.memory_space<vmem>>, vector<1x128xf32>
    %899 = vector.broadcast %898 : vector<1x128xf32> to vector<8x128xf32>
    %900 = arith.addf %897, %899 : vector<8x128xf32>
    %901 = arith.negf %900 : vector<8x128xf32>
    %902 = math.exp %901 : vector<8x128xf32>
    %cst_290 = arith.constant 1.000000e+00 : f32
    %903 = vector.broadcast %cst_290 : f32 to vector<8x128xf32>
    %904 = arith.addf %903, %902 : vector<8x128xf32>
    %905 = arith.divf %903, %904 : vector<8x128xf32>
    %906 = math.tanh %900 : vector<8x128xf32>
    %907 = vector.extract_strided_slice %905 {offsets = [0, 0], sizes = [8, 32], strides = [1, 1]} : vector<8x128xf32> to vector<8x32xf32>
    %908 = vector.extract_strided_slice %905 {offsets = [0, 32], sizes = [8, 32], strides = [1, 1]} : vector<8x128xf32> to vector<8x32xf32>
    %909 = vector.extract_strided_slice %906 {offsets = [0, 64], sizes = [8, 32], strides = [1, 1]} : vector<8x128xf32> to vector<8x32xf32>
    %910 = vector.extract_strided_slice %905 {offsets = [0, 96], sizes = [8, 32], strides = [1, 1]} : vector<8x128xf32> to vector<8x32xf32>
    %911 = arith.mulf %908, %865 : vector<8x32xf32>
    %912 = arith.mulf %907, %909 : vector<8x32xf32>
    %913 = arith.addf %911, %912 : vector<8x32xf32>
    %914 = math.tanh %913 : vector<8x32xf32>
    %915 = arith.mulf %910, %914 : vector<8x32xf32>
    %916 = arith.index_cast %c18_i32 : i32 to index
    %c0_291 = arith.constant 0 : index
    %c0_292 = arith.constant 0 : index
    %917 = vector.load %arg6[%916, %c0_291, %c0_292] : memref<28x32x128xf32, #tpu.memory_space<vmem>>, vector<1x32x128xf32>
    %918 = vector.shape_cast %917 : vector<1x32x128xf32> to vector<32x128xf32>
    %cst_293 = arith.constant dense<0.000000e+00> : vector<8x128xf32>
    %919 = tpu.matmul %915, %918, %cst_293 {dimension_numbers = #tpu.dot_dimension_numbers<[1], [0], [0], [1], [0, 0, 1, 1], [], []>} : vector<8x32xf32>, vector<32x128xf32>, vector<8x128xf32> -> vector<8x128xf32>
    %920 = arith.addf %872, %919 : vector<8x128xf32>
    %c19_i32 = arith.constant 19 : i32
    %c8_i32_294 = arith.constant 8 : i32
    %921 = arith.muli %c19_i32, %c8_i32_294 : i32
    %922 = tpu.assume_multiple %921, 8 : i32
    %923 = arith.index_cast %922 : i32 to index
    %c0_295 = arith.constant 0 : index
    %924 = vector.load %arg9[%923, %c0_295] : memref<224x128xf32, #tpu.memory_space<vmem>>, vector<8x128xf32>
    %c0_296 = arith.constant 0 : index
    %c0_297 = arith.constant 0 : index
    %925 = vector.load %arg2[%c0_296, %c0_297] : memref<32x128xf32, #tpu.memory_space<vmem>>, vector<32x128xf32>
    %cst_298 = arith.constant dense<0.000000e+00> : vector<8x128xf32>
    %926 = tpu.matmul %894, %925, %cst_298 {dimension_numbers = #tpu.dot_dimension_numbers<[1], [0], [0], [1], [0, 0, 1, 1], [], []>} : vector<8x32xf32>, vector<32x128xf32>, vector<8x128xf32> -> vector<8x128xf32>
    %927 = arith.addf %924, %926 : vector<8x128xf32>
    %928 = arith.negf %927 : vector<8x128xf32>
    %929 = math.exp %928 : vector<8x128xf32>
    %cst_299 = arith.constant 1.000000e+00 : f32
    %930 = vector.broadcast %cst_299 : f32 to vector<8x128xf32>
    %931 = arith.addf %930, %929 : vector<8x128xf32>
    %932 = arith.divf %930, %931 : vector<8x128xf32>
    %933 = math.tanh %927 : vector<8x128xf32>
    %934 = vector.extract_strided_slice %932 {offsets = [0, 0], sizes = [8, 32], strides = [1, 1]} : vector<8x128xf32> to vector<8x32xf32>
    %935 = vector.extract_strided_slice %932 {offsets = [0, 32], sizes = [8, 32], strides = [1, 1]} : vector<8x128xf32> to vector<8x32xf32>
    %936 = vector.extract_strided_slice %933 {offsets = [0, 64], sizes = [8, 32], strides = [1, 1]} : vector<8x128xf32> to vector<8x32xf32>
    %937 = vector.extract_strided_slice %932 {offsets = [0, 96], sizes = [8, 32], strides = [1, 1]} : vector<8x128xf32> to vector<8x32xf32>
    %938 = arith.mulf %935, %892 : vector<8x32xf32>
    %939 = arith.mulf %934, %936 : vector<8x32xf32>
    %940 = arith.addf %938, %939 : vector<8x32xf32>
    %941 = math.tanh %940 : vector<8x32xf32>
    %942 = arith.mulf %937, %941 : vector<8x32xf32>
    %943 = tpu.concatenate %942, %915 in 1 : vector<8x32xf32>, vector<8x32xf32> -> vector<8x64xf32>
    %c0_300 = arith.constant 0 : index
    %c0_301 = arith.constant 0 : index
    %944 = vector.load %arg4[%c0_300, %c0_301] : memref<64x128xf32, #tpu.memory_space<vmem>>, vector<64x128xf32>
    %cst_302 = arith.constant dense<0.000000e+00> : vector<8x128xf32>
    %945 = tpu.matmul %943, %944, %cst_302 {dimension_numbers = #tpu.dot_dimension_numbers<[1], [0], [0], [1], [0, 0, 1, 1], [], []>} : vector<8x64xf32>, vector<64x128xf32>, vector<8x128xf32> -> vector<8x128xf32>
    %c0_303 = arith.constant 0 : index
    %c0_304 = arith.constant 0 : index
    %946 = vector.load %arg5[%c0_303, %c0_304] : memref<1x128xf32, #tpu.memory_space<vmem>>, vector<1x128xf32>
    %947 = vector.broadcast %946 : vector<1x128xf32> to vector<8x128xf32>
    %948 = arith.addf %945, %947 : vector<8x128xf32>
    %949 = arith.negf %948 : vector<8x128xf32>
    %950 = math.exp %949 : vector<8x128xf32>
    %cst_305 = arith.constant 1.000000e+00 : f32
    %951 = vector.broadcast %cst_305 : f32 to vector<8x128xf32>
    %952 = arith.addf %951, %950 : vector<8x128xf32>
    %953 = arith.divf %951, %952 : vector<8x128xf32>
    %954 = math.tanh %948 : vector<8x128xf32>
    %955 = vector.extract_strided_slice %953 {offsets = [0, 0], sizes = [8, 32], strides = [1, 1]} : vector<8x128xf32> to vector<8x32xf32>
    %956 = vector.extract_strided_slice %953 {offsets = [0, 32], sizes = [8, 32], strides = [1, 1]} : vector<8x128xf32> to vector<8x32xf32>
    %957 = vector.extract_strided_slice %954 {offsets = [0, 64], sizes = [8, 32], strides = [1, 1]} : vector<8x128xf32> to vector<8x32xf32>
    %958 = vector.extract_strided_slice %953 {offsets = [0, 96], sizes = [8, 32], strides = [1, 1]} : vector<8x128xf32> to vector<8x32xf32>
    %959 = arith.mulf %956, %913 : vector<8x32xf32>
    %960 = arith.mulf %955, %957 : vector<8x32xf32>
    %961 = arith.addf %959, %960 : vector<8x32xf32>
    %962 = math.tanh %961 : vector<8x32xf32>
    %963 = arith.mulf %958, %962 : vector<8x32xf32>
    %964 = arith.index_cast %c19_i32 : i32 to index
    %c0_306 = arith.constant 0 : index
    %c0_307 = arith.constant 0 : index
    %965 = vector.load %arg6[%964, %c0_306, %c0_307] : memref<28x32x128xf32, #tpu.memory_space<vmem>>, vector<1x32x128xf32>
    %966 = vector.shape_cast %965 : vector<1x32x128xf32> to vector<32x128xf32>
    %cst_308 = arith.constant dense<0.000000e+00> : vector<8x128xf32>
    %967 = tpu.matmul %963, %966, %cst_308 {dimension_numbers = #tpu.dot_dimension_numbers<[1], [0], [0], [1], [0, 0, 1, 1], [], []>} : vector<8x32xf32>, vector<32x128xf32>, vector<8x128xf32> -> vector<8x128xf32>
    %968 = arith.addf %920, %967 : vector<8x128xf32>
    %c20_i32 = arith.constant 20 : i32
    %c8_i32_309 = arith.constant 8 : i32
    %969 = arith.muli %c20_i32, %c8_i32_309 : i32
    %970 = tpu.assume_multiple %969, 8 : i32
    %971 = arith.index_cast %970 : i32 to index
    %c0_310 = arith.constant 0 : index
    %972 = vector.load %arg9[%971, %c0_310] : memref<224x128xf32, #tpu.memory_space<vmem>>, vector<8x128xf32>
    %c0_311 = arith.constant 0 : index
    %c0_312 = arith.constant 0 : index
    %973 = vector.load %arg2[%c0_311, %c0_312] : memref<32x128xf32, #tpu.memory_space<vmem>>, vector<32x128xf32>
    %cst_313 = arith.constant dense<0.000000e+00> : vector<8x128xf32>
    %974 = tpu.matmul %942, %973, %cst_313 {dimension_numbers = #tpu.dot_dimension_numbers<[1], [0], [0], [1], [0, 0, 1, 1], [], []>} : vector<8x32xf32>, vector<32x128xf32>, vector<8x128xf32> -> vector<8x128xf32>
    %975 = arith.addf %972, %974 : vector<8x128xf32>
    %976 = arith.negf %975 : vector<8x128xf32>
    %977 = math.exp %976 : vector<8x128xf32>
    %cst_314 = arith.constant 1.000000e+00 : f32
    %978 = vector.broadcast %cst_314 : f32 to vector<8x128xf32>
    %979 = arith.addf %978, %977 : vector<8x128xf32>
    %980 = arith.divf %978, %979 : vector<8x128xf32>
    %981 = math.tanh %975 : vector<8x128xf32>
    %982 = vector.extract_strided_slice %980 {offsets = [0, 0], sizes = [8, 32], strides = [1, 1]} : vector<8x128xf32> to vector<8x32xf32>
    %983 = vector.extract_strided_slice %980 {offsets = [0, 32], sizes = [8, 32], strides = [1, 1]} : vector<8x128xf32> to vector<8x32xf32>
    %984 = vector.extract_strided_slice %981 {offsets = [0, 64], sizes = [8, 32], strides = [1, 1]} : vector<8x128xf32> to vector<8x32xf32>
    %985 = vector.extract_strided_slice %980 {offsets = [0, 96], sizes = [8, 32], strides = [1, 1]} : vector<8x128xf32> to vector<8x32xf32>
    %986 = arith.mulf %983, %940 : vector<8x32xf32>
    %987 = arith.mulf %982, %984 : vector<8x32xf32>
    %988 = arith.addf %986, %987 : vector<8x32xf32>
    %989 = math.tanh %988 : vector<8x32xf32>
    %990 = arith.mulf %985, %989 : vector<8x32xf32>
    %991 = tpu.concatenate %990, %963 in 1 : vector<8x32xf32>, vector<8x32xf32> -> vector<8x64xf32>
    %c0_315 = arith.constant 0 : index
    %c0_316 = arith.constant 0 : index
    %992 = vector.load %arg4[%c0_315, %c0_316] : memref<64x128xf32, #tpu.memory_space<vmem>>, vector<64x128xf32>
    %cst_317 = arith.constant dense<0.000000e+00> : vector<8x128xf32>
    %993 = tpu.matmul %991, %992, %cst_317 {dimension_numbers = #tpu.dot_dimension_numbers<[1], [0], [0], [1], [0, 0, 1, 1], [], []>} : vector<8x64xf32>, vector<64x128xf32>, vector<8x128xf32> -> vector<8x128xf32>
    %c0_318 = arith.constant 0 : index
    %c0_319 = arith.constant 0 : index
    %994 = vector.load %arg5[%c0_318, %c0_319] : memref<1x128xf32, #tpu.memory_space<vmem>>, vector<1x128xf32>
    %995 = vector.broadcast %994 : vector<1x128xf32> to vector<8x128xf32>
    %996 = arith.addf %993, %995 : vector<8x128xf32>
    %997 = arith.negf %996 : vector<8x128xf32>
    %998 = math.exp %997 : vector<8x128xf32>
    %cst_320 = arith.constant 1.000000e+00 : f32
    %999 = vector.broadcast %cst_320 : f32 to vector<8x128xf32>
    %1000 = arith.addf %999, %998 : vector<8x128xf32>
    %1001 = arith.divf %999, %1000 : vector<8x128xf32>
    %1002 = math.tanh %996 : vector<8x128xf32>
    %1003 = vector.extract_strided_slice %1001 {offsets = [0, 0], sizes = [8, 32], strides = [1, 1]} : vector<8x128xf32> to vector<8x32xf32>
    %1004 = vector.extract_strided_slice %1001 {offsets = [0, 32], sizes = [8, 32], strides = [1, 1]} : vector<8x128xf32> to vector<8x32xf32>
    %1005 = vector.extract_strided_slice %1002 {offsets = [0, 64], sizes = [8, 32], strides = [1, 1]} : vector<8x128xf32> to vector<8x32xf32>
    %1006 = vector.extract_strided_slice %1001 {offsets = [0, 96], sizes = [8, 32], strides = [1, 1]} : vector<8x128xf32> to vector<8x32xf32>
    %1007 = arith.mulf %1004, %961 : vector<8x32xf32>
    %1008 = arith.mulf %1003, %1005 : vector<8x32xf32>
    %1009 = arith.addf %1007, %1008 : vector<8x32xf32>
    %1010 = math.tanh %1009 : vector<8x32xf32>
    %1011 = arith.mulf %1006, %1010 : vector<8x32xf32>
    %1012 = arith.index_cast %c20_i32 : i32 to index
    %c0_321 = arith.constant 0 : index
    %c0_322 = arith.constant 0 : index
    %1013 = vector.load %arg6[%1012, %c0_321, %c0_322] : memref<28x32x128xf32, #tpu.memory_space<vmem>>, vector<1x32x128xf32>
    %1014 = vector.shape_cast %1013 : vector<1x32x128xf32> to vector<32x128xf32>
    %cst_323 = arith.constant dense<0.000000e+00> : vector<8x128xf32>
    %1015 = tpu.matmul %1011, %1014, %cst_323 {dimension_numbers = #tpu.dot_dimension_numbers<[1], [0], [0], [1], [0, 0, 1, 1], [], []>} : vector<8x32xf32>, vector<32x128xf32>, vector<8x128xf32> -> vector<8x128xf32>
    %1016 = arith.addf %968, %1015 : vector<8x128xf32>
    %c21_i32 = arith.constant 21 : i32
    %c8_i32_324 = arith.constant 8 : i32
    %1017 = arith.muli %c21_i32, %c8_i32_324 : i32
    %1018 = tpu.assume_multiple %1017, 8 : i32
    %1019 = arith.index_cast %1018 : i32 to index
    %c0_325 = arith.constant 0 : index
    %1020 = vector.load %arg9[%1019, %c0_325] : memref<224x128xf32, #tpu.memory_space<vmem>>, vector<8x128xf32>
    %c0_326 = arith.constant 0 : index
    %c0_327 = arith.constant 0 : index
    %1021 = vector.load %arg2[%c0_326, %c0_327] : memref<32x128xf32, #tpu.memory_space<vmem>>, vector<32x128xf32>
    %cst_328 = arith.constant dense<0.000000e+00> : vector<8x128xf32>
    %1022 = tpu.matmul %990, %1021, %cst_328 {dimension_numbers = #tpu.dot_dimension_numbers<[1], [0], [0], [1], [0, 0, 1, 1], [], []>} : vector<8x32xf32>, vector<32x128xf32>, vector<8x128xf32> -> vector<8x128xf32>
    %1023 = arith.addf %1020, %1022 : vector<8x128xf32>
    %1024 = arith.negf %1023 : vector<8x128xf32>
    %1025 = math.exp %1024 : vector<8x128xf32>
    %cst_329 = arith.constant 1.000000e+00 : f32
    %1026 = vector.broadcast %cst_329 : f32 to vector<8x128xf32>
    %1027 = arith.addf %1026, %1025 : vector<8x128xf32>
    %1028 = arith.divf %1026, %1027 : vector<8x128xf32>
    %1029 = math.tanh %1023 : vector<8x128xf32>
    %1030 = vector.extract_strided_slice %1028 {offsets = [0, 0], sizes = [8, 32], strides = [1, 1]} : vector<8x128xf32> to vector<8x32xf32>
    %1031 = vector.extract_strided_slice %1028 {offsets = [0, 32], sizes = [8, 32], strides = [1, 1]} : vector<8x128xf32> to vector<8x32xf32>
    %1032 = vector.extract_strided_slice %1029 {offsets = [0, 64], sizes = [8, 32], strides = [1, 1]} : vector<8x128xf32> to vector<8x32xf32>
    %1033 = vector.extract_strided_slice %1028 {offsets = [0, 96], sizes = [8, 32], strides = [1, 1]} : vector<8x128xf32> to vector<8x32xf32>
    %1034 = arith.mulf %1031, %988 : vector<8x32xf32>
    %1035 = arith.mulf %1030, %1032 : vector<8x32xf32>
    %1036 = arith.addf %1034, %1035 : vector<8x32xf32>
    %1037 = math.tanh %1036 : vector<8x32xf32>
    %1038 = arith.mulf %1033, %1037 : vector<8x32xf32>
    %1039 = tpu.concatenate %1038, %1011 in 1 : vector<8x32xf32>, vector<8x32xf32> -> vector<8x64xf32>
    %c0_330 = arith.constant 0 : index
    %c0_331 = arith.constant 0 : index
    %1040 = vector.load %arg4[%c0_330, %c0_331] : memref<64x128xf32, #tpu.memory_space<vmem>>, vector<64x128xf32>
    %cst_332 = arith.constant dense<0.000000e+00> : vector<8x128xf32>
    %1041 = tpu.matmul %1039, %1040, %cst_332 {dimension_numbers = #tpu.dot_dimension_numbers<[1], [0], [0], [1], [0, 0, 1, 1], [], []>} : vector<8x64xf32>, vector<64x128xf32>, vector<8x128xf32> -> vector<8x128xf32>
    %c0_333 = arith.constant 0 : index
    %c0_334 = arith.constant 0 : index
    %1042 = vector.load %arg5[%c0_333, %c0_334] : memref<1x128xf32, #tpu.memory_space<vmem>>, vector<1x128xf32>
    %1043 = vector.broadcast %1042 : vector<1x128xf32> to vector<8x128xf32>
    %1044 = arith.addf %1041, %1043 : vector<8x128xf32>
    %1045 = arith.negf %1044 : vector<8x128xf32>
    %1046 = math.exp %1045 : vector<8x128xf32>
    %cst_335 = arith.constant 1.000000e+00 : f32
    %1047 = vector.broadcast %cst_335 : f32 to vector<8x128xf32>
    %1048 = arith.addf %1047, %1046 : vector<8x128xf32>
    %1049 = arith.divf %1047, %1048 : vector<8x128xf32>
    %1050 = math.tanh %1044 : vector<8x128xf32>
    %1051 = vector.extract_strided_slice %1049 {offsets = [0, 0], sizes = [8, 32], strides = [1, 1]} : vector<8x128xf32> to vector<8x32xf32>
    %1052 = vector.extract_strided_slice %1049 {offsets = [0, 32], sizes = [8, 32], strides = [1, 1]} : vector<8x128xf32> to vector<8x32xf32>
    %1053 = vector.extract_strided_slice %1050 {offsets = [0, 64], sizes = [8, 32], strides = [1, 1]} : vector<8x128xf32> to vector<8x32xf32>
    %1054 = vector.extract_strided_slice %1049 {offsets = [0, 96], sizes = [8, 32], strides = [1, 1]} : vector<8x128xf32> to vector<8x32xf32>
    %1055 = arith.mulf %1052, %1009 : vector<8x32xf32>
    %1056 = arith.mulf %1051, %1053 : vector<8x32xf32>
    %1057 = arith.addf %1055, %1056 : vector<8x32xf32>
    %1058 = math.tanh %1057 : vector<8x32xf32>
    %1059 = arith.mulf %1054, %1058 : vector<8x32xf32>
    %1060 = arith.index_cast %c21_i32 : i32 to index
    %c0_336 = arith.constant 0 : index
    %c0_337 = arith.constant 0 : index
    %1061 = vector.load %arg6[%1060, %c0_336, %c0_337] : memref<28x32x128xf32, #tpu.memory_space<vmem>>, vector<1x32x128xf32>
    %1062 = vector.shape_cast %1061 : vector<1x32x128xf32> to vector<32x128xf32>
    %cst_338 = arith.constant dense<0.000000e+00> : vector<8x128xf32>
    %1063 = tpu.matmul %1059, %1062, %cst_338 {dimension_numbers = #tpu.dot_dimension_numbers<[1], [0], [0], [1], [0, 0, 1, 1], [], []>} : vector<8x32xf32>, vector<32x128xf32>, vector<8x128xf32> -> vector<8x128xf32>
    %1064 = arith.addf %1016, %1063 : vector<8x128xf32>
    %c22_i32 = arith.constant 22 : i32
    %c8_i32_339 = arith.constant 8 : i32
    %1065 = arith.muli %c22_i32, %c8_i32_339 : i32
    %1066 = tpu.assume_multiple %1065, 8 : i32
    %1067 = arith.index_cast %1066 : i32 to index
    %c0_340 = arith.constant 0 : index
    %1068 = vector.load %arg9[%1067, %c0_340] : memref<224x128xf32, #tpu.memory_space<vmem>>, vector<8x128xf32>
    %c0_341 = arith.constant 0 : index
    %c0_342 = arith.constant 0 : index
    %1069 = vector.load %arg2[%c0_341, %c0_342] : memref<32x128xf32, #tpu.memory_space<vmem>>, vector<32x128xf32>
    %cst_343 = arith.constant dense<0.000000e+00> : vector<8x128xf32>
    %1070 = tpu.matmul %1038, %1069, %cst_343 {dimension_numbers = #tpu.dot_dimension_numbers<[1], [0], [0], [1], [0, 0, 1, 1], [], []>} : vector<8x32xf32>, vector<32x128xf32>, vector<8x128xf32> -> vector<8x128xf32>
    %1071 = arith.addf %1068, %1070 : vector<8x128xf32>
    %1072 = arith.negf %1071 : vector<8x128xf32>
    %1073 = math.exp %1072 : vector<8x128xf32>
    %cst_344 = arith.constant 1.000000e+00 : f32
    %1074 = vector.broadcast %cst_344 : f32 to vector<8x128xf32>
    %1075 = arith.addf %1074, %1073 : vector<8x128xf32>
    %1076 = arith.divf %1074, %1075 : vector<8x128xf32>
    %1077 = math.tanh %1071 : vector<8x128xf32>
    %1078 = vector.extract_strided_slice %1076 {offsets = [0, 0], sizes = [8, 32], strides = [1, 1]} : vector<8x128xf32> to vector<8x32xf32>
    %1079 = vector.extract_strided_slice %1076 {offsets = [0, 32], sizes = [8, 32], strides = [1, 1]} : vector<8x128xf32> to vector<8x32xf32>
    %1080 = vector.extract_strided_slice %1077 {offsets = [0, 64], sizes = [8, 32], strides = [1, 1]} : vector<8x128xf32> to vector<8x32xf32>
    %1081 = vector.extract_strided_slice %1076 {offsets = [0, 96], sizes = [8, 32], strides = [1, 1]} : vector<8x128xf32> to vector<8x32xf32>
    %1082 = arith.mulf %1079, %1036 : vector<8x32xf32>
    %1083 = arith.mulf %1078, %1080 : vector<8x32xf32>
    %1084 = arith.addf %1082, %1083 : vector<8x32xf32>
    %1085 = math.tanh %1084 : vector<8x32xf32>
    %1086 = arith.mulf %1081, %1085 : vector<8x32xf32>
    %1087 = tpu.concatenate %1086, %1059 in 1 : vector<8x32xf32>, vector<8x32xf32> -> vector<8x64xf32>
    %c0_345 = arith.constant 0 : index
    %c0_346 = arith.constant 0 : index
    %1088 = vector.load %arg4[%c0_345, %c0_346] : memref<64x128xf32, #tpu.memory_space<vmem>>, vector<64x128xf32>
    %cst_347 = arith.constant dense<0.000000e+00> : vector<8x128xf32>
    %1089 = tpu.matmul %1087, %1088, %cst_347 {dimension_numbers = #tpu.dot_dimension_numbers<[1], [0], [0], [1], [0, 0, 1, 1], [], []>} : vector<8x64xf32>, vector<64x128xf32>, vector<8x128xf32> -> vector<8x128xf32>
    %c0_348 = arith.constant 0 : index
    %c0_349 = arith.constant 0 : index
    %1090 = vector.load %arg5[%c0_348, %c0_349] : memref<1x128xf32, #tpu.memory_space<vmem>>, vector<1x128xf32>
    %1091 = vector.broadcast %1090 : vector<1x128xf32> to vector<8x128xf32>
    %1092 = arith.addf %1089, %1091 : vector<8x128xf32>
    %1093 = arith.negf %1092 : vector<8x128xf32>
    %1094 = math.exp %1093 : vector<8x128xf32>
    %cst_350 = arith.constant 1.000000e+00 : f32
    %1095 = vector.broadcast %cst_350 : f32 to vector<8x128xf32>
    %1096 = arith.addf %1095, %1094 : vector<8x128xf32>
    %1097 = arith.divf %1095, %1096 : vector<8x128xf32>
    %1098 = math.tanh %1092 : vector<8x128xf32>
    %1099 = vector.extract_strided_slice %1097 {offsets = [0, 0], sizes = [8, 32], strides = [1, 1]} : vector<8x128xf32> to vector<8x32xf32>
    %1100 = vector.extract_strided_slice %1097 {offsets = [0, 32], sizes = [8, 32], strides = [1, 1]} : vector<8x128xf32> to vector<8x32xf32>
    %1101 = vector.extract_strided_slice %1098 {offsets = [0, 64], sizes = [8, 32], strides = [1, 1]} : vector<8x128xf32> to vector<8x32xf32>
    %1102 = vector.extract_strided_slice %1097 {offsets = [0, 96], sizes = [8, 32], strides = [1, 1]} : vector<8x128xf32> to vector<8x32xf32>
    %1103 = arith.mulf %1100, %1057 : vector<8x32xf32>
    %1104 = arith.mulf %1099, %1101 : vector<8x32xf32>
    %1105 = arith.addf %1103, %1104 : vector<8x32xf32>
    %1106 = math.tanh %1105 : vector<8x32xf32>
    %1107 = arith.mulf %1102, %1106 : vector<8x32xf32>
    %1108 = arith.index_cast %c22_i32 : i32 to index
    %c0_351 = arith.constant 0 : index
    %c0_352 = arith.constant 0 : index
    %1109 = vector.load %arg6[%1108, %c0_351, %c0_352] : memref<28x32x128xf32, #tpu.memory_space<vmem>>, vector<1x32x128xf32>
    %1110 = vector.shape_cast %1109 : vector<1x32x128xf32> to vector<32x128xf32>
    %cst_353 = arith.constant dense<0.000000e+00> : vector<8x128xf32>
    %1111 = tpu.matmul %1107, %1110, %cst_353 {dimension_numbers = #tpu.dot_dimension_numbers<[1], [0], [0], [1], [0, 0, 1, 1], [], []>} : vector<8x32xf32>, vector<32x128xf32>, vector<8x128xf32> -> vector<8x128xf32>
    %1112 = arith.addf %1064, %1111 : vector<8x128xf32>
    %c23_i32 = arith.constant 23 : i32
    %c8_i32_354 = arith.constant 8 : i32
    %1113 = arith.muli %c23_i32, %c8_i32_354 : i32
    %1114 = tpu.assume_multiple %1113, 8 : i32
    %1115 = arith.index_cast %1114 : i32 to index
    %c0_355 = arith.constant 0 : index
    %1116 = vector.load %arg9[%1115, %c0_355] : memref<224x128xf32, #tpu.memory_space<vmem>>, vector<8x128xf32>
    %c0_356 = arith.constant 0 : index
    %c0_357 = arith.constant 0 : index
    %1117 = vector.load %arg2[%c0_356, %c0_357] : memref<32x128xf32, #tpu.memory_space<vmem>>, vector<32x128xf32>
    %cst_358 = arith.constant dense<0.000000e+00> : vector<8x128xf32>
    %1118 = tpu.matmul %1086, %1117, %cst_358 {dimension_numbers = #tpu.dot_dimension_numbers<[1], [0], [0], [1], [0, 0, 1, 1], [], []>} : vector<8x32xf32>, vector<32x128xf32>, vector<8x128xf32> -> vector<8x128xf32>
    %1119 = arith.addf %1116, %1118 : vector<8x128xf32>
    %1120 = arith.negf %1119 : vector<8x128xf32>
    %1121 = math.exp %1120 : vector<8x128xf32>
    %cst_359 = arith.constant 1.000000e+00 : f32
    %1122 = vector.broadcast %cst_359 : f32 to vector<8x128xf32>
    %1123 = arith.addf %1122, %1121 : vector<8x128xf32>
    %1124 = arith.divf %1122, %1123 : vector<8x128xf32>
    %1125 = math.tanh %1119 : vector<8x128xf32>
    %1126 = vector.extract_strided_slice %1124 {offsets = [0, 0], sizes = [8, 32], strides = [1, 1]} : vector<8x128xf32> to vector<8x32xf32>
    %1127 = vector.extract_strided_slice %1124 {offsets = [0, 32], sizes = [8, 32], strides = [1, 1]} : vector<8x128xf32> to vector<8x32xf32>
    %1128 = vector.extract_strided_slice %1125 {offsets = [0, 64], sizes = [8, 32], strides = [1, 1]} : vector<8x128xf32> to vector<8x32xf32>
    %1129 = vector.extract_strided_slice %1124 {offsets = [0, 96], sizes = [8, 32], strides = [1, 1]} : vector<8x128xf32> to vector<8x32xf32>
    %1130 = arith.mulf %1127, %1084 : vector<8x32xf32>
    %1131 = arith.mulf %1126, %1128 : vector<8x32xf32>
    %1132 = arith.addf %1130, %1131 : vector<8x32xf32>
    %1133 = math.tanh %1132 : vector<8x32xf32>
    %1134 = arith.mulf %1129, %1133 : vector<8x32xf32>
    %1135 = tpu.concatenate %1134, %1107 in 1 : vector<8x32xf32>, vector<8x32xf32> -> vector<8x64xf32>
    %c0_360 = arith.constant 0 : index
    %c0_361 = arith.constant 0 : index
    %1136 = vector.load %arg4[%c0_360, %c0_361] : memref<64x128xf32, #tpu.memory_space<vmem>>, vector<64x128xf32>
    %cst_362 = arith.constant dense<0.000000e+00> : vector<8x128xf32>
    %1137 = tpu.matmul %1135, %1136, %cst_362 {dimension_numbers = #tpu.dot_dimension_numbers<[1], [0], [0], [1], [0, 0, 1, 1], [], []>} : vector<8x64xf32>, vector<64x128xf32>, vector<8x128xf32> -> vector<8x128xf32>
    %c0_363 = arith.constant 0 : index
    %c0_364 = arith.constant 0 : index
    %1138 = vector.load %arg5[%c0_363, %c0_364] : memref<1x128xf32, #tpu.memory_space<vmem>>, vector<1x128xf32>
    %1139 = vector.broadcast %1138 : vector<1x128xf32> to vector<8x128xf32>
    %1140 = arith.addf %1137, %1139 : vector<8x128xf32>
    %1141 = arith.negf %1140 : vector<8x128xf32>
    %1142 = math.exp %1141 : vector<8x128xf32>
    %cst_365 = arith.constant 1.000000e+00 : f32
    %1143 = vector.broadcast %cst_365 : f32 to vector<8x128xf32>
    %1144 = arith.addf %1143, %1142 : vector<8x128xf32>
    %1145 = arith.divf %1143, %1144 : vector<8x128xf32>
    %1146 = math.tanh %1140 : vector<8x128xf32>
    %1147 = vector.extract_strided_slice %1145 {offsets = [0, 0], sizes = [8, 32], strides = [1, 1]} : vector<8x128xf32> to vector<8x32xf32>
    %1148 = vector.extract_strided_slice %1145 {offsets = [0, 32], sizes = [8, 32], strides = [1, 1]} : vector<8x128xf32> to vector<8x32xf32>
    %1149 = vector.extract_strided_slice %1146 {offsets = [0, 64], sizes = [8, 32], strides = [1, 1]} : vector<8x128xf32> to vector<8x32xf32>
    %1150 = vector.extract_strided_slice %1145 {offsets = [0, 96], sizes = [8, 32], strides = [1, 1]} : vector<8x128xf32> to vector<8x32xf32>
    %1151 = arith.mulf %1148, %1105 : vector<8x32xf32>
    %1152 = arith.mulf %1147, %1149 : vector<8x32xf32>
    %1153 = arith.addf %1151, %1152 : vector<8x32xf32>
    %1154 = math.tanh %1153 : vector<8x32xf32>
    %1155 = arith.mulf %1150, %1154 : vector<8x32xf32>
    %1156 = arith.index_cast %c23_i32 : i32 to index
    %c0_366 = arith.constant 0 : index
    %c0_367 = arith.constant 0 : index
    %1157 = vector.load %arg6[%1156, %c0_366, %c0_367] : memref<28x32x128xf32, #tpu.memory_space<vmem>>, vector<1x32x128xf32>
    %1158 = vector.shape_cast %1157 : vector<1x32x128xf32> to vector<32x128xf32>
    %cst_368 = arith.constant dense<0.000000e+00> : vector<8x128xf32>
    %1159 = tpu.matmul %1155, %1158, %cst_368 {dimension_numbers = #tpu.dot_dimension_numbers<[1], [0], [0], [1], [0, 0, 1, 1], [], []>} : vector<8x32xf32>, vector<32x128xf32>, vector<8x128xf32> -> vector<8x128xf32>
    %1160 = arith.addf %1112, %1159 : vector<8x128xf32>
    %c24_i32 = arith.constant 24 : i32
    %c8_i32_369 = arith.constant 8 : i32
    %1161 = arith.muli %c24_i32, %c8_i32_369 : i32
    %1162 = tpu.assume_multiple %1161, 8 : i32
    %1163 = arith.index_cast %1162 : i32 to index
    %c0_370 = arith.constant 0 : index
    %1164 = vector.load %arg9[%1163, %c0_370] : memref<224x128xf32, #tpu.memory_space<vmem>>, vector<8x128xf32>
    %c0_371 = arith.constant 0 : index
    %c0_372 = arith.constant 0 : index
    %1165 = vector.load %arg2[%c0_371, %c0_372] : memref<32x128xf32, #tpu.memory_space<vmem>>, vector<32x128xf32>
    %cst_373 = arith.constant dense<0.000000e+00> : vector<8x128xf32>
    %1166 = tpu.matmul %1134, %1165, %cst_373 {dimension_numbers = #tpu.dot_dimension_numbers<[1], [0], [0], [1], [0, 0, 1, 1], [], []>} : vector<8x32xf32>, vector<32x128xf32>, vector<8x128xf32> -> vector<8x128xf32>
    %1167 = arith.addf %1164, %1166 : vector<8x128xf32>
    %1168 = arith.negf %1167 : vector<8x128xf32>
    %1169 = math.exp %1168 : vector<8x128xf32>
    %cst_374 = arith.constant 1.000000e+00 : f32
    %1170 = vector.broadcast %cst_374 : f32 to vector<8x128xf32>
    %1171 = arith.addf %1170, %1169 : vector<8x128xf32>
    %1172 = arith.divf %1170, %1171 : vector<8x128xf32>
    %1173 = math.tanh %1167 : vector<8x128xf32>
    %1174 = vector.extract_strided_slice %1172 {offsets = [0, 0], sizes = [8, 32], strides = [1, 1]} : vector<8x128xf32> to vector<8x32xf32>
    %1175 = vector.extract_strided_slice %1172 {offsets = [0, 32], sizes = [8, 32], strides = [1, 1]} : vector<8x128xf32> to vector<8x32xf32>
    %1176 = vector.extract_strided_slice %1173 {offsets = [0, 64], sizes = [8, 32], strides = [1, 1]} : vector<8x128xf32> to vector<8x32xf32>
    %1177 = vector.extract_strided_slice %1172 {offsets = [0, 96], sizes = [8, 32], strides = [1, 1]} : vector<8x128xf32> to vector<8x32xf32>
    %1178 = arith.mulf %1175, %1132 : vector<8x32xf32>
    %1179 = arith.mulf %1174, %1176 : vector<8x32xf32>
    %1180 = arith.addf %1178, %1179 : vector<8x32xf32>
    %1181 = math.tanh %1180 : vector<8x32xf32>
    %1182 = arith.mulf %1177, %1181 : vector<8x32xf32>
    %1183 = tpu.concatenate %1182, %1155 in 1 : vector<8x32xf32>, vector<8x32xf32> -> vector<8x64xf32>
    %c0_375 = arith.constant 0 : index
    %c0_376 = arith.constant 0 : index
    %1184 = vector.load %arg4[%c0_375, %c0_376] : memref<64x128xf32, #tpu.memory_space<vmem>>, vector<64x128xf32>
    %cst_377 = arith.constant dense<0.000000e+00> : vector<8x128xf32>
    %1185 = tpu.matmul %1183, %1184, %cst_377 {dimension_numbers = #tpu.dot_dimension_numbers<[1], [0], [0], [1], [0, 0, 1, 1], [], []>} : vector<8x64xf32>, vector<64x128xf32>, vector<8x128xf32> -> vector<8x128xf32>
    %c0_378 = arith.constant 0 : index
    %c0_379 = arith.constant 0 : index
    %1186 = vector.load %arg5[%c0_378, %c0_379] : memref<1x128xf32, #tpu.memory_space<vmem>>, vector<1x128xf32>
    %1187 = vector.broadcast %1186 : vector<1x128xf32> to vector<8x128xf32>
    %1188 = arith.addf %1185, %1187 : vector<8x128xf32>
    %1189 = arith.negf %1188 : vector<8x128xf32>
    %1190 = math.exp %1189 : vector<8x128xf32>
    %cst_380 = arith.constant 1.000000e+00 : f32
    %1191 = vector.broadcast %cst_380 : f32 to vector<8x128xf32>
    %1192 = arith.addf %1191, %1190 : vector<8x128xf32>
    %1193 = arith.divf %1191, %1192 : vector<8x128xf32>
    %1194 = math.tanh %1188 : vector<8x128xf32>
    %1195 = vector.extract_strided_slice %1193 {offsets = [0, 0], sizes = [8, 32], strides = [1, 1]} : vector<8x128xf32> to vector<8x32xf32>
    %1196 = vector.extract_strided_slice %1193 {offsets = [0, 32], sizes = [8, 32], strides = [1, 1]} : vector<8x128xf32> to vector<8x32xf32>
    %1197 = vector.extract_strided_slice %1194 {offsets = [0, 64], sizes = [8, 32], strides = [1, 1]} : vector<8x128xf32> to vector<8x32xf32>
    %1198 = vector.extract_strided_slice %1193 {offsets = [0, 96], sizes = [8, 32], strides = [1, 1]} : vector<8x128xf32> to vector<8x32xf32>
    %1199 = arith.mulf %1196, %1153 : vector<8x32xf32>
    %1200 = arith.mulf %1195, %1197 : vector<8x32xf32>
    %1201 = arith.addf %1199, %1200 : vector<8x32xf32>
    %1202 = math.tanh %1201 : vector<8x32xf32>
    %1203 = arith.mulf %1198, %1202 : vector<8x32xf32>
    %1204 = arith.index_cast %c24_i32 : i32 to index
    %c0_381 = arith.constant 0 : index
    %c0_382 = arith.constant 0 : index
    %1205 = vector.load %arg6[%1204, %c0_381, %c0_382] : memref<28x32x128xf32, #tpu.memory_space<vmem>>, vector<1x32x128xf32>
    %1206 = vector.shape_cast %1205 : vector<1x32x128xf32> to vector<32x128xf32>
    %cst_383 = arith.constant dense<0.000000e+00> : vector<8x128xf32>
    %1207 = tpu.matmul %1203, %1206, %cst_383 {dimension_numbers = #tpu.dot_dimension_numbers<[1], [0], [0], [1], [0, 0, 1, 1], [], []>} : vector<8x32xf32>, vector<32x128xf32>, vector<8x128xf32> -> vector<8x128xf32>
    %1208 = arith.addf %1160, %1207 : vector<8x128xf32>
    %c25_i32 = arith.constant 25 : i32
    %c8_i32_384 = arith.constant 8 : i32
    %1209 = arith.muli %c25_i32, %c8_i32_384 : i32
    %1210 = tpu.assume_multiple %1209, 8 : i32
    %1211 = arith.index_cast %1210 : i32 to index
    %c0_385 = arith.constant 0 : index
    %1212 = vector.load %arg9[%1211, %c0_385] : memref<224x128xf32, #tpu.memory_space<vmem>>, vector<8x128xf32>
    %c0_386 = arith.constant 0 : index
    %c0_387 = arith.constant 0 : index
    %1213 = vector.load %arg2[%c0_386, %c0_387] : memref<32x128xf32, #tpu.memory_space<vmem>>, vector<32x128xf32>
    %cst_388 = arith.constant dense<0.000000e+00> : vector<8x128xf32>
    %1214 = tpu.matmul %1182, %1213, %cst_388 {dimension_numbers = #tpu.dot_dimension_numbers<[1], [0], [0], [1], [0, 0, 1, 1], [], []>} : vector<8x32xf32>, vector<32x128xf32>, vector<8x128xf32> -> vector<8x128xf32>
    %1215 = arith.addf %1212, %1214 : vector<8x128xf32>
    %1216 = arith.negf %1215 : vector<8x128xf32>
    %1217 = math.exp %1216 : vector<8x128xf32>
    %cst_389 = arith.constant 1.000000e+00 : f32
    %1218 = vector.broadcast %cst_389 : f32 to vector<8x128xf32>
    %1219 = arith.addf %1218, %1217 : vector<8x128xf32>
    %1220 = arith.divf %1218, %1219 : vector<8x128xf32>
    %1221 = math.tanh %1215 : vector<8x128xf32>
    %1222 = vector.extract_strided_slice %1220 {offsets = [0, 0], sizes = [8, 32], strides = [1, 1]} : vector<8x128xf32> to vector<8x32xf32>
    %1223 = vector.extract_strided_slice %1220 {offsets = [0, 32], sizes = [8, 32], strides = [1, 1]} : vector<8x128xf32> to vector<8x32xf32>
    %1224 = vector.extract_strided_slice %1221 {offsets = [0, 64], sizes = [8, 32], strides = [1, 1]} : vector<8x128xf32> to vector<8x32xf32>
    %1225 = vector.extract_strided_slice %1220 {offsets = [0, 96], sizes = [8, 32], strides = [1, 1]} : vector<8x128xf32> to vector<8x32xf32>
    %1226 = arith.mulf %1223, %1180 : vector<8x32xf32>
    %1227 = arith.mulf %1222, %1224 : vector<8x32xf32>
    %1228 = arith.addf %1226, %1227 : vector<8x32xf32>
    %1229 = math.tanh %1228 : vector<8x32xf32>
    %1230 = arith.mulf %1225, %1229 : vector<8x32xf32>
    %1231 = tpu.concatenate %1230, %1203 in 1 : vector<8x32xf32>, vector<8x32xf32> -> vector<8x64xf32>
    %c0_390 = arith.constant 0 : index
    %c0_391 = arith.constant 0 : index
    %1232 = vector.load %arg4[%c0_390, %c0_391] : memref<64x128xf32, #tpu.memory_space<vmem>>, vector<64x128xf32>
    %cst_392 = arith.constant dense<0.000000e+00> : vector<8x128xf32>
    %1233 = tpu.matmul %1231, %1232, %cst_392 {dimension_numbers = #tpu.dot_dimension_numbers<[1], [0], [0], [1], [0, 0, 1, 1], [], []>} : vector<8x64xf32>, vector<64x128xf32>, vector<8x128xf32> -> vector<8x128xf32>
    %c0_393 = arith.constant 0 : index
    %c0_394 = arith.constant 0 : index
    %1234 = vector.load %arg5[%c0_393, %c0_394] : memref<1x128xf32, #tpu.memory_space<vmem>>, vector<1x128xf32>
    %1235 = vector.broadcast %1234 : vector<1x128xf32> to vector<8x128xf32>
    %1236 = arith.addf %1233, %1235 : vector<8x128xf32>
    %1237 = arith.negf %1236 : vector<8x128xf32>
    %1238 = math.exp %1237 : vector<8x128xf32>
    %cst_395 = arith.constant 1.000000e+00 : f32
    %1239 = vector.broadcast %cst_395 : f32 to vector<8x128xf32>
    %1240 = arith.addf %1239, %1238 : vector<8x128xf32>
    %1241 = arith.divf %1239, %1240 : vector<8x128xf32>
    %1242 = math.tanh %1236 : vector<8x128xf32>
    %1243 = vector.extract_strided_slice %1241 {offsets = [0, 0], sizes = [8, 32], strides = [1, 1]} : vector<8x128xf32> to vector<8x32xf32>
    %1244 = vector.extract_strided_slice %1241 {offsets = [0, 32], sizes = [8, 32], strides = [1, 1]} : vector<8x128xf32> to vector<8x32xf32>
    %1245 = vector.extract_strided_slice %1242 {offsets = [0, 64], sizes = [8, 32], strides = [1, 1]} : vector<8x128xf32> to vector<8x32xf32>
    %1246 = vector.extract_strided_slice %1241 {offsets = [0, 96], sizes = [8, 32], strides = [1, 1]} : vector<8x128xf32> to vector<8x32xf32>
    %1247 = arith.mulf %1244, %1201 : vector<8x32xf32>
    %1248 = arith.mulf %1243, %1245 : vector<8x32xf32>
    %1249 = arith.addf %1247, %1248 : vector<8x32xf32>
    %1250 = math.tanh %1249 : vector<8x32xf32>
    %1251 = arith.mulf %1246, %1250 : vector<8x32xf32>
    %1252 = arith.index_cast %c25_i32 : i32 to index
    %c0_396 = arith.constant 0 : index
    %c0_397 = arith.constant 0 : index
    %1253 = vector.load %arg6[%1252, %c0_396, %c0_397] : memref<28x32x128xf32, #tpu.memory_space<vmem>>, vector<1x32x128xf32>
    %1254 = vector.shape_cast %1253 : vector<1x32x128xf32> to vector<32x128xf32>
    %cst_398 = arith.constant dense<0.000000e+00> : vector<8x128xf32>
    %1255 = tpu.matmul %1251, %1254, %cst_398 {dimension_numbers = #tpu.dot_dimension_numbers<[1], [0], [0], [1], [0, 0, 1, 1], [], []>} : vector<8x32xf32>, vector<32x128xf32>, vector<8x128xf32> -> vector<8x128xf32>
    %1256 = arith.addf %1208, %1255 : vector<8x128xf32>
    %c26_i32 = arith.constant 26 : i32
    %c8_i32_399 = arith.constant 8 : i32
    %1257 = arith.muli %c26_i32, %c8_i32_399 : i32
    %1258 = tpu.assume_multiple %1257, 8 : i32
    %1259 = arith.index_cast %1258 : i32 to index
    %c0_400 = arith.constant 0 : index
    %1260 = vector.load %arg9[%1259, %c0_400] : memref<224x128xf32, #tpu.memory_space<vmem>>, vector<8x128xf32>
    %c0_401 = arith.constant 0 : index
    %c0_402 = arith.constant 0 : index
    %1261 = vector.load %arg2[%c0_401, %c0_402] : memref<32x128xf32, #tpu.memory_space<vmem>>, vector<32x128xf32>
    %cst_403 = arith.constant dense<0.000000e+00> : vector<8x128xf32>
    %1262 = tpu.matmul %1230, %1261, %cst_403 {dimension_numbers = #tpu.dot_dimension_numbers<[1], [0], [0], [1], [0, 0, 1, 1], [], []>} : vector<8x32xf32>, vector<32x128xf32>, vector<8x128xf32> -> vector<8x128xf32>
    %1263 = arith.addf %1260, %1262 : vector<8x128xf32>
    %1264 = arith.negf %1263 : vector<8x128xf32>
    %1265 = math.exp %1264 : vector<8x128xf32>
    %cst_404 = arith.constant 1.000000e+00 : f32
    %1266 = vector.broadcast %cst_404 : f32 to vector<8x128xf32>
    %1267 = arith.addf %1266, %1265 : vector<8x128xf32>
    %1268 = arith.divf %1266, %1267 : vector<8x128xf32>
    %1269 = math.tanh %1263 : vector<8x128xf32>
    %1270 = vector.extract_strided_slice %1268 {offsets = [0, 0], sizes = [8, 32], strides = [1, 1]} : vector<8x128xf32> to vector<8x32xf32>
    %1271 = vector.extract_strided_slice %1268 {offsets = [0, 32], sizes = [8, 32], strides = [1, 1]} : vector<8x128xf32> to vector<8x32xf32>
    %1272 = vector.extract_strided_slice %1269 {offsets = [0, 64], sizes = [8, 32], strides = [1, 1]} : vector<8x128xf32> to vector<8x32xf32>
    %1273 = vector.extract_strided_slice %1268 {offsets = [0, 96], sizes = [8, 32], strides = [1, 1]} : vector<8x128xf32> to vector<8x32xf32>
    %1274 = arith.mulf %1271, %1228 : vector<8x32xf32>
    %1275 = arith.mulf %1270, %1272 : vector<8x32xf32>
    %1276 = arith.addf %1274, %1275 : vector<8x32xf32>
    %1277 = math.tanh %1276 : vector<8x32xf32>
    %1278 = arith.mulf %1273, %1277 : vector<8x32xf32>
    %1279 = tpu.concatenate %1278, %1251 in 1 : vector<8x32xf32>, vector<8x32xf32> -> vector<8x64xf32>
    %c0_405 = arith.constant 0 : index
    %c0_406 = arith.constant 0 : index
    %1280 = vector.load %arg4[%c0_405, %c0_406] : memref<64x128xf32, #tpu.memory_space<vmem>>, vector<64x128xf32>
    %cst_407 = arith.constant dense<0.000000e+00> : vector<8x128xf32>
    %1281 = tpu.matmul %1279, %1280, %cst_407 {dimension_numbers = #tpu.dot_dimension_numbers<[1], [0], [0], [1], [0, 0, 1, 1], [], []>} : vector<8x64xf32>, vector<64x128xf32>, vector<8x128xf32> -> vector<8x128xf32>
    %c0_408 = arith.constant 0 : index
    %c0_409 = arith.constant 0 : index
    %1282 = vector.load %arg5[%c0_408, %c0_409] : memref<1x128xf32, #tpu.memory_space<vmem>>, vector<1x128xf32>
    %1283 = vector.broadcast %1282 : vector<1x128xf32> to vector<8x128xf32>
    %1284 = arith.addf %1281, %1283 : vector<8x128xf32>
    %1285 = arith.negf %1284 : vector<8x128xf32>
    %1286 = math.exp %1285 : vector<8x128xf32>
    %cst_410 = arith.constant 1.000000e+00 : f32
    %1287 = vector.broadcast %cst_410 : f32 to vector<8x128xf32>
    %1288 = arith.addf %1287, %1286 : vector<8x128xf32>
    %1289 = arith.divf %1287, %1288 : vector<8x128xf32>
    %1290 = math.tanh %1284 : vector<8x128xf32>
    %1291 = vector.extract_strided_slice %1289 {offsets = [0, 0], sizes = [8, 32], strides = [1, 1]} : vector<8x128xf32> to vector<8x32xf32>
    %1292 = vector.extract_strided_slice %1289 {offsets = [0, 32], sizes = [8, 32], strides = [1, 1]} : vector<8x128xf32> to vector<8x32xf32>
    %1293 = vector.extract_strided_slice %1290 {offsets = [0, 64], sizes = [8, 32], strides = [1, 1]} : vector<8x128xf32> to vector<8x32xf32>
    %1294 = vector.extract_strided_slice %1289 {offsets = [0, 96], sizes = [8, 32], strides = [1, 1]} : vector<8x128xf32> to vector<8x32xf32>
    %1295 = arith.mulf %1292, %1249 : vector<8x32xf32>
    %1296 = arith.mulf %1291, %1293 : vector<8x32xf32>
    %1297 = arith.addf %1295, %1296 : vector<8x32xf32>
    %1298 = math.tanh %1297 : vector<8x32xf32>
    %1299 = arith.mulf %1294, %1298 : vector<8x32xf32>
    %1300 = arith.index_cast %c26_i32 : i32 to index
    %c0_411 = arith.constant 0 : index
    %c0_412 = arith.constant 0 : index
    %1301 = vector.load %arg6[%1300, %c0_411, %c0_412] : memref<28x32x128xf32, #tpu.memory_space<vmem>>, vector<1x32x128xf32>
    %1302 = vector.shape_cast %1301 : vector<1x32x128xf32> to vector<32x128xf32>
    %cst_413 = arith.constant dense<0.000000e+00> : vector<8x128xf32>
    %1303 = tpu.matmul %1299, %1302, %cst_413 {dimension_numbers = #tpu.dot_dimension_numbers<[1], [0], [0], [1], [0, 0, 1, 1], [], []>} : vector<8x32xf32>, vector<32x128xf32>, vector<8x128xf32> -> vector<8x128xf32>
    %1304 = arith.addf %1256, %1303 : vector<8x128xf32>
    %c27_i32 = arith.constant 27 : i32
    %c8_i32_414 = arith.constant 8 : i32
    %1305 = arith.muli %c27_i32, %c8_i32_414 : i32
    %1306 = tpu.assume_multiple %1305, 8 : i32
    %1307 = arith.index_cast %1306 : i32 to index
    %c0_415 = arith.constant 0 : index
    %1308 = vector.load %arg9[%1307, %c0_415] : memref<224x128xf32, #tpu.memory_space<vmem>>, vector<8x128xf32>
    %c0_416 = arith.constant 0 : index
    %c0_417 = arith.constant 0 : index
    %1309 = vector.load %arg2[%c0_416, %c0_417] : memref<32x128xf32, #tpu.memory_space<vmem>>, vector<32x128xf32>
    %cst_418 = arith.constant dense<0.000000e+00> : vector<8x128xf32>
    %1310 = tpu.matmul %1278, %1309, %cst_418 {dimension_numbers = #tpu.dot_dimension_numbers<[1], [0], [0], [1], [0, 0, 1, 1], [], []>} : vector<8x32xf32>, vector<32x128xf32>, vector<8x128xf32> -> vector<8x128xf32>
    %1311 = arith.addf %1308, %1310 : vector<8x128xf32>
    %1312 = arith.negf %1311 : vector<8x128xf32>
    %1313 = math.exp %1312 : vector<8x128xf32>
    %cst_419 = arith.constant 1.000000e+00 : f32
    %1314 = vector.broadcast %cst_419 : f32 to vector<8x128xf32>
    %1315 = arith.addf %1314, %1313 : vector<8x128xf32>
    %1316 = arith.divf %1314, %1315 : vector<8x128xf32>
    %1317 = math.tanh %1311 : vector<8x128xf32>
    %1318 = vector.extract_strided_slice %1316 {offsets = [0, 0], sizes = [8, 32], strides = [1, 1]} : vector<8x128xf32> to vector<8x32xf32>
    %1319 = vector.extract_strided_slice %1316 {offsets = [0, 32], sizes = [8, 32], strides = [1, 1]} : vector<8x128xf32> to vector<8x32xf32>
    %1320 = vector.extract_strided_slice %1317 {offsets = [0, 64], sizes = [8, 32], strides = [1, 1]} : vector<8x128xf32> to vector<8x32xf32>
    %1321 = vector.extract_strided_slice %1316 {offsets = [0, 96], sizes = [8, 32], strides = [1, 1]} : vector<8x128xf32> to vector<8x32xf32>
    %1322 = arith.mulf %1319, %1276 : vector<8x32xf32>
    %1323 = arith.mulf %1318, %1320 : vector<8x32xf32>
    %1324 = arith.addf %1322, %1323 : vector<8x32xf32>
    %1325 = math.tanh %1324 : vector<8x32xf32>
    %1326 = arith.mulf %1321, %1325 : vector<8x32xf32>
    %1327 = tpu.concatenate %1326, %1299 in 1 : vector<8x32xf32>, vector<8x32xf32> -> vector<8x64xf32>
    %c0_420 = arith.constant 0 : index
    %c0_421 = arith.constant 0 : index
    %1328 = vector.load %arg4[%c0_420, %c0_421] : memref<64x128xf32, #tpu.memory_space<vmem>>, vector<64x128xf32>
    %cst_422 = arith.constant dense<0.000000e+00> : vector<8x128xf32>
    %1329 = tpu.matmul %1327, %1328, %cst_422 {dimension_numbers = #tpu.dot_dimension_numbers<[1], [0], [0], [1], [0, 0, 1, 1], [], []>} : vector<8x64xf32>, vector<64x128xf32>, vector<8x128xf32> -> vector<8x128xf32>
    %c0_423 = arith.constant 0 : index
    %c0_424 = arith.constant 0 : index
    %1330 = vector.load %arg5[%c0_423, %c0_424] : memref<1x128xf32, #tpu.memory_space<vmem>>, vector<1x128xf32>
    %1331 = vector.broadcast %1330 : vector<1x128xf32> to vector<8x128xf32>
    %1332 = arith.addf %1329, %1331 : vector<8x128xf32>
    %1333 = arith.negf %1332 : vector<8x128xf32>
    %1334 = math.exp %1333 : vector<8x128xf32>
    %cst_425 = arith.constant 1.000000e+00 : f32
    %1335 = vector.broadcast %cst_425 : f32 to vector<8x128xf32>
    %1336 = arith.addf %1335, %1334 : vector<8x128xf32>
    %1337 = arith.divf %1335, %1336 : vector<8x128xf32>
    %1338 = math.tanh %1332 : vector<8x128xf32>
    %1339 = vector.extract_strided_slice %1337 {offsets = [0, 0], sizes = [8, 32], strides = [1, 1]} : vector<8x128xf32> to vector<8x32xf32>
    %1340 = vector.extract_strided_slice %1337 {offsets = [0, 32], sizes = [8, 32], strides = [1, 1]} : vector<8x128xf32> to vector<8x32xf32>
    %1341 = vector.extract_strided_slice %1338 {offsets = [0, 64], sizes = [8, 32], strides = [1, 1]} : vector<8x128xf32> to vector<8x32xf32>
    %1342 = vector.extract_strided_slice %1337 {offsets = [0, 96], sizes = [8, 32], strides = [1, 1]} : vector<8x128xf32> to vector<8x32xf32>
    %1343 = arith.mulf %1340, %1297 : vector<8x32xf32>
    %1344 = arith.mulf %1339, %1341 : vector<8x32xf32>
    %1345 = arith.addf %1343, %1344 : vector<8x32xf32>
    %1346 = math.tanh %1345 : vector<8x32xf32>
    %1347 = arith.mulf %1342, %1346 : vector<8x32xf32>
    %1348 = arith.index_cast %c27_i32 : i32 to index
    %c0_426 = arith.constant 0 : index
    %c0_427 = arith.constant 0 : index
    %1349 = vector.load %arg6[%1348, %c0_426, %c0_427] : memref<28x32x128xf32, #tpu.memory_space<vmem>>, vector<1x32x128xf32>
    %1350 = vector.shape_cast %1349 : vector<1x32x128xf32> to vector<32x128xf32>
    %cst_428 = arith.constant dense<0.000000e+00> : vector<8x128xf32>
    %1351 = tpu.matmul %1347, %1350, %cst_428 {dimension_numbers = #tpu.dot_dimension_numbers<[1], [0], [0], [1], [0, 0, 1, 1], [], []>} : vector<8x32xf32>, vector<32x128xf32>, vector<8x128xf32> -> vector<8x128xf32>
    %1352 = arith.addf %1304, %1351 : vector<8x128xf32>
    %c28_i32 = arith.constant 28 : i32
    %c0_429 = arith.constant 0 : index
    %c0_430 = arith.constant 0 : index
    %1353 = vector.load %arg7[%c0_429, %c0_430] : memref<1x128xf32, #tpu.memory_space<vmem>>, vector<1x128xf32>
    %1354 = vector.broadcast %1353 : vector<1x128xf32> to vector<8x128xf32>
    %1355 = arith.addf %1352, %1354 : vector<8x128xf32>
    %c0_431 = arith.constant 0 : index
    %c0_432 = arith.constant 0 : index
    %1356 = vector.load %arg8[%c0_431, %c0_432] : memref<8x128xf32, #tpu.memory_space<vmem>>, vector<8x128xf32>
    tpu.vector_store %arg8[%c0_431, %c0_432], %1355 {strides = array<i32>} : memref<8x128xf32, #tpu.memory_space<vmem>>, vector<8x128xf32>,
    return
  }
}

</mosaic_0001>

<bundles_post_ra>
// kernel: tpu_custom_call.1
= control target key start
LH: loop header
LB: loop body
LE: loop exit
PB: predicated region body
PF: predicated region fallthrough
CT: control target
= control target key end

     0   :  { %13 = vsyncpa [#allocation4], 0  ;;  %s7195_s0 = inlined_call_operand.vmem [shape: f32[224,28], index: 0, kind: input, shape index: {}]   ;;  %s7196_s1 = inlined_call_operand.vmem [shape: f32[28,128], index: 1, kind: input, shape index: {}]   ;;  %s7197_s2 = inlined_call_operand.vmem [shape: f32[32,128], index: 2, kind: input, shape index: {}]   ;;  %s7198_s3 = inlined_call_operand.vmem [shape: f32[1,128], index: 3, kind: input, shape index: {}]   ;;  %s7199_s4 = inlined_call_operand.vmem [shape: f32[64,128], index: 4, kind: input, shape index: {}]   ;;  %s7200_s5 = inlined_call_operand.vmem [shape: f32[1,128], index: 5, kind: input, shape index: {}]   ;;  %s7201_s6 = inlined_call_operand.hbm [shape: f32[28,32,128], index: 6, kind: input, shape index: {}]   ;;  %s7202_s7 = inlined_call_operand.vmem [shape: f32[1,128], index: 7, kind: input, shape index: {}]   ;;  %s7203_s8 = inlined_call_operand.hbm [shape: f32[8,128], index: 8, kind: output, shape index: {}]  }
   0x1   :  { %14 = vsyncpa [#allocation5], 0  ;;  %s31_s29 = sshll.u32 %s7201_s6, 4  ;;  %s5579_s30 = smov [#allocation3]   ;;  %s32_s29 = int_to_ptr.hbm [resolvable:$true] %s31_s29 }
   0x2   :  { %s33_s9 = sshll.u32 %s5579_s30, 4  ;;  %s5580_s10 = smov 128   ;;  %s34_s9 = int_to_ptr.vmem [resolvable:$true] %s33_s9 }
   0x3   :  { %s5581_s11 = smov 8  }
   0x4   :  { %39 = dma.hbm_to_vmem [thread:$0]  %s32_s29, 14336, %s34_s9, [#allocation4], %s5580_s10, %s5580_s10, %s5581_s11  }
   0x5   :  { %5575 = dma.done.wait [#allocation4], 14336  }
   0x6   :  { %5576 = vsyncadd [#allocation4], 4294952960  ;;  %vm167_vm0 = vcmask 1043456   ;;  %v77_v0 = vld [vmem:[%s7196_s1 + $0x18] sm:$0xf]  ;;  %v76_v1 = vld [vmem:[%s7196_s1 + $0x10] sm:$0xff] }
   0x7   :  { %v5643_v2 = vld [vmem:[%s7197_s2 + $0x18] sm:$0xff]  ;;  %4843 = vmatpush.msk.msra.mxu0 %vm167_vm0, %v77_v0  ;;  %v5649_v3 = vld [vmem:[%s7197_s2 + $0x10] sm:$0xff]  ;;  %v75_v4 = vld [vmem:[%s7196_s1 + $0x8] sm:$0xff]  ;;  %vm82_vm1 = vcmask 228352   ;;  %v5582_v9 = vmov 0.0   ;;  %s5583_s30 = smov 64  }
   0x8   :  { %321 = vmatpush.msra.mxu1 %v5643_v2  ;;  %v5657_v5 = vld [vmem:[%s7197_s2 + $0x8] sm:$0xff]  ;;  %465 = vmatpush.msra.mxu3 %v5643_v2  ;;  %v74_v6 = vld [vmem:[%s7196_s1] sm:$0xff]  ;;  %s5584_s9 = smov 32   ;;  %v5693_v35 = vld [vmem:[%s7199_s4 + $0x38] sm:$0xff]  ;;  %vm305_vm6 = vcmask 261120   ;;  %vm384_vm7 = vcmask 523264  }
   0x9   :  { %184 = vmatpush.msra.mxu0 %v76_v1  ;;  %v5667_v7 = vld [vmem:[%s7197_s2] sm:$0xff]  ;;  %v5698_v36 = vld [vmem:[%s7199_s4 + $0x30] sm:$0xff]  ;;  %396 = vmatpush.msra.mxu2 %v5693_v35  ;;  %v5705_v37 = vld [vmem:[%s7199_s4 + $0x28] sm:$0xff]  ;;  %s4833_s19 = sshll.u32 %s7203_s8, 4  ;;  %s4834_s19 = int_to_ptr.hbm [resolvable:$true] %s4833_s19 }
   0xa   :  { %322 = vmatpush.msra.mxu1 %v5649_v3  ;;  %466 = vmatpush.msra.mxu3 %v5649_v3  ;;  %v46_v8 = vld [vmem:[%s7195_s0] sm:$0xff]  ;;  %v5721_v39 = vld [vmem:[%s7199_s4 + $0x18] sm:$0xff]  ;;  %v5729_v40 = vld [vmem:[%s7199_s4 + $0x10] sm:$0xff] }
   0xb   :  { %185 = vmatpush.msra.mxu0 %v75_v4  ;;  %v5681_v10 = vld [vmem:[%s7198_s3] ss:$0 sm:$0xff]  ;;  %397 = vmatpush.msra.mxu2 %v5698_v36  ;;  %v5737_v41 = vld [vmem:[%s7199_s4 + $0x8] sm:$0xff] }
   0xc   :  { %323 = vmatpush.msra.mxu1 %v5657_v5  ;;  %467 = vmatpush.msra.mxu3 %v5657_v5  ;;  %v5713_v38 = vld [vmem:[%s7199_s4 + $0x20] sm:$0xff]  ;;  %v47_v45 = vld [vmem:[%s7195_s0 + $0x8] sm:$0xff] }
   0xd   :  { %186 = vmatpush.msra.mxu0 %v74_v6  ;;  %398 = vmatpush.msra.mxu2 %v5705_v37  ;;  %v5750_v44 = vld [vmem:[%s7199_s4] sm:$0xff] }
   0xe   :  { %324 = vmatpush.msra.mxu1 %v5667_v7  ;;  %4844 = vmatmul.msk.f32.vlgmr.msra.gmra.mxu0 %vm82_vm1, %v46_v8  ;;  %v5781_v48 = vld [vmem:[%s7200_s5] ss:$0 sm:$0xff] }
   0xf   :  { %325 = vmatmul.f32.vlgmr.msra.gmra.mxu1 %v5582_v9  ;;  %468 = vmatpush.msra.mxu3 %v5667_v7 }
  0x10   :  { %531 = vmatpush.msrb.mxu1 %v5693_v35  ;;  %3613 = vmatpush.msrb.mxu0 %v5693_v35 }
  0x11   :  { %399 = vmatpush.msra.mxu2 %v5713_v38 }
  0x12   :  { %532 = vmatpush.msrb.mxu1 %v5698_v36  ;;  %3614 = vmatpush.msrb.mxu0 %v5698_v36 }
  0x13   :  { %400 = vmatpush.msra.mxu2 %v5721_v39 }
  0x14   :  { %533 = vmatpush.msrb.mxu1 %v5705_v37  ;;  %3615 = vmatpush.msrb.mxu0 %v5705_v37 }
  0x15   :  { %401 = vmatpush.msra.mxu2 %v5729_v40 }
  0x16   :  { %534 = vmatpush.msrb.mxu1 %v5713_v38  ;;  %3616 = vmatpush.msrb.mxu0 %v5713_v38 }
  0x17   :  { %402 = vmatpush.msra.mxu2 %v5737_v41  ;;  %4845 = vmatmul.msk.f32.gmra.mxu0 %vm82_vm1, %v47_v45 }
  0x18   :  { %535 = vmatpush.msrb.mxu1 %v5721_v39  ;;  %3617 = vmatpush.msrb.mxu0 %v5721_v39 }
  0x19   :  { %403 = vmatpush.msra.mxu2 %v5750_v44 }
  0x1a   :  { %536 = vmatpush.msrb.mxu1 %v5729_v40  ;;  %3618 = vmatpush.msrb.mxu0 %v5729_v40 }
  0x1c   :  { %537 = vmatpush.msrb.mxu1 %v5737_v41  ;;  %3619 = vmatpush.msrb.mxu0 %v5737_v41 }
  0x1e   :  { %538 = vmatpush.msrb.mxu1 %v5750_v44  ;;  %3620 = vmatpush.msrb.mxu0 %v5750_v44 }
  0x20   :  { %715 = vmatpush.msra.mxu1 %v5693_v35  ;;  %3935 = vmatpush.msra.mxu0 %v5693_v35 }
  0x22   :  { %716 = vmatpush.msra.mxu1 %v5698_v36  ;;  %3936 = vmatpush.msra.mxu0 %v5698_v36 }
  0x24   :  { %717 = vmatpush.msra.mxu1 %v5705_v37  ;;  %3937 = vmatpush.msra.mxu0 %v5705_v37 }
  0x26   :  { %718 = vmatpush.msra.mxu1 %v5713_v38  ;;  %3938 = vmatpush.msra.mxu0 %v5713_v38 }
  0x28   :  { %719 = vmatpush.msra.mxu1 %v5721_v39  ;;  %3939 = vmatpush.msra.mxu0 %v5721_v39 }
  0x2a   :  { %720 = vmatpush.msra.mxu1 %v5729_v40  ;;  %3940 = vmatpush.msra.mxu0 %v5729_v40 }
  0x2c   :  { %721 = vmatpush.msra.mxu1 %v5737_v41  ;;  %3941 = vmatpush.msra.mxu0 %v5737_v41 }
  0x2e   :  { %722 = vmatpush.msra.mxu1 %v5750_v44  ;;  %3942 = vmatpush.msra.mxu0 %v5750_v44 }
  0x8b   :  { %v188_v11 = vpop.f32.mrf.mxu0 }
  0x8c   :  { %v326_v12 = vpop.f32.mrf.mxu1  ;;  %v189_v13 = vadd.f32 %v5681_v10, %v188_v11 }
  0x8e   :  { %v329_v14 = vadd.f32 %v326_v12, %v189_v13 }
  0x90   :  { %5021 = vtanh.f32 %v329_v14  ;;  %v4872_v16 = vmul.f32 -1.442695, %v329_v14 }
  0x92   :  { %5023 = vpow2.f32 %v4872_v16 }
  0x94   :  { %v191_v49 = vpop.f32.mrf.mxu0 }
  0x95   :  { %v192_v52 = vadd.f32 %v5681_v10, %v191_v49 }
  0x96   :  { %v5022_v15 = vpop.eup %5021 }
  0x97   :  { %352 = vrot.lane.b32.xlu0 %v5022_v15, %s5583_s30 }
  0x98   :  { %v5024_v17 = vpop.eup %5023 }
  0x99   :  { %v333_v18 = vadd.f32 1.0, %v5024_v17 }
  0x9b   :  { %5025 = vrcp.f32 %v333_v18  ;;  %v345_v24 = vand.u32 2147483648, %v333_v18  ;;  %vm339_vm3 = vweird.f32 %v333_v18  ;;  %v343_v25 = vand.u32 2147483647, %v333_v18 }
  0x9d   :  { %v346_v27 = vor.u32 1.1754944e-38, %v345_v24  ;;  %vm344_vm5 = vcmp.eq.f32.partialorder %v343_v25, 8.507059e+37 }
  0xa1   :  { %v5026_v19 = vpop.eup %5025 }
  0xa2   :  { %v335_v20 = vmul.f32 %v5026_v19, %v333_v18  ;;  %vm340_vm2 = vweird.f32 %v5026_v19 }
  0xa3   :  { %vm341_vm4 = vmor %vm339_vm3, %vm340_vm2 }
  0xa4   :  { %v336_v21 = vsub.f32 1.0, %v335_v20 }
  0xa6   :  { %v337_v22 = vmul.f32 %v5026_v19, %v336_v21 }
  0xa8   :  { %v338_v23 = vadd.f32 %v5026_v19, %v337_v22 }
  0xaa   :  { %v342_v26 = vsel %vm341_vm4, %v5026_v19, %v338_v23 }
  0xab   :  { %v347_v29 = vsel %vm344_vm5, %v346_v27, %v342_v26 }
  0xac   :  { %v350_v31 = vmul.f32 0.0, %v347_v29 }
 0x109   :  { %v353_v28 = vpop.permute.xlu0 %352 }
 0x10a   :  { %v355_v30 = vmul.f32 %v353_v28, %v347_v29 }
 0x10c   :  { %357 = vrot.lane.b32.xlu0 %v355_v30, %s5584_s9 }
 0x17e   :  { %v358_v32 = vpop.permute.xlu0 %357 }
 0x17f   :  { %v5686_v33 = vadd.f32 %v358_v32, %v350_v31 }
 0x181   :  { %5027 = vtanh.f32 %v5686_v33 }
 0x187   :  { %v5028_v34 = vpop.eup %5027 }
 0x188   :  { %363 = vrot.lane.b32.xlu1 %v5028_v34, %s5583_s30 }
 0x1fa   :  { %v364_v42 = vpop.permute.xlu1 %363 }
 0x1fb   :  { %v366_v43 = vmul.f32 %v364_v42, %v347_v29 }
 0x1fd   :  { %368 = vrot.lane.b32.xlu1 %v366_v43, %s5584_s9 }
 0x26f   :  { %v369_v46 = vpop.permute.xlu1 %368 }
 0x270   :  { %4875 = vmatmul.msk.f32.vlgmr.msra.gmra.mxu3 %vm305_vm6, %v369_v46  ;;  %v371_v47 = vsel %vm305_vm6, %v369_v46, 0.0 }
 0x271   :  { %4873 = vmatmul.msk.f32.vlgmr.msra.gmra.mxu2 %vm384_vm7, %v371_v47 }
 0x2f3   :  { %v470_v53 = vpop.f32.mrf.mxu3 }
 0x2f4   :  { %v405_v50 = vpop.f32.mrf.mxu2  ;;  %v473_v54 = vadd.f32 %v470_v53, %v192_v52 }
 0x2f5   :  { %v406_v51 = vadd.f32 %v5781_v48, %v405_v50 }
 0x2f6   :  { %v4876_v58 = vmul.f32 -1.442695, %v473_v54 }
 0x2f7   :  { %5029 = vtanh.f32 %v406_v51  ;;  %v4874_v57 = vmul.f32 -1.442695, %v406_v51 }
 0x2f8   :  { %5031 = vtanh.f32 %v473_v54 }
 0x2f9   :  { %5033 = vpow2.f32 %v4874_v57 }
 0x2fa   :  { %5035 = vpow2.f32 %v4876_v58 }
 0x2fd   :  { %v5030_v55 = vpop.eup %5029 }
 0x2fe   :  { %430 = vrot.lane.b32.xlu2 %v5030_v55, %s5583_s30  ;;  %v5032_v56 = vpop.eup %5031 }
 0x2ff   :  { %v5034_v59 = vpop.eup %5033 }
 0x300   :  { %v411_v60 = vadd.f32 1.0, %v5034_v59  ;;  %v5036_v61 = vpop.eup %5035 }
 0x301   :  { %v477_v62 = vadd.f32 1.0, %v5036_v61 }
 0x302   :  { %5037 = vrcp.f32 %v411_v60  ;;  %v423_v12 = vand.u32 2147483648, %v411_v60  ;;  %vm417_vm9 = vweird.f32 %v411_v60  ;;  %v421_v13 = vand.u32 2147483647, %v411_v60 }
 0x303   :  { %5039 = vrcp.f32 %v477_v62  ;;  %v489_v21 = vand.u32 2147483648, %v477_v62  ;;  %vm483_vm13 = vweird.f32 %v477_v62  ;;  %v487_v22 = vand.u32 2147483647, %v477_v62 }
 0x304   :  { %v424_v16 = vor.u32 1.1754944e-38, %v423_v12  ;;  %vm422_vm11 = vcmp.eq.f32.partialorder %v421_v13, 8.507059e+37 }
 0x305   :  { %v490_v24 = vor.u32 1.1754944e-38, %v489_v21  ;;  %vm488_vm15 = vcmp.eq.f32.partialorder %v487_v22, 8.507059e+37  ;;  %v48_v21 = vld [vmem:[%s7195_s0 + $0x10] sm:$0xff] }
 0x306   :  { %496 = vrot.lane.b32.xlu2 %v5032_v56, %s5583_s30  ;;  %4846 = vmatmul.msk.f32.gmra.mxu0 %vm82_vm1, %v48_v21 }
 0x308   :  { %v5038_v63 = vpop.eup %5037 }
 0x309   :  { %v413_v0 = vmul.f32 %v5038_v63, %v411_v60  ;;  %v5040_v4 = vpop.eup %5039  ;;  %vm418_vm8 = vweird.f32 %v5038_v63 }
 0x30a   :  { %v479_v8 = vmul.f32 %v5040_v4, %v477_v62  ;;  %vm419_vm10 = vmor %vm417_vm9, %vm418_vm8  ;;  %vm484_vm12 = vweird.f32 %v5040_v4 }
 0x30b   :  { %v414_v1 = vsub.f32 1.0, %v413_v0  ;;  %vm485_vm14 = vmor %vm483_vm13, %vm484_vm12 }
 0x30c   :  { %v480_v11 = vsub.f32 1.0, %v479_v8 }
 0x30d   :  { %v415_v6 = vmul.f32 %v5038_v63, %v414_v1 }
 0x30e   :  { %v481_v15 = vmul.f32 %v5040_v4, %v480_v11 }
 0x30f   :  { %v416_v9 = vadd.f32 %v5038_v63, %v415_v6 }
 0x310   :  { %v482_v20 = vadd.f32 %v5040_v4, %v481_v15  ;;  %v584_v15 = vld [vmem:[#allocation3 + $0x38] sm:$0xff] }
 0x311   :  { %v420_v14 = vsel %vm419_vm10, %v5038_v63, %v416_v9  ;;  %602 = vmatpush.msrb.mxu3 %v584_v15 }
 0x312   :  { %v425_v18 = vsel %vm422_vm11, %v424_v16, %v420_v14  ;;  %v486_v23 = vsel %vm485_vm14, %v5040_v4, %v482_v20  ;;  %v583_v16 = vld [vmem:[#allocation3 + $0x30] sm:$0xff] }
 0x313   :  { %v491_v25 = vsel %vm488_vm15, %v490_v24, %v486_v23  ;;  %v428_v28 = vmul.f32 0.0, %v425_v18  ;;  %603 = vmatpush.msrb.mxu3 %v583_v16 }
 0x314   :  { %v494_v31 = vmul.f32 %v491_v25, %v5686_v33 }
 0x358   :  { %v431_v17 = vpop.permute.xlu2 %430 }
 0x359   :  { %v433_v19 = vmul.f32 %v431_v17, %v425_v18  ;;  %v582_v17 = vld [vmem:[#allocation3 + $0x28] sm:$0xff] }
 0x35a   :  { %604 = vmatpush.msrb.mxu3 %v582_v17 }
 0x35b   :  { %435 = vrot.lane.b32.xlu0 %v433_v19, %s5584_s9 }
 0x360   :  { %v497_v26 = vpop.permute.xlu2 %496 }
 0x361   :  { %v499_v27 = vmul.f32 %v497_v26, %v491_v25 }
 0x363   :  { %501 = vrot.lane.b32.xlu1 %v499_v27, %s5584_s9 }
 0x383   :  { %v194_v24 = vpop.f32.mrf.mxu0 }
 0x3cd   :  { %v436_v29 = vpop.permute.xlu0 %435 }
 0x3ce   :  { %v438_v30 = vadd.f32 %v436_v29, %v428_v28 }
 0x3d0   :  { %5041 = vtanh.f32 %v438_v30 }
 0x3d5   :  { %v502_v32 = vpop.permute.xlu1 %501 }
 0x3d6   :  { %v5042_v34 = vpop.eup %5041  ;;  %v5790_v42 = vadd.f32 %v502_v32, %v494_v31 }
 0x3d7   :  { %441 = vrot.lane.b32.xlu2 %v5042_v34, %s5583_s30 }
 0x3d8   :  { %5043 = vtanh.f32 %v5790_v42 }
 0x3de   :  { %v5044_v43 = vpop.eup %5043 }
 0x3df   :  { %507 = vrot.lane.b32.xlu0 %v5044_v43, %s5583_s30 }
 0x431   :  { %v442_v45 = vpop.permute.xlu2 %441 }
 0x432   :  { %v5795_v46 = vmul.f32 %v442_v45, %v425_v18  ;;  %v581_v18 = vld [vmem:[#allocation3 + $0x20] sm:$0xff] }
 0x433   :  { %605 = vmatpush.msrb.mxu3 %v581_v18 }
 0x434   :  { %516 = vrot.lane.b32.xlu2 %v5795_v46, %s5583_s30 }
 0x435   :  { %650 = vmatpush.msra.mxu3 %v5643_v2 }
 0x437   :  { %651 = vmatpush.msra.mxu3 %v5649_v3 }
 0x439   :  { %652 = vmatpush.msra.mxu3 %v5657_v5 }
 0x43b   :  { %653 = vmatpush.msra.mxu3 %v5667_v7 }
 0x451   :  { %v508_v47 = vpop.permute.xlu0 %507 }
 0x452   :  { %v510_v49 = vmul.f32 %v508_v47, %v491_v25  ;;  %v195_v25 = vadd.f32 %v5681_v10, %v194_v24 }
 0x454   :  { %512 = vrot.lane.b32.xlu1 %v510_v49, %s5584_s9 }
 0x48e   :  { %v517_v33 = vpop.permute.xlu2 %516 }
 0x4c6   :  { %v5800_v50 = vpop.permute.xlu1 %512 }
 0x4c7   :  { %v519_v51 = vsel %vm305_vm6, %v5800_v50, %v517_v33 }
 0x4c8   :  { %4877 = vmatmul.msk.f32.vlgmr.msrb.gmra.mxu1 %vm384_vm7, %v519_v51 }
 0x4c9   :  { %972 = vmatpush.msrb.mxu1 %v5643_v2 }
 0x4cb   :  { %973 = vmatpush.msrb.mxu1 %v5649_v3 }
 0x4cd   :  { %974 = vmatpush.msrb.mxu1 %v5657_v5 }
 0x4cf   :  { %975 = vmatpush.msrb.mxu1 %v5667_v7 }
 0x545   :  { %v540_v52 = vpop.f32.mrf.mxu1 }
 0x546   :  { %v541_v53 = vadd.f32 %v5781_v48, %v540_v52 }
 0x548   :  { %5045 = vtanh.f32 %v541_v53  ;;  %v4878_v55 = vmul.f32 -1.442695, %v541_v53 }
 0x54a   :  { %5047 = vpow2.f32 %v4878_v55 }
 0x54e   :  { %v5046_v54 = vpop.eup %5045 }
 0x54f   :  { %565 = vrot.lane.b32.xlu0 %v5046_v54, %s5583_s30 }
 0x550   :  { %v5048_v56 = vpop.eup %5047 }
 0x551   :  { %v546_v57 = vadd.f32 1.0, %v5048_v56 }
 0x553   :  { %5049 = vrcp.f32 %v546_v57  ;;  %v558_v63 = vand.u32 2147483648, %v546_v57  ;;  %vm552_vm2 = vweird.f32 %v546_v57  ;;  %v556_v0 = vand.u32 2147483647, %v546_v57 }
 0x555   :  { %v559_v4 = vor.u32 1.1754944e-38, %v558_v63  ;;  %vm557_vm4 = vcmp.eq.f32.partialorder %v556_v0, 8.507059e+37 }
 0x559   :  { %v5050_v58 = vpop.eup %5049 }
 0x55a   :  { %v548_v59 = vmul.f32 %v5050_v58, %v546_v57  ;;  %vm553_vm0 = vweird.f32 %v5050_v58 }
 0x55b   :  { %vm554_vm3 = vmor %vm552_vm2, %vm553_vm0 }
 0x55c   :  { %v549_v60 = vsub.f32 1.0, %v548_v59 }
 0x55e   :  { %v550_v61 = vmul.f32 %v5050_v58, %v549_v60 }
 0x560   :  { %v551_v62 = vadd.f32 %v5050_v58, %v550_v61  ;;  %v49_v61 = vld [vmem:[%s7195_s0 + $0x18] sm:$0xff] }
 0x561   :  { %4847 = vmatmul.msk.f32.gmra.mxu0 %vm82_vm1, %v49_v61  ;;  %v446_v61 = vld [vmem:[#allocation3 + $0x8] sm:$0xff] }
 0x562   :  { %v555_v1 = vsel %vm554_vm3, %v5050_v58, %v551_v62 }
 0x563   :  { %v560_v8 = vsel %vm557_vm4, %v559_v4, %v555_v1 }
 0x564   :  { %v563_v11 = vmul.f32 %v560_v8, %v438_v30 }
 0x5c1   :  { %v566_v6 = vpop.permute.xlu0 %565 }
 0x5c2   :  { %v568_v9 = vmul.f32 %v566_v6, %v560_v8 }
 0x5c4   :  { %570 = vrot.lane.b32.xlu1 %v568_v9, %s5584_s9 }
 0x5de   :  { %v197_v0 = vpop.f32.mrf.mxu0 }
 0x5df   :  { %v198_v6 = vadd.f32 %v5681_v10, %v197_v0 }
 0x636   :  { %v571_v12 = vpop.permute.xlu1 %570 }
 0x637   :  { %v5812_v13 = vadd.f32 %v571_v12, %v563_v11 }
 0x639   :  { %5051 = vtanh.f32 %v5812_v13 }
 0x63f   :  { %v5052_v14 = vpop.eup %5051 }
 0x640   :  { %576 = vrot.lane.b32.xlu2 %v5052_v14, %s5583_s30 }
 0x69a   :  { %v577_v19 = vpop.permute.xlu2 %576 }
 0x69b   :  { %v579_v20 = vmul.f32 %v577_v19, %v560_v8 }
 0x69d   :  { %586 = vrot.lane.b32.xlu0 %v579_v20, %s5584_s9 }
 0x70f   :  { %v587_v22 = vpop.permute.xlu0 %586 }
 0x710   :  { %4879 = vmatmul.msk.f32.vlgmr.msrb.gmra.mxu3 %vm305_vm6, %v587_v22 }
 0x711   :  { %811 = vmatpush.msrb.mxu3 %v5643_v2 }
 0x713   :  { %812 = vmatpush.msrb.mxu3 %v5649_v3 }
 0x715   :  { %813 = vmatpush.msrb.mxu3 %v5657_v5 }
 0x717   :  { %814 = vmatpush.msrb.mxu3 %v5667_v7 }
 0x718   :  { %4881 = vmatmul.msk.f32.vlgmr.msra.gmra.mxu3 %vm305_vm6, %v5800_v50 }
 0x793   :  { %v5832_v23 = vpop.f32.mrf.mxu3 }
 0x79b   :  { %v655_v26 = vpop.f32.mrf.mxu3 }
 0x79c   :  { %v658_v27 = vadd.f32 %v655_v26, %v195_v25 }
 0x79e   :  { %5053 = vtanh.f32 %v658_v27  ;;  %v4882_v29 = vmul.f32 -1.442695, %v658_v27 }
 0x7a0   :  { %5055 = vpow2.f32 %v4882_v29 }
 0x7a4   :  { %v5054_v28 = vpop.eup %5053 }
 0x7a5   :  { %681 = vrot.lane.b32.xlu1 %v5054_v28, %s5583_s30 }
 0x7a6   :  { %v5056_v30 = vpop.eup %5055 }
 0x7a7   :  { %v662_v31 = vadd.f32 1.0, %v5056_v30 }
 0x7a9   :  { %5057 = vrcp.f32 %v662_v31  ;;  %v674_v49 = vand.u32 2147483648, %v662_v31  ;;  %vm668_vm8 = vweird.f32 %v662_v31  ;;  %v672_v33 = vand.u32 2147483647, %v662_v31 }
 0x7ab   :  { %v675_v51 = vor.u32 1.1754944e-38, %v674_v49  ;;  %vm673_vm10 = vcmp.eq.f32.partialorder %v672_v33, 8.507059e+37 }
 0x7af   :  { %v5058_v32 = vpop.eup %5057 }
 0x7b0   :  { %v664_v34 = vmul.f32 %v5058_v32, %v662_v31  ;;  %vm669_vm5 = vweird.f32 %v5058_v32 }
 0x7b1   :  { %vm670_vm9 = vmor %vm668_vm8, %vm669_vm5 }
 0x7b2   :  { %v665_v43 = vsub.f32 1.0, %v664_v34 }
 0x7b4   :  { %v666_v45 = vmul.f32 %v5058_v32, %v665_v43 }
 0x7b6   :  { %v667_v47 = vadd.f32 %v5058_v32, %v666_v45 }
 0x7b8   :  { %v671_v50 = vsel %vm670_vm9, %v5058_v32, %v667_v47 }
 0x7b9   :  { %v676_v53 = vsel %vm673_vm10, %v675_v51, %v671_v50 }
 0x7ba   :  { %v679_v55 = vmul.f32 %v676_v53, %v5790_v42 }
 0x817   :  { %v682_v52 = vpop.permute.xlu1 %681 }
 0x818   :  { %v684_v54 = vmul.f32 %v682_v52, %v676_v53 }
 0x81a   :  { %686 = vrot.lane.b32.xlu2 %v684_v54, %s5584_s9 }
 0x822   :  { %700 = vrot.lane.b32.xlu2 %v579_v20, %s5583_s30 }
 0x874   :  { %v687_v56 = vpop.permute.xlu2 %686 }
 0x875   :  { %v5839_v57 = vadd.f32 %v687_v56, %v679_v55  ;;  %v448_v56 = vld [vmem:[#allocation3 + $0x18] sm:$0xff] }
 0x876   :  { %626 = vmatpush.msrb.mxu2 %v448_v56 }
 0x877   :  { %5059 = vtanh.f32 %v5839_v57 }
 0x87c   :  { %v701_v62 = vpop.permute.xlu2 %700 }
 0x87d   :  { %v5060_v58 = vpop.eup %5059 }
 0x87e   :  { %692 = vrot.lane.b32.xlu0 %v5060_v58, %s5583_s30 }
 0x8f0   :  { %v693_v59 = vpop.permute.xlu0 %692 }
 0x8f1   :  { %v695_v60 = vmul.f32 %v693_v59, %v676_v53 }
 0x8f3   :  { %697 = vrot.lane.b32.xlu1 %v695_v60, %s5584_s9  ;;  %v447_v60 = vld [vmem:[#allocation3 + $0x10] sm:$0xff] }
 0x8f4   :  { %627 = vmatpush.msrb.mxu2 %v447_v60 }
 0x8f6   :  { %628 = vmatpush.msrb.mxu2 %v446_v61 }
 0x965   :  { %v698_v42 = vpop.permute.xlu1 %697 }
 0x966   :  { %v703_v63 = vsel %vm305_vm6, %v698_v42, %v701_v62  ;;  %4886 = vmatmul.msk.f32.vlgmr.msrb.gmra.mxu3 %vm305_vm6, %v698_v42  ;;  %v445_v42 = vld [vmem:[#allocation3] sm:$0xff] }
 0x967   :  { %4883 = vmatmul.msk.f32.vlgmr.msra.gmra.mxu1 %vm384_vm7, %v703_v63  ;;  %629 = vmatpush.msrb.mxu2 %v445_v42 }
 0x9e4   :  { %v724_v1 = vpop.f32.mrf.mxu1 }
 0x9e5   :  { %v725_v4 = vadd.f32 %v5781_v48, %v724_v1 }
 0x9e7   :  { %5061 = vtanh.f32 %v725_v4  ;;  %v4884_v14 = vmul.f32 -1.442695, %v725_v4 }
 0x9e9   :  { %v816_v8 = vpop.f32.mrf.mxu3 }
 0x9ea   :  { %v819_v9 = vadd.f32 %v816_v8, %v198_v6 }
 0x9ec   :  { %5063 = vtanh.f32 %v819_v9  ;;  %v4887_v15 = vmul.f32 -1.442695, %v819_v9 }
 0x9ed   :  { %v5062_v11 = vpop.eup %5061  ;;  %5065 = vpow2.f32 %v4884_v14  ;;  %v767_v14 = vld [vmem:[#allocation3 + $0x50] sm:$0xff] }
 0x9ee   :  { %749 = vrot.lane.b32.xlu0 %v5062_v11, %s5583_s30  ;;  %5067 = vpow2.f32 %v4887_v15  ;;  %v766_v15 = vld [vmem:[#allocation3 + $0x48] sm:$0xff] }
 0x9f2   :  { %v5064_v12 = vpop.eup %5063 }
 0x9f3   :  { %842 = vrot.lane.b32.xlu1 %v5064_v12, %s5583_s30  ;;  %v5066_v16 = vpop.eup %5065  ;;  %v768_v12 = vld [vmem:[#allocation3 + $0x58] sm:$0xff] }
 0x9f4   :  { %v730_v17 = vadd.f32 1.0, %v5066_v16  ;;  %v5068_v18 = vpop.eup %5067  ;;  %786 = vmatpush.msra.mxu2 %v768_v12  ;;  %v765_v16 = vld [vmem:[#allocation3 + $0x40] sm:$0xff] }
 0x9f5   :  { %v823_v19 = vadd.f32 1.0, %v5068_v18 }
 0x9f6   :  { %5069 = vrcp.f32 %v730_v17  ;;  %v742_v29 = vand.u32 2147483648, %v730_v17  ;;  %vm736_vm12 = vweird.f32 %v730_v17  ;;  %v740_v31 = vand.u32 2147483647, %v730_v17  ;;  %787 = vmatpush.msra.mxu2 %v767_v14 }
 0x9f7   :  { %5071 = vrcp.f32 %v823_v19  ;;  %v835_v45 = vand.u32 2147483648, %v823_v19  ;;  %vm829_vm0 = vweird.f32 %v823_v19  ;;  %v833_v33 = vand.u32 2147483647, %v823_v19 }
 0x9f8   :  { %v743_v34 = vor.u32 1.1754944e-38, %v742_v29  ;;  %vm741_vm15 = vcmp.eq.f32.partialorder %v740_v31, 8.507059e+37  ;;  %788 = vmatpush.msra.mxu2 %v766_v15 }
 0x9f9   :  { %v836_v52 = vor.u32 1.1754944e-38, %v835_v45  ;;  %vm834_vm3 = vcmp.eq.f32.partialorder %v833_v33, 8.507059e+37 }
 0x9fa   :  { %789 = vmatpush.msra.mxu2 %v765_v16 }
 0x9fc   :  { %v5070_v20 = vpop.eup %5069 }
 0x9fd   :  { %v732_v21 = vmul.f32 %v5070_v20, %v730_v17  ;;  %v5072_v22 = vpop.eup %5071  ;;  %vm737_vm11 = vweird.f32 %v5070_v20 }
 0x9fe   :  { %v825_v25 = vmul.f32 %v5072_v22, %v823_v19  ;;  %vm738_vm13 = vmor %vm736_vm12, %vm737_vm11  ;;  %vm830_vm14 = vweird.f32 %v5072_v22 }
 0x9ff   :  { %v733_v24 = vsub.f32 1.0, %v732_v21  ;;  %vm831_vm2 = vmor %vm829_vm0, %vm830_vm14 }
 0xa00   :  { %v826_v27 = vsub.f32 1.0, %v825_v25 }
 0xa01   :  { %v734_v26 = vmul.f32 %v5070_v20, %v733_v24 }
 0xa02   :  { %v827_v30 = vmul.f32 %v5072_v22, %v826_v27 }
 0xa03   :  { %v735_v28 = vadd.f32 %v5070_v20, %v734_v26 }
 0xa04   :  { %v828_v43 = vadd.f32 %v5072_v22, %v827_v30 }
 0xa05   :  { %v739_v32 = vsel %vm738_vm13, %v5070_v20, %v735_v28 }
 0xa06   :  { %v744_v49 = vsel %vm741_vm15, %v743_v34, %v739_v32  ;;  %v832_v51 = vsel %vm831_vm2, %v5072_v22, %v828_v43 }
 0xa07   :  { %v837_v54 = vsel %vm834_vm3, %v836_v52, %v832_v51  ;;  %v747_v58 = vmul.f32 %v744_v49, %v5812_v13 }
 0xa60   :  { %v750_v47 = vpop.permute.xlu0 %749 }
 0xa61   :  { %v752_v50 = vmul.f32 %v750_v47, %v744_v49 }
 0xa63   :  { %754 = vrot.lane.b32.xlu2 %v752_v50, %s5584_s9 }
 0xa65   :  { %v843_v53 = vpop.permute.xlu1 %842 }
 0xa66   :  { %v845_v55 = vmul.f32 %v843_v53, %v837_v54 }
 0xa68   :  { %847 = vrot.lane.b32.xlu0 %v845_v55, %s5584_s9 }
 0xa70   :  { %610 = vrot.lane.b32.xlu0 %v5795_v46, %s5584_s9  ;;  %v840_v46 = vmul.f32 %v837_v54, %v5839_v57  ;;  %v50_v57 = vld [vmem:[%s7195_s0 + $0x20] sm:$0xff] }
 0xa71   :  { %4848 = vmatmul.msk.f32.gmra.mxu0 %vm82_vm1, %v50_v57 }
 0xabd   :  { %v755_v59 = vpop.permute.xlu2 %754 }
 0xabe   :  { %v5860_v62 = vadd.f32 %v755_v59, %v747_v58 }
 0xac0   :  { %5073 = vtanh.f32 %v5860_v62 }
 0xac6   :  { %v5074_v63 = vpop.eup %5073 }
 0xac7   :  { %760 = vrot.lane.b32.xlu1 %v5074_v63, %s5583_s30 }
 0xada   :  { %v848_v0 = vpop.permute.xlu0 %847 }
 0xadb   :  { %v5865_v1 = vadd.f32 %v848_v0, %v840_v46 }
 0xadd   :  { %5075 = vtanh.f32 %v5865_v1 }
 0xae2   :  { %v611_v13 = vpop.permute.xlu0 %610 }
 0xae3   :  { %v5076_v4 = vpop.eup %5075  ;;  %4880 = vmatmul.msk.f32.vlgmr.msrb.gmra.mxu2 %vm305_vm6, %v611_v13 }
 0xae4   :  { %853 = vrot.lane.b32.xlu2 %v5076_v4, %s5583_s30  ;;  %876 = vmatpush.msrb.mxu2 %v5693_v35 }
 0xae6   :  { %877 = vmatpush.msrb.mxu2 %v5698_v36 }
 0xae8   :  { %878 = vmatpush.msrb.mxu2 %v5705_v37 }
 0xaea   :  { %879 = vmatpush.msrb.mxu2 %v5713_v38 }
 0xaec   :  { %880 = vmatpush.msrb.mxu2 %v5721_v39 }
 0xaee   :  { %881 = vmatpush.msrb.mxu2 %v5729_v40  ;;  %v200_v21 = vpop.f32.mrf.mxu0 }
 0xaef   :  { %v201_v22 = vadd.f32 %v5681_v10, %v200_v21  ;;  %v929_v21 = vld [vmem:[#allocation3 + $0x78] sm:$0xff] }
 0xaf0   :  { %882 = vmatpush.msrb.mxu2 %v5737_v41  ;;  %947 = vmatpush.msra.mxu3 %v929_v21 }
 0xaf2   :  { %883 = vmatpush.msrb.mxu2 %v5750_v44 }
 0xb39   :  { %v761_v6 = vpop.permute.xlu1 %760 }
 0xb3a   :  { %v763_v8 = vmul.f32 %v761_v6, %v744_v49 }
 0xb3c   :  { %861 = vrot.lane.b32.xlu0 %v763_v8, %s5583_s30  ;;  %770 = vrot.lane.b32.xlu1 %v763_v8, %s5584_s9 }
 0xb3e   :  { %v854_v9 = vpop.permute.xlu2 %853 }
 0xb3f   :  { %v856_v11 = vmul.f32 %v854_v9, %v837_v54 }
 0xb41   :  { %858 = vrot.lane.b32.xlu2 %v856_v11, %s5584_s9 }
 0xb9b   :  { %v859_v17 = vpop.permute.xlu2 %858 }
 0xb9c   :  { %4891 = vmatmul.msk.f32.vlgmr.msrb.gmra.mxu1 %vm305_vm6, %v859_v17 }
 0xbae   :  { %v771_v18 = vpop.permute.xlu1 %770  ;;  %v862_v19 = vpop.permute.xlu0 %861 }
 0xbaf   :  { %4885 = vmatmul.msk.f32.vlgmr.msra.gmra.mxu2 %vm305_vm6, %v771_v18  ;;  %v864_v20 = vsel %vm305_vm6, %v859_v17, %v862_v19 }
 0xbb0   :  { %1133 = vmatpush.msra.mxu2 %v5643_v2  ;;  %v5895_v2 = vpop.f32.mrf.mxu2 }
 0xbb2   :  { %1134 = vmatpush.msra.mxu2 %v5649_v3 }
 0xbb4   :  { %1135 = vmatpush.msra.mxu2 %v5657_v5 }
 0xbb6   :  { %1136 = vmatpush.msra.mxu2 %v5667_v7 }
 0xbb7   :  { %4888 = vmatmul.msk.f32.vlgmr.msrb.gmra.mxu2 %vm384_vm7, %v864_v20 }
 0xc19   :  { %v977_v24 = vpop.f32.mrf.mxu1 }
 0xc1a   :  { %v980_v25 = vadd.f32 %v977_v24, %v201_v22  ;;  %v928_v22 = vld [vmem:[#allocation3 + $0x70] sm:$0xff]  ;;  %v927_v24 = vld [vmem:[#allocation3 + $0x68] sm:$0xff] }
 0xc1b   :  { %948 = vmatpush.msra.mxu3 %v928_v22  ;;  %v52_v22 = vld [vmem:[%s7195_s0 + $0x30] sm:$0xff] }
 0xc1c   :  { %5077 = vtanh.f32 %v980_v25  ;;  %v4892_v28 = vmul.f32 -1.442695, %v980_v25  ;;  %v926_v25 = vld [vmem:[#allocation3 + $0x60] sm:$0xff] }
 0xc1d   :  { %949 = vmatpush.msra.mxu3 %v927_v24  ;;  %v1090_v24 = vld [vmem:[#allocation3 + $0x98] sm:$0xff] }
 0xc1e   :  { %1108 = vmatpush.msra.mxu1 %v1090_v24 }
 0xc1f   :  { %950 = vmatpush.msra.mxu3 %v926_v25  ;;  %v1089_v25 = vld [vmem:[#allocation3 + $0x90] sm:$0xff] }
 0xc20   :  { %1109 = vmatpush.msra.mxu1 %v1089_v25 }
 0xc21   :  { %1037 = vmatpush.msrb.mxu3 %v5693_v35  ;;  %v5933_v35 = vld [vmem:[%s7197_s2 + $0x18] sm:$0xff] }
 0xc22   :  { %v5078_v26 = vpop.eup %5077 }
 0xc23   :  { %1003 = vrot.lane.b32.xlu2 %v5078_v26, %s5583_s30  ;;  %1038 = vmatpush.msrb.mxu3 %v5698_v36  ;;  %v5939_v36 = vld [vmem:[%s7197_s2 + $0x10] sm:$0xff] }
 0xc25   :  { %1039 = vmatpush.msrb.mxu3 %v5705_v37 }
 0xc27   :  { %1040 = vmatpush.msrb.mxu3 %v5713_v38  ;;  %v5945_v38 = vld [vmem:[%s7197_s2 + $0x8] sm:$0xff] }
 0xc29   :  { %1041 = vmatpush.msrb.mxu3 %v5721_v39 }
 0xc2b   :  { %1042 = vmatpush.msrb.mxu3 %v5729_v40  ;;  %v5952_v40 = vld [vmem:[%s7197_s2] sm:$0xff] }
 0xc2d   :  { %1043 = vmatpush.msrb.mxu3 %v5737_v41 }
 0xc2f   :  { %1044 = vmatpush.msrb.mxu3 %v5750_v44 }
 0xc32   :  { %v5897_v3 = vpop.f32.mrf.mxu2 }
 0xc3a   :  { %v885_v5 = vpop.f32.mrf.mxu2 }
 0xc3b   :  { %v886_v27 = vadd.f32 %v5781_v48, %v885_v5 }
 0xc3d   :  { %5079 = vtanh.f32 %v886_v27  ;;  %v4889_v54 = vmul.f32 -1.442695, %v886_v27 }
 0xc3e   :  { %5081 = vpow2.f32 %v4892_v28 }
 0xc43   :  { %v5080_v7 = vpop.eup %5079 }
 0xc44   :  { %910 = vrot.lane.b32.xlu1 %v5080_v7, %s5583_s30  ;;  %v5082_v29 = vpop.eup %5081 }
 0xc45   :  { %v984_v30 = vadd.f32 1.0, %v5082_v29 }
 0xc47   :  { %5083 = vrcp.f32 %v984_v30  ;;  %v996_v47 = vand.u32 2147483648, %v984_v30  ;;  %vm990_vm5 = vweird.f32 %v984_v30  ;;  %v994_v49 = vand.u32 2147483647, %v984_v30 }
 0xc48   :  { %5085 = vpow2.f32 %v4889_v54 }
 0xc49   :  { %v997_v50 = vor.u32 1.1754944e-38, %v996_v47  ;;  %vm995_vm9 = vcmp.eq.f32.partialorder %v994_v49, 8.507059e+37 }
 0xc4d   :  { %v5084_v31 = vpop.eup %5083 }
 0xc4e   :  { %v986_v32 = vmul.f32 %v5084_v31, %v984_v30  ;;  %vm991_vm4 = vweird.f32 %v5084_v31  ;;  %v5086_v55 = vpop.eup %5085 }
 0xc4f   :  { %vm992_vm8 = vmor %vm990_vm5, %vm991_vm4  ;;  %v891_v56 = vadd.f32 1.0, %v5086_v55 }
 0xc50   :  { %v987_v34 = vsub.f32 1.0, %v986_v32 }
 0xc51   :  { %5087 = vrcp.f32 %v891_v56  ;;  %v903_v63 = vand.u32 2147483648, %v891_v56  ;;  %vm897_vm11 = vweird.f32 %v891_v56  ;;  %v901_v46 = vand.u32 2147483647, %v891_v56 }
 0xc52   :  { %v988_v43 = vmul.f32 %v5084_v31, %v987_v34 }
 0xc53   :  { %v904_v13 = vor.u32 1.1754944e-38, %v903_v63  ;;  %vm902_vm13 = vcmp.eq.f32.partialorder %v901_v46, 8.507059e+37 }
 0xc54   :  { %v989_v45 = vadd.f32 %v5084_v31, %v988_v43 }
 0xc56   :  { %v993_v33 = vsel %vm992_vm8, %v5084_v31, %v989_v45 }
 0xc57   :  { %v998_v52 = vsel %vm995_vm9, %v997_v50, %v993_v33  ;;  %v5088_v58 = vpop.eup %5087 }
 0xc58   :  { %v893_v59 = vmul.f32 %v5088_v58, %v891_v56  ;;  %vm898_vm10 = vweird.f32 %v5088_v58  ;;  %v1001_v9 = vmul.f32 %v998_v52, %v5865_v1 }
 0xc59   :  { %vm899_vm12 = vmor %vm897_vm11, %vm898_vm10 }
 0xc5a   :  { %v894_v60 = vsub.f32 1.0, %v893_v59 }
 0xc5c   :  { %v895_v61 = vmul.f32 %v5088_v58, %v894_v60 }
 0xc5e   :  { %v896_v42 = vadd.f32 %v5088_v58, %v895_v61 }
 0xc60   :  { %v900_v0 = vsel %vm899_vm12, %v5088_v58, %v896_v42 }
 0xc61   :  { %v905_v6 = vsel %vm902_vm13, %v904_v13, %v900_v0 }
 0xc62   :  { %v908_v14 = vmul.f32 %v905_v6, %v5860_v62  ;;  %v51_v62 = vld [vmem:[%s7195_s0 + $0x28] sm:$0xff] }
 0xc63   :  { %4849 = vmatmul.msk.f32.gmra.mxu0 %vm82_vm1, %v51_v62 }
 0xc6b   :  { %4850 = vmatmul.msk.f32.gmra.mxu0 %vm82_vm1, %v52_v22 }
 0xc7d   :  { %v1004_v51 = vpop.permute.xlu2 %1003 }
 0xc7e   :  { %v1006_v53 = vmul.f32 %v1004_v51, %v998_v52 }
 0xc80   :  { %1008 = vrot.lane.b32.xlu1 %v1006_v53, %s5584_s9 }
 0xcb6   :  { %v911_v4 = vpop.permute.xlu1 %910 }
 0xcb7   :  { %v913_v8 = vmul.f32 %v911_v4, %v905_v6 }
 0xcb9   :  { %915 = vrot.lane.b32.xlu0 %v913_v8, %s5584_s9 }
 0xce0   :  { %v203_v41 = vpop.f32.mrf.mxu0 }
 0xce1   :  { %v204_v44 = vadd.f32 %v5681_v10, %v203_v41  ;;  %v5990_v41 = vld [vmem:[%s7199_s4 + $0x30] sm:$0xff] }
 0xcf2   :  { %v1009_v11 = vpop.permute.xlu1 %1008 }
 0xcf3   :  { %v5904_v57 = vadd.f32 %v1009_v11, %v1001_v9 }
 0xcf5   :  { %5089 = vtanh.f32 %v5904_v57 }
 0xcfb   :  { %v5090_v12 = vpop.eup %5089 }
 0xcfc   :  { %1014 = vrot.lane.b32.xlu0 %v5090_v12, %s5583_s30 }
 0xd2b   :  { %v916_v15 = vpop.permute.xlu0 %915 }
 0xd2c   :  { %v5909_v16 = vadd.f32 %v916_v15, %v908_v14 }
 0xd2e   :  { %5091 = vtanh.f32 %v5909_v16 }
 0xd34   :  { %v5092_v17 = vpop.eup %5091 }
 0xd35   :  { %921 = vrot.lane.b32.xlu2 %v5092_v17, %s5583_s30 }
 0xd6e   :  { %v1015_v18 = vpop.permute.xlu0 %1014 }
 0xd6f   :  { %v1017_v1 = vmul.f32 %v1015_v18, %v998_v52 }
 0xd71   :  { %1019 = vrot.lane.b32.xlu2 %v1017_v1, %s5584_s9 }
 0xd8f   :  { %v922_v19 = vpop.permute.xlu2 %921 }
 0xd90   :  { %v924_v20 = vmul.f32 %v922_v19, %v905_v6 }
 0xd92   :  { %1022 = vrot.lane.b32.xlu0 %v924_v20, %s5583_s30  ;;  %931 = vrot.lane.b32.xlu1 %v924_v20, %s5584_s9 }
 0xdcb   :  { %v1020_v26 = vpop.permute.xlu2 %1019 }
 0xdcc   :  { %4896 = vmatmul.msk.f32.vlgmr.msra.gmra.mxu2 %vm305_vm6, %v1020_v26 }
 0xe04   :  { %v932_v5 = vpop.permute.xlu1 %931  ;;  %v1023_v37 = vpop.permute.xlu0 %1022 }
 0xe05   :  { %4890 = vmatmul.msk.f32.vlgmr.msra.gmra.mxu3 %vm305_vm6, %v932_v5  ;;  %v1025_v39 = vsel %vm305_vm6, %v1020_v26, %v1023_v37  ;;  %v1087_v37 = vld [vmem:[#allocation3 + $0x80] sm:$0xff] }
 0xe06   :  { %1294 = vmatpush.msra.mxu3 %v5933_v35 }
 0xe08   :  { %1295 = vmatpush.msra.mxu3 %v5939_v36 }
 0xe0a   :  { %1296 = vmatpush.msra.mxu3 %v5945_v38 }
 0xe0c   :  { %1297 = vmatpush.msra.mxu3 %v5952_v40 }
 0xe0d   :  { %4893 = vmatmul.msk.f32.vlgmr.msrb.gmra.mxu3 %vm384_vm7, %v1025_v39  ;;  %v5984_v39 = vld [vmem:[%s7199_s4 + $0x38] sm:$0xff] }
 0xe4f   :  { %v1138_v27 = vpop.f32.mrf.mxu2 }
 0xe50   :  { %v1141_v7 = vadd.f32 %v1138_v27, %v204_v44  ;;  %v5996_v44 = vld [vmem:[%s7199_s4 + $0x28] sm:$0xff]  ;;  %v6002_v27 = vld [vmem:[%s7199_s4 + $0x20] sm:$0xff] }
 0xe52   :  { %5093 = vtanh.f32 %v1141_v7  ;;  %v4897_v29 = vmul.f32 -1.442695, %v1141_v7  ;;  %v6008_v7 = vld [vmem:[%s7199_s4 + $0x18] sm:$0xff] }
 0xe54   :  { %5095 = vpow2.f32 %v4897_v29  ;;  %v6020_v29 = vld [vmem:[%s7199_s4 + $0x8] sm:$0xff] }
 0xe58   :  { %v5094_v28 = vpop.eup %5093 }
 0xe59   :  { %1164 = vrot.lane.b32.xlu2 %v5094_v28, %s5583_s30  ;;  %v6014_v28 = vld [vmem:[%s7199_s4 + $0x10] sm:$0xff] }
 0xe5a   :  { %v5096_v31 = vpop.eup %5095 }
 0xe5b   :  { %v1145_v43 = vadd.f32 1.0, %v5096_v31  ;;  %v6026_v31 = vld [vmem:[%s7199_s4] sm:$0xff] }
 0xe5d   :  { %v1157_v51 = vand.u32 2147483648, %v1145_v43  ;;  %vm1151_vm15 = vweird.f32 %v1145_v43  ;;  %v1155_v52 = vand.u32 2147483647, %v1145_v43 }
 0xe5f   :  { %v1158_v54 = vor.u32 1.1754944e-38, %v1157_v51  ;;  %vm1156_vm2 = vcmp.eq.f32.partialorder %v1155_v52, 8.507059e+37 }
 0xe88   :  { %v5958_v30 = vpop.f32.mrf.mxu3 }
 0xe90   :  { %v1046_v32 = vpop.f32.mrf.mxu3 }
 0xe91   :  { %v1047_v34 = vadd.f32 %v5781_v48, %v1046_v32 }
 0xe93   :  { %5097 = vtanh.f32 %v1047_v34  ;;  %v4894_v58 = vmul.f32 -1.442695, %v1047_v34 }
 0xe94   :  { %5099 = vrcp.f32 %v1145_v43 }
 0xe95   :  { %5101 = vpow2.f32 %v4894_v58 }
 0xe99   :  { %v5098_v45 = vpop.eup %5097 }
 0xe9a   :  { %1071 = vrot.lane.b32.xlu1 %v5098_v45, %s5583_s30  ;;  %v5100_v10 = vpop.eup %5099 }
 0xe9b   :  { %v1147_v47 = vmul.f32 %v5100_v10, %v1145_v43  ;;  %vm1152_vm14 = vweird.f32 %v5100_v10  ;;  %v5102_v59 = vpop.eup %5101 }
 0xe9c   :  { %vm1153_vm0 = vmor %vm1151_vm15, %vm1152_vm14  ;;  %v1052_v60 = vadd.f32 1.0, %v5102_v59 }
 0xe9d   :  { %v1148_v49 = vsub.f32 1.0, %v1147_v47  ;;  %v6040_v47 = vld [vmem:[%s7198_s3] ss:$0 sm:$0xff] }
 0xe9e   :  { %5103 = vrcp.f32 %v1052_v60  ;;  %v1064_v13 = vand.u32 2147483648, %v1052_v60  ;;  %vm1058_vm4 = vweird.f32 %v1052_v60  ;;  %v1062_v4 = vand.u32 2147483647, %v1052_v60 }
 0xe9f   :  { %v1149_v33 = vmul.f32 %v5100_v10, %v1148_v49 }
 0xea0   :  { %v1065_v8 = vor.u32 1.1754944e-38, %v1064_v13  ;;  %vm1063_vm8 = vcmp.eq.f32.partialorder %v1062_v4, 8.507059e+37 }
 0xea1   :  { %v1150_v50 = vadd.f32 %v5100_v10, %v1149_v33 }
 0xea3   :  { %v1154_v53 = vsel %vm1153_vm0, %v5100_v10, %v1150_v50  ;;  %v206_v10 = vpop.f32.mrf.mxu0 }
 0xea4   :  { %v1159_v55 = vsel %vm1156_vm2, %v1158_v54, %v1154_v53  ;;  %v5104_v61 = vpop.eup %5103  ;;  %v207_v49 = vadd.f32 %v6040_v47, %v206_v10 }
 0xea5   :  { %v1054_v42 = vmul.f32 %v5104_v61, %v1052_v60  ;;  %vm1059_vm3 = vweird.f32 %v5104_v61  ;;  %v1162_v14 = vmul.f32 %v1159_v55, %v5904_v57 }
 0xea6   :  { %vm1060_vm5 = vmor %vm1058_vm4, %vm1059_vm3 }
 0xea7   :  { %v1055_v63 = vsub.f32 1.0, %v1054_v42 }
 0xea9   :  { %v1056_v46 = vmul.f32 %v5104_v61, %v1055_v63 }
 0xeab   :  { %v1057_v0 = vadd.f32 %v5104_v61, %v1056_v46  ;;  %v6053_v46 = vld [vmem:[%s7200_s5] ss:$0 sm:$0xff] }
 0xead   :  { %v1061_v6 = vsel %vm1060_vm5, %v5104_v61, %v1057_v0 }
 0xeae   :  { %v1066_v11 = vsel %vm1063_vm8, %v1065_v8, %v1061_v6 }
 0xeaf   :  { %v1069_v1 = vmul.f32 %v1066_v11, %v5909_v16  ;;  %v1088_v16 = vld [vmem:[#allocation3 + $0x88] sm:$0xff] }
 0xeb0   :  { %1110 = vmatpush.msra.mxu1 %v1088_v16 }
 0xeb2   :  { %1111 = vmatpush.msra.mxu1 %v1087_v37 }
 0xeb3   :  { %v1165_v48 = vpop.permute.xlu2 %1164 }
 0xeb4   :  { %v1167_v56 = vmul.f32 %v1165_v48, %v1159_v55  ;;  %1198 = vmatpush.msrb.mxu1 %v5984_v39  ;;  %v632_v48 = vadd.f32 %v5895_v2, %v5832_v23 }
 0xeb6   :  { %1169 = vrot.lane.b32.xlu1 %v1167_v56, %s5584_s9  ;;  %1199 = vmatpush.msrb.mxu1 %v5990_v41 }
 0xeb8   :  { %1200 = vmatpush.msrb.mxu1 %v5996_v44 }
 0xeba   :  { %1201 = vmatpush.msrb.mxu1 %v6002_v27 }
 0xebc   :  { %1202 = vmatpush.msrb.mxu1 %v6008_v7 }
 0xebe   :  { %1203 = vmatpush.msrb.mxu1 %v6014_v28 }
 0xec0   :  { %1204 = vmatpush.msrb.mxu1 %v6020_v29 }
 0xec2   :  { %1205 = vmatpush.msrb.mxu1 %v6026_v31 }
 0xf0c   :  { %v1072_v9 = vpop.permute.xlu1 %1071 }
 0xf0d   :  { %v1074_v12 = vmul.f32 %v1072_v9, %v1066_v11 }
 0xf0f   :  { %1076 = vrot.lane.b32.xlu0 %v1074_v12, %s5584_s9 }
 0xf28   :  { %v1170_v15 = vpop.permute.xlu1 %1169 }
 0xf29   :  { %v5965_v17 = vadd.f32 %v1170_v15, %v1162_v14 }
 0xf2b   :  { %5105 = vtanh.f32 %v5965_v17 }
 0xf31   :  { %v5106_v18 = vpop.eup %5105 }
 0xf32   :  { %1175 = vrot.lane.b32.xlu0 %v5106_v18, %s5583_s30 }
 0xf81   :  { %v1077_v19 = vpop.permute.xlu0 %1076 }
 0xf82   :  { %v5970_v20 = vadd.f32 %v1077_v19, %v1069_v1 }
 0xf84   :  { %5107 = vtanh.f32 %v5970_v20 }
 0xf8a   :  { %v5108_v62 = vpop.eup %5107 }
 0xf8b   :  { %1082 = vrot.lane.b32.xlu2 %v5108_v62, %s5583_s30 }
 0xfa4   :  { %v1176_v21 = vpop.permute.xlu0 %1175 }
 0xfa5   :  { %v1178_v57 = vmul.f32 %v1176_v21, %v1159_v55  ;;  %v794_v55 = vadd.f32 %v5897_v3, %v632_v48 }
 0xfa7   :  { %1180 = vrot.lane.b32.xlu2 %v1178_v57, %s5584_s9  ;;  %v955_v56 = vadd.f32 %v5958_v30, %v794_v55 }
 0xfe5   :  { %v1083_v26 = vpop.permute.xlu2 %1082 }
 0xfe6   :  { %v1085_v5 = vmul.f32 %v1083_v26, %v1066_v11 }
 0xfe8   :  { %1183 = vrot.lane.b32.xlu0 %v1085_v5, %s5583_s30  ;;  %1092 = vrot.lane.b32.xlu1 %v1085_v5, %s5584_s9 }
0x1001   :  { %v1181_v32 = vpop.permute.xlu2 %1180 }
0x1002   :  { %4901 = vmatmul.msk.f32.vlgmr.msra.gmra.mxu3 %vm305_vm6, %v1181_v32 }
0x105a   :  { %v1093_v34 = vpop.permute.xlu1 %1092  ;;  %v1184_v43 = vpop.permute.xlu0 %1183 }
0x105b   :  { %4895 = vmatmul.msk.f32.vlgmr.msra.gmra.mxu1 %vm305_vm6, %v1093_v34  ;;  %v1186_v45 = vsel %vm305_vm6, %v1181_v32, %v1184_v43 }
0x105c   :  { %1455 = vmatpush.msra.mxu1 %v5933_v35 }
0x105e   :  { %1456 = vmatpush.msra.mxu1 %v5939_v36 }
0x1060   :  { %1457 = vmatpush.msra.mxu1 %v5945_v38 }
0x1062   :  { %1458 = vmatpush.msra.mxu1 %v5952_v40 }
0x1063   :  { %4898 = vmatmul.msk.f32.vlgmr.msrb.gmra.mxu1 %vm384_vm7, %v1186_v45 }
0x1085   :  { %v1299_v33 = vpop.f32.mrf.mxu3 }
0x1086   :  { %v1302_v50 = vadd.f32 %v1299_v33, %v207_v49 }
0x1088   :  { %5109 = vtanh.f32 %v1302_v50  ;;  %v4902_v52 = vmul.f32 -1.442695, %v1302_v50 }
0x108a   :  { %5111 = vpow2.f32 %v4902_v52  ;;  %v1251_v52 = vld [vmem:[#allocation3 + $0xb8] sm:$0xff] }
0x108b   :  { %1269 = vmatpush.msrb.mxu2 %v1251_v52 }
0x108e   :  { %v5110_v51 = vpop.eup %5109 }
0x108f   :  { %1325 = vrot.lane.b32.xlu2 %v5110_v51, %s5583_s30  ;;  %v53_v51 = vld [vmem:[%s7195_s0 + $0x38] sm:$0xff] }
0x1090   :  { %v5112_v53 = vpop.eup %5111  ;;  %4851 = vmatmul.msk.f32.gmra.mxu0 %vm82_vm1, %v53_v51 }
0x1091   :  { %v1306_v54 = vadd.f32 1.0, %v5112_v53  ;;  %v1249_v53 = vld [vmem:[#allocation3 + $0xa8] sm:$0xff] }
0x1093   :  { %5113 = vrcp.f32 %v1306_v54  ;;  %v1318_v30 = vand.u32 2147483648, %v1306_v54  ;;  %vm1312_vm10 = vweird.f32 %v1306_v54  ;;  %v1316_v13 = vand.u32 2147483647, %v1306_v54 }
0x1095   :  { %v1319_v8 = vor.u32 1.1754944e-38, %v1318_v30  ;;  %vm1317_vm12 = vcmp.eq.f32.partialorder %v1316_v13, 8.507059e+37 }
0x1099   :  { %v5114_v59 = vpop.eup %5113 }
0x109a   :  { %v1308_v61 = vmul.f32 %v5114_v59, %v1306_v54  ;;  %vm1313_vm9 = vweird.f32 %v5114_v59  ;;  %v1248_v54 = vld [vmem:[#allocation3 + $0xa0] sm:$0xff] }
0x109b   :  { %vm1314_vm11 = vmor %vm1312_vm10, %vm1313_vm9 }
0x109c   :  { %v1309_v63 = vsub.f32 1.0, %v1308_v61 }
0x109e   :  { %v1310_v23 = vmul.f32 %v5114_v59, %v1309_v63 }
0x10a0   :  { %v1311_v2 = vadd.f32 %v5114_v59, %v1310_v23 }
0x10a2   :  { %v1315_v4 = vsel %vm1314_vm11, %v5114_v59, %v1311_v2 }
0x10a3   :  { %v1320_v9 = vsel %vm1317_vm12, %v1319_v8, %v1315_v4 }
0x10a4   :  { %v1323_v37 = vmul.f32 %v1320_v9, %v5965_v17 }
0x10d8   :  { %v1113_v58 = vpop.f32.mrf.mxu1 }
0x10d9   :  { %v6048_v60 = vadd.f32 %v1113_v58, %v955_v56 }
0x10e0   :  { %v1207_v42 = vpop.f32.mrf.mxu1 }
0x10e1   :  { %v1208_v0 = vadd.f32 %v6053_v46, %v1207_v42 }
0x10e3   :  { %5115 = vtanh.f32 %v1208_v0  ;;  %v4899_v12 = vmul.f32 -1.442695, %v1208_v0 }
0x10e5   :  { %5117 = vpow2.f32 %v4899_v12 }
0x10e9   :  { %v5116_v3 = vpop.eup %5115  ;;  %v1326_v6 = vpop.permute.xlu2 %1325 }
0x10ea   :  { %1232 = vrot.lane.b32.xlu1 %v5116_v3, %s5583_s30  ;;  %v1328_v11 = vmul.f32 %v1326_v6, %v1320_v9 }
0x10eb   :  { %v5118_v14 = vpop.eup %5117 }
0x10ec   :  { %v1213_v15 = vadd.f32 1.0, %v5118_v14 }
0x10ee   :  { %5119 = vrcp.f32 %v1213_v15  ;;  %v1225_v57 = vand.u32 2147483648, %v1213_v15  ;;  %vm1219_vm14 = vweird.f32 %v1213_v15  ;;  %v1223_v22 = vand.u32 2147483647, %v1213_v15 }
0x10f0   :  { %v1226_v25 = vor.u32 1.1754944e-38, %v1225_v57  ;;  %vm1224_vm0 = vcmp.eq.f32.partialorder %v1223_v22, 8.507059e+37 }
0x10f2   :  { %1330 = vrot.lane.b32.xlu1 %v1328_v11, %s5584_s9 }
0x10f4   :  { %v5120_v18 = vpop.eup %5119 }
0x10f5   :  { %v1215_v1 = vmul.f32 %v5120_v18, %v1213_v15  ;;  %vm1220_vm13 = vweird.f32 %v5120_v18 }
0x10f6   :  { %vm1221_vm15 = vmor %vm1219_vm14, %vm1220_vm13 }
0x10f7   :  { %v1216_v19 = vsub.f32 1.0, %v1215_v1 }
0x10f9   :  { %v1217_v62 = vmul.f32 %v5120_v18, %v1216_v19 }
0x10fb   :  { %v1218_v21 = vadd.f32 %v5120_v18, %v1217_v62 }
0x10fd   :  { %v1222_v24 = vsel %vm1221_vm15, %v5120_v18, %v1218_v21 }
0x10fe   :  { %v1227_v26 = vsel %vm1224_vm0, %v1226_v25, %v1222_v24 }
0x10ff   :  { %v1230_v45 = vmul.f32 %v1227_v26, %v5970_v20  ;;  %v1250_v20 = vld [vmem:[#allocation3 + $0xb0] sm:$0xff] }
0x1100   :  { %1270 = vmatpush.msrb.mxu2 %v1250_v20 }
0x1102   :  { %1271 = vmatpush.msrb.mxu2 %v1249_v53 }
0x1104   :  { %1272 = vmatpush.msrb.mxu2 %v1248_v54 }
0x1106   :  { %1359 = vmatpush.msra.mxu2 %v5984_v39 }
0x1108   :  { %1360 = vmatpush.msra.mxu2 %v5990_v41 }
0x110a   :  { %1361 = vmatpush.msra.mxu2 %v5996_v44 }
0x110c   :  { %1362 = vmatpush.msra.mxu2 %v6002_v27 }
0x110d   :  { %v209_v42 = vpop.f32.mrf.mxu0 }
0x110e   :  { %1363 = vmatpush.msra.mxu2 %v6008_v7  ;;  %v210_v63 = vadd.f32 %v6040_v47, %v209_v42 }
0x1110   :  { %1364 = vmatpush.msra.mxu2 %v6014_v28 }
0x1112   :  { %1365 = vmatpush.msra.mxu2 %v6020_v29 }
0x1114   :  { %1366 = vmatpush.msra.mxu2 %v6026_v31 }
0x115c   :  { %v1233_v16 = vpop.permute.xlu1 %1232 }
0x115d   :  { %v1235_v5 = vmul.f32 %v1233_v16, %v1227_v26 }
0x115f   :  { %1237 = vrot.lane.b32.xlu0 %v1235_v5, %s5584_s9 }
0x1164   :  { %v1331_v32 = vpop.permute.xlu1 %1330 }
0x1165   :  { %v6060_v34 = vadd.f32 %v1331_v32, %v1323_v37 }
0x1167   :  { %5121 = vtanh.f32 %v6060_v34 }
0x116d   :  { %v5122_v43 = vpop.eup %5121 }
0x116e   :  { %1336 = vrot.lane.b32.xlu0 %v5122_v43, %s5583_s30 }
0x11d1   :  { %v1238_v10 = vpop.permute.xlu0 %1237 }
0x11d2   :  { %v6065_v49 = vadd.f32 %v1238_v10, %v1230_v45 }
0x11d4   :  { %5123 = vtanh.f32 %v6065_v49 }
0x11da   :  { %v5124_v33 = vpop.eup %5123 }
0x11db   :  { %1243 = vrot.lane.b32.xlu2 %v5124_v33, %s5583_s30 }
0x11e0   :  { %v1337_v50 = vpop.permute.xlu0 %1336 }
0x11e1   :  { %v1339_v17 = vmul.f32 %v1337_v50, %v1320_v9 }
0x11e3   :  { %1341 = vrot.lane.b32.xlu2 %v1339_v17, %s5584_s9 }
0x1235   :  { %v1244_v48 = vpop.permute.xlu2 %1243 }
0x1236   :  { %v1246_v55 = vmul.f32 %v1244_v48, %v1227_v26 }
0x1238   :  { %1344 = vrot.lane.b32.xlu0 %v1246_v55, %s5583_s30  ;;  %1253 = vrot.lane.b32.xlu1 %v1246_v55, %s5584_s9 }
0x123d   :  { %v1342_v56 = vpop.permute.xlu2 %1341 }
0x123e   :  { %4906 = vmatmul.msk.f32.vlgmr.msra.gmra.mxu1 %vm305_vm6, %v1342_v56 }
0x12aa   :  { %v1254_v58 = vpop.permute.xlu1 %1253  ;;  %v1345_v59 = vpop.permute.xlu0 %1344 }
0x12ab   :  { %4900 = vmatmul.msk.f32.vlgmr.msrb.gmra.mxu2 %vm305_vm6, %v1254_v58  ;;  %v1347_v61 = vsel %vm305_vm6, %v1342_v56, %v1345_v59 }
0x12ac   :  { %1616 = vmatpush.msrb.mxu2 %v5933_v35 }
0x12ae   :  { %1617 = vmatpush.msrb.mxu2 %v5939_v36 }
0x12b0   :  { %1618 = vmatpush.msrb.mxu2 %v5945_v38 }
0x12b2   :  { %1619 = vmatpush.msrb.mxu2 %v5952_v40 }
0x12b3   :  { %4903 = vmatmul.msk.f32.vlgmr.msra.gmra.mxu2 %vm384_vm7, %v1347_v61 }
0x12bb   :  { %v1460_v0 = vpop.f32.mrf.mxu1 }
0x12bc   :  { %v1463_v23 = vadd.f32 %v1460_v0, %v210_v63  ;;  %v54_v63 = vld [vmem:[%s7195_s0 + $0x40] sm:$0xff]  ;;  %v1412_v0 = vld [vmem:[#allocation3 + $0xd8] sm:$0xff] }
0x12bd   :  { %4852 = vmatmul.msk.f32.gmra.mxu0 %vm82_vm1, %v54_v63  ;;  %1430 = vmatpush.msrb.mxu3 %v1412_v0 }
0x12be   :  { %5125 = vtanh.f32 %v1463_v23  ;;  %v4907_v3 = vmul.f32 -1.442695, %v1463_v23  ;;  %v1411_v23 = vld [vmem:[#allocation3 + $0xd0] sm:$0xff] }
0x12bf   :  { %1431 = vmatpush.msrb.mxu3 %v1411_v23 }
0x12c0   :  { %5127 = vpow2.f32 %v4907_v3 }
0x12c4   :  { %v5126_v2 = vpop.eup %5125 }
0x12c5   :  { %1486 = vrot.lane.b32.xlu2 %v5126_v2, %s5583_s30  ;;  %v1409_v2 = vld [vmem:[#allocation3 + $0xc0] sm:$0xff] }
0x12c6   :  { %v5128_v30 = vpop.eup %5127 }
0x12c7   :  { %v1467_v13 = vadd.f32 1.0, %v5128_v30 }
0x12c9   :  { %5129 = vrcp.f32 %v1467_v13  ;;  %v1479_v19 = vand.u32 2147483648, %v1467_v13  ;;  %vm1473_vm3 = vweird.f32 %v1467_v13  ;;  %v1477_v62 = vand.u32 2147483647, %v1467_v13 }
0x12cb   :  { %vm1478_vm5 = vcmp.eq.f32.partialorder %v1477_v62, 8.507059e+37 }
0x12cf   :  { %v5130_v6 = vpop.eup %5129 }
0x12d0   :  { %v1469_v9 = vmul.f32 %v5130_v6, %v1467_v13  ;;  %vm1474_vm2 = vweird.f32 %v5130_v6 }
0x12d1   :  { %vm1475_vm4 = vmor %vm1473_vm3, %vm1474_vm2 }
0x12d2   :  { %v1470_v11 = vsub.f32 1.0, %v1469_v9 }
0x12d4   :  { %v1471_v15 = vmul.f32 %v5130_v6, %v1470_v11 }
0x12d6   :  { %v1472_v18 = vadd.f32 %v5130_v6, %v1471_v15 }
0x12d8   :  { %v1476_v21 = vsel %vm1475_vm4, %v5130_v6, %v1472_v18 }
0x131f   :  { %v1487_v57 = vpop.permute.xlu2 %1486 }
0x132e   :  { %v1274_v4 = vpop.f32.mrf.mxu2 }
0x132f   :  { %v6095_v8 = vadd.f32 %v1274_v4, %v6048_v60  ;;  %v1480_v60 = vor.u32 1.1754944e-38, %v1479_v19 }
0x1331   :  { %v1481_v22 = vsel %vm1478_vm5, %v1480_v60, %v1476_v21 }
0x1332   :  { %v1489_v24 = vmul.f32 %v1487_v57, %v1481_v22  ;;  %v1484_v53 = vmul.f32 %v1481_v22, %v6060_v34 }
0x1336   :  { %v1368_v12 = vpop.f32.mrf.mxu2 }
0x1337   :  { %v1369_v14 = vadd.f32 %v6053_v46, %v1368_v12 }
0x1339   :  { %5131 = vtanh.f32 %v1369_v14  ;;  %v4904_v25 = vmul.f32 -1.442695, %v1369_v14 }
0x133a   :  { %v212_v11 = vpop.f32.mrf.mxu0 }
0x133b   :  { %5133 = vpow2.f32 %v4904_v25  ;;  %v213_v12 = vadd.f32 %v6040_v47, %v212_v11 }
0x133f   :  { %v5132_v1 = vpop.eup %5131 }
0x1340   :  { %1393 = vrot.lane.b32.xlu1 %v5132_v1, %s5583_s30 }
0x1341   :  { %v5134_v16 = vpop.eup %5133 }
0x1342   :  { %v1374_v26 = vadd.f32 1.0, %v5134_v16 }
0x1344   :  { %5135 = vrcp.f32 %v1374_v26  ;;  %v1386_v10 = vand.u32 2147483648, %v1374_v26  ;;  %vm1380_vm9 = vweird.f32 %v1374_v26  ;;  %v1384_v33 = vand.u32 2147483647, %v1374_v26 }
0x1346   :  { %v1387_v17 = vor.u32 1.1754944e-38, %v1386_v10  ;;  %vm1385_vm11 = vcmp.eq.f32.partialorder %v1384_v33, 8.507059e+37 }
0x1348   :  { %1491 = vrot.lane.b32.xlu1 %v1489_v24, %s5584_s9 }
0x134a   :  { %v5136_v5 = vpop.eup %5135 }
0x134b   :  { %v1376_v37 = vmul.f32 %v5136_v5, %v1374_v26  ;;  %vm1381_vm8 = vweird.f32 %v5136_v5 }
0x134c   :  { %vm1382_vm10 = vmor %vm1380_vm9, %vm1381_vm8 }
0x134d   :  { %v1377_v32 = vsub.f32 1.0, %v1376_v37 }
0x134f   :  { %v1378_v43 = vmul.f32 %v5136_v5, %v1377_v32 }
0x1351   :  { %v1379_v45 = vadd.f32 %v5136_v5, %v1378_v43 }
0x1353   :  { %v1383_v50 = vsel %vm1382_vm10, %v5136_v5, %v1379_v45 }
0x1354   :  { %v1388_v52 = vsel %vm1385_vm11, %v1387_v17, %v1383_v50 }
0x1355   :  { %v1391_v56 = vmul.f32 %v1388_v52, %v6065_v49  ;;  %v1410_v49 = vld [vmem:[#allocation3 + $0xc8] sm:$0xff] }
0x1356   :  { %1432 = vmatpush.msrb.mxu3 %v1410_v49 }
0x1358   :  { %1433 = vmatpush.msrb.mxu3 %v1409_v2 }
0x135a   :  { %1520 = vmatpush.msra.mxu3 %v5984_v39 }
0x135c   :  { %1521 = vmatpush.msra.mxu3 %v5990_v41 }
0x135e   :  { %1522 = vmatpush.msra.mxu3 %v5996_v44 }
0x1360   :  { %1523 = vmatpush.msra.mxu3 %v6002_v27 }
0x1362   :  { %1524 = vmatpush.msra.mxu3 %v6008_v7 }
0x1364   :  { %1525 = vmatpush.msra.mxu3 %v6014_v28 }
0x1366   :  { %1526 = vmatpush.msra.mxu3 %v6020_v29 }
0x1368   :  { %1527 = vmatpush.msra.mxu3 %v6026_v31 }
0x13b2   :  { %v1394_v51 = vpop.permute.xlu1 %1393 }
0x13b3   :  { %v1396_v20 = vmul.f32 %v1394_v51, %v1388_v52 }
0x13b5   :  { %1398 = vrot.lane.b32.xlu0 %v1396_v20, %s5584_s9 }
0x13ba   :  { %v1492_v54 = vpop.permute.xlu1 %1491 }
0x13bb   :  { %v6102_v48 = vadd.f32 %v1492_v54, %v1484_v53 }
0x13bd   :  { %5137 = vtanh.f32 %v6102_v48 }
0x13c3   :  { %v5138_v55 = vpop.eup %5137 }
0x13c4   :  { %1497 = vrot.lane.b32.xlu0 %v5138_v55, %s5583_s30 }
0x1427   :  { %v1399_v58 = vpop.permute.xlu0 %1398 }
0x1428   :  { %v6107_v59 = vadd.f32 %v1399_v58, %v1391_v56 }
0x142a   :  { %5139 = vtanh.f32 %v6107_v59 }
0x1430   :  { %v5140_v61 = vpop.eup %5139 }
0x1431   :  { %1404 = vrot.lane.b32.xlu2 %v5140_v61, %s5583_s30 }
0x1436   :  { %v1498_v42 = vpop.permute.xlu0 %1497 }
0x1437   :  { %v1500_v34 = vmul.f32 %v1498_v42, %v1481_v22 }
0x1439   :  { %1502 = vrot.lane.b32.xlu2 %v1500_v34, %s5584_s9 }
0x148b   :  { %v1405_v3 = vpop.permute.xlu2 %1404 }
0x148c   :  { %v1407_v30 = vmul.f32 %v1405_v3, %v1388_v52 }
0x148e   :  { %1505 = vrot.lane.b32.xlu0 %v1407_v30, %s5583_s30  ;;  %1414 = vrot.lane.b32.xlu1 %v1407_v30, %s5584_s9 }
0x1493   :  { %v1503_v13 = vpop.permute.xlu2 %1502 }
0x1494   :  { %4911 = vmatmul.msk.f32.vlgmr.msrb.gmra.mxu2 %vm305_vm6, %v1503_v13 }
0x1500   :  { %v1415_v4 = vpop.permute.xlu1 %1414  ;;  %v1506_v6 = vpop.permute.xlu0 %1505 }
0x1501   :  { %4905 = vmatmul.msk.f32.vlgmr.msrb.gmra.mxu3 %vm305_vm6, %v1415_v4  ;;  %v1508_v9 = vsel %vm305_vm6, %v1503_v13, %v1506_v6 }
0x1502   :  { %1777 = vmatpush.msrb.mxu3 %v5933_v35 }
0x1504   :  { %1778 = vmatpush.msrb.mxu3 %v5939_v36 }
0x1506   :  { %1779 = vmatpush.msrb.mxu3 %v5945_v38 }
0x1508   :  { %1780 = vmatpush.msrb.mxu3 %v5952_v40 }
0x1509   :  { %4908 = vmatmul.msk.f32.vlgmr.msra.gmra.mxu3 %vm384_vm7, %v1508_v9 }
0x1517   :  { %v1621_v14 = vpop.f32.mrf.mxu2 }
0x1518   :  { %v1624_v15 = vadd.f32 %v1621_v14, %v213_v12  ;;  %v55_v12 = vld [vmem:[%s7195_s0 + $0x48] sm:$0xff]  ;;  %v1573_v14 = vld [vmem:[#allocation3 + $0xf8] sm:$0xff] }
0x1519   :  { %4853 = vmatmul.msk.f32.gmra.mxu0 %vm82_vm1, %v55_v12  ;;  %1591 = vmatpush.msrb.mxu1 %v1573_v14 }
0x151a   :  { %5141 = vtanh.f32 %v1624_v15  ;;  %v4912_v1 = vmul.f32 -1.442695, %v1624_v15  ;;  %v1572_v15 = vld [vmem:[#allocation3 + $0xf0] sm:$0xff] }
0x151b   :  { %1592 = vmatpush.msrb.mxu1 %v1572_v15 }
0x151c   :  { %5143 = vpow2.f32 %v4912_v1 }
0x1520   :  { %v5142_v18 = vpop.eup %5141 }
0x1521   :  { %1647 = vrot.lane.b32.xlu2 %v5142_v18, %s5583_s30  ;;  %v1570_v18 = vld [vmem:[#allocation3 + $0xe0] sm:$0xff] }
0x1522   :  { %v5144_v19 = vpop.eup %5143 }
0x1523   :  { %v1628_v62 = vadd.f32 1.0, %v5144_v19 }
0x1525   :  { %5145 = vrcp.f32 %v1628_v62  ;;  %v1640_v32 = vand.u32 2147483648, %v1628_v62  ;;  %vm1634_vm13 = vweird.f32 %v1628_v62  ;;  %v1638_v43 = vand.u32 2147483647, %v1628_v62 }
0x1527   :  { %vm1639_vm15 = vcmp.eq.f32.partialorder %v1638_v43, 8.507059e+37 }
0x152b   :  { %v5146_v57 = vpop.eup %5145 }
0x152c   :  { %v1630_v22 = vmul.f32 %v5146_v57, %v1628_v62  ;;  %vm1635_vm12 = vweird.f32 %v5146_v57 }
0x152d   :  { %vm1636_vm14 = vmor %vm1634_vm13, %vm1635_vm12 }
0x152e   :  { %v1631_v24 = vsub.f32 1.0, %v1630_v22 }
0x1530   :  { %v1632_v26 = vmul.f32 %v5146_v57, %v1631_v24 }
0x1532   :  { %v1633_v5 = vadd.f32 %v5146_v57, %v1632_v26 }
0x1534   :  { %v1637_v45 = vsel %vm1636_vm14, %v5146_v57, %v1633_v5 }
0x157b   :  { %v1648_v10 = vpop.permute.xlu2 %1647 }
0x1584   :  { %v1435_v21 = vpop.f32.mrf.mxu3 }
0x1585   :  { %v6137_v60 = vadd.f32 %v1435_v21, %v6095_v8  ;;  %v1641_v8 = vor.u32 1.1754944e-38, %v1640_v32 }
0x1587   :  { %v1642_v33 = vsel %vm1639_vm15, %v1641_v8, %v1637_v45 }
0x1588   :  { %v1650_v50 = vmul.f32 %v1648_v10, %v1642_v33  ;;  %v1645_v49 = vmul.f32 %v1642_v33, %v6102_v48 }
0x158c   :  { %v1529_v25 = vpop.f32.mrf.mxu3 }
0x158d   :  { %v1530_v16 = vadd.f32 %v6053_v46, %v1529_v25 }
0x158f   :  { %5147 = vtanh.f32 %v1530_v16  ;;  %v4909_v17 = vmul.f32 -1.442695, %v1530_v16 }
0x1591   :  { %5149 = vpow2.f32 %v4909_v17 }
0x1595   :  { %v5148_v37 = vpop.eup %5147 }
0x1596   :  { %1554 = vrot.lane.b32.xlu1 %v5148_v37, %s5583_s30  ;;  %v215_v24 = vpop.f32.mrf.mxu0 }
0x1597   :  { %v5150_v51 = vpop.eup %5149  ;;  %v216_v25 = vadd.f32 %v6040_v47, %v215_v24  ;;  %v1731_v24 = vld [vmem:[#allocation3 + $0x100] sm:$0xff] }
0x1598   :  { %v1535_v52 = vadd.f32 1.0, %v5150_v51 }
0x159a   :  { %5151 = vrcp.f32 %v1535_v52  ;;  %v1547_v58 = vand.u32 2147483648, %v1535_v52  ;;  %vm1541_vm2 = vweird.f32 %v1535_v52  ;;  %v1545_v61 = vand.u32 2147483647, %v1535_v52 }
0x159c   :  { %v1548_v34 = vor.u32 1.1754944e-38, %v1547_v58  ;;  %vm1546_vm4 = vcmp.eq.f32.partialorder %v1545_v61, 8.507059e+37 }
0x159e   :  { %1652 = vrot.lane.b32.xlu1 %v1650_v50, %s5584_s9 }
0x15a0   :  { %v5152_v20 = vpop.eup %5151 }
0x15a1   :  { %v1537_v53 = vmul.f32 %v5152_v20, %v1535_v52  ;;  %vm1542_vm0 = vweird.f32 %v5152_v20 }
0x15a2   :  { %vm1543_vm3 = vmor %vm1541_vm2, %vm1542_vm0 }
0x15a3   :  { %v1538_v54 = vsub.f32 1.0, %v1537_v53 }
0x15a5   :  { %v1539_v55 = vmul.f32 %v5152_v20, %v1538_v54 }
0x15a7   :  { %v1540_v56 = vadd.f32 %v5152_v20, %v1539_v55 }
0x15a9   :  { %v1544_v42 = vsel %vm1543_vm3, %v5152_v20, %v1540_v56 }
0x15aa   :  { %v1549_v0 = vsel %vm1546_vm4, %v1548_v34, %v1544_v42 }
0x15ab   :  { %v1552_v13 = vmul.f32 %v1549_v0, %v6107_v59  ;;  %v1571_v59 = vld [vmem:[#allocation3 + $0xe8] sm:$0xff] }
0x15ac   :  { %1593 = vmatpush.msrb.mxu1 %v1571_v59 }
0x15ae   :  { %1594 = vmatpush.msrb.mxu1 %v1570_v18 }
0x15b0   :  { %1681 = vmatpush.msra.mxu1 %v5984_v39 }
0x15b2   :  { %1682 = vmatpush.msra.mxu1 %v5990_v41 }
0x15b4   :  { %1683 = vmatpush.msra.mxu1 %v5996_v44 }
0x15b6   :  { %1684 = vmatpush.msra.mxu1 %v6002_v27 }
0x15b8   :  { %1685 = vmatpush.msra.mxu1 %v6008_v7 }
0x15ba   :  { %1686 = vmatpush.msra.mxu1 %v6014_v28 }
0x15bc   :  { %1687 = vmatpush.msra.mxu1 %v6020_v29 }
0x15be   :  { %1688 = vmatpush.msra.mxu1 %v6026_v31 }
0x1608   :  { %v1555_v63 = vpop.permute.xlu1 %1554 }
0x1609   :  { %v1557_v23 = vmul.f32 %v1555_v63, %v1549_v0 }
0x160b   :  { %1559 = vrot.lane.b32.xlu0 %v1557_v23, %s5584_s9 }
0x1610   :  { %v1653_v2 = vpop.permute.xlu1 %1652 }
0x1611   :  { %v6144_v3 = vadd.f32 %v1653_v2, %v1645_v49 }
0x1613   :  { %5153 = vtanh.f32 %v6144_v3 }
0x1619   :  { %v5154_v30 = vpop.eup %5153 }
0x161a   :  { %1658 = vrot.lane.b32.xlu0 %v5154_v30, %s5583_s30 }
0x167d   :  { %v1560_v4 = vpop.permute.xlu0 %1559 }
0x167e   :  { %v6149_v6 = vadd.f32 %v1560_v4, %v1552_v13 }
0x1680   :  { %5155 = vtanh.f32 %v6149_v6 }
0x1686   :  { %v5156_v9 = vpop.eup %5155 }
0x1687   :  { %1565 = vrot.lane.b32.xlu2 %v5156_v9, %s5583_s30 }
0x168c   :  { %v1659_v11 = vpop.permute.xlu0 %1658 }
0x168d   :  { %v1661_v48 = vmul.f32 %v1659_v11, %v1642_v33 }
0x168f   :  { %1663 = vrot.lane.b32.xlu2 %v1661_v48, %s5584_s9 }
0x16e1   :  { %v1566_v1 = vpop.permute.xlu2 %1565 }
0x16e2   :  { %v1568_v19 = vmul.f32 %v1566_v1, %v1549_v0 }
0x16e4   :  { %1666 = vrot.lane.b32.xlu0 %v1568_v19, %s5583_s30  ;;  %1575 = vrot.lane.b32.xlu1 %v1568_v19, %s5584_s9 }
0x16e9   :  { %v1664_v62 = vpop.permute.xlu2 %1663 }
0x16ea   :  { %4916 = vmatmul.msk.f32.vlgmr.msrb.gmra.mxu3 %vm305_vm6, %v1664_v62 }
0x1756   :  { %v1576_v21 = vpop.permute.xlu1 %1575  ;;  %v1667_v57 = vpop.permute.xlu0 %1666 }
0x1757   :  { %4910 = vmatmul.msk.f32.vlgmr.msrb.gmra.mxu1 %vm305_vm6, %v1576_v21  ;;  %v1669_v22 = vsel %vm305_vm6, %v1664_v62, %v1667_v57  ;;  %v56_v21 = vld [vmem:[%s7195_s0 + $0x50] sm:$0xff]  ;;  %v1734_v57 = vld [vmem:[#allocation3 + $0x118] sm:$0xff] }
0x1758   :  { %1938 = vmatpush.msrb.mxu1 %v5933_v35  ;;  %4854 = vmatmul.msk.f32.gmra.mxu0 %vm82_vm1, %v56_v21 }
0x1759   :  { %1752 = vmatpush.msra.mxu2 %v1734_v57 }
0x175a   :  { %1939 = vmatpush.msrb.mxu1 %v5939_v36 }
0x175c   :  { %1940 = vmatpush.msrb.mxu1 %v5945_v38 }
0x175e   :  { %1941 = vmatpush.msrb.mxu1 %v5952_v40 }
0x175f   :  { %4913 = vmatmul.msk.f32.vlgmr.msra.gmra.mxu1 %vm384_vm7, %v1669_v22  ;;  %v1732_v22 = vld [vmem:[#allocation3 + $0x108] sm:$0xff] }
0x176d   :  { %v1782_v16 = vpop.f32.mrf.mxu3 }
0x176e   :  { %v1785_v26 = vadd.f32 %v1782_v16, %v216_v25 }
0x1770   :  { %5157 = vtanh.f32 %v1785_v26  ;;  %v4917_v35 = vmul.f32 -1.442695, %v1785_v26 }
0x1772   :  { %5159 = vpow2.f32 %v4917_v35 }
0x1776   :  { %v5158_v5 = vpop.eup %5157 }
0x1777   :  { %1808 = vrot.lane.b32.xlu2 %v5158_v5, %s5583_s30 }
0x1778   :  { %v5160_v36 = vpop.eup %5159 }
0x1779   :  { %v1789_v37 = vadd.f32 1.0, %v5160_v36 }
0x177b   :  { %5161 = vrcp.f32 %v1789_v37  ;;  %v1801_v51 = vand.u32 2147483648, %v1789_v37  ;;  %vm1795_vm8 = vweird.f32 %v1789_v37  ;;  %v1799_v52 = vand.u32 2147483647, %v1789_v37 }
0x177d   :  { %vm1800_vm10 = vcmp.eq.f32.partialorder %v1799_v52, 8.507059e+37 }
0x1781   :  { %v5162_v32 = vpop.eup %5161 }
0x1782   :  { %v1791_v43 = vmul.f32 %v5162_v32, %v1789_v37  ;;  %vm1796_vm5 = vweird.f32 %v5162_v32 }
0x1783   :  { %vm1797_vm9 = vmor %vm1795_vm8, %vm1796_vm5 }
0x1784   :  { %v1792_v45 = vsub.f32 1.0, %v1791_v43 }
0x1786   :  { %v1793_v33 = vmul.f32 %v5162_v32, %v1792_v45 }
0x1788   :  { %v1794_v50 = vadd.f32 %v5162_v32, %v1793_v33 }
0x178a   :  { %v1798_v20 = vsel %vm1797_vm9, %v5162_v32, %v1794_v50 }
0x17d1   :  { %v1809_v53 = vpop.permute.xlu2 %1808 }
0x17d4   :  { %v1596_v38 = vpop.f32.mrf.mxu1 }
0x17d5   :  { %v6179_v40 = vadd.f32 %v1596_v38, %v6137_v60  ;;  %v1802_v60 = vor.u32 1.1754944e-38, %v1801_v51  ;;  %v218_v26 = vpop.f32.mrf.mxu0 }
0x17d6   :  { %v219_v5 = vadd.f32 %v6040_v47, %v218_v26  ;;  %v6295_v26 = vld [vmem:[%s7199_s4 + $0x10] sm:$0xff] }
0x17d7   :  { %v1803_v54 = vsel %vm1800_vm10, %v1802_v60, %v1798_v20 }
0x17d8   :  { %v1811_v55 = vmul.f32 %v1809_v53, %v1803_v54  ;;  %v1806_v48 = vmul.f32 %v1803_v54, %v6144_v3 }
0x17dc   :  { %v1690_v10 = vpop.f32.mrf.mxu1 }
0x17dd   :  { %v1691_v8 = vadd.f32 %v6053_v46, %v1690_v10 }
0x17df   :  { %5163 = vtanh.f32 %v1691_v8  ;;  %v4914_v56 = vmul.f32 -1.442695, %v1691_v8 }
0x17e1   :  { %5165 = vpow2.f32 %v4914_v56 }
0x17e5   :  { %v5164_v17 = vpop.eup %5163 }
0x17e6   :  { %1715 = vrot.lane.b32.xlu1 %v5164_v17, %s5583_s30 }
0x17e7   :  { %v5166_v58 = vpop.eup %5165 }
0x17e8   :  { %v1696_v61 = vadd.f32 1.0, %v5166_v58 }
0x17ea   :  { %5167 = vrcp.f32 %v1696_v61  ;;  %v1708_v49 = vand.u32 2147483648, %v1696_v61  ;;  %vm1702_vm12 = vweird.f32 %v1696_v61  ;;  %v1706_v2 = vand.u32 2147483647, %v1696_v61 }
0x17ec   :  { %v1709_v13 = vor.u32 1.1754944e-38, %v1708_v49  ;;  %vm1707_vm14 = vcmp.eq.f32.partialorder %v1706_v2, 8.507059e+37 }
0x17ee   :  { %1813 = vrot.lane.b32.xlu1 %v1811_v55, %s5584_s9 }
0x17f0   :  { %v5168_v42 = vpop.eup %5167 }
0x17f1   :  { %v1698_v34 = vmul.f32 %v5168_v42, %v1696_v61  ;;  %vm1703_vm11 = vweird.f32 %v5168_v42 }
0x17f2   :  { %vm1704_vm13 = vmor %vm1702_vm12, %vm1703_vm11 }
0x17f3   :  { %v1699_v63 = vsub.f32 1.0, %v1698_v34 }
0x17f5   :  { %v1700_v0 = vmul.f32 %v5168_v42, %v1699_v63 }
0x17f7   :  { %v1701_v23 = vadd.f32 %v5168_v42, %v1700_v0 }
0x17f9   :  { %v1705_v30 = vsel %vm1704_vm13, %v5168_v42, %v1701_v23 }
0x17fa   :  { %v1710_v9 = vsel %vm1707_vm14, %v1709_v13, %v1705_v30 }
0x17fb   :  { %v1713_v59 = vmul.f32 %v1710_v9, %v6149_v6  ;;  %v1733_v6 = vld [vmem:[#allocation3 + $0x110] sm:$0xff] }
0x17fc   :  { %1753 = vmatpush.msra.mxu2 %v1733_v6  ;;  %v57_v6 = vld [vmem:[%s7195_s0 + $0x58] sm:$0xff] }
0x17fd   :  { %4855 = vmatmul.msk.f32.gmra.mxu0 %vm82_vm1, %v57_v6 }
0x17fe   :  { %1754 = vmatpush.msra.mxu2 %v1732_v22  ;;  %v1895_v22 = vld [vmem:[#allocation3 + $0x138] sm:$0xff] }
0x17ff   :  { %1913 = vmatpush.msra.mxu3 %v1895_v22 }
0x1800   :  { %1755 = vmatpush.msra.mxu2 %v1731_v24  ;;  %v1894_v24 = vld [vmem:[#allocation3 + $0x130] sm:$0xff] }
0x1801   :  { %1914 = vmatpush.msra.mxu3 %v1894_v24 }
0x1802   :  { %1842 = vmatpush.msrb.mxu2 %v5984_v39 }
0x1804   :  { %1843 = vmatpush.msrb.mxu2 %v5990_v41 }
0x1806   :  { %1844 = vmatpush.msrb.mxu2 %v5996_v44  ;;  %v6215_v44 = vld [vmem:[%s7197_s2 + $0x18] sm:$0xff] }
0x1808   :  { %1845 = vmatpush.msrb.mxu2 %v6002_v27  ;;  %v6221_v27 = vld [vmem:[%s7197_s2 + $0x10] sm:$0xff] }
0x180a   :  { %1846 = vmatpush.msrb.mxu2 %v6008_v7 }
0x180c   :  { %1847 = vmatpush.msrb.mxu2 %v6014_v28  ;;  %v6227_v28 = vld [vmem:[%s7197_s2 + $0x8] sm:$0xff] }
0x180e   :  { %1848 = vmatpush.msrb.mxu2 %v6020_v29 }
0x1810   :  { %1849 = vmatpush.msrb.mxu2 %v6026_v31  ;;  %v6234_v31 = vld [vmem:[%s7197_s2] sm:$0xff] }
0x1858   :  { %v1716_v4 = vpop.permute.xlu1 %1715 }
0x1859   :  { %v1718_v11 = vmul.f32 %v1716_v4, %v1710_v9 }
0x185b   :  { %1720 = vrot.lane.b32.xlu0 %v1718_v11, %s5584_s9 }
0x1860   :  { %v1814_v12 = vpop.permute.xlu1 %1813 }
0x1861   :  { %v6186_v14 = vadd.f32 %v1814_v12, %v1806_v48 }
0x1863   :  { %5169 = vtanh.f32 %v6186_v14 }
0x1869   :  { %v5170_v15 = vpop.eup %5169 }
0x186a   :  { %1819 = vrot.lane.b32.xlu0 %v5170_v15, %s5583_s30 }
0x18cd   :  { %v1721_v18 = vpop.permute.xlu0 %1720 }
0x18ce   :  { %v6191_v1 = vadd.f32 %v1721_v18, %v1713_v59 }
0x18d0   :  { %5171 = vtanh.f32 %v6191_v1 }
0x18d6   :  { %v5172_v19 = vpop.eup %5171 }
0x18d7   :  { %1726 = vrot.lane.b32.xlu2 %v5172_v19, %s5583_s30 }
0x18dc   :  { %v1820_v62 = vpop.permute.xlu0 %1819 }
0x18dd   :  { %v1822_v3 = vmul.f32 %v1820_v62, %v1803_v54 }
0x18df   :  { %1824 = vrot.lane.b32.xlu2 %v1822_v3, %s5584_s9 }
0x1931   :  { %v1727_v25 = vpop.permute.xlu2 %1726 }
0x1932   :  { %v1729_v16 = vmul.f32 %v1727_v25, %v1710_v9  ;;  %v1892_v25 = vld [vmem:[#allocation3 + $0x120] sm:$0xff] }
0x1934   :  { %1827 = vrot.lane.b32.xlu0 %v1729_v16, %s5583_s30  ;;  %1736 = vrot.lane.b32.xlu1 %v1729_v16, %s5584_s9  ;;  %v6265_v16 = vld [vmem:[%s7199_s4 + $0x38] sm:$0xff] }
0x1939   :  { %v1825_v39 = vpop.permute.xlu2 %1824 }
0x193a   :  { %4921 = vmatmul.msk.f32.vlgmr.msrb.gmra.mxu1 %vm305_vm6, %v1825_v39 }
0x19a6   :  { %v1737_v41 = vpop.permute.xlu1 %1736  ;;  %v1828_v7 = vpop.permute.xlu0 %1827 }
0x19a7   :  { %4915 = vmatmul.msk.f32.vlgmr.msra.gmra.mxu2 %vm305_vm6, %v1737_v41  ;;  %v1830_v29 = vsel %vm305_vm6, %v1825_v39, %v1828_v7  ;;  %v6271_v39 = vld [vmem:[%s7199_s4 + $0x30] sm:$0xff]  ;;  %v6277_v41 = vld [vmem:[%s7199_s4 + $0x28] sm:$0xff]  ;;  %v6283_v7 = vld [vmem:[%s7199_s4 + $0x20] sm:$0xff] }
0x19a8   :  { %2099 = vmatpush.msra.mxu2 %v6215_v44 }
0x19aa   :  { %2100 = vmatpush.msra.mxu2 %v6221_v27 }
0x19ac   :  { %2101 = vmatpush.msra.mxu2 %v6227_v28 }
0x19ae   :  { %2102 = vmatpush.msra.mxu2 %v6234_v31 }
0x19af   :  { %4918 = vmatmul.msk.f32.vlgmr.msrb.gmra.mxu2 %vm384_vm7, %v1830_v29  ;;  %v6289_v29 = vld [vmem:[%s7199_s4 + $0x18] sm:$0xff] }
0x19b7   :  { %v1943_v35 = vpop.f32.mrf.mxu1 }
0x19b8   :  { %v1946_v36 = vadd.f32 %v1943_v35, %v219_v5  ;;  %v6301_v5 = vld [vmem:[%s7199_s4 + $0x8] sm:$0xff]  ;;  %v6307_v35 = vld [vmem:[%s7199_s4] sm:$0xff] }
0x19ba   :  { %5173 = vtanh.f32 %v1946_v36  ;;  %v4922_v38 = vmul.f32 -1.442695, %v1946_v36 }
0x19bc   :  { %5175 = vpow2.f32 %v4922_v38 }
0x19c0   :  { %v5174_v37 = vpop.eup %5173 }
0x19c1   :  { %1969 = vrot.lane.b32.xlu2 %v5174_v37, %s5583_s30 }
0x19c2   :  { %v5176_v32 = vpop.eup %5175 }
0x19c3   :  { %v1950_v43 = vadd.f32 1.0, %v5176_v32 }
0x19c5   :  { %5177 = vrcp.f32 %v1950_v43  ;;  %v1962_v53 = vand.u32 2147483648, %v1950_v43  ;;  %vm1956_vm0 = vweird.f32 %v1950_v43  ;;  %v1960_v60 = vand.u32 2147483647, %v1950_v43 }
0x19c7   :  { %vm1961_vm3 = vcmp.eq.f32.partialorder %v1960_v60, 8.507059e+37 }
0x19cb   :  { %v5178_v10 = vpop.eup %5177 }
0x19cc   :  { %v1952_v33 = vmul.f32 %v5178_v10, %v1950_v43  ;;  %vm1957_vm15 = vweird.f32 %v5178_v10 }
0x19cd   :  { %vm1958_vm2 = vmor %vm1956_vm0, %vm1957_vm15 }
0x19ce   :  { %v1953_v50 = vsub.f32 1.0, %v1952_v33  ;;  %v6323_v33 = vld [vmem:[%s7198_s3] ss:$0 sm:$0xff] }
0x19d0   :  { %v1954_v51 = vmul.f32 %v5178_v10, %v1953_v50 }
0x19d2   :  { %v1955_v52 = vadd.f32 %v5178_v10, %v1954_v51 }
0x19d4   :  { %v1959_v54 = vsel %vm1958_vm2, %v5178_v10, %v1955_v52  ;;  %v221_v10 = vpop.f32.mrf.mxu0 }
0x19d5   :  { %v222_v50 = vadd.f32 %v6323_v33, %v221_v10 }
0x1a1b   :  { %v1970_v55 = vpop.permute.xlu2 %1969 }
0x1a2a   :  { %v1757_v45 = vpop.f32.mrf.mxu2 }
0x1a2b   :  { %v6241_v8 = vadd.f32 %v1757_v45, %v6179_v40  ;;  %v1963_v40 = vor.u32 1.1754944e-38, %v1962_v53 }
0x1a2d   :  { %v1964_v56 = vsel %vm1961_vm3, %v1963_v40, %v1959_v54 }
0x1a2e   :  { %v1972_v58 = vmul.f32 %v1970_v55, %v1964_v56  ;;  %v1967_v12 = vmul.f32 %v1964_v56, %v6186_v14 }
0x1a32   :  { %v1851_v17 = vpop.f32.mrf.mxu2 }
0x1a33   :  { %v1852_v47 = vadd.f32 %v6053_v46, %v1851_v17 }
0x1a35   :  { %5179 = vtanh.f32 %v1852_v47  ;;  %v4919_v46 = vmul.f32 -1.442695, %v1852_v47 }
0x1a37   :  { %5181 = vpow2.f32 %v4919_v46  ;;  %v6333_v46 = vld [vmem:[%s7200_s5] ss:$0 sm:$0xff] }
0x1a3b   :  { %v5180_v20 = vpop.eup %5179 }
0x1a3c   :  { %1876 = vrot.lane.b32.xlu1 %v5180_v20, %s5583_s30 }
0x1a3d   :  { %v5182_v61 = vpop.eup %5181 }
0x1a3e   :  { %v1857_v42 = vadd.f32 1.0, %v5182_v61 }
0x1a40   :  { %5183 = vrcp.f32 %v1857_v42  ;;  %v1869_v2 = vand.u32 2147483648, %v1857_v42  ;;  %vm1863_vm5 = vweird.f32 %v1857_v42  ;;  %v1867_v30 = vand.u32 2147483647, %v1857_v42 }
0x1a42   :  { %v1870_v4 = vor.u32 1.1754944e-38, %v1869_v2  ;;  %vm1868_vm9 = vcmp.eq.f32.partialorder %v1867_v30, 8.507059e+37 }
0x1a44   :  { %1974 = vrot.lane.b32.xlu1 %v1972_v58, %s5584_s9 }
0x1a46   :  { %v5184_v34 = vpop.eup %5183 }
0x1a47   :  { %v1859_v63 = vmul.f32 %v5184_v34, %v1857_v42  ;;  %vm1864_vm4 = vweird.f32 %v5184_v34 }
0x1a48   :  { %vm1865_vm8 = vmor %vm1863_vm5, %vm1864_vm4 }
0x1a49   :  { %v1860_v0 = vsub.f32 1.0, %v1859_v63 }
0x1a4b   :  { %v1861_v23 = vmul.f32 %v5184_v34, %v1860_v0 }
0x1a4d   :  { %v1862_v49 = vadd.f32 %v5184_v34, %v1861_v23 }
0x1a4f   :  { %v1866_v13 = vsel %vm1865_vm8, %v5184_v34, %v1862_v49 }
0x1a50   :  { %v1871_v11 = vsel %vm1868_vm9, %v1870_v4, %v1866_v13 }
0x1a51   :  { %v1874_v19 = vmul.f32 %v1871_v11, %v6191_v1  ;;  %v1893_v1 = vld [vmem:[#allocation3 + $0x128] sm:$0xff] }
0x1a52   :  { %1915 = vmatpush.msra.mxu3 %v1893_v1 }
0x1a54   :  { %1916 = vmatpush.msra.mxu3 %v1892_v25 }
0x1a56   :  { %2003 = vmatpush.msrb.mxu3 %v6265_v16 }
0x1a58   :  { %2004 = vmatpush.msrb.mxu3 %v6271_v39 }
0x1a5a   :  { %2005 = vmatpush.msrb.mxu3 %v6277_v41 }
0x1a5c   :  { %2006 = vmatpush.msrb.mxu3 %v6283_v7 }
0x1a5e   :  { %2007 = vmatpush.msrb.mxu3 %v6289_v29 }
0x1a60   :  { %2008 = vmatpush.msrb.mxu3 %v6295_v26 }
0x1a62   :  { %2009 = vmatpush.msrb.mxu3 %v6301_v5 }
0x1a64   :  { %2010 = vmatpush.msrb.mxu3 %v6307_v35 }
0x1aae   :  { %v1877_v9 = vpop.permute.xlu1 %1876 }
0x1aaf   :  { %v1879_v48 = vmul.f32 %v1877_v9, %v1871_v11 }
0x1ab1   :  { %1881 = vrot.lane.b32.xlu0 %v1879_v48, %s5584_s9 }
0x1ab6   :  { %v1975_v15 = vpop.permute.xlu1 %1974 }
0x1ab7   :  { %v6248_v59 = vadd.f32 %v1975_v15, %v1967_v12 }
0x1ab9   :  { %5185 = vtanh.f32 %v6248_v59 }
0x1abf   :  { %v5186_v18 = vpop.eup %5185 }
0x1ac0   :  { %1980 = vrot.lane.b32.xlu0 %v5186_v18, %s5583_s30 }
0x1b23   :  { %v1882_v62 = vpop.permute.xlu0 %1881 }
0x1b24   :  { %v6253_v3 = vadd.f32 %v1882_v62, %v1874_v19 }
0x1b26   :  { %5187 = vtanh.f32 %v6253_v3 }
0x1b2c   :  { %v5188_v21 = vpop.eup %5187 }
0x1b2d   :  { %1887 = vrot.lane.b32.xlu2 %v5188_v21, %s5583_s30 }
0x1b32   :  { %v1981_v57 = vpop.permute.xlu0 %1980 }
0x1b33   :  { %v1983_v14 = vmul.f32 %v1981_v57, %v1964_v56 }
0x1b35   :  { %1985 = vrot.lane.b32.xlu2 %v1983_v14, %s5584_s9 }
0x1b87   :  { %v1888_v36 = vpop.permute.xlu2 %1887 }
0x1b88   :  { %v1890_v37 = vmul.f32 %v1888_v36, %v1871_v11 }
0x1b8a   :  { %1988 = vrot.lane.b32.xlu0 %v1890_v37, %s5583_s30  ;;  %1897 = vrot.lane.b32.xlu1 %v1890_v37, %s5584_s9 }
0x1b8f   :  { %v1986_v38 = vpop.permute.xlu2 %1985 }
0x1b90   :  { %4926 = vmatmul.msk.f32.vlgmr.msra.gmra.mxu2 %vm305_vm6, %v1986_v38 }
0x1bfc   :  { %v1898_v32 = vpop.permute.xlu1 %1897  ;;  %v1989_v43 = vpop.permute.xlu0 %1988 }
0x1bfd   :  { %4920 = vmatmul.msk.f32.vlgmr.msra.gmra.mxu3 %vm305_vm6, %v1898_v32  ;;  %v1991_v45 = vsel %vm305_vm6, %v1986_v38, %v1989_v43 }
0x1bfe   :  { %2260 = vmatpush.msra.mxu3 %v6215_v44 }
0x1c00   :  { %2261 = vmatpush.msra.mxu3 %v6221_v27 }
0x1c02   :  { %2262 = vmatpush.msra.mxu3 %v6227_v28 }
0x1c04   :  { %2263 = vmatpush.msra.mxu3 %v6234_v31 }
0x1c05   :  { %4923 = vmatmul.msk.f32.vlgmr.msrb.gmra.mxu3 %vm384_vm7, %v1991_v45 }
0x1c13   :  { %v2104_v17 = vpop.f32.mrf.mxu2 }
0x1c14   :  { %v2107_v47 = vadd.f32 %v2104_v17, %v222_v50  ;;  %v58_v50 = vld [vmem:[%s7195_s0 + $0x60] sm:$0xff]  ;;  %v2056_v17 = vld [vmem:[#allocation3 + $0x158] sm:$0xff] }
0x1c15   :  { %4856 = vmatmul.msk.f32.gmra.mxu0 %vm82_vm1, %v58_v50  ;;  %2074 = vmatpush.msra.mxu1 %v2056_v17 }
0x1c16   :  { %5189 = vtanh.f32 %v2107_v47  ;;  %v4927_v52 = vmul.f32 -1.442695, %v2107_v47  ;;  %v2055_v47 = vld [vmem:[#allocation3 + $0x150] sm:$0xff] }
0x1c17   :  { %2075 = vmatpush.msra.mxu1 %v2055_v47 }
0x1c18   :  { %5191 = vpow2.f32 %v4927_v52 }
0x1c1c   :  { %v5190_v51 = vpop.eup %5189 }
0x1c1d   :  { %2130 = vrot.lane.b32.xlu2 %v5190_v51, %s5583_s30  ;;  %v2053_v51 = vld [vmem:[#allocation3 + $0x140] sm:$0xff] }
0x1c1e   :  { %v5192_v20 = vpop.eup %5191 }
0x1c1f   :  { %v2111_v53 = vadd.f32 1.0, %v5192_v20 }
0x1c21   :  { %5193 = vrcp.f32 %v2111_v53  ;;  %v2123_v0 = vand.u32 2147483648, %v2111_v53  ;;  %vm2117_vm11 = vweird.f32 %v2111_v53  ;;  %v2121_v23 = vand.u32 2147483647, %v2111_v53 }
0x1c23   :  { %v2124_v2 = vor.u32 1.1754944e-38, %v2123_v0  ;;  %vm2122_vm13 = vcmp.eq.f32.partialorder %v2121_v23, 8.507059e+37 }
0x1c27   :  { %v5194_v54 = vpop.eup %5193 }
0x1c28   :  { %v2113_v40 = vmul.f32 %v5194_v54, %v2111_v53  ;;  %vm2118_vm10 = vweird.f32 %v5194_v54 }
0x1c29   :  { %vm2119_vm12 = vmor %vm2117_vm11, %vm2118_vm10 }
0x1c2a   :  { %v2114_v56 = vsub.f32 1.0, %v2113_v40 }
0x1c2c   :  { %v2115_v42 = vmul.f32 %v5194_v54, %v2114_v56 }
0x1c2e   :  { %v2116_v34 = vadd.f32 %v5194_v54, %v2115_v42 }
0x1c77   :  { %v2131_v49 = vpop.permute.xlu2 %2130 }
0x1c80   :  { %v1918_v60 = vpop.f32.mrf.mxu3 }
0x1c81   :  { %v6328_v55 = vadd.f32 %v1918_v60, %v6241_v8  ;;  %v2120_v8 = vsel %vm2119_vm12, %v5194_v54, %v2116_v34 }
0x1c82   :  { %v2125_v30 = vsel %vm2122_vm13, %v2124_v2, %v2120_v8 }
0x1c83   :  { %v2133_v13 = vmul.f32 %v2131_v49, %v2125_v30  ;;  %v2128_v1 = vmul.f32 %v2125_v30, %v6248_v59 }
0x1c88   :  { %v2012_v58 = vpop.f32.mrf.mxu3 }
0x1c89   :  { %v2013_v61 = vadd.f32 %v6333_v46, %v2012_v58 }
0x1c8b   :  { %5195 = vtanh.f32 %v2013_v61  ;;  %v4924_v4 = vmul.f32 -1.442695, %v2013_v61 }
0x1c8d   :  { %5197 = vpow2.f32 %v4924_v4 }
0x1c91   :  { %v5196_v63 = vpop.eup %5195 }
0x1c92   :  { %2037 = vrot.lane.b32.xlu1 %v5196_v63, %s5583_s30  ;;  %v224_v56 = vpop.f32.mrf.mxu0 }
0x1c93   :  { %v5198_v9 = vpop.eup %5197  ;;  %v225_v58 = vadd.f32 %v6323_v33, %v224_v56 }
0x1c94   :  { %v2018_v11 = vadd.f32 1.0, %v5198_v9 }
0x1c96   :  { %5199 = vrcp.f32 %v2018_v11  ;;  %v2030_v62 = vand.u32 2147483648, %v2018_v11  ;;  %vm2024_vm15 = vweird.f32 %v2018_v11  ;;  %v2028_v21 = vand.u32 2147483647, %v2018_v11 }
0x1c98   :  { %v2031_v14 = vor.u32 1.1754944e-38, %v2030_v62  ;;  %vm2029_vm2 = vcmp.eq.f32.partialorder %v2028_v21, 8.507059e+37 }
0x1c9a   :  { %2135 = vrot.lane.b32.xlu1 %v2133_v13, %s5584_s9 }
0x1c9c   :  { %v5200_v48 = vpop.eup %5199 }
0x1c9d   :  { %v2020_v12 = vmul.f32 %v5200_v48, %v2018_v11  ;;  %vm2025_vm14 = vweird.f32 %v5200_v48 }
0x1c9e   :  { %vm2026_vm0 = vmor %vm2024_vm15, %vm2025_vm14 }
0x1c9f   :  { %v2021_v15 = vsub.f32 1.0, %v2020_v12 }
0x1ca1   :  { %v2022_v18 = vmul.f32 %v5200_v48, %v2021_v15 }
0x1ca3   :  { %v2023_v19 = vadd.f32 %v5200_v48, %v2022_v18 }
0x1ca5   :  { %v2027_v57 = vsel %vm2026_vm0, %v5200_v48, %v2023_v19 }
0x1ca6   :  { %v2032_v22 = vsel %vm2029_vm2, %v2031_v14, %v2027_v57 }
0x1ca7   :  { %v2035_v38 = vmul.f32 %v2032_v22, %v6253_v3  ;;  %v2054_v3 = vld [vmem:[#allocation3 + $0x148] sm:$0xff] }
0x1ca8   :  { %2076 = vmatpush.msra.mxu1 %v2054_v3 }
0x1caa   :  { %2077 = vmatpush.msra.mxu1 %v2053_v51 }
0x1cac   :  { %2164 = vmatpush.msrb.mxu1 %v6265_v16 }
0x1cae   :  { %2165 = vmatpush.msrb.mxu1 %v6271_v39 }
0x1cb0   :  { %2166 = vmatpush.msrb.mxu1 %v6277_v41 }
0x1cb2   :  { %2167 = vmatpush.msrb.mxu1 %v6283_v7 }
0x1cb4   :  { %2168 = vmatpush.msrb.mxu1 %v6289_v29 }
0x1cb6   :  { %2169 = vmatpush.msrb.mxu1 %v6295_v26 }
0x1cb8   :  { %2170 = vmatpush.msrb.mxu1 %v6301_v5 }
0x1cba   :  { %2171 = vmatpush.msrb.mxu1 %v6307_v35 }
0x1d04   :  { %v2038_v6 = vpop.permute.xlu1 %2037 }
0x1d05   :  { %v2040_v24 = vmul.f32 %v2038_v6, %v2032_v22 }
0x1d07   :  { %2042 = vrot.lane.b32.xlu0 %v2040_v24, %s5584_s9 }
0x1d0c   :  { %v2136_v25 = vpop.permute.xlu1 %2135 }
0x1d0d   :  { %v6340_v36 = vadd.f32 %v2136_v25, %v2128_v1 }
0x1d0f   :  { %5201 = vtanh.f32 %v6340_v36 }
0x1d15   :  { %v5202_v37 = vpop.eup %5201 }
0x1d16   :  { %2141 = vrot.lane.b32.xlu0 %v5202_v37, %s5583_s30 }
0x1d79   :  { %v2043_v32 = vpop.permute.xlu0 %2042 }
0x1d7a   :  { %v6345_v43 = vadd.f32 %v2043_v32, %v2035_v38 }
0x1d7c   :  { %5203 = vtanh.f32 %v6345_v43 }
0x1d82   :  { %v5204_v45 = vpop.eup %5203 }
0x1d83   :  { %2048 = vrot.lane.b32.xlu2 %v5204_v45, %s5583_s30 }
0x1d88   :  { %v2142_v10 = vpop.permute.xlu0 %2141 }
0x1d89   :  { %v2144_v59 = vmul.f32 %v2142_v10, %v2125_v30 }
0x1d8b   :  { %2146 = vrot.lane.b32.xlu2 %v2144_v59, %s5584_s9 }
0x1ddd   :  { %v2049_v52 = vpop.permute.xlu2 %2048 }
0x1dde   :  { %v2051_v20 = vmul.f32 %v2049_v52, %v2032_v22 }
0x1de0   :  { %2149 = vrot.lane.b32.xlu0 %v2051_v20, %s5583_s30  ;;  %2058 = vrot.lane.b32.xlu1 %v2051_v20, %s5584_s9 }
0x1de5   :  { %v2147_v53 = vpop.permute.xlu2 %2146 }
0x1de6   :  { %4931 = vmatmul.msk.f32.vlgmr.msra.gmra.mxu3 %vm305_vm6, %v2147_v53 }
0x1e52   :  { %v2059_v60 = vpop.permute.xlu1 %2058  ;;  %v2150_v54 = vpop.permute.xlu0 %2149 }
0x1e53   :  { %4925 = vmatmul.msk.f32.vlgmr.msra.gmra.mxu1 %vm305_vm6, %v2059_v60  ;;  %v2152_v40 = vsel %vm305_vm6, %v2147_v53, %v2150_v54 }
0x1e54   :  { %2421 = vmatpush.msra.mxu1 %v6215_v44 }
0x1e56   :  { %2422 = vmatpush.msra.mxu1 %v6221_v27 }
0x1e58   :  { %2423 = vmatpush.msra.mxu1 %v6227_v28 }
0x1e5a   :  { %2424 = vmatpush.msra.mxu1 %v6234_v31 }
0x1e5b   :  { %4928 = vmatmul.msk.f32.vlgmr.msrb.gmra.mxu1 %vm384_vm7, %v2152_v40 }
0x1e69   :  { %v2265_v61 = vpop.f32.mrf.mxu3 }
0x1e6a   :  { %v2268_v42 = vadd.f32 %v2265_v61, %v225_v58  ;;  %v59_v58 = vld [vmem:[%s7195_s0 + $0x68] sm:$0xff]  ;;  %v2217_v61 = vld [vmem:[#allocation3 + $0x178] sm:$0xff] }
0x1e6b   :  { %4857 = vmatmul.msk.f32.gmra.mxu0 %vm82_vm1, %v59_v58  ;;  %2235 = vmatpush.msrb.mxu2 %v2217_v61 }
0x1e6c   :  { %5205 = vtanh.f32 %v2268_v42  ;;  %v4932_v63 = vmul.f32 -1.442695, %v2268_v42  ;;  %v2215_v42 = vld [vmem:[#allocation3 + $0x168] sm:$0xff] }
0x1e6e   :  { %5207 = vpow2.f32 %v4932_v63 }
0x1e72   :  { %v5206_v34 = vpop.eup %5205 }
0x1e73   :  { %2291 = vrot.lane.b32.xlu2 %v5206_v34, %s5583_s30  ;;  %v2214_v34 = vld [vmem:[#allocation3 + $0x160] sm:$0xff] }
0x1e74   :  { %v5208_v0 = vpop.eup %5207 }
0x1e75   :  { %v2272_v23 = vadd.f32 1.0, %v5208_v0 }
0x1e77   :  { %5209 = vrcp.f32 %v2272_v23  ;;  %v2284_v15 = vand.u32 2147483648, %v2272_v23  ;;  %vm2278_vm4 = vweird.f32 %v2272_v23  ;;  %v2282_v18 = vand.u32 2147483647, %v2272_v23 }
0x1e79   :  { %vm2283_vm8 = vcmp.eq.f32.partialorder %v2282_v18, 8.507059e+37 }
0x1e7d   :  { %v5210_v49 = vpop.eup %5209 }
0x1e7e   :  { %v2274_v30 = vmul.f32 %v5210_v49, %v2272_v23  ;;  %vm2279_vm3 = vweird.f32 %v5210_v49 }
0x1e7f   :  { %vm2280_vm5 = vmor %vm2278_vm4, %vm2279_vm3 }
0x1e80   :  { %v2275_v13 = vsub.f32 1.0, %v2274_v30 }
0x1e82   :  { %v2276_v11 = vmul.f32 %v5210_v49, %v2275_v13 }
0x1e84   :  { %v2277_v48 = vadd.f32 %v5210_v49, %v2276_v11 }
0x1e86   :  { %v2281_v19 = vsel %vm2280_vm5, %v5210_v49, %v2277_v48 }
0x1ecd   :  { %v2292_v62 = vpop.permute.xlu2 %2291 }
0x1ed0   :  { %v2079_v8 = vpop.f32.mrf.mxu1 }
0x1ed1   :  { %v6375_v2 = vadd.f32 %v2079_v8, %v6328_v55  ;;  %v2285_v55 = vor.u32 1.1754944e-38, %v2284_v15 }
0x1ed3   :  { %v2286_v21 = vsel %vm2283_vm8, %v2285_v55, %v2281_v19 }
0x1ed4   :  { %v2294_v57 = vmul.f32 %v2292_v62, %v2286_v21  ;;  %v2289_v3 = vmul.f32 %v2286_v21, %v6340_v36 }
0x1ed8   :  { %v2173_v4 = vpop.f32.mrf.mxu1 }
0x1ed9   :  { %v2174_v9 = vadd.f32 %v6333_v46, %v2173_v4 }
0x1edb   :  { %5211 = vtanh.f32 %v2174_v9  ;;  %v4929_v14 = vmul.f32 -1.442695, %v2174_v9 }
0x1edd   :  { %5213 = vpow2.f32 %v4929_v14 }
0x1ee1   :  { %v5212_v12 = vpop.eup %5211 }
0x1ee2   :  { %2198 = vrot.lane.b32.xlu1 %v5212_v12, %s5583_s30 }
0x1ee3   :  { %v5214_v6 = vpop.eup %5213 }
0x1ee4   :  { %v2179_v22 = vadd.f32 1.0, %v5214_v6 }
0x1ee6   :  { %5215 = vrcp.f32 %v2179_v22  ;;  %v2191_v32 = vand.u32 2147483648, %v2179_v22  ;;  %vm2185_vm10 = vweird.f32 %v2179_v22  ;;  %v2189_v45 = vand.u32 2147483647, %v2179_v22 }
0x1ee8   :  { %v2192_v59 = vor.u32 1.1754944e-38, %v2191_v32  ;;  %vm2190_vm12 = vcmp.eq.f32.partialorder %v2189_v45, 8.507059e+37  ;;  %v227_v13 = vpop.f32.mrf.mxu0 }
0x1ee9   :  { %v228_v4 = vadd.f32 %v6323_v33, %v227_v13 }
0x1eea   :  { %2296 = vrot.lane.b32.xlu1 %v2294_v57, %s5584_s9 }
0x1eec   :  { %v5216_v24 = vpop.eup %5215 }
0x1eed   :  { %v2181_v1 = vmul.f32 %v5216_v24, %v2179_v22  ;;  %vm2186_vm9 = vweird.f32 %v5216_v24 }
0x1eee   :  { %vm2187_vm11 = vmor %vm2185_vm10, %vm2186_vm9 }
0x1eef   :  { %v2182_v25 = vsub.f32 1.0, %v2181_v1 }
0x1ef1   :  { %v2183_v37 = vmul.f32 %v5216_v24, %v2182_v25 }
0x1ef3   :  { %v2184_v38 = vadd.f32 %v5216_v24, %v2183_v37 }
0x1ef5   :  { %v2188_v10 = vsel %vm2187_vm11, %v5216_v24, %v2184_v38 }
0x1ef6   :  { %v2193_v17 = vsel %vm2190_vm12, %v2192_v59, %v2188_v10 }
0x1ef7   :  { %v2196_v53 = vmul.f32 %v2193_v17, %v6345_v43  ;;  %v2216_v43 = vld [vmem:[#allocation3 + $0x170] sm:$0xff] }
0x1ef8   :  { %2236 = vmatpush.msrb.mxu2 %v2216_v43 }
0x1efa   :  { %2237 = vmatpush.msrb.mxu2 %v2215_v42 }
0x1efc   :  { %2238 = vmatpush.msrb.mxu2 %v2214_v34 }
0x1efe   :  { %2325 = vmatpush.msra.mxu2 %v6265_v16 }
0x1f00   :  { %2326 = vmatpush.msra.mxu2 %v6271_v39 }
0x1f02   :  { %2327 = vmatpush.msra.mxu2 %v6277_v41 }
0x1f04   :  { %2328 = vmatpush.msra.mxu2 %v6283_v7 }
0x1f06   :  { %2329 = vmatpush.msra.mxu2 %v6289_v29 }
0x1f08   :  { %2330 = vmatpush.msra.mxu2 %v6295_v26 }
0x1f0a   :  { %2331 = vmatpush.msra.mxu2 %v6301_v5 }
0x1f0c   :  { %2332 = vmatpush.msra.mxu2 %v6307_v35 }
0x1f54   :  { %v2199_v50 = vpop.permute.xlu1 %2198 }
0x1f55   :  { %v2201_v47 = vmul.f32 %v2199_v50, %v2193_v17 }
0x1f57   :  { %2203 = vrot.lane.b32.xlu0 %v2201_v47, %s5584_s9 }
0x1f5c   :  { %v2297_v51 = vpop.permute.xlu1 %2296 }
0x1f5d   :  { %v6382_v52 = vadd.f32 %v2297_v51, %v2289_v3 }
0x1f5f   :  { %5217 = vtanh.f32 %v6382_v52 }
0x1f65   :  { %v5218_v20 = vpop.eup %5217 }
0x1f66   :  { %2302 = vrot.lane.b32.xlu0 %v5218_v20, %s5583_s30 }
0x1fc9   :  { %v2204_v60 = vpop.permute.xlu0 %2203 }
0x1fca   :  { %v6387_v54 = vadd.f32 %v2204_v60, %v2196_v53 }
0x1fcc   :  { %5219 = vtanh.f32 %v6387_v54 }
0x1fd2   :  { %v5220_v40 = vpop.eup %5219 }
0x1fd3   :  { %2209 = vrot.lane.b32.xlu2 %v5220_v40, %s5583_s30 }
0x1fd8   :  { %v2303_v56 = vpop.permute.xlu0 %2302 }
0x1fd9   :  { %v2305_v36 = vmul.f32 %v2303_v56, %v2286_v21 }
0x1fdb   :  { %2307 = vrot.lane.b32.xlu2 %v2305_v36, %s5584_s9 }
0x202d   :  { %v2210_v63 = vpop.permute.xlu2 %2209 }
0x202e   :  { %v2212_v0 = vmul.f32 %v2210_v63, %v2193_v17 }
0x2030   :  { %2310 = vrot.lane.b32.xlu0 %v2212_v0, %s5583_s30  ;;  %2219 = vrot.lane.b32.xlu1 %v2212_v0, %s5584_s9 }
0x2035   :  { %v2308_v23 = vpop.permute.xlu2 %2307 }
0x2036   :  { %4936 = vmatmul.msk.f32.vlgmr.msra.gmra.mxu1 %vm305_vm6, %v2308_v23 }
0x20a2   :  { %v2220_v8 = vpop.permute.xlu1 %2219  ;;  %v2311_v49 = vpop.permute.xlu0 %2310 }
0x20a3   :  { %4930 = vmatmul.msk.f32.vlgmr.msrb.gmra.mxu2 %vm305_vm6, %v2220_v8  ;;  %v2313_v30 = vsel %vm305_vm6, %v2308_v23, %v2311_v49 }
0x20a4   :  { %2582 = vmatpush.msrb.mxu2 %v6215_v44 }
0x20a6   :  { %2583 = vmatpush.msrb.mxu2 %v6221_v27 }
0x20a8   :  { %2584 = vmatpush.msrb.mxu2 %v6227_v28 }
0x20aa   :  { %2585 = vmatpush.msrb.mxu2 %v6234_v31 }
0x20ab   :  { %4933 = vmatmul.msk.f32.vlgmr.msra.gmra.mxu2 %vm384_vm7, %v2313_v30 }
0x20b3   :  { %v2426_v9 = vpop.f32.mrf.mxu1 }
0x20b4   :  { %v2429_v11 = vadd.f32 %v2426_v9, %v228_v4  ;;  %v60_v4 = vld [vmem:[%s7195_s0 + $0x70] sm:$0xff]  ;;  %v2378_v9 = vld [vmem:[#allocation3 + $0x198] sm:$0xff] }
0x20b5   :  { %4858 = vmatmul.msk.f32.gmra.mxu0 %vm82_vm1, %v60_v4  ;;  %2396 = vmatpush.msrb.mxu3 %v2378_v9 }
0x20b6   :  { %5221 = vtanh.f32 %v2429_v11  ;;  %v4937_v12 = vmul.f32 -1.442695, %v2429_v11  ;;  %v2377_v11 = vld [vmem:[#allocation3 + $0x190] sm:$0xff] }
0x20b7   :  { %2397 = vmatpush.msrb.mxu3 %v2377_v11 }
0x20b8   :  { %5223 = vpow2.f32 %v4937_v12 }
0x20bc   :  { %v5222_v48 = vpop.eup %5221 }
0x20bd   :  { %2452 = vrot.lane.b32.xlu2 %v5222_v48, %s5583_s30  ;;  %v2375_v48 = vld [vmem:[#allocation3 + $0x180] sm:$0xff] }
0x20be   :  { %v5224_v15 = vpop.eup %5223 }
0x20bf   :  { %v2433_v18 = vadd.f32 1.0, %v5224_v15 }
0x20c1   :  { %5225 = vrcp.f32 %v2433_v18  ;;  %v2445_v25 = vand.u32 2147483648, %v2433_v18  ;;  %vm2439_vm14 = vweird.f32 %v2433_v18  ;;  %v2443_v37 = vand.u32 2147483647, %v2433_v18 }
0x20c3   :  { %vm2444_vm0 = vcmp.eq.f32.partialorder %v2443_v37, 8.507059e+37 }
0x20c7   :  { %v5226_v62 = vpop.eup %5225 }
0x20c8   :  { %v2435_v21 = vmul.f32 %v5226_v62, %v2433_v18  ;;  %vm2440_vm13 = vweird.f32 %v5226_v62 }
0x20c9   :  { %vm2441_vm15 = vmor %vm2439_vm14, %vm2440_vm13 }
0x20ca   :  { %v2436_v57 = vsub.f32 1.0, %v2435_v21 }
0x20cc   :  { %v2437_v22 = vmul.f32 %v5226_v62, %v2436_v57 }
0x20ce   :  { %v2438_v24 = vadd.f32 %v5226_v62, %v2437_v22 }
0x20d0   :  { %v2442_v38 = vsel %vm2441_vm15, %v5226_v62, %v2438_v24 }
0x2117   :  { %v2453_v32 = vpop.permute.xlu2 %2452 }
0x2126   :  { %v2240_v19 = vpop.f32.mrf.mxu2 }
0x2127   :  { %v6417_v55 = vadd.f32 %v2240_v19, %v6375_v2  ;;  %v2446_v2 = vor.u32 1.1754944e-38, %v2445_v25 }
0x2129   :  { %v2447_v45 = vsel %vm2444_vm0, %v2446_v2, %v2442_v38 }
0x212a   :  { %v2455_v10 = vmul.f32 %v2453_v32, %v2447_v45  ;;  %v2450_v42 = vmul.f32 %v2447_v45, %v6382_v52 }
0x212e   :  { %v2334_v14 = vpop.f32.mrf.mxu2 }
0x212f   :  { %v2335_v6 = vadd.f32 %v6333_v46, %v2334_v14 }
0x2131   :  { %5227 = vtanh.f32 %v2335_v6  ;;  %v4934_v59 = vmul.f32 -1.442695, %v2335_v6 }
0x2132   :  { %v230_v57 = vpop.f32.mrf.mxu0 }
0x2133   :  { %5229 = vpow2.f32 %v4934_v59  ;;  %v231_v14 = vadd.f32 %v6323_v33, %v230_v57  ;;  %v2536_v57 = vld [vmem:[#allocation3 + $0x1a0] sm:$0xff] }
0x2137   :  { %v5228_v1 = vpop.eup %5227 }
0x2138   :  { %2359 = vrot.lane.b32.xlu1 %v5228_v1, %s5583_s30 }
0x2139   :  { %v5230_v50 = vpop.eup %5229 }
0x213a   :  { %v2340_v17 = vadd.f32 1.0, %v5230_v50 }
0x213c   :  { %5231 = vrcp.f32 %v2340_v17  ;;  %v2352_v60 = vand.u32 2147483648, %v2340_v17  ;;  %vm2346_vm3 = vweird.f32 %v2340_v17  ;;  %v2350_v40 = vand.u32 2147483647, %v2340_v17 }
0x213e   :  { %v2353_v36 = vor.u32 1.1754944e-38, %v2352_v60  ;;  %vm2351_vm5 = vcmp.eq.f32.partialorder %v2350_v40, 8.507059e+37 }
0x2140   :  { %2457 = vrot.lane.b32.xlu1 %v2455_v10, %s5584_s9 }
0x2142   :  { %v5232_v47 = vpop.eup %5231 }
0x2143   :  { %v2342_v3 = vmul.f32 %v5232_v47, %v2340_v17  ;;  %vm2347_vm2 = vweird.f32 %v5232_v47 }
0x2144   :  { %vm2348_vm4 = vmor %vm2346_vm3, %vm2347_vm2 }
0x2145   :  { %v2343_v51 = vsub.f32 1.0, %v2342_v3 }
0x2147   :  { %v2344_v20 = vmul.f32 %v5232_v47, %v2343_v51 }
0x2149   :  { %v2345_v53 = vadd.f32 %v5232_v47, %v2344_v20 }
0x214b   :  { %v2349_v56 = vsel %vm2348_vm4, %v5232_v47, %v2345_v53 }
0x214c   :  { %v2354_v61 = vsel %vm2351_vm5, %v2353_v36, %v2349_v56 }
0x214d   :  { %v2357_v23 = vmul.f32 %v2354_v61, %v6387_v54  ;;  %v2376_v54 = vld [vmem:[#allocation3 + $0x188] sm:$0xff] }
0x214e   :  { %2398 = vmatpush.msrb.mxu3 %v2376_v54 }
0x2150   :  { %2399 = vmatpush.msrb.mxu3 %v2375_v48 }
0x2152   :  { %2486 = vmatpush.msra.mxu3 %v6265_v16 }
0x2154   :  { %2487 = vmatpush.msra.mxu3 %v6271_v39 }
0x2156   :  { %2488 = vmatpush.msra.mxu3 %v6277_v41 }
0x2158   :  { %2489 = vmatpush.msra.mxu3 %v6283_v7 }
0x215a   :  { %2490 = vmatpush.msra.mxu3 %v6289_v29 }
0x215c   :  { %2491 = vmatpush.msra.mxu3 %v6295_v26 }
0x215e   :  { %2492 = vmatpush.msra.mxu3 %v6301_v5 }
0x2160   :  { %2493 = vmatpush.msra.mxu3 %v6307_v35 }
0x21aa   :  { %v2360_v58 = vpop.permute.xlu1 %2359 }
0x21ab   :  { %v2362_v43 = vmul.f32 %v2360_v58, %v2354_v61 }
0x21ad   :  { %2364 = vrot.lane.b32.xlu0 %v2362_v43, %s5584_s9 }
0x21b2   :  { %v2458_v34 = vpop.permute.xlu1 %2457 }
0x21b3   :  { %v6424_v63 = vadd.f32 %v2458_v34, %v2450_v42 }
0x21b5   :  { %5233 = vtanh.f32 %v6424_v63 }
0x21bb   :  { %v5234_v0 = vpop.eup %5233 }
0x21bc   :  { %2463 = vrot.lane.b32.xlu0 %v5234_v0, %s5583_s30 }
0x221f   :  { %v2365_v8 = vpop.permute.xlu0 %2364 }
0x2220   :  { %v6429_v49 = vadd.f32 %v2365_v8, %v2357_v23 }
0x2222   :  { %5235 = vtanh.f32 %v6429_v49 }
0x2228   :  { %v5236_v30 = vpop.eup %5235 }
0x2229   :  { %2370 = vrot.lane.b32.xlu2 %v5236_v30, %s5583_s30 }
0x222e   :  { %v2464_v13 = vpop.permute.xlu0 %2463 }
0x222f   :  { %v2466_v52 = vmul.f32 %v2464_v13, %v2447_v45 }
0x2231   :  { %2468 = vrot.lane.b32.xlu2 %v2466_v52, %s5584_s9 }
0x2283   :  { %v2371_v12 = vpop.permute.xlu2 %2370 }
0x2284   :  { %v2373_v15 = vmul.f32 %v2371_v12, %v2354_v61 }
0x2286   :  { %2471 = vrot.lane.b32.xlu0 %v2373_v15, %s5583_s30  ;;  %2380 = vrot.lane.b32.xlu1 %v2373_v15, %s5584_s9 }
0x228b   :  { %v2469_v18 = vpop.permute.xlu2 %2468 }
0x228c   :  { %4941 = vmatmul.msk.f32.vlgmr.msrb.gmra.mxu2 %vm305_vm6, %v2469_v18 }
0x22f8   :  { %v2381_v19 = vpop.permute.xlu1 %2380  ;;  %v2472_v62 = vpop.permute.xlu0 %2471 }
0x22f9   :  { %4935 = vmatmul.msk.f32.vlgmr.msrb.gmra.mxu3 %vm305_vm6, %v2381_v19  ;;  %v2474_v21 = vsel %vm305_vm6, %v2469_v18, %v2472_v62  ;;  %v61_v19 = vld [vmem:[%s7195_s0 + $0x78] sm:$0xff] }
0x22fa   :  { %2743 = vmatpush.msrb.mxu3 %v6215_v44  ;;  %v2539_v62 = vld [vmem:[#allocation3 + $0x1b8] sm:$0xff]  ;;  %4859 = vmatmul.msk.f32.gmra.mxu0 %vm82_vm1, %v61_v19 }
0x22fb   :  { %2557 = vmatpush.msrb.mxu1 %v2539_v62 }
0x22fc   :  { %2744 = vmatpush.msrb.mxu3 %v6221_v27 }
0x22fe   :  { %2745 = vmatpush.msrb.mxu3 %v6227_v28 }
0x2300   :  { %2746 = vmatpush.msrb.mxu3 %v6234_v31 }
0x2301   :  { %4938 = vmatmul.msk.f32.vlgmr.msra.gmra.mxu3 %vm384_vm7, %v2474_v21  ;;  %v2538_v21 = vld [vmem:[#allocation3 + $0x1b0] sm:$0xff] }
0x2302   :  { %2558 = vmatpush.msrb.mxu1 %v2538_v21  ;;  %v62_v21 = vld [vmem:[%s7195_s0 + $0x80] sm:$0xff] }
0x2303   :  { %4860 = vmatmul.msk.f32.gmra.mxu0 %vm82_vm1, %v62_v21 }
0x230f   :  { %v2587_v6 = vpop.f32.mrf.mxu2 }
0x2310   :  { %v2590_v22 = vadd.f32 %v2587_v6, %v231_v14 }
0x2312   :  { %5237 = vtanh.f32 %v2590_v22  ;;  %v4942_v44 = vmul.f32 -1.442695, %v2590_v22 }
0x2314   :  { %5239 = vpow2.f32 %v4942_v44 }
0x2318   :  { %v5238_v24 = vpop.eup %5237 }
0x2319   :  { %2613 = vrot.lane.b32.xlu2 %v5238_v24, %s5583_s30 }
0x231a   :  { %v5240_v27 = vpop.eup %5239 }
0x231b   :  { %v2594_v1 = vadd.f32 1.0, %v5240_v27 }
0x231d   :  { %5241 = vrcp.f32 %v2594_v1  ;;  %v2606_v50 = vand.u32 2147483648, %v2594_v1  ;;  %vm2600_vm9 = vweird.f32 %v2594_v1  ;;  %v2604_v17 = vand.u32 2147483647, %v2594_v1 }
0x231f   :  { %vm2605_vm11 = vcmp.eq.f32.partialorder %v2604_v17, 8.507059e+37 }
0x2323   :  { %v5242_v25 = vpop.eup %5241 }
0x2324   :  { %v2596_v37 = vmul.f32 %v5242_v25, %v2594_v1  ;;  %vm2601_vm8 = vweird.f32 %v5242_v25 }
0x2325   :  { %vm2602_vm10 = vmor %vm2600_vm9, %vm2601_vm8 }
0x2326   :  { %v2597_v38 = vsub.f32 1.0, %v2596_v37 }
0x2328   :  { %v2598_v45 = vmul.f32 %v5242_v25, %v2597_v38 }
0x232a   :  { %v2599_v10 = vadd.f32 %v5242_v25, %v2598_v45 }
0x232c   :  { %v2603_v47 = vsel %vm2602_vm10, %v5242_v25, %v2599_v10 }
0x2373   :  { %v2614_v3 = vpop.permute.xlu2 %2613 }
0x2377   :  { %v233_v22 = vpop.f32.mrf.mxu0 }
0x2378   :  { %v234_v24 = vadd.f32 %v6323_v33, %v233_v22  ;;  %v6575_v22 = vld [vmem:[%s7199_s4 + $0x10] sm:$0xff] }
0x237c   :  { %v2401_v28 = vpop.f32.mrf.mxu3 }
0x237d   :  { %v6459_v31 = vadd.f32 %v2401_v28, %v6417_v55  ;;  %v2607_v55 = vor.u32 1.1754944e-38, %v2606_v50 }
0x237f   :  { %v2608_v51 = vsel %vm2605_vm11, %v2607_v55, %v2603_v47 }
0x2380   :  { %v2616_v20 = vmul.f32 %v2614_v3, %v2608_v51  ;;  %v2611_v52 = vmul.f32 %v2608_v51, %v6424_v63 }
0x2384   :  { %v2495_v32 = vpop.f32.mrf.mxu3 }
0x2385   :  { %v2496_v2 = vadd.f32 %v6333_v46, %v2495_v32 }
0x2387   :  { %5243 = vtanh.f32 %v2496_v2  ;;  %v4939_v53 = vmul.f32 -1.442695, %v2496_v2 }
0x2389   :  { %5245 = vpow2.f32 %v4939_v53 }
0x238d   :  { %v5244_v59 = vpop.eup %5243 }
0x238e   :  { %2520 = vrot.lane.b32.xlu1 %v5244_v59, %s5583_s30 }
0x238f   :  { %v5246_v60 = vpop.eup %5245 }
0x2390   :  { %v2501_v40 = vadd.f32 1.0, %v5246_v60 }
0x2392   :  { %5247 = vrcp.f32 %v2501_v40  ;;  %v2513_v42 = vand.u32 2147483648, %v2501_v40  ;;  %vm2507_vm13 = vweird.f32 %v2501_v40  ;;  %v2511_v34 = vand.u32 2147483647, %v2501_v40 }
0x2394   :  { %v2514_v23 = vor.u32 1.1754944e-38, %v2513_v42  ;;  %vm2512_vm15 = vcmp.eq.f32.partialorder %v2511_v34, 8.507059e+37 }
0x2396   :  { %2618 = vrot.lane.b32.xlu1 %v2616_v20, %s5584_s9 }
0x2398   :  { %v5248_v56 = vpop.eup %5247 }
0x2399   :  { %v2503_v36 = vmul.f32 %v5248_v56, %v2501_v40  ;;  %vm2508_vm12 = vweird.f32 %v5248_v56 }
0x239a   :  { %vm2509_vm14 = vmor %vm2507_vm13, %vm2508_vm12 }
0x239b   :  { %v2504_v58 = vsub.f32 1.0, %v2503_v36 }
0x239d   :  { %v2505_v61 = vmul.f32 %v5248_v56, %v2504_v58 }
0x239f   :  { %v2506_v43 = vadd.f32 %v5248_v56, %v2505_v61 }
0x23a1   :  { %v2510_v0 = vsel %vm2509_vm14, %v5248_v56, %v2506_v43 }
0x23a2   :  { %v2515_v30 = vsel %vm2512_vm15, %v2514_v23, %v2510_v0 }
0x23a3   :  { %v2518_v54 = vmul.f32 %v2515_v30, %v6429_v49  ;;  %v2537_v49 = vld [vmem:[#allocation3 + $0x1a8] sm:$0xff] }
0x23a4   :  { %2559 = vmatpush.msrb.mxu1 %v2537_v49  ;;  %v2700_v49 = vld [vmem:[#allocation3 + $0x1d8] sm:$0xff] }
0x23a5   :  { %2718 = vmatpush.msra.mxu2 %v2700_v49 }
0x23a6   :  { %2560 = vmatpush.msrb.mxu1 %v2536_v57  ;;  %v2698_v57 = vld [vmem:[#allocation3 + $0x1c8] sm:$0xff] }
0x23a8   :  { %2647 = vmatpush.msra.mxu1 %v6265_v16 }
0x23aa   :  { %2648 = vmatpush.msra.mxu1 %v6271_v39 }
0x23ac   :  { %2649 = vmatpush.msra.mxu1 %v6277_v41  ;;  %v6495_v41 = vld [vmem:[%s7197_s2 + $0x18] sm:$0xff] }
0x23ae   :  { %2650 = vmatpush.msra.mxu1 %v6283_v7  ;;  %v6501_v7 = vld [vmem:[%s7197_s2 + $0x10] sm:$0xff] }
0x23b0   :  { %2651 = vmatpush.msra.mxu1 %v6289_v29 }
0x23b2   :  { %2652 = vmatpush.msra.mxu1 %v6295_v26  ;;  %v6507_v26 = vld [vmem:[%s7197_s2 + $0x8] sm:$0xff] }
0x23b4   :  { %2653 = vmatpush.msra.mxu1 %v6301_v5 }
0x23b6   :  { %2654 = vmatpush.msra.mxu1 %v6307_v35  ;;  %v6514_v35 = vld [vmem:[%s7197_s2] sm:$0xff] }
0x2400   :  { %v2521_v8 = vpop.permute.xlu1 %2520 }
0x2401   :  { %v2523_v13 = vmul.f32 %v2521_v8, %v2515_v30 }
0x2403   :  { %2525 = vrot.lane.b32.xlu0 %v2523_v13, %s5584_s9 }
0x2408   :  { %v2619_v4 = vpop.permute.xlu1 %2618 }
0x2409   :  { %v6466_v9 = vadd.f32 %v2619_v4, %v2611_v52 }
0x240b   :  { %5249 = vtanh.f32 %v6466_v9 }
0x2411   :  { %v5250_v11 = vpop.eup %5249 }
0x2412   :  { %2624 = vrot.lane.b32.xlu0 %v5250_v11, %s5583_s30 }
0x2475   :  { %v2526_v48 = vpop.permute.xlu0 %2525 }
0x2476   :  { %v6471_v12 = vadd.f32 %v2526_v48, %v2518_v54 }
0x2478   :  { %5251 = vtanh.f32 %v6471_v12 }
0x247e   :  { %v5252_v15 = vpop.eup %5251 }
0x247f   :  { %2531 = vrot.lane.b32.xlu2 %v5252_v15, %s5583_s30 }
0x2484   :  { %v2625_v18 = vpop.permute.xlu0 %2624 }
0x2485   :  { %v2627_v63 = vmul.f32 %v2625_v18, %v2608_v51 }
0x2487   :  { %2629 = vrot.lane.b32.xlu2 %v2627_v63, %s5584_s9 }
0x24d9   :  { %v2532_v14 = vpop.permute.xlu2 %2531 }
0x24da   :  { %v2534_v6 = vmul.f32 %v2532_v14, %v2515_v30  ;;  %v2697_v14 = vld [vmem:[#allocation3 + $0x1c0] sm:$0xff] }
0x24dc   :  { %2632 = vrot.lane.b32.xlu0 %v2534_v6, %s5583_s30  ;;  %2541 = vrot.lane.b32.xlu1 %v2534_v6, %s5584_s9  ;;  %v6545_v6 = vld [vmem:[%s7199_s4 + $0x38] sm:$0xff] }
0x24e1   :  { %v2630_v16 = vpop.permute.xlu2 %2629 }
0x24e2   :  { %4946 = vmatmul.msk.f32.vlgmr.msrb.gmra.mxu3 %vm305_vm6, %v2630_v16 }
0x254e   :  { %v2542_v39 = vpop.permute.xlu1 %2541  ;;  %v2633_v29 = vpop.permute.xlu0 %2632 }
0x254f   :  { %4940 = vmatmul.msk.f32.vlgmr.msrb.gmra.mxu1 %vm305_vm6, %v2542_v39  ;;  %v2635_v5 = vsel %vm305_vm6, %v2630_v16, %v2633_v29  ;;  %v6551_v16 = vld [vmem:[%s7199_s4 + $0x30] sm:$0xff]  ;;  %v6557_v39 = vld [vmem:[%s7199_s4 + $0x28] sm:$0xff]  ;;  %v6563_v29 = vld [vmem:[%s7199_s4 + $0x20] sm:$0xff] }
0x2550   :  { %2904 = vmatpush.msrb.mxu1 %v6495_v41 }
0x2552   :  { %2905 = vmatpush.msrb.mxu1 %v6501_v7 }
0x2554   :  { %2906 = vmatpush.msrb.mxu1 %v6507_v26 }
0x2556   :  { %2907 = vmatpush.msrb.mxu1 %v6514_v35 }
0x2557   :  { %4943 = vmatmul.msk.f32.vlgmr.msra.gmra.mxu1 %vm384_vm7, %v2635_v5  ;;  %v6569_v5 = vld [vmem:[%s7199_s4 + $0x18] sm:$0xff] }
0x2565   :  { %v2748_v44 = vpop.f32.mrf.mxu3 }
0x2566   :  { %v2751_v27 = vadd.f32 %v2748_v44, %v234_v24  ;;  %v6581_v24 = vld [vmem:[%s7199_s4 + $0x8] sm:$0xff]  ;;  %v6587_v44 = vld [vmem:[%s7199_s4] sm:$0xff] }
0x2568   :  { %5253 = vtanh.f32 %v2751_v27  ;;  %v4947_v28 = vmul.f32 -1.442695, %v2751_v27 }
0x256a   :  { %5255 = vpow2.f32 %v4947_v28 }
0x256e   :  { %v5254_v1 = vpop.eup %5253 }
0x256f   :  { %2774 = vrot.lane.b32.xlu2 %v5254_v1, %s5583_s30 }
0x2570   :  { %v5256_v25 = vpop.eup %5255 }
0x2571   :  { %v2755_v37 = vadd.f32 1.0, %v5256_v25 }
0x2573   :  { %5257 = vrcp.f32 %v2755_v37  ;;  %v2767_v3 = vand.u32 2147483648, %v2755_v37  ;;  %vm2761_vm2 = vweird.f32 %v2755_v37  ;;  %v2765_v55 = vand.u32 2147483647, %v2755_v37 }
0x2575   :  { %vm2766_vm4 = vcmp.eq.f32.partialorder %v2765_v55, 8.507059e+37 }
0x2579   :  { %v5258_v32 = vpop.eup %5257 }
0x257a   :  { %v2757_v45 = vmul.f32 %v5258_v32, %v2755_v37  ;;  %vm2762_vm0 = vweird.f32 %v5258_v32 }
0x257b   :  { %vm2763_vm3 = vmor %vm2761_vm2, %vm2762_vm0 }
0x257c   :  { %v2758_v10 = vsub.f32 1.0, %v2757_v45  ;;  %v6603_v45 = vld [vmem:[%s7198_s3] ss:$0 sm:$0xff] }
0x257e   :  { %v2759_v50 = vmul.f32 %v5258_v32, %v2758_v10 }
0x2580   :  { %v2760_v17 = vadd.f32 %v5258_v32, %v2759_v50 }
0x2582   :  { %v2764_v51 = vsel %vm2763_vm3, %v5258_v32, %v2760_v17  ;;  %v236_v32 = vpop.f32.mrf.mxu0 }
0x2583   :  { %v237_v10 = vadd.f32 %v6603_v45, %v236_v32 }
0x25c9   :  { %v2775_v20 = vpop.permute.xlu2 %2774 }
0x25cc   :  { %v2562_v38 = vpop.f32.mrf.mxu1 }
0x25cd   :  { %v6521_v2 = vadd.f32 %v2562_v38, %v6459_v31  ;;  %v2768_v31 = vor.u32 1.1754944e-38, %v2767_v3 }
0x25cf   :  { %v2769_v53 = vsel %vm2766_vm4, %v2768_v31, %v2764_v51 }
0x25d0   :  { %v2777_v60 = vmul.f32 %v2775_v20, %v2769_v53  ;;  %v2772_v4 = vmul.f32 %v2769_v53, %v6466_v9 }
0x25d4   :  { %v2656_v59 = vpop.f32.mrf.mxu1 }
0x25d5   :  { %v2657_v33 = vadd.f32 %v6333_v46, %v2656_v59 }
0x25d7   :  { %5259 = vtanh.f32 %v2657_v33  ;;  %v4944_v46 = vmul.f32 -1.442695, %v2657_v33 }
0x25d9   :  { %5261 = vpow2.f32 %v4944_v46  ;;  %v6613_v46 = vld [vmem:[%s7200_s5] ss:$0 sm:$0xff] }
0x25dd   :  { %v5260_v47 = vpop.eup %5259 }
0x25de   :  { %2681 = vrot.lane.b32.xlu1 %v5260_v47, %s5583_s30 }
0x25df   :  { %v5262_v40 = vpop.eup %5261 }
0x25e0   :  { %v2662_v56 = vadd.f32 1.0, %v5262_v40 }
0x25e2   :  { %5263 = vrcp.f32 %v2662_v56  ;;  %v2674_v34 = vand.u32 2147483648, %v2662_v56  ;;  %vm2668_vm8 = vweird.f32 %v2662_v56  ;;  %v2672_v0 = vand.u32 2147483647, %v2662_v56 }
0x25e4   :  { %v2675_v8 = vor.u32 1.1754944e-38, %v2674_v34  ;;  %vm2673_vm10 = vcmp.eq.f32.partialorder %v2672_v0, 8.507059e+37 }
0x25e6   :  { %2779 = vrot.lane.b32.xlu1 %v2777_v60, %s5584_s9 }
0x25e8   :  { %v5264_v36 = vpop.eup %5263 }
0x25e9   :  { %v2664_v58 = vmul.f32 %v5264_v36, %v2662_v56  ;;  %vm2669_vm5 = vweird.f32 %v5264_v36 }
0x25ea   :  { %vm2670_vm9 = vmor %vm2668_vm8, %vm2669_vm5 }
0x25eb   :  { %v2665_v61 = vsub.f32 1.0, %v2664_v58 }
0x25ed   :  { %v2666_v43 = vmul.f32 %v5264_v36, %v2665_v61 }
0x25ef   :  { %v2667_v42 = vadd.f32 %v5264_v36, %v2666_v43 }
0x25f1   :  { %v2671_v23 = vsel %vm2670_vm9, %v5264_v36, %v2667_v42 }
0x25f2   :  { %v2676_v13 = vsel %vm2673_vm10, %v2675_v8, %v2671_v23 }
0x25f3   :  { %v2679_v15 = vmul.f32 %v2676_v13, %v6471_v12  ;;  %v2699_v12 = vld [vmem:[#allocation3 + $0x1d0] sm:$0xff] }
0x25f4   :  { %2719 = vmatpush.msra.mxu2 %v2699_v12 }
0x25f6   :  { %2720 = vmatpush.msra.mxu2 %v2698_v57 }
0x25f8   :  { %2721 = vmatpush.msra.mxu2 %v2697_v14 }
0x25fa   :  { %2808 = vmatpush.msrb.mxu2 %v6545_v6 }
0x25fc   :  { %2809 = vmatpush.msrb.mxu2 %v6551_v16 }
0x25fe   :  { %2810 = vmatpush.msrb.mxu2 %v6557_v39 }
0x2600   :  { %2811 = vmatpush.msrb.mxu2 %v6563_v29 }
0x2602   :  { %2812 = vmatpush.msrb.mxu2 %v6569_v5 }
0x2604   :  { %2813 = vmatpush.msrb.mxu2 %v6575_v22 }
0x2606   :  { %2814 = vmatpush.msrb.mxu2 %v6581_v24 }
0x2608   :  { %2815 = vmatpush.msrb.mxu2 %v6587_v44 }
0x2650   :  { %v2682_v30 = vpop.permute.xlu1 %2681 }
0x2651   :  { %v2684_v52 = vmul.f32 %v2682_v30, %v2676_v13 }
0x2653   :  { %2686 = vrot.lane.b32.xlu0 %v2684_v52, %s5584_s9 }
0x2658   :  { %v2780_v11 = vpop.permute.xlu1 %2779 }
0x2659   :  { %v6528_v54 = vadd.f32 %v2780_v11, %v2772_v4 }
0x265b   :  { %5265 = vtanh.f32 %v6528_v54 }
0x2661   :  { %v5266_v48 = vpop.eup %5265 }
0x2662   :  { %2785 = vrot.lane.b32.xlu0 %v5266_v48, %s5583_s30 }
0x26c5   :  { %v2687_v18 = vpop.permute.xlu0 %2686 }
0x26c6   :  { %v6533_v63 = vadd.f32 %v2687_v18, %v2679_v15 }
0x26c8   :  { %5267 = vtanh.f32 %v6533_v63 }
0x26ce   :  { %v5268_v19 = vpop.eup %5267 }
0x26cf   :  { %2692 = vrot.lane.b32.xlu2 %v5268_v19, %s5583_s30 }
0x26d4   :  { %v2786_v62 = vpop.permute.xlu0 %2785 }
0x26d5   :  { %v2788_v9 = vmul.f32 %v2786_v62, %v2769_v53 }
0x26d7   :  { %2790 = vrot.lane.b32.xlu2 %v2788_v9, %s5584_s9 }
0x2729   :  { %v2693_v27 = vpop.permute.xlu2 %2692 }
0x272a   :  { %v2695_v1 = vmul.f32 %v2693_v27, %v2676_v13 }
0x272c   :  { %2793 = vrot.lane.b32.xlu0 %v2695_v1, %s5583_s30  ;;  %2702 = vrot.lane.b32.xlu1 %v2695_v1, %s5584_s9 }
0x2731   :  { %v2791_v28 = vpop.permute.xlu2 %2790 }
0x2732   :  { %4951 = vmatmul.msk.f32.vlgmr.msrb.gmra.mxu1 %vm305_vm6, %v2791_v28 }
0x279e   :  { %v2703_v25 = vpop.permute.xlu1 %2702  ;;  %v2794_v37 = vpop.permute.xlu0 %2793 }
0x279f   :  { %4945 = vmatmul.msk.f32.vlgmr.msra.gmra.mxu2 %vm305_vm6, %v2703_v25  ;;  %v2796_v38 = vsel %vm305_vm6, %v2791_v28, %v2794_v37 }
0x27a0   :  { %3065 = vmatpush.msra.mxu2 %v6495_v41 }
0x27a2   :  { %3066 = vmatpush.msra.mxu2 %v6501_v7 }
0x27a4   :  { %3067 = vmatpush.msra.mxu2 %v6507_v26 }
0x27a6   :  { %3068 = vmatpush.msra.mxu2 %v6514_v35 }
0x27a7   :  { %4948 = vmatmul.msk.f32.vlgmr.msrb.gmra.mxu2 %vm384_vm7, %v2796_v38 }
0x27af   :  { %v2909_v59 = vpop.f32.mrf.mxu1 }
0x27b0   :  { %v2912_v33 = vadd.f32 %v2909_v59, %v237_v10  ;;  %v63_v10 = vld [vmem:[%s7195_s0 + $0x88] sm:$0xff]  ;;  %v2861_v59 = vld [vmem:[#allocation3 + $0x1f8] sm:$0xff] }
0x27b1   :  { %4861 = vmatmul.msk.f32.gmra.mxu0 %vm82_vm1, %v63_v10  ;;  %2879 = vmatpush.msra.mxu3 %v2861_v59 }
0x27b2   :  { %5269 = vtanh.f32 %v2912_v33  ;;  %v4952_v17 = vmul.f32 -1.442695, %v2912_v33  ;;  %v2860_v33 = vld [vmem:[#allocation3 + $0x1f0] sm:$0xff] }
0x27b3   :  { %2880 = vmatpush.msra.mxu3 %v2860_v33 }
0x27b4   :  { %5271 = vpow2.f32 %v4952_v17 }
0x27b8   :  { %v5270_v50 = vpop.eup %5269 }
0x27b9   :  { %2935 = vrot.lane.b32.xlu2 %v5270_v50, %s5583_s30  ;;  %v2858_v50 = vld [vmem:[#allocation3 + $0x1e0] sm:$0xff] }
0x27ba   :  { %v5272_v47 = vpop.eup %5271 }
0x27bb   :  { %v2916_v3 = vadd.f32 1.0, %v5272_v47 }
0x27bd   :  { %5273 = vrcp.f32 %v2916_v3  ;;  %v2928_v61 = vand.u32 2147483648, %v2916_v3  ;;  %vm2922_vm12 = vweird.f32 %v2916_v3  ;;  %v2926_v43 = vand.u32 2147483647, %v2916_v3 }
0x27bf   :  { %v2929_v34 = vor.u32 1.1754944e-38, %v2928_v61  ;;  %vm2927_vm14 = vcmp.eq.f32.partialorder %v2926_v43, 8.507059e+37 }
0x27c3   :  { %v5274_v51 = vpop.eup %5273 }
0x27c4   :  { %v2918_v31 = vmul.f32 %v5274_v51, %v2916_v3  ;;  %vm2923_vm11 = vweird.f32 %v5274_v51 }
0x27c5   :  { %vm2924_vm13 = vmor %vm2922_vm12, %vm2923_vm11 }
0x27c6   :  { %v2919_v53 = vsub.f32 1.0, %v2918_v31 }
0x27c8   :  { %v2920_v56 = vmul.f32 %v5274_v51, %v2919_v53 }
0x27ca   :  { %v2921_v36 = vadd.f32 %v5274_v51, %v2920_v56 }
0x2813   :  { %v2936_v42 = vpop.permute.xlu2 %2935 }
0x2822   :  { %v2723_v55 = vpop.f32.mrf.mxu2 }
0x2823   :  { %v6608_v20 = vadd.f32 %v2723_v55, %v6521_v2  ;;  %v2925_v2 = vsel %vm2924_vm13, %v5274_v51, %v2921_v36 }
0x2824   :  { %v2930_v0 = vsel %vm2927_vm14, %v2929_v34, %v2925_v2 }
0x2825   :  { %v2938_v23 = vmul.f32 %v2936_v42, %v2930_v0  ;;  %v2933_v57 = vmul.f32 %v2930_v0, %v6528_v54 }
0x282a   :  { %v2817_v60 = vpop.f32.mrf.mxu2 }
0x282b   :  { %v2818_v40 = vadd.f32 %v6613_v46, %v2817_v60 }
0x282d   :  { %5275 = vtanh.f32 %v2818_v40  ;;  %v4949_v8 = vmul.f32 -1.442695, %v2818_v40 }
0x282e   :  { %v239_v53 = vpop.f32.mrf.mxu0 }
0x282f   :  { %5277 = vpow2.f32 %v4949_v8  ;;  %v240_v60 = vadd.f32 %v6603_v45, %v239_v53 }
0x2833   :  { %v5276_v58 = vpop.eup %5275 }
0x2834   :  { %2842 = vrot.lane.b32.xlu1 %v5276_v58, %s5583_s30 }
0x2835   :  { %v5278_v30 = vpop.eup %5277 }
0x2836   :  { %v2823_v13 = vadd.f32 1.0, %v5278_v30 }
0x2838   :  { %5279 = vrcp.f32 %v2823_v13  ;;  %v2835_v18 = vand.u32 2147483648, %v2823_v13  ;;  %vm2829_vm0 = vweird.f32 %v2823_v13  ;;  %v2833_v19 = vand.u32 2147483647, %v2823_v13 }
0x283a   :  { %v2836_v9 = vor.u32 1.1754944e-38, %v2835_v18  ;;  %vm2834_vm3 = vcmp.eq.f32.partialorder %v2833_v19, 8.507059e+37 }
0x283c   :  { %2940 = vrot.lane.b32.xlu1 %v2938_v23, %s5584_s9 }
0x283e   :  { %v5280_v52 = vpop.eup %5279 }
0x283f   :  { %v2825_v4 = vmul.f32 %v5280_v52, %v2823_v13  ;;  %vm2830_vm15 = vweird.f32 %v5280_v52 }
0x2840   :  { %vm2831_vm2 = vmor %vm2829_vm0, %vm2830_vm15 }
0x2841   :  { %v2826_v11 = vsub.f32 1.0, %v2825_v4 }
0x2843   :  { %v2827_v48 = vmul.f32 %v5280_v52, %v2826_v11 }
0x2845   :  { %v2828_v15 = vadd.f32 %v5280_v52, %v2827_v48 }
0x2847   :  { %v2832_v62 = vsel %vm2831_vm2, %v5280_v52, %v2828_v15 }
0x2848   :  { %v2837_v49 = vsel %vm2834_vm3, %v2836_v9, %v2832_v62 }
0x2849   :  { %v2840_v28 = vmul.f32 %v2837_v49, %v6533_v63  ;;  %v2859_v63 = vld [vmem:[#allocation3 + $0x1e8] sm:$0xff] }
0x284a   :  { %2881 = vmatpush.msra.mxu3 %v2859_v63 }
0x284c   :  { %2882 = vmatpush.msra.mxu3 %v2858_v50 }
0x284e   :  { %2969 = vmatpush.msrb.mxu3 %v6545_v6 }
0x2850   :  { %2970 = vmatpush.msrb.mxu3 %v6551_v16 }
0x2852   :  { %2971 = vmatpush.msrb.mxu3 %v6557_v39 }
0x2854   :  { %2972 = vmatpush.msrb.mxu3 %v6563_v29 }
0x2856   :  { %2973 = vmatpush.msrb.mxu3 %v6569_v5 }
0x2858   :  { %2974 = vmatpush.msrb.mxu3 %v6575_v22 }
0x285a   :  { %2975 = vmatpush.msrb.mxu3 %v6581_v24 }
0x285c   :  { %2976 = vmatpush.msrb.mxu3 %v6587_v44 }
0x28a6   :  { %v2843_v21 = vpop.permute.xlu1 %2842 }
0x28a7   :  { %v2845_v12 = vmul.f32 %v2843_v21, %v2837_v49 }
0x28a9   :  { %2847 = vrot.lane.b32.xlu0 %v2845_v12, %s5584_s9 }
0x28ae   :  { %v2941_v14 = vpop.permute.xlu1 %2940 }
0x28af   :  { %v6620_v27 = vadd.f32 %v2941_v14, %v2933_v57 }
0x28b1   :  { %5281 = vtanh.f32 %v6620_v27 }
0x28b7   :  { %v5282_v1 = vpop.eup %5281 }
0x28b8   :  { %2946 = vrot.lane.b32.xlu0 %v5282_v1, %s5583_s30 }
0x291b   :  { %v2848_v25 = vpop.permute.xlu0 %2847 }
0x291c   :  { %v6625_v37 = vadd.f32 %v2848_v25, %v2840_v28 }
0x291e   :  { %5283 = vtanh.f32 %v6625_v37 }
0x2924   :  { %v5284_v38 = vpop.eup %5283 }
0x2925   :  { %2853 = vrot.lane.b32.xlu2 %v5284_v38, %s5583_s30 }
0x292a   :  { %v2947_v32 = vpop.permute.xlu0 %2946 }
0x292b   :  { %v2949_v54 = vmul.f32 %v2947_v32, %v2930_v0 }
0x292d   :  { %2951 = vrot.lane.b32.xlu2 %v2949_v54, %s5584_s9 }
0x297f   :  { %v2854_v17 = vpop.permute.xlu2 %2853 }
0x2980   :  { %v2856_v47 = vmul.f32 %v2854_v17, %v2837_v49 }
0x2982   :  { %2954 = vrot.lane.b32.xlu0 %v2856_v47, %s5583_s30  ;;  %2863 = vrot.lane.b32.xlu1 %v2856_v47, %s5584_s9 }
0x2987   :  { %v2952_v3 = vpop.permute.xlu2 %2951 }
0x2988   :  { %4956 = vmatmul.msk.f32.vlgmr.msra.gmra.mxu2 %vm305_vm6, %v2952_v3 }
0x29f4   :  { %v2864_v55 = vpop.permute.xlu1 %2863  ;;  %v2955_v51 = vpop.permute.xlu0 %2954 }
0x29f5   :  { %4950 = vmatmul.msk.f32.vlgmr.msra.gmra.mxu3 %vm305_vm6, %v2864_v55  ;;  %v2957_v31 = vsel %vm305_vm6, %v2952_v3, %v2955_v51 }
0x29f6   :  { %3226 = vmatpush.msra.mxu3 %v6495_v41 }
0x29f8   :  { %3227 = vmatpush.msra.mxu3 %v6501_v7 }
0x29fa   :  { %3228 = vmatpush.msra.mxu3 %v6507_v26 }
0x29fc   :  { %3229 = vmatpush.msra.mxu3 %v6514_v35 }
0x29fd   :  { %4953 = vmatmul.msk.f32.vlgmr.msrb.gmra.mxu3 %vm384_vm7, %v2957_v31 }
0x2a0b   :  { %v3070_v40 = vpop.f32.mrf.mxu2 }
0x2a0c   :  { %v3073_v56 = vadd.f32 %v3070_v40, %v240_v60  ;;  %v64_v60 = vld [vmem:[%s7195_s0 + $0x90] sm:$0xff]  ;;  %v3022_v40 = vld [vmem:[#allocation3 + $0x218] sm:$0xff] }
0x2a0d   :  { %4862 = vmatmul.msk.f32.gmra.mxu0 %vm82_vm1, %v64_v60  ;;  %3040 = vmatpush.msra.mxu1 %v3022_v40 }
0x2a0e   :  { %5285 = vtanh.f32 %v3073_v56  ;;  %v4957_v58 = vmul.f32 -1.442695, %v3073_v56  ;;  %v3021_v56 = vld [vmem:[#allocation3 + $0x210] sm:$0xff] }
0x2a0f   :  { %3041 = vmatpush.msra.mxu1 %v3021_v56 }
0x2a10   :  { %5287 = vpow2.f32 %v4957_v58 }
0x2a14   :  { %v5286_v36 = vpop.eup %5285 }
0x2a15   :  { %3096 = vrot.lane.b32.xlu2 %v5286_v36, %s5583_s30  ;;  %v3019_v36 = vld [vmem:[#allocation3 + $0x200] sm:$0xff] }
0x2a16   :  { %v5288_v61 = vpop.eup %5287 }
0x2a17   :  { %v3077_v43 = vadd.f32 1.0, %v5288_v61 }
0x2a19   :  { %5289 = vrcp.f32 %v3077_v43  ;;  %v3089_v11 = vand.u32 2147483648, %v3077_v43  ;;  %vm3083_vm5 = vweird.f32 %v3077_v43  ;;  %v3087_v48 = vand.u32 2147483647, %v3077_v43 }
0x2a1b   :  { %vm3088_vm9 = vcmp.eq.f32.partialorder %v3087_v48, 8.507059e+37 }
0x2a1f   :  { %v5290_v42 = vpop.eup %5289 }
0x2a20   :  { %v3079_v0 = vmul.f32 %v5290_v42, %v3077_v43  ;;  %vm3084_vm4 = vweird.f32 %v5290_v42 }
0x2a21   :  { %vm3085_vm8 = vmor %vm3083_vm5, %vm3084_vm4 }
0x2a22   :  { %v3080_v23 = vsub.f32 1.0, %v3079_v0 }
0x2a24   :  { %v3081_v13 = vmul.f32 %v5290_v42, %v3080_v23 }
0x2a26   :  { %v3082_v52 = vadd.f32 %v5290_v42, %v3081_v13 }
0x2a28   :  { %v3086_v15 = vsel %vm3085_vm8, %v5290_v42, %v3082_v52 }
0x2a6f   :  { %v3097_v18 = vpop.permute.xlu2 %3096 }
0x2a78   :  { %v2884_v2 = vpop.f32.mrf.mxu3 }
0x2a79   :  { %v6655_v34 = vadd.f32 %v2884_v2, %v6608_v20  ;;  %v3090_v20 = vor.u32 1.1754944e-38, %v3089_v11 }
0x2a7b   :  { %v3091_v19 = vsel %vm3088_vm9, %v3090_v20, %v3086_v15 }
0x2a7c   :  { %v3099_v62 = vmul.f32 %v3097_v18, %v3091_v19  ;;  %v3094_v63 = vmul.f32 %v3091_v19, %v6620_v27 }
0x2a80   :  { %v2978_v8 = vpop.f32.mrf.mxu3 }
0x2a81   :  { %v2979_v30 = vadd.f32 %v6613_v46, %v2978_v8 }
0x2a83   :  { %5291 = vtanh.f32 %v2979_v30  ;;  %v4954_v9 = vmul.f32 -1.442695, %v2979_v30 }
0x2a85   :  { %5293 = vpow2.f32 %v4954_v9 }
0x2a89   :  { %v5292_v4 = vpop.eup %5291 }
0x2a8a   :  { %3003 = vrot.lane.b32.xlu1 %v5292_v4, %s5583_s30  ;;  %v242_v23 = vpop.f32.mrf.mxu0 }
0x2a8b   :  { %v5294_v21 = vpop.eup %5293  ;;  %v243_v8 = vadd.f32 %v6603_v45, %v242_v23 }
0x2a8c   :  { %v2984_v49 = vadd.f32 1.0, %v5294_v21 }
0x2a8e   :  { %5295 = vrcp.f32 %v2984_v49  ;;  %v2996_v25 = vand.u32 2147483648, %v2984_v49  ;;  %vm2990_vm11 = vweird.f32 %v2984_v49  ;;  %v2994_v38 = vand.u32 2147483647, %v2984_v49 }
0x2a90   :  { %v2997_v54 = vor.u32 1.1754944e-38, %v2996_v25  ;;  %vm2995_vm13 = vcmp.eq.f32.partialorder %v2994_v38, 8.507059e+37 }
0x2a92   :  { %3101 = vrot.lane.b32.xlu1 %v3099_v62, %s5584_s9 }
0x2a94   :  { %v5296_v12 = vpop.eup %5295 }
0x2a95   :  { %v2986_v57 = vmul.f32 %v5296_v12, %v2984_v49  ;;  %vm2991_vm10 = vweird.f32 %v5296_v12 }
0x2a96   :  { %vm2992_vm12 = vmor %vm2990_vm11, %vm2991_vm10 }
0x2a97   :  { %v2987_v14 = vsub.f32 1.0, %v2986_v57 }
0x2a99   :  { %v2988_v1 = vmul.f32 %v5296_v12, %v2987_v14 }
0x2a9b   :  { %v2989_v28 = vadd.f32 %v5296_v12, %v2988_v1 }
0x2a9d   :  { %v2993_v32 = vsel %vm2992_vm12, %v5296_v12, %v2989_v28 }
0x2a9e   :  { %v2998_v59 = vsel %vm2995_vm13, %v2997_v54, %v2993_v32 }
0x2a9f   :  { %v3001_v3 = vmul.f32 %v2998_v59, %v6625_v37  ;;  %v3020_v37 = vld [vmem:[#allocation3 + $0x208] sm:$0xff] }
0x2aa0   :  { %3042 = vmatpush.msra.mxu1 %v3020_v37 }
0x2aa2   :  { %3043 = vmatpush.msra.mxu1 %v3019_v36 }
0x2aa4   :  { %3130 = vmatpush.msrb.mxu1 %v6545_v6 }
0x2aa6   :  { %3131 = vmatpush.msrb.mxu1 %v6551_v16 }
0x2aa8   :  { %3132 = vmatpush.msrb.mxu1 %v6557_v39 }
0x2aaa   :  { %3133 = vmatpush.msrb.mxu1 %v6563_v29 }
0x2aac   :  { %3134 = vmatpush.msrb.mxu1 %v6569_v5 }
0x2aae   :  { %3135 = vmatpush.msrb.mxu1 %v6575_v22 }
0x2ab0   :  { %3136 = vmatpush.msrb.mxu1 %v6581_v24 }
0x2ab2   :  { %3137 = vmatpush.msrb.mxu1 %v6587_v44 }
0x2afc   :  { %v3004_v10 = vpop.permute.xlu1 %3003 }
0x2afd   :  { %v3006_v33 = vmul.f32 %v3004_v10, %v2998_v59 }
0x2aff   :  { %3008 = vrot.lane.b32.xlu0 %v3006_v33, %s5584_s9 }
0x2b04   :  { %v3102_v50 = vpop.permute.xlu1 %3101 }
0x2b05   :  { %v6662_v17 = vadd.f32 %v3102_v50, %v3094_v63 }
0x2b07   :  { %5297 = vtanh.f32 %v6662_v17 }
0x2b0d   :  { %v5298_v47 = vpop.eup %5297 }
0x2b0e   :  { %3107 = vrot.lane.b32.xlu0 %v5298_v47, %s5583_s30 }
0x2b71   :  { %v3009_v55 = vpop.permute.xlu0 %3008 }
0x2b72   :  { %v6667_v51 = vadd.f32 %v3009_v55, %v3001_v3 }
0x2b74   :  { %5299 = vtanh.f32 %v6667_v51 }
0x2b7a   :  { %v5300_v31 = vpop.eup %5299 }
0x2b7b   :  { %3014 = vrot.lane.b32.xlu2 %v5300_v31, %s5583_s30 }
0x2b80   :  { %v3108_v53 = vpop.permute.xlu0 %3107 }
0x2b81   :  { %v3110_v27 = vmul.f32 %v3108_v53, %v3091_v19 }
0x2b83   :  { %3112 = vrot.lane.b32.xlu2 %v3110_v27, %s5584_s9 }
0x2bd5   :  { %v3015_v58 = vpop.permute.xlu2 %3014 }
0x2bd6   :  { %v3017_v61 = vmul.f32 %v3015_v58, %v2998_v59 }
0x2bd8   :  { %3115 = vrot.lane.b32.xlu0 %v3017_v61, %s5583_s30  ;;  %3024 = vrot.lane.b32.xlu1 %v3017_v61, %s5584_s9 }
0x2bdd   :  { %v3113_v43 = vpop.permute.xlu2 %3112 }
0x2bde   :  { %4961 = vmatmul.msk.f32.vlgmr.msra.gmra.mxu3 %vm305_vm6, %v3113_v43 }
0x2c4a   :  { %v3025_v2 = vpop.permute.xlu1 %3024  ;;  %v3116_v42 = vpop.permute.xlu0 %3115 }
0x2c4b   :  { %4955 = vmatmul.msk.f32.vlgmr.msra.gmra.mxu1 %vm305_vm6, %v3025_v2  ;;  %v3118_v0 = vsel %vm305_vm6, %v3113_v43, %v3116_v42 }
0x2c4c   :  { %3387 = vmatpush.msra.mxu1 %v6495_v41 }
0x2c4e   :  { %3388 = vmatpush.msra.mxu1 %v6501_v7 }
0x2c50   :  { %3389 = vmatpush.msra.mxu1 %v6507_v26 }
0x2c52   :  { %3390 = vmatpush.msra.mxu1 %v6514_v35 }
0x2c53   :  { %4958 = vmatmul.msk.f32.vlgmr.msrb.gmra.mxu1 %vm384_vm7, %v3118_v0 }
0x2c61   :  { %v3231_v30 = vpop.f32.mrf.mxu3 }
0x2c62   :  { %v3234_v13 = vadd.f32 %v3231_v30, %v243_v8  ;;  %v65_v8 = vld [vmem:[%s7195_s0 + $0x98] sm:$0xff] }
0x2c63   :  { %4863 = vmatmul.msk.f32.gmra.mxu0 %vm82_vm1, %v65_v8  ;;  %v3183_v30 = vld [vmem:[#allocation3 + $0x238] sm:$0xff] }
0x2c64   :  { %5301 = vtanh.f32 %v3234_v13  ;;  %v4962_v4 = vmul.f32 -1.442695, %v3234_v13  ;;  %3201 = vmatpush.msrb.mxu2 %v3183_v30  ;;  %v3181_v13 = vld [vmem:[#allocation3 + $0x228] sm:$0xff] }
0x2c66   :  { %5303 = vpow2.f32 %v4962_v4 }
0x2c6a   :  { %v5302_v52 = vpop.eup %5301 }
0x2c6b   :  { %3257 = vrot.lane.b32.xlu2 %v5302_v52, %s5583_s30  ;;  %v3180_v52 = vld [vmem:[#allocation3 + $0x220] sm:$0xff] }
0x2c6c   :  { %v5304_v11 = vpop.eup %5303 }
0x2c6d   :  { %v3238_v48 = vadd.f32 1.0, %v5304_v11 }
0x2c6f   :  { %5305 = vrcp.f32 %v3238_v48  ;;  %v3250_v14 = vand.u32 2147483648, %v3238_v48  ;;  %vm3244_vm15 = vweird.f32 %v3238_v48  ;;  %v3248_v1 = vand.u32 2147483647, %v3238_v48 }
0x2c71   :  { %vm3249_vm2 = vcmp.eq.f32.partialorder %v3248_v1, 8.507059e+37 }
0x2c75   :  { %v5306_v18 = vpop.eup %5305 }
0x2c76   :  { %v3240_v19 = vmul.f32 %v5306_v18, %v3238_v48  ;;  %vm3245_vm14 = vweird.f32 %v5306_v18 }
0x2c77   :  { %vm3246_vm0 = vmor %vm3244_vm15, %vm3245_vm14 }
0x2c78   :  { %v3241_v62 = vsub.f32 1.0, %v3240_v19 }
0x2c7a   :  { %v3242_v49 = vmul.f32 %v5306_v18, %v3241_v62 }
0x2c7c   :  { %v3243_v12 = vadd.f32 %v5306_v18, %v3242_v49 }
0x2c7e   :  { %v3247_v28 = vsel %vm3246_vm0, %v5306_v18, %v3243_v12 }
0x2cc5   :  { %v3258_v25 = vpop.permute.xlu2 %3257 }
0x2cc8   :  { %v3045_v15 = vpop.f32.mrf.mxu1 }
0x2cc9   :  { %v6697_v20 = vadd.f32 %v3045_v15, %v6655_v34  ;;  %v3251_v34 = vor.u32 1.1754944e-38, %v3250_v14 }
0x2ccb   :  { %v3252_v38 = vsel %vm3249_vm2, %v3251_v34, %v3247_v28 }
0x2ccc   :  { %v3260_v32 = vmul.f32 %v3258_v25, %v3252_v38  ;;  %v3255_v37 = vmul.f32 %v3252_v38, %v6662_v17 }
0x2cd0   :  { %v3139_v9 = vpop.f32.mrf.mxu1 }
0x2cd1   :  { %v3140_v21 = vadd.f32 %v6613_v46, %v3139_v9 }
0x2cd3   :  { %5307 = vtanh.f32 %v3140_v21  ;;  %v4959_v54 = vmul.f32 -1.442695, %v3140_v21 }
0x2cd5   :  { %5309 = vpow2.f32 %v4959_v54 }
0x2cd9   :  { %v5308_v57 = vpop.eup %5307 }
0x2cda   :  { %3164 = vrot.lane.b32.xlu1 %v5308_v57, %s5583_s30 }
0x2cdb   :  { %v5310_v10 = vpop.eup %5309 }
0x2cdc   :  { %v3145_v59 = vadd.f32 1.0, %v5310_v10 }
0x2cde   :  { %5311 = vrcp.f32 %v3145_v59  ;;  %v3157_v55 = vand.u32 2147483648, %v3145_v59  ;;  %vm3151_vm4 = vweird.f32 %v3145_v59  ;;  %v3155_v31 = vand.u32 2147483647, %v3145_v59 }
0x2ce0   :  { %v3158_v27 = vor.u32 1.1754944e-38, %v3157_v55  ;;  %vm3156_vm8 = vcmp.eq.f32.partialorder %v3155_v31, 8.507059e+37  ;;  %v245_v62 = vpop.f32.mrf.mxu0 }
0x2ce1   :  { %v246_v9 = vadd.f32 %v6603_v45, %v245_v62  ;;  %v3341_v62 = vld [vmem:[#allocation3 + $0x240] sm:$0xff] }
0x2ce2   :  { %3262 = vrot.lane.b32.xlu1 %v3260_v32, %s5584_s9 }
0x2ce4   :  { %v5312_v33 = vpop.eup %5311 }
0x2ce5   :  { %v3147_v63 = vmul.f32 %v5312_v33, %v3145_v59  ;;  %vm3152_vm3 = vweird.f32 %v5312_v33 }
0x2ce6   :  { %vm3153_vm5 = vmor %vm3151_vm4, %vm3152_vm3 }
0x2ce7   :  { %v3148_v50 = vsub.f32 1.0, %v3147_v63 }
0x2ce9   :  { %v3149_v47 = vmul.f32 %v5312_v33, %v3148_v50 }
0x2ceb   :  { %v3150_v3 = vadd.f32 %v5312_v33, %v3149_v47 }
0x2ced   :  { %v3154_v53 = vsel %vm3153_vm5, %v5312_v33, %v3150_v3 }
0x2cee   :  { %v3159_v40 = vsel %vm3156_vm8, %v3158_v27, %v3154_v53 }
0x2cef   :  { %v3162_v43 = vmul.f32 %v3159_v40, %v6667_v51  ;;  %v3182_v51 = vld [vmem:[#allocation3 + $0x230] sm:$0xff] }
0x2cf0   :  { %3202 = vmatpush.msrb.mxu2 %v3182_v51 }
0x2cf2   :  { %3203 = vmatpush.msrb.mxu2 %v3181_v13 }
0x2cf4   :  { %3204 = vmatpush.msrb.mxu2 %v3180_v52 }
0x2cf6   :  { %3291 = vmatpush.msra.mxu2 %v6545_v6 }
0x2cf8   :  { %3292 = vmatpush.msra.mxu2 %v6551_v16 }
0x2cfa   :  { %3293 = vmatpush.msra.mxu2 %v6557_v39 }
0x2cfc   :  { %3294 = vmatpush.msra.mxu2 %v6563_v29 }
0x2cfe   :  { %3295 = vmatpush.msra.mxu2 %v6569_v5 }
0x2d00   :  { %3296 = vmatpush.msra.mxu2 %v6575_v22 }
0x2d02   :  { %3297 = vmatpush.msra.mxu2 %v6581_v24 }
0x2d04   :  { %3298 = vmatpush.msra.mxu2 %v6587_v44 }
0x2d4c   :  { %v3165_v60 = vpop.permute.xlu1 %3164 }
0x2d4d   :  { %v3167_v56 = vmul.f32 %v3165_v60, %v3159_v40 }
0x2d4f   :  { %3169 = vrot.lane.b32.xlu0 %v3167_v56, %s5584_s9 }
0x2d54   :  { %v3263_v36 = vpop.permute.xlu1 %3262 }
0x2d55   :  { %v6704_v58 = vadd.f32 %v3263_v36, %v3255_v37 }
0x2d57   :  { %5313 = vtanh.f32 %v6704_v58 }
0x2d5d   :  { %v5314_v61 = vpop.eup %5313 }
0x2d5e   :  { %3268 = vrot.lane.b32.xlu0 %v5314_v61, %s5583_s30 }
0x2dc1   :  { %v3170_v2 = vpop.permute.xlu0 %3169 }
0x2dc2   :  { %v6709_v42 = vadd.f32 %v3170_v2, %v3162_v43 }
0x2dc4   :  { %5315 = vtanh.f32 %v6709_v42 }
0x2dca   :  { %v5316_v0 = vpop.eup %5315 }
0x2dcb   :  { %3175 = vrot.lane.b32.xlu2 %v5316_v0, %s5583_s30 }
0x2dd0   :  { %v3269_v23 = vpop.permute.xlu0 %3268 }
0x2dd1   :  { %v3271_v17 = vmul.f32 %v3269_v23, %v3252_v38 }
0x2dd3   :  { %3273 = vrot.lane.b32.xlu2 %v3271_v17, %s5584_s9 }
0x2e25   :  { %v3176_v4 = vpop.permute.xlu2 %3175 }
0x2e26   :  { %v3178_v11 = vmul.f32 %v3176_v4, %v3159_v40 }
0x2e28   :  { %3276 = vrot.lane.b32.xlu0 %v3178_v11, %s5583_s30  ;;  %3185 = vrot.lane.b32.xlu1 %v3178_v11, %s5584_s9 }
0x2e2d   :  { %v3274_v48 = vpop.permute.xlu2 %3273 }
0x2e2e   :  { %4966 = vmatmul.msk.f32.vlgmr.msra.gmra.mxu1 %vm305_vm6, %v3274_v48 }
0x2e9a   :  { %v3186_v15 = vpop.permute.xlu1 %3185  ;;  %v3277_v18 = vpop.permute.xlu0 %3276 }
0x2e9b   :  { %4960 = vmatmul.msk.f32.vlgmr.msrb.gmra.mxu2 %vm305_vm6, %v3186_v15  ;;  %v3279_v19 = vsel %vm305_vm6, %v3274_v48, %v3277_v18  ;;  %v66_v15 = vld [vmem:[%s7195_s0 + $0xa0] sm:$0xff]  ;;  %v3344_v18 = vld [vmem:[#allocation3 + $0x258] sm:$0xff] }
0x2e9c   :  { %3548 = vmatpush.msrb.mxu2 %v6495_v41  ;;  %4864 = vmatmul.msk.f32.gmra.mxu0 %vm82_vm1, %v66_v15 }
0x2e9d   :  { %3362 = vmatpush.msrb.mxu3 %v3344_v18 }
0x2e9e   :  { %3549 = vmatpush.msrb.mxu2 %v6501_v7 }
0x2ea0   :  { %3550 = vmatpush.msrb.mxu2 %v6507_v26 }
0x2ea2   :  { %3551 = vmatpush.msrb.mxu2 %v6514_v35 }
0x2ea3   :  { %4963 = vmatmul.msk.f32.vlgmr.msra.gmra.mxu2 %vm384_vm7, %v3279_v19  ;;  %v3342_v19 = vld [vmem:[#allocation3 + $0x248] sm:$0xff] }
0x2ea4   :  { %3709 = vmatpush.msra.mxu2 %v6495_v41 }
0x2ea6   :  { %3710 = vmatpush.msra.mxu2 %v6501_v7 }
0x2ea8   :  { %3711 = vmatpush.msra.mxu2 %v6507_v26 }
0x2eaa   :  { %3712 = vmatpush.msra.mxu2 %v6514_v35 }
0x2eab   :  { %v3392_v21 = vpop.f32.mrf.mxu1 }
0x2eac   :  { %v3395_v49 = vadd.f32 %v3392_v21, %v246_v9  ;;  %v6776_v21 = vld [vmem:[%s7197_s2 + $0x18] sm:$0xff] }
0x2eae   :  { %5317 = vtanh.f32 %v3395_v49  ;;  %v4967_v57 = vmul.f32 -1.442695, %v3395_v49  ;;  %v6782_v49 = vld [vmem:[%s7197_s2 + $0x10] sm:$0xff] }
0x2eb0   :  { %5319 = vpow2.f32 %v4967_v57  ;;  %v6788_v57 = vld [vmem:[%s7197_s2 + $0x8] sm:$0xff] }
0x2eb4   :  { %v5318_v12 = vpop.eup %5317 }
0x2eb5   :  { %3418 = vrot.lane.b32.xlu1 %v5318_v12, %s5583_s30 }
0x2eb6   :  { %v5320_v14 = vpop.eup %5319 }
0x2eb7   :  { %v3399_v1 = vadd.f32 1.0, %v5320_v14 }
0x2eb9   :  { %5321 = vrcp.f32 %v3399_v1  ;;  %v3411_v38 = vand.u32 2147483648, %v3399_v1  ;;  %vm3405_vm10 = vweird.f32 %v3399_v1  ;;  %v3409_v32 = vand.u32 2147483647, %v3399_v1 }
0x2ebb   :  { %v3412_v10 = vor.u32 1.1754944e-38, %v3411_v38  ;;  %vm3410_vm12 = vcmp.eq.f32.partialorder %v3409_v32, 8.507059e+37 }
0x2ebf   :  { %v5322_v41 = vpop.eup %5321 }
0x2ec0   :  { %v3401_v28 = vmul.f32 %v5322_v41, %v3399_v1  ;;  %vm3406_vm9 = vweird.f32 %v5322_v41  ;;  %v6794_v1 = vld [vmem:[%s7197_s2] sm:$0xff] }
0x2ec1   :  { %vm3407_vm11 = vmor %vm3405_vm10, %vm3406_vm9 }
0x2ec2   :  { %v3402_v7 = vsub.f32 1.0, %v3401_v28 }
0x2ec4   :  { %v3403_v25 = vmul.f32 %v5322_v41, %v3402_v7 }
0x2ec6   :  { %v3404_v35 = vadd.f32 %v5322_v41, %v3403_v25 }
0x2ec8   :  { %v3408_v54 = vsel %vm3407_vm11, %v5322_v41, %v3404_v35 }
0x2ec9   :  { %v3413_v50 = vsel %vm3410_vm12, %v3412_v10, %v3408_v54 }
0x2eca   :  { %v3416_v17 = vmul.f32 %v3413_v50, %v6704_v58 }
0x2f19   :  { %v248_v25 = vpop.f32.mrf.mxu0 }
0x2f1e   :  { %v3206_v34 = vpop.f32.mrf.mxu2 }
0x2f1f   :  { %v6743_v26 = vadd.f32 %v3206_v34, %v6697_v20  ;;  %v249_v34 = vadd.f32 %v6603_v45, %v248_v25 }
0x2f26   :  { %v3300_v59 = vpop.f32.mrf.mxu2 }
0x2f27   :  { %v3301_v33 = vadd.f32 %v6613_v46, %v3300_v59  ;;  %v3419_v63 = vpop.permute.xlu1 %3418 }
0x2f28   :  { %v3421_v47 = vmul.f32 %v3419_v63, %v3413_v50 }
0x2f29   :  { %5323 = vtanh.f32 %v3301_v33  ;;  %v4964_v3 = vmul.f32 -1.442695, %v3301_v33 }
0x2f2a   :  { %3423 = vrot.lane.b32.xlu0 %v3421_v47, %s5584_s9 }
0x2f2b   :  { %5325 = vpow2.f32 %v4964_v3 }
0x2f2f   :  { %v5324_v20 = vpop.eup %5323 }
0x2f30   :  { %3325 = vrot.lane.b32.xlu2 %v5324_v20, %s5583_s30 }
0x2f31   :  { %v5326_v55 = vpop.eup %5325 }
0x2f32   :  { %v3306_v31 = vadd.f32 1.0, %v5326_v55 }
0x2f34   :  { %5327 = vrcp.f32 %v3306_v31  ;;  %v3318_v37 = vand.u32 2147483648, %v3306_v31  ;;  %vm3312_vm14 = vweird.f32 %v3306_v31  ;;  %v3316_v36 = vand.u32 2147483647, %v3306_v31 }
0x2f36   :  { %v3319_v43 = vor.u32 1.1754944e-38, %v3318_v37  ;;  %vm3317_vm0 = vcmp.eq.f32.partialorder %v3316_v36, 8.507059e+37 }
0x2f3a   :  { %v5328_v53 = vpop.eup %5327 }
0x2f3b   :  { %v3308_v27 = vmul.f32 %v5328_v53, %v3306_v31  ;;  %vm3313_vm13 = vweird.f32 %v5328_v53 }
0x2f3c   :  { %vm3314_vm15 = vmor %vm3312_vm14, %vm3313_vm13 }
0x2f3d   :  { %v3309_v60 = vsub.f32 1.0, %v3308_v27 }
0x2f3f   :  { %v3310_v40 = vmul.f32 %v5328_v53, %v3309_v60 }
0x2f41   :  { %v3311_v56 = vadd.f32 %v5328_v53, %v3310_v40 }
0x2f43   :  { %v3315_v61 = vsel %vm3314_vm15, %v5328_v53, %v3311_v56 }
0x2f44   :  { %v3320_v0 = vsel %vm3317_vm0, %v3319_v43, %v3315_v61 }
0x2f45   :  { %v3323_v13 = vmul.f32 %v3320_v0, %v6709_v42  ;;  %v3343_v42 = vld [vmem:[#allocation3 + $0x250] sm:$0xff] }
0x2f46   :  { %3363 = vmatpush.msrb.mxu3 %v3343_v42  ;;  %v67_v42 = vld [vmem:[%s7195_s0 + $0xa8] sm:$0xff] }
0x2f47   :  { %4865 = vmatmul.msk.f32.gmra.mxu0 %vm82_vm1, %v67_v42 }
0x2f48   :  { %3364 = vmatpush.msrb.mxu3 %v3342_v19  ;;  %v69_v19 = vld [vmem:[%s7195_s0 + $0xb8] sm:$0xff] }
0x2f4a   :  { %3365 = vmatpush.msrb.mxu3 %v3341_v62  ;;  %v70_v62 = vld [vmem:[%s7195_s0 + $0xc0] sm:$0xff] }
0x2f4c   :  { %3452 = vmatpush.msra.mxu3 %v6545_v6 }
0x2f4e   :  { %3453 = vmatpush.msra.mxu3 %v6551_v16 }
0x2f50   :  { %3454 = vmatpush.msra.mxu3 %v6557_v39 }
0x2f52   :  { %3455 = vmatpush.msra.mxu3 %v6563_v29 }
0x2f54   :  { %3456 = vmatpush.msra.mxu3 %v6569_v5 }
0x2f56   :  { %3457 = vmatpush.msra.mxu3 %v6575_v22 }
0x2f58   :  { %3458 = vmatpush.msra.mxu3 %v6581_v24 }
0x2f5a   :  { %3459 = vmatpush.msra.mxu3 %v6587_v44 }
0x2f8a   :  { %v3326_v2 = vpop.permute.xlu2 %3325 }
0x2f8b   :  { %v3328_v23 = vmul.f32 %v3326_v2, %v3320_v0 }
0x2f8d   :  { %3330 = vrot.lane.b32.xlu1 %v3328_v23, %s5584_s9 }
0x2f9c   :  { %v3424_v8 = vpop.permute.xlu0 %3423 }
0x2f9d   :  { %v6750_v30 = vadd.f32 %v3424_v8, %v3416_v17 }
0x2f9f   :  { %5329 = vtanh.f32 %v6750_v30 }
0x2fa5   :  { %v5330_v51 = vpop.eup %5329 }
0x2fa6   :  { %3429 = vrot.lane.b32.xlu2 %v5330_v51, %s5583_s30 }
0x2fff   :  { %v3331_v52 = vpop.permute.xlu1 %3330 }
0x3000   :  { %v6755_v4 = vadd.f32 %v3331_v52, %v3323_v13  ;;  %v3430_v11 = vpop.permute.xlu2 %3429 }
0x3001   :  { %v3432_v48 = vmul.f32 %v3430_v11, %v3413_v50 }
0x3002   :  { %5331 = vtanh.f32 %v6755_v4 }
0x3003   :  { %3434 = vrot.lane.b32.xlu1 %v3432_v48, %s5584_s9 }
0x3008   :  { %v5332_v58 = vpop.eup %5331 }
0x3009   :  { %3336 = vrot.lane.b32.xlu0 %v5332_v58, %s5583_s30 }
0x3075   :  { %v3435_v9 = vpop.permute.xlu1 %3434 }
0x3076   :  { %4971 = vmatmul.msk.f32.vlgmr.msrb.gmra.mxu2 %vm305_vm6, %v3435_v9 }
0x3077   :  { %3870 = vmatpush.msrb.mxu2 %v6776_v21 }
0x3079   :  { %3871 = vmatpush.msrb.mxu2 %v6782_v49 }
0x307b   :  { %v3337_v12 = vpop.permute.xlu0 %3336  ;;  %3872 = vmatpush.msrb.mxu2 %v6788_v57 }
0x307c   :  { %v3339_v14 = vmul.f32 %v3337_v12, %v3320_v0  ;;  %v71_v12 = vld [vmem:[%s7195_s0 + $0xc8] sm:$0xff] }
0x307d   :  { %3873 = vmatpush.msrb.mxu2 %v6794_v1 }
0x307e   :  { %3437 = vrot.lane.b32.xlu0 %v3339_v14, %s5583_s30  ;;  %3346 = vrot.lane.b32.xlu2 %v3339_v14, %s5584_s9 }
0x30d8   :  { %v3347_v41 = vpop.permute.xlu2 %3346 }
0x30d9   :  { %4965 = vmatmul.msk.f32.vlgmr.msrb.gmra.mxu3 %vm305_vm6, %v3347_v41 }
0x30da   :  { %3774 = vmatpush.msrb.mxu3 %v6545_v6 }
0x30dc   :  { %3775 = vmatpush.msrb.mxu3 %v6551_v16 }
0x30de   :  { %3776 = vmatpush.msrb.mxu3 %v6557_v39 }
0x30e0   :  { %3777 = vmatpush.msrb.mxu3 %v6563_v29 }
0x30e2   :  { %3778 = vmatpush.msrb.mxu3 %v6569_v5 }
0x30e4   :  { %3779 = vmatpush.msrb.mxu3 %v6575_v22 }
0x30e6   :  { %3780 = vmatpush.msrb.mxu3 %v6581_v24 }
0x30e8   :  { %3781 = vmatpush.msrb.mxu3 %v6587_v44 }
0x30f0   :  { %v3438_v28 = vpop.permute.xlu0 %3437 }
0x30f1   :  { %v3440_v7 = vsel %vm305_vm6, %v3435_v9, %v3438_v28  ;;  %v72_v28 = vld [vmem:[%s7195_s0 + $0xd0] sm:$0xff] }
0x30f2   :  { %4968 = vmatmul.msk.f32.vlgmr.msra.gmra.mxu3 %vm384_vm7, %v3440_v7  ;;  %v73_v7 = vld [vmem:[%s7195_s0 + $0xd8] sm:$0xff] }
0x30f3   :  { %4096 = vmatpush.msra.mxu3 %v6545_v6 }
0x30f5   :  { %4097 = vmatpush.msra.mxu3 %v6551_v16 }
0x30f7   :  { %4098 = vmatpush.msra.mxu3 %v6557_v39 }
0x30f9   :  { %v3553_v35 = vpop.f32.mrf.mxu2  ;;  %4099 = vmatpush.msra.mxu3 %v6563_v29 }
0x30fa   :  { %v3556_v38 = vadd.f32 %v3553_v35, %v249_v34  ;;  %v6880_v35 = vld [vmem:[%s7199_s4 + $0x38] sm:$0xff] }
0x30fb   :  { %4100 = vmatpush.msra.mxu3 %v6569_v5 }
0x30fc   :  { %5333 = vtanh.f32 %v3556_v38  ;;  %v4972_v16 = vmul.f32 -1.442695, %v3556_v38  ;;  %v6886_v38 = vld [vmem:[%s7199_s4 + $0x30] sm:$0xff] }
0x30fd   :  { %4101 = vmatpush.msra.mxu3 %v6575_v22 }
0x30fe   :  { %5335 = vpow2.f32 %v4972_v16  ;;  %v6898_v16 = vld [vmem:[%s7199_s4 + $0x20] sm:$0xff] }
0x30ff   :  { %4102 = vmatpush.msra.mxu3 %v6581_v24 }
0x3101   :  { %4103 = vmatpush.msra.mxu3 %v6587_v44 }
0x3102   :  { %v5334_v6 = vpop.eup %5333 }
0x3103   :  { %3579 = vrot.lane.b32.xlu1 %v5334_v6, %s5583_s30  ;;  %v6892_v6 = vld [vmem:[%s7199_s4 + $0x28] sm:$0xff] }
0x3104   :  { %v5336_v45 = vpop.eup %5335 }
0x3105   :  { %v3560_v39 = vadd.f32 1.0, %v5336_v45  ;;  %v6904_v45 = vld [vmem:[%s7199_s4 + $0x18] sm:$0xff] }
0x3107   :  { %5337 = vrcp.f32 %v3560_v39  ;;  %v3572_v24 = vand.u32 2147483648, %v3560_v39  ;;  %vm3566_vm3 = vweird.f32 %v3560_v39  ;;  %v3570_v44 = vand.u32 2147483647, %v3560_v39 }
0x3109   :  { %v3573_v63 = vor.u32 1.1754944e-38, %v3572_v24  ;;  %vm3571_vm5 = vcmp.eq.f32.partialorder %v3570_v44, 8.507059e+37 }
0x310d   :  { %v5338_v5 = vpop.eup %5337 }
0x310e   :  { %v3562_v54 = vmul.f32 %v5338_v5, %v3560_v39  ;;  %vm3567_vm2 = vweird.f32 %v5338_v5  ;;  %v6910_v39 = vld [vmem:[%s7199_s4 + $0x10] sm:$0xff] }
0x310f   :  { %vm3568_vm4 = vmor %vm3566_vm3, %vm3567_vm2 }
0x3110   :  { %v3563_v10 = vsub.f32 1.0, %v3562_v54  ;;  %v251_v54 = vpop.f32.mrf.mxu0 }
0x3112   :  { %v3564_v22 = vmul.f32 %v5338_v5, %v3563_v10  ;;  %v6928_v10 = vld [vmem:[%s7198_s3] ss:$0 sm:$0xff] }
0x3114   :  { %v3565_v59 = vadd.f32 %v5338_v5, %v3564_v22  ;;  %v252_v22 = vadd.f32 %v6928_v10, %v251_v54 }
0x3116   :  { %v3569_v33 = vsel %vm3568_vm4, %v5338_v5, %v3565_v59  ;;  %v6922_v5 = vld [vmem:[%s7199_s4] sm:$0xff] }
0x3117   :  { %v3574_v47 = vsel %vm3571_vm5, %v3573_v63, %v3569_v33 }
0x3118   :  { %v3577_v8 = vmul.f32 %v3574_v47, %v6750_v30 }
0x315c   :  { %v3367_v32 = vpop.f32.mrf.mxu3 }
0x315d   :  { %v6821_v29 = vadd.f32 %v3367_v32, %v6743_v26  ;;  %v6916_v32 = vld [vmem:[%s7199_s4 + $0x8] sm:$0xff] }
0x3175   :  { %v3580_v50 = vpop.permute.xlu1 %3579  ;;  %v3461_v20 = vpop.f32.mrf.mxu3 }
0x3176   :  { %v3582_v3 = vmul.f32 %v3580_v50, %v3574_v47  ;;  %v3462_v26 = vadd.f32 %v6613_v46, %v3461_v20 }
0x3178   :  { %5339 = vtanh.f32 %v3462_v26  ;;  %3584 = vrot.lane.b32.xlu0 %v3582_v3, %s5584_s9  ;;  %v4969_v31 = vmul.f32 -1.442695, %v3462_v26 }
0x317a   :  { %5341 = vpow2.f32 %v4969_v31 }
0x317e   :  { %v5340_v55 = vpop.eup %5339 }
0x317f   :  { %3486 = vrot.lane.b32.xlu2 %v5340_v55, %s5583_s30 }
0x3180   :  { %v5342_v53 = vpop.eup %5341 }
0x3181   :  { %v3467_v27 = vadd.f32 1.0, %v5342_v53 }
0x3183   :  { %5343 = vrcp.f32 %v3467_v27  ;;  %v3479_v61 = vand.u32 2147483648, %v3467_v27  ;;  %vm3473_vm9 = vweird.f32 %v3467_v27  ;;  %v3477_v46 = vand.u32 2147483647, %v3467_v27 }
0x3185   :  { %v3480_v2 = vor.u32 1.1754944e-38, %v3479_v61  ;;  %vm3478_vm11 = vcmp.eq.f32.partialorder %v3477_v46, 8.507059e+37 }
0x3189   :  { %v5344_v60 = vpop.eup %5343 }
0x318a   :  { %v3469_v40 = vmul.f32 %v5344_v60, %v3467_v27  ;;  %vm3474_vm8 = vweird.f32 %v5344_v60  ;;  %v6947_v27 = vld [vmem:[%s7200_s5] ss:$0 sm:$0xff] }
0x318b   :  { %vm3475_vm10 = vmor %vm3473_vm9, %vm3474_vm8 }
0x318c   :  { %v3470_v56 = vsub.f32 1.0, %v3469_v40 }
0x318e   :  { %v3471_v37 = vmul.f32 %v5344_v60, %v3470_v56 }
0x3190   :  { %v3472_v36 = vadd.f32 %v5344_v60, %v3471_v37 }
0x3192   :  { %v3476_v43 = vsel %vm3475_vm10, %v5344_v60, %v3472_v36 }
0x3193   :  { %v3481_v23 = vsel %vm3478_vm11, %v3480_v2, %v3476_v43 }
0x3194   :  { %v3484_v11 = vmul.f32 %v3481_v23, %v6755_v4  ;;  %v68_v4 = vld [vmem:[%s7195_s0 + $0xb0] sm:$0xff] }
0x3195   :  { %4866 = vmatmul.msk.f32.gmra.mxu0 %vm82_vm1, %v68_v4 }
0x319d   :  { %4867 = vmatmul.msk.f32.gmra.mxu0 %vm82_vm1, %v69_v19 }
0x31a5   :  { %4868 = vmatmul.msk.f32.gmra.mxu0 %vm82_vm1, %v70_v62 }
0x31ad   :  { %4869 = vmatmul.msk.f32.gmra.mxu0 %vm82_vm1, %v71_v12 }
0x31b5   :  { %4870 = vmatmul.msk.f32.gmra.mxu0 %vm82_vm1, %v72_v28 }
0x31bd   :  { %4871 = vmatmul.msk.f32.gmra.mxu0 %vm82_vm1, %v73_v7 }
0x31d9   :  { %v3487_v0 = vpop.permute.xlu2 %3486 }
0x31da   :  { %v3489_v17 = vmul.f32 %v3487_v0, %v3481_v23 }
0x31dc   :  { %3491 = vrot.lane.b32.xlu1 %v3489_v17, %s5584_s9 }
0x31ea   :  { %v3585_v51 = vpop.permute.xlu0 %3584 }
0x31eb   :  { %v6828_v13 = vadd.f32 %v3585_v51, %v3577_v8 }
0x31ed   :  { %5345 = vtanh.f32 %v6828_v13 }
0x31f3   :  { %v5346_v52 = vpop.eup %5345 }
0x31f4   :  { %3590 = vrot.lane.b32.xlu2 %v5346_v52, %s5583_s30 }
0x3212   :  { %v6932_v33 = vpop.f32.mrf.mxu0 }
0x321a   :  { %v6934_v63 = vpop.f32.mrf.mxu0 }
0x3222   :  { %v6936_v50 = vpop.f32.mrf.mxu0 }
0x324e   :  { %v3591_v48 = vpop.permute.xlu2 %3590  ;;  %v3492_v58 = vpop.permute.xlu1 %3491 }
0x324f   :  { %v3593_v15 = vmul.f32 %v3591_v48, %v3574_v47  ;;  %v6833_v18 = vadd.f32 %v3492_v58, %v3484_v11  ;;  %v6938_v47 = vpop.f32.mrf.mxu0 }
0x3251   :  { %5347 = vtanh.f32 %v6833_v18  ;;  %3595 = vrot.lane.b32.xlu1 %v3593_v15, %s5584_s9 }
0x3257   :  { %v5348_v30 = vpop.eup %5347  ;;  %v6940_v20 = vpop.f32.mrf.mxu0 }
0x3258   :  { %3497 = vrot.lane.b32.xlu0 %v5348_v30, %s5583_s30 }
0x325f   :  { %v6942_v26 = vpop.f32.mrf.mxu0 }
0x32c3   :  { %v3596_v9 = vpop.permute.xlu1 %3595 }
0x32c4   :  { %4976 = vmatmul.msk.f32.vlgmr.msra.gmra.mxu2 %vm305_vm6, %v3596_v9 }
0x32c5   :  { %4031 = vmatpush.msra.mxu2 %v6776_v21 }
0x32c7   :  { %4032 = vmatpush.msra.mxu2 %v6782_v49 }
0x32c9   :  { %4033 = vmatpush.msra.mxu2 %v6788_v57 }
0x32ca   :  { %v3498_v14 = vpop.permute.xlu0 %3497 }
0x32cb   :  { %v6862_v41 = vmul.f32 %v3498_v14, %v3481_v23  ;;  %4034 = vmatpush.msra.mxu2 %v6794_v1 }
0x32cd   :  { %3598 = vrot.lane.b32.xlu2 %v6862_v41, %s5583_s30 }
0x3327   :  { %v3599_v25 = vpop.permute.xlu2 %3598 }
0x3328   :  { %v3601_v34 = vsel %vm305_vm6, %v3596_v9, %v3599_v25 }
0x3329   :  { %4973 = vmatmul.msk.f32.vlgmr.msrb.gmra.mxu0 %vm384_vm7, %v3601_v34 }
0x332a   :  { %4257 = vmatpush.msrb.mxu0 %v6880_v35 }
0x332c   :  { %4258 = vmatpush.msrb.mxu0 %v6886_v38 }
0x332e   :  { %4259 = vmatpush.msrb.mxu0 %v6892_v6 }
0x3330   :  { %4260 = vmatpush.msrb.mxu0 %v6898_v16 }
0x3332   :  { %4261 = vmatpush.msrb.mxu0 %v6904_v45 }
0x3334   :  { %4262 = vmatpush.msrb.mxu0 %v6910_v39 }
0x3336   :  { %4263 = vmatpush.msrb.mxu0 %v6916_v32 }
0x3338   :  { %4264 = vmatpush.msrb.mxu0 %v6922_v5 }
0x3347   :  { %v3714_v59 = vpop.f32.mrf.mxu2 }
0x3348   :  { %v3717_v24 = vadd.f32 %v3714_v59, %v252_v22 }
0x334a   :  { %5349 = vtanh.f32 %v3717_v24  ;;  %v4977_v3 = vmul.f32 -1.442695, %v3717_v24 }
0x334c   :  { %5351 = vpow2.f32 %v4977_v3 }
0x3350   :  { %v5350_v44 = vpop.eup %5349 }
0x3351   :  { %3740 = vrot.lane.b32.xlu0 %v5350_v44, %s5583_s30 }
0x3352   :  { %v5352_v55 = vpop.eup %5351 }
0x3353   :  { %v3721_v31 = vadd.f32 1.0, %v5352_v55 }
0x3355   :  { %5353 = vrcp.f32 %v3721_v31  ;;  %v3733_v43 = vand.u32 2147483648, %v3721_v31  ;;  %vm3727_vm12 = vweird.f32 %v3721_v31  ;;  %v3731_v2 = vand.u32 2147483647, %v3721_v31 }
0x3357   :  { %v3734_v23 = vor.u32 1.1754944e-38, %v3733_v43  ;;  %vm3732_vm14 = vcmp.eq.f32.partialorder %v3731_v2, 8.507059e+37 }
0x335b   :  { %v5354_v40 = vpop.eup %5353 }
0x335c   :  { %v3723_v37 = vmul.f32 %v5354_v40, %v3721_v31  ;;  %vm3728_vm1 = vweird.f32 %v5354_v40 }
0x335d   :  { %vm3729_vm13 = vmor %vm3727_vm12, %vm3728_vm1 }
0x335e   :  { %v3724_v36 = vsub.f32 1.0, %v3723_v37 }
0x3360   :  { %v3725_v61 = vmul.f32 %v5354_v40, %v3724_v36 }
0x3362   :  { %v3726_v46 = vadd.f32 %v5354_v40, %v3725_v61 }
0x3364   :  { %v3730_v0 = vsel %vm3729_vm13, %v5354_v40, %v3726_v46 }
0x3365   :  { %v3735_v17 = vsel %vm3732_vm14, %v3734_v23, %v3730_v0 }
0x3366   :  { %v3738_v9 = vmul.f32 %v3735_v17, %v6828_v13 }
0x33a6   :  { %v3622_v53 = vpop.f32.mrf.mxu0 }
0x33a7   :  { %v3623_v60 = vadd.f32 %v6947_v27, %v3622_v53 }
0x33a9   :  { %5355 = vtanh.f32 %v3623_v60  ;;  %v4974_v52 = vmul.f32 -1.442695, %v3623_v60 }
0x33ab   :  { %5357 = vpow2.f32 %v4974_v52 }
0x33af   :  { %v5356_v56 = vpop.eup %5355 }
0x33b0   :  { %3647 = vrot.lane.b32.xlu1 %v5356_v56, %s5583_s30  ;;  %v255_v56 = vadd.f32 %v6928_v10, %v6932_v33 }
0x33b1   :  { %v5358_v11 = vpop.eup %5357 }
0x33b2   :  { %v3628_v48 = vadd.f32 1.0, %v5358_v11 }
0x33b4   :  { %5359 = vrcp.f32 %v3628_v48  ;;  %v3640_v19 = vand.u32 2147483648, %v3628_v48  ;;  %vm3634_vm0 = vweird.f32 %v3628_v48  ;;  %v3638_v62 = vand.u32 2147483647, %v3628_v48 }
0x33b6   :  { %v3641_v28 = vor.u32 1.1754944e-38, %v3640_v19  ;;  %vm3639_vm3 = vcmp.eq.f32.partialorder %v3638_v62, 8.507059e+37 }
0x33ba   :  { %v5360_v58 = vpop.eup %5359 }
0x33bb   :  { %v3630_v15 = vmul.f32 %v5360_v58, %v3628_v48  ;;  %vm3635_vm15 = vweird.f32 %v5360_v58 }
0x33bc   :  { %vm3636_vm2 = vmor %vm3634_vm0, %vm3635_vm15 }
0x33bd   :  { %v3631_v30 = vsub.f32 1.0, %v3630_v15 }
0x33bf   :  { %v3632_v42 = vmul.f32 %v5360_v58, %v3631_v30 }
0x33c1   :  { %v3633_v4 = vadd.f32 %v5360_v58, %v3632_v42 }
0x33c3   :  { %v3741_v8 = vpop.permute.xlu0 %3740  ;;  %v3637_v12 = vsel %vm3636_vm2, %v5360_v58, %v3633_v4 }
0x33c4   :  { %v3743_v51 = vmul.f32 %v3741_v8, %v3735_v17  ;;  %v3642_v34 = vsel %vm3639_vm3, %v3641_v28, %v3637_v12 }
0x33c5   :  { %v3645_v59 = vmul.f32 %v3642_v34, %v6833_v18 }
0x33c6   :  { %3745 = vrot.lane.b32.xlu2 %v3743_v51, %s5584_s9 }
0x3420   :  { %v3746_v14 = vpop.permute.xlu2 %3745 }
0x3421   :  { %v6953_v7 = vadd.f32 %v3746_v14, %v3738_v9 }
0x3422   :  { %v3648_v25 = vpop.permute.xlu1 %3647 }
0x3423   :  { %5361 = vtanh.f32 %v6953_v7  ;;  %v3650_v54 = vmul.f32 %v3648_v25, %v3642_v34 }
0x3425   :  { %3652 = vrot.lane.b32.xlu0 %v3650_v54, %s5584_s9 }
0x3429   :  { %v5362_v22 = vpop.eup %5361 }
0x342a   :  { %3751 = vrot.lane.b32.xlu1 %v5362_v22, %s5583_s30 }
0x3497   :  { %v3653_v24 = vpop.permute.xlu0 %3652 }
0x3498   :  { %v6959_v13 = vadd.f32 %v3653_v24, %v3645_v59 }
0x349a   :  { %5363 = vtanh.f32 %v6959_v13 }
0x349c   :  { %v3752_v44 = vpop.permute.xlu1 %3751 }
0x349d   :  { %v3754_v3 = vmul.f32 %v3752_v44, %v3735_v17 }
0x349f   :  { %3756 = vrot.lane.b32.xlu0 %v3754_v3, %s5584_s9 }
0x34a0   :  { %v5364_v55 = vpop.eup %5363 }
0x34a1   :  { %3658 = vrot.lane.b32.xlu2 %v5364_v55, %s5583_s30 }
0x34fb   :  { %v3659_v31 = vpop.permute.xlu2 %3658 }
0x34fc   :  { %v6964_v53 = vmul.f32 %v3659_v31, %v3642_v34 }
0x34fe   :  { %3759 = vrot.lane.b32.xlu1 %v6964_v53, %s5583_s30 }
0x3511   :  { %v3757_v60 = vpop.permute.xlu0 %3756 }
0x3512   :  { %4981 = vmatmul.msk.f32.vlgmr.msrb.gmra.mxu2 %vm305_vm6, %v3757_v60 }
0x3513   :  { %4192 = vmatpush.msrb.mxu2 %v6776_v21 }
0x3515   :  { %4193 = vmatpush.msrb.mxu2 %v6782_v49 }
0x3517   :  { %4194 = vmatpush.msrb.mxu2 %v6788_v57 }
0x3519   :  { %4195 = vmatpush.msrb.mxu2 %v6794_v1 }
0x3570   :  { %v3760_v18 = vpop.permute.xlu1 %3759 }
0x3571   :  { %v3762_v40 = vsel %vm305_vm6, %v3757_v60, %v3760_v18 }
0x3572   :  { %4978 = vmatmul.msk.f32.vlgmr.msrb.gmra.mxu3 %vm384_vm7, %v3762_v40 }
0x3573   :  { %4418 = vmatpush.msrb.mxu3 %v6880_v35 }
0x3575   :  { %4419 = vmatpush.msrb.mxu3 %v6886_v38 }
0x3577   :  { %4420 = vmatpush.msrb.mxu3 %v6892_v6 }
0x3579   :  { %4421 = vmatpush.msrb.mxu3 %v6898_v16 }
0x357b   :  { %4422 = vmatpush.msrb.mxu3 %v6904_v45 }
0x357d   :  { %4423 = vmatpush.msrb.mxu3 %v6910_v39 }
0x357f   :  { %4424 = vmatpush.msrb.mxu3 %v6916_v32 }
0x3581   :  { %4425 = vmatpush.msrb.mxu3 %v6922_v5 }
0x3595   :  { %v3875_v37 = vpop.f32.mrf.mxu2 }
0x3596   :  { %v3878_v36 = vadd.f32 %v3875_v37, %v255_v56 }
0x3598   :  { %5365 = vtanh.f32 %v3878_v36  ;;  %v4982_v46 = vmul.f32 -1.442695, %v3878_v36 }
0x359a   :  { %5367 = vpow2.f32 %v4982_v46 }
0x359e   :  { %v5366_v61 = vpop.eup %5365 }
0x359f   :  { %3901 = vrot.lane.b32.xlu2 %v5366_v61, %s5583_s30 }
0x35a0   :  { %v5368_v43 = vpop.eup %5367 }
0x35a1   :  { %v3882_v2 = vadd.f32 1.0, %v5368_v43 }
0x35a3   :  { %5369 = vrcp.f32 %v3882_v2  ;;  %v3894_v52 = vand.u32 2147483648, %v3882_v2  ;;  %vm3888_vm5 = vweird.f32 %v3882_v2  ;;  %v3892_v33 = vand.u32 2147483647, %v3882_v2 }
0x35a5   :  { %v3895_v15 = vor.u32 1.1754944e-38, %v3894_v52  ;;  %vm3893_vm9 = vcmp.eq.f32.partialorder %v3892_v33, 8.507059e+37 }
0x35a9   :  { %v5370_v0 = vpop.eup %5369 }
0x35aa   :  { %v3884_v23 = vmul.f32 %v5370_v0, %v3882_v2  ;;  %vm3889_vm4 = vweird.f32 %v5370_v0 }
0x35ab   :  { %vm3890_vm8 = vmor %vm3888_vm5, %vm3889_vm4 }
0x35ac   :  { %v3885_v17 = vsub.f32 1.0, %v3884_v23 }
0x35ae   :  { %v3886_v8 = vmul.f32 %v5370_v0, %v3885_v17 }
0x35b0   :  { %v3887_v51 = vadd.f32 %v5370_v0, %v3886_v8  ;;  %v258_v8 = vadd.f32 %v6928_v10, %v6934_v63 }
0x35b2   :  { %v3891_v58 = vsel %vm3890_vm8, %v5370_v0, %v3887_v51 }
0x35b3   :  { %v3896_v42 = vsel %vm3893_vm9, %v3895_v15, %v3891_v58 }
0x35b4   :  { %v3899_v24 = vmul.f32 %v3896_v42, %v6953_v7 }
0x35f5   :  { %v3783_v11 = vpop.f32.mrf.mxu3 }
0x35f6   :  { %v3784_v48 = vadd.f32 %v6947_v27, %v3783_v11 }
0x35f8   :  { %5371 = vtanh.f32 %v3784_v48  ;;  %v4979_v62 = vmul.f32 -1.442695, %v3784_v48 }
0x35f9   :  { %v3902_v30 = vpop.permute.xlu2 %3901 }
0x35fa   :  { %v3904_v4 = vmul.f32 %v3902_v30, %v3896_v42  ;;  %5373 = vpow2.f32 %v4979_v62 }
0x35fc   :  { %3906 = vrot.lane.b32.xlu1 %v3904_v4, %s5584_s9 }
0x35fe   :  { %v5372_v19 = vpop.eup %5371 }
0x35ff   :  { %3808 = vrot.lane.b32.xlu0 %v5372_v19, %s5583_s30 }
0x3600   :  { %v5374_v9 = vpop.eup %5373 }
0x3601   :  { %v3789_v12 = vadd.f32 1.0, %v5374_v9 }
0x3603   :  { %5375 = vrcp.f32 %v3789_v12  ;;  %v3801_v22 = vand.u32 2147483648, %v3789_v12  ;;  %vm3795_vm11 = vweird.f32 %v3789_v12  ;;  %v3799_v59 = vand.u32 2147483647, %v3789_v12 }
0x3605   :  { %v3802_v31 = vor.u32 1.1754944e-38, %v3801_v22  ;;  %vm3800_vm12 = vcmp.eq.f32.partialorder %v3799_v59, 8.507059e+37 }
0x3609   :  { %v5376_v14 = vpop.eup %5375 }
0x360a   :  { %v3791_v28 = vmul.f32 %v5376_v14, %v3789_v12  ;;  %vm3796_vm10 = vweird.f32 %v5376_v14 }
0x360b   :  { %vm3797_vm1 = vmor %vm3795_vm11, %vm3796_vm10 }
0x360c   :  { %v3792_v25 = vsub.f32 1.0, %v3791_v28 }
0x360e   :  { %v3793_v34 = vmul.f32 %v5376_v14, %v3792_v25 }
0x3610   :  { %v3794_v54 = vadd.f32 %v5376_v14, %v3793_v34 }
0x3612   :  { %v3798_v3 = vsel %vm3797_vm1, %v5376_v14, %v3794_v54 }
0x3613   :  { %v3803_v18 = vsel %vm3800_vm12, %v3802_v31, %v3798_v3 }
0x3614   :  { %v3806_v37 = vmul.f32 %v3803_v18, %v6959_v13 }
0x366e   :  { %v3907_v44 = vpop.permute.xlu1 %3906 }
0x366f   :  { %v6990_v55 = vadd.f32 %v3907_v44, %v3899_v24 }
0x3671   :  { %5377 = vtanh.f32 %v6990_v55  ;;  %v3809_v60 = vpop.permute.xlu0 %3808 }
0x3672   :  { %v3811_v40 = vmul.f32 %v3809_v60, %v3803_v18 }
0x3674   :  { %3813 = vrot.lane.b32.xlu2 %v3811_v40, %s5584_s9 }
0x3677   :  { %v5378_v56 = vpop.eup %5377 }
0x3678   :  { %3912 = vrot.lane.b32.xlu0 %v5378_v56, %s5583_s30 }
0x36ce   :  { %v3814_v7 = vpop.permute.xlu2 %3813 }
0x36cf   :  { %v6996_v36 = vadd.f32 %v3814_v7, %v3806_v37 }
0x36d1   :  { %5379 = vtanh.f32 %v6996_v36 }
0x36d7   :  { %v5380_v61 = vpop.eup %5379 }
0x36d8   :  { %3819 = vrot.lane.b32.xlu1 %v5380_v61, %s5583_s30 }
0x36ea   :  { %v3913_v46 = vpop.permute.xlu0 %3912 }
0x36eb   :  { %v3915_v43 = vmul.f32 %v3913_v46, %v3896_v42 }
0x36ed   :  { %3917 = vrot.lane.b32.xlu2 %v3915_v43, %s5584_s9 }
0x3747   :  { %v3918_v2 = vpop.permute.xlu2 %3917 }
0x3748   :  { %4986 = vmatmul.msk.f32.vlgmr.msra.gmra.mxu2 %vm305_vm6, %v3918_v2 }
0x3749   :  { %4353 = vmatpush.msra.mxu2 %v6776_v21 }
0x374a   :  { %v3820_v0 = vpop.permute.xlu1 %3819 }
0x374b   :  { %v7003_v23 = vmul.f32 %v3820_v0, %v3803_v18  ;;  %4354 = vmatpush.msra.mxu2 %v6782_v49 }
0x374d   :  { %3920 = vrot.lane.b32.xlu0 %v7003_v23, %s5583_s30  ;;  %4355 = vmatpush.msra.mxu2 %v6788_v57 }
0x374f   :  { %4356 = vmatpush.msra.mxu2 %v6794_v1 }
0x37bf   :  { %v3921_v13 = vpop.permute.xlu0 %3920 }
0x37c0   :  { %v3923_v17 = vsel %vm305_vm6, %v3918_v2, %v3921_v13 }
0x37c1   :  { %4983 = vmatmul.msk.f32.vlgmr.msra.gmra.mxu0 %vm384_vm7, %v3923_v17 }
0x37c2   :  { %4579 = vmatpush.msra.mxu0 %v6880_v35 }
0x37c4   :  { %4580 = vmatpush.msra.mxu0 %v6886_v38 }
0x37c6   :  { %4581 = vmatpush.msra.mxu0 %v6892_v6 }
0x37c8   :  { %4582 = vmatpush.msra.mxu0 %v6898_v16 }
0x37ca   :  { %4583 = vmatpush.msra.mxu0 %v6904_v45 }
0x37cb   :  { %v4036_v51 = vpop.f32.mrf.mxu2 }
0x37cc   :  { %v4039_v52 = vadd.f32 %v4036_v51, %v258_v8  ;;  %4584 = vmatpush.msra.mxu0 %v6910_v39 }
0x37ce   :  { %5381 = vtanh.f32 %v4039_v52  ;;  %4585 = vmatpush.msra.mxu0 %v6916_v32  ;;  %v4987_v11 = vmul.f32 -1.442695, %v4039_v52 }
0x37d0   :  { %4586 = vmatpush.msra.mxu0 %v6922_v5  ;;  %5383 = vpow2.f32 %v4987_v11 }
0x37d4   :  { %v5382_v33 = vpop.eup %5381 }
0x37d5   :  { %4062 = vrot.lane.b32.xlu1 %v5382_v33, %s5583_s30 }
0x37d6   :  { %v5384_v48 = vpop.eup %5383 }
0x37d7   :  { %v4043_v58 = vadd.f32 1.0, %v5384_v48 }
0x37d9   :  { %5385 = vrcp.f32 %v4043_v58  ;;  %v4055_v9 = vand.u32 2147483648, %v4043_v58  ;;  %vm4049_vm14 = vweird.f32 %v4043_v58  ;;  %v4053_v12 = vand.u32 2147483647, %v4043_v58 }
0x37db   :  { %v4056_v28 = vor.u32 1.1754944e-38, %v4055_v9  ;;  %vm4054_vm0 = vcmp.eq.f32.partialorder %v4053_v12, 8.507059e+37 }
0x37df   :  { %v5386_v63 = vpop.eup %5385 }
0x37e0   :  { %v4045_v15 = vmul.f32 %v5386_v63, %v4043_v58  ;;  %vm4050_vm13 = vweird.f32 %v5386_v63 }
0x37e1   :  { %vm4051_vm15 = vmor %vm4049_vm14, %vm4050_vm13 }
0x37e2   :  { %v4046_v30 = vsub.f32 1.0, %v4045_v15 }
0x37e4   :  { %v4047_v42 = vmul.f32 %v5386_v63, %v4046_v30 }
0x37e6   :  { %v4048_v62 = vadd.f32 %v5386_v63, %v4047_v42  ;;  %v261_v42 = vadd.f32 %v6928_v10, %v6936_v50 }
0x37e8   :  { %v4052_v14 = vsel %vm4051_vm15, %v5386_v63, %v4048_v62 }
0x37e9   :  { %v4057_v34 = vsel %vm4054_vm0, %v4056_v28, %v4052_v14 }
0x37ea   :  { %v4060_v0 = vmul.f32 %v4057_v34, %v6990_v55 }
0x383e   :  { %v3944_v4 = vpop.f32.mrf.mxu0 }
0x383f   :  { %v3945_v19 = vadd.f32 %v6947_v27, %v3944_v4 }
0x3841   :  { %5387 = vtanh.f32 %v3945_v19  ;;  %v4984_v59 = vmul.f32 -1.442695, %v3945_v19 }
0x3843   :  { %5389 = vpow2.f32 %v4984_v59 }
0x3847   :  { %v5388_v25 = vpop.eup %5387  ;;  %v4063_v54 = vpop.permute.xlu1 %4062 }
0x3848   :  { %v4065_v22 = vmul.f32 %v4063_v54, %v4057_v34  ;;  %3969 = vrot.lane.b32.xlu2 %v5388_v25, %s5583_s30 }
0x3849   :  { %v5390_v24 = vpop.eup %5389 }
0x384a   :  { %4067 = vrot.lane.b32.xlu0 %v4065_v22, %s5584_s9  ;;  %v3950_v44 = vadd.f32 1.0, %v5390_v24 }
0x384c   :  { %5391 = vrcp.f32 %v3950_v44  ;;  %v3962_v56 = vand.u32 2147483648, %v3950_v44  ;;  %vm3956_vm3 = vweird.f32 %v3950_v44  ;;  %v3960_v37 = vand.u32 2147483647, %v3950_v44 }
0x384e   :  { %v3963_v61 = vor.u32 1.1754944e-38, %v3962_v56  ;;  %vm3961_vm5 = vcmp.eq.f32.partialorder %v3960_v37, 8.507059e+37 }
0x3852   :  { %v5392_v3 = vpop.eup %5391 }
0x3853   :  { %v3952_v31 = vmul.f32 %v5392_v3, %v3950_v44  ;;  %vm3957_vm2 = vweird.f32 %v5392_v3 }
0x3854   :  { %vm3958_vm4 = vmor %vm3956_vm3, %vm3957_vm2 }
0x3855   :  { %v3953_v60 = vsub.f32 1.0, %v3952_v31 }
0x3857   :  { %v3954_v18 = vmul.f32 %v5392_v3, %v3953_v60 }
0x3859   :  { %v3955_v40 = vadd.f32 %v5392_v3, %v3954_v18 }
0x385b   :  { %v3959_v7 = vsel %vm3958_vm4, %v5392_v3, %v3955_v40 }
0x385c   :  { %v3964_v43 = vsel %vm3961_vm5, %v3963_v61, %v3959_v7 }
0x385d   :  { %v3967_v51 = vmul.f32 %v3964_v43, %v6996_v36 }
0x38a2   :  { %v3970_v46 = vpop.permute.xlu2 %3969 }
0x38a3   :  { %v3972_v2 = vmul.f32 %v3970_v46, %v3964_v43 }
0x38a5   :  { %3974 = vrot.lane.b32.xlu1 %v3972_v2, %s5584_s9 }
0x38bc   :  { %v4068_v13 = vpop.permute.xlu0 %4067 }
0x38bd   :  { %v7028_v17 = vadd.f32 %v4068_v13, %v4060_v0 }
0x38bf   :  { %5393 = vtanh.f32 %v7028_v17 }
0x38c5   :  { %v5394_v8 = vpop.eup %5393 }
0x38c6   :  { %4073 = vrot.lane.b32.xlu2 %v5394_v8, %s5583_s30 }
0x3917   :  { %v3975_v52 = vpop.permute.xlu1 %3974 }
0x3918   :  { %v7033_v33 = vadd.f32 %v3975_v52, %v3967_v51 }
0x391a   :  { %5395 = vtanh.f32 %v7033_v33 }
0x3920   :  { %v5396_v11 = vpop.eup %5395  ;;  %v4074_v48 = vpop.permute.xlu2 %4073 }
0x3921   :  { %v4076_v58 = vmul.f32 %v4074_v48, %v4057_v34  ;;  %3980 = vrot.lane.b32.xlu0 %v5396_v11, %s5583_s30 }
0x3923   :  { %4078 = vrot.lane.b32.xlu1 %v4076_v58, %s5584_s9 }
0x3993   :  { %v3981_v55 = vpop.permute.xlu0 %3980 }
0x3994   :  { %v7038_v63 = vmul.f32 %v3981_v55, %v3964_v43 }
0x3995   :  { %v4079_v15 = vpop.permute.xlu1 %4078 }
0x3996   :  { %4081 = vrot.lane.b32.xlu2 %v7038_v63, %s5583_s30  ;;  %4991 = vmatmul.msk.f32.vlgmr.msrb.gmra.mxu2 %vm305_vm6, %v4079_v15 }
0x3997   :  { %4514 = vmatpush.msrb.mxu2 %v6776_v21 }
0x3999   :  { %4515 = vmatpush.msrb.mxu2 %v6782_v49 }
0x399b   :  { %4516 = vmatpush.msrb.mxu2 %v6788_v57 }
0x399d   :  { %4517 = vmatpush.msrb.mxu2 %v6794_v1 }
0x39f0   :  { %v4082_v36 = vpop.permute.xlu2 %4081 }
0x39f1   :  { %v4084_v30 = vsel %vm305_vm6, %v4079_v15, %v4082_v36 }
0x39f2   :  { %4988 = vmatmul.msk.f32.vlgmr.msra.gmra.mxu3 %vm384_vm7, %v4084_v30 }
0x39f3   :  { %4740 = vmatpush.msra.mxu3 %v6880_v35 }
0x39f5   :  { %4741 = vmatpush.msra.mxu3 %v6886_v38 }
0x39f7   :  { %4742 = vmatpush.msra.mxu3 %v6892_v6 }
0x39f9   :  { %4743 = vmatpush.msra.mxu3 %v6898_v16 }
0x39fb   :  { %4744 = vmatpush.msra.mxu3 %v6904_v45 }
0x39fd   :  { %4745 = vmatpush.msra.mxu3 %v6910_v39 }
0x39ff   :  { %4746 = vmatpush.msra.mxu3 %v6916_v32 }
0x3a01   :  { %4747 = vmatpush.msra.mxu3 %v6922_v5 }
0x3a19   :  { %v4197_v4 = vpop.f32.mrf.mxu2 }
0x3a1a   :  { %v4200_v19 = vadd.f32 %v4197_v4, %v261_v42 }
0x3a1c   :  { %5397 = vtanh.f32 %v4200_v19  ;;  %v4992_v38 = vmul.f32 -1.442695, %v4200_v19  ;;  %v264_v19 = vadd.f32 %v6928_v10, %v6938_v47 }
0x3a1e   :  { %5399 = vpow2.f32 %v4992_v38 }
0x3a22   :  { %v5398_v35 = vpop.eup %5397 }
0x3a23   :  { %4223 = vrot.lane.b32.xlu0 %v5398_v35, %s5583_s30 }
0x3a24   :  { %v5400_v6 = vpop.eup %5399 }
0x3a25   :  { %v4204_v16 = vadd.f32 1.0, %v5400_v6 }
0x3a27   :  { %v4216_v14 = vand.u32 2147483648, %v4204_v16  ;;  %vm4210_vm9 = vweird.f32 %v4204_v16  ;;  %v4214_v28 = vand.u32 2147483647, %v4204_v16 }
0x3a29   :  { %v4217_v34 = vor.u32 1.1754944e-38, %v4216_v14  ;;  %vm4215_vm11 = vcmp.eq.f32.partialorder %v4214_v28, 8.507059e+37 }
0x3a75   :  { %v4105_v45 = vpop.f32.mrf.mxu3 }
0x3a76   :  { %v4106_v39 = vadd.f32 %v6947_v27, %v4105_v45 }
0x3a78   :  { %5401 = vtanh.f32 %v4106_v39  ;;  %v4989_v24 = vmul.f32 -1.442695, %v4106_v39 }
0x3a79   :  { %5403 = vrcp.f32 %v4204_v16 }
0x3a7a   :  { %5405 = vpow2.f32 %v4989_v24 }
0x3a7e   :  { %v5402_v32 = vpop.eup %5401 }
0x3a7f   :  { %v5404_v5 = vpop.eup %5403  ;;  %4130 = vrot.lane.b32.xlu1 %v5402_v32, %s5583_s30 }
0x3a80   :  { %v4206_v50 = vmul.f32 %v5404_v5, %v4204_v16  ;;  %vm4211_vm8 = vweird.f32 %v5404_v5  ;;  %v5406_v44 = vpop.eup %5405 }
0x3a81   :  { %vm4212_vm10 = vmor %vm4210_vm9, %vm4211_vm8  ;;  %v4111_v3 = vadd.f32 1.0, %v5406_v44 }
0x3a82   :  { %v4207_v62 = vsub.f32 1.0, %v4206_v50 }
0x3a83   :  { %5407 = vrcp.f32 %v4111_v3  ;;  %v4123_v37 = vand.u32 2147483648, %v4111_v3  ;;  %vm4117_vm12 = vweird.f32 %v4111_v3  ;;  %v4121_v7 = vand.u32 2147483647, %v4111_v3 }
0x3a84   :  { %v4208_v9 = vmul.f32 %v5404_v5, %v4207_v62 }
0x3a85   :  { %v4124_v46 = vor.u32 1.1754944e-38, %v4123_v37  ;;  %vm4122_vm14 = vcmp.eq.f32.partialorder %v4121_v7, 8.507059e+37 }
0x3a86   :  { %v4209_v12 = vadd.f32 %v5404_v5, %v4208_v9 }
0x3a88   :  { %v4213_v25 = vsel %vm4212_vm10, %v5404_v5, %v4209_v12 }
0x3a89   :  { %v4218_v22 = vsel %vm4215_vm11, %v4217_v34, %v4213_v25  ;;  %v5408_v31 = vpop.eup %5407 }
0x3a8a   :  { %v4113_v60 = vmul.f32 %v5408_v31, %v4111_v3  ;;  %vm4118_vm1 = vweird.f32 %v5408_v31  ;;  %v4221_v0 = vmul.f32 %v4218_v22, %v7028_v17 }
0x3a8b   :  { %vm4119_vm13 = vmor %vm4117_vm12, %vm4118_vm1 }
0x3a8c   :  { %v4114_v18 = vsub.f32 1.0, %v4113_v60 }
0x3a8e   :  { %v4115_v40 = vmul.f32 %v5408_v31, %v4114_v18 }
0x3a90   :  { %v4116_v56 = vadd.f32 %v5408_v31, %v4115_v40 }
0x3a92   :  { %v4120_v61 = vsel %vm4119_vm13, %v5408_v31, %v4116_v56 }
0x3a93   :  { %v4125_v2 = vsel %vm4122_vm14, %v4124_v46, %v4120_v61 }
0x3a94   :  { %v4128_v11 = vmul.f32 %v4125_v2, %v7033_v33 }
0x3a95   :  { %v4224_v54 = vpop.permute.xlu0 %4223 }
0x3a96   :  { %v4226_v59 = vmul.f32 %v4224_v54, %v4218_v22 }
0x3a98   :  { %4228 = vrot.lane.b32.xlu2 %v4226_v59, %s5584_s9 }
0x3af1   :  { %v4131_v43 = vpop.permute.xlu1 %4130 }
0x3af2   :  { %v4133_v13 = vmul.f32 %v4131_v43, %v4125_v2  ;;  %v4229_v8 = vpop.permute.xlu2 %4228 }
0x3af3   :  { %v7064_v51 = vadd.f32 %v4229_v8, %v4221_v0 }
0x3af4   :  { %4135 = vrot.lane.b32.xlu0 %v4133_v13, %s5584_s9 }
0x3af5   :  { %5409 = vtanh.f32 %v7064_v51 }
0x3afb   :  { %v5410_v52 = vpop.eup %5409 }
0x3afc   :  { %4234 = vrot.lane.b32.xlu1 %v5410_v52, %s5583_s30 }
0x3b66   :  { %v4136_v48 = vpop.permute.xlu0 %4135 }
0x3b67   :  { %v7070_v58 = vadd.f32 %v4136_v48, %v4128_v11 }
0x3b69   :  { %5411 = vtanh.f32 %v7070_v58 }
0x3b6e   :  { %v4235_v55 = vpop.permute.xlu1 %4234 }
0x3b6f   :  { %v5412_v17 = vpop.eup %5411  ;;  %v4237_v15 = vmul.f32 %v4235_v55, %v4218_v22 }
0x3b70   :  { %4141 = vrot.lane.b32.xlu2 %v5412_v17, %s5583_s30 }
0x3b71   :  { %4239 = vrot.lane.b32.xlu0 %v4237_v15, %s5584_s9 }
0x3bca   :  { %v4142_v36 = vpop.permute.xlu2 %4141 }
0x3bcb   :  { %v7075_v30 = vmul.f32 %v4142_v36, %v4125_v2 }
0x3bcd   :  { %4242 = vrot.lane.b32.xlu1 %v7075_v30, %s5583_s30 }
0x3be3   :  { %v4240_v42 = vpop.permute.xlu0 %4239 }
0x3be4   :  { %4996 = vmatmul.msk.f32.vlgmr.msra.gmra.mxu2 %vm305_vm6, %v4240_v42 }
0x3be5   :  { %4675 = vmatpush.msra.mxu2 %v6776_v21 }
0x3be7   :  { %4676 = vmatpush.msra.mxu2 %v6782_v49 }
0x3be9   :  { %4677 = vmatpush.msra.mxu2 %v6788_v57 }
0x3beb   :  { %4678 = vmatpush.msra.mxu2 %v6794_v1 }
0x3c3f   :  { %v4243_v33 = vpop.permute.xlu1 %4242 }
0x3c40   :  { %v4245_v4 = vsel %vm305_vm6, %v4240_v42, %v4243_v33  ;;  %v267_v33 = vadd.f32 %v6928_v10, %v6940_v20 }
0x3c41   :  { %4993 = vmatmul.msk.f32.vlgmr.msrb.gmra.mxu0 %vm384_vm7, %v4245_v4 }
0x3c67   :  { %v4358_v35 = vpop.f32.mrf.mxu2 }
0x3c68   :  { %v4361_v38 = vadd.f32 %v4358_v35, %v264_v19 }
0x3c6a   :  { %5413 = vtanh.f32 %v4361_v38  ;;  %v4997_v21 = vmul.f32 -1.442695, %v4361_v38 }
0x3c6c   :  { %5415 = vpow2.f32 %v4997_v21 }
0x3c70   :  { %v5414_v6 = vpop.eup %5413 }
0x3c71   :  { %4384 = vrot.lane.b32.xlu2 %v5414_v6, %s5583_s30 }
0x3c72   :  { %v5416_v49 = vpop.eup %5415 }
0x3c73   :  { %v4365_v57 = vadd.f32 1.0, %v5416_v49 }
0x3c75   :  { %5417 = vrcp.f32 %v4365_v57  ;;  %v4377_v50 = vand.u32 2147483648, %v4365_v57  ;;  %vm4371_vm0 = vweird.f32 %v4365_v57  ;;  %v4375_v62 = vand.u32 2147483647, %v4365_v57 }
0x3c77   :  { %v4378_v14 = vor.u32 1.1754944e-38, %v4377_v50  ;;  %vm4376_vm3 = vcmp.eq.f32.partialorder %v4375_v62, 8.507059e+37 }
0x3c7b   :  { %v5418_v1 = vpop.eup %5417 }
0x3c7c   :  { %v4367_v16 = vmul.f32 %v5418_v1, %v4365_v57  ;;  %vm4372_vm15 = vweird.f32 %v5418_v1 }
0x3c7d   :  { %vm4373_vm2 = vmor %vm4371_vm0, %vm4372_vm15 }
0x3c7e   :  { %v4368_v45 = vsub.f32 1.0, %v4367_v16 }
0x3c80   :  { %v4369_v5 = vmul.f32 %v5418_v1, %v4368_v45 }
0x3c82   :  { %v4370_v47 = vadd.f32 %v5418_v1, %v4369_v5 }
0x3c84   :  { %v4374_v12 = vsel %vm4373_vm2, %v5418_v1, %v4370_v47 }
0x3c85   :  { %v4379_v28 = vsel %vm4376_vm3, %v4378_v14, %v4374_v12 }
0x3c86   :  { %v4382_v43 = vmul.f32 %v4379_v28, %v7064_v51 }
0x3cbe   :  { %v4266_v39 = vpop.f32.mrf.mxu0 }
0x3cbf   :  { %v4267_v32 = vadd.f32 %v6947_v27, %v4266_v39 }
0x3cc1   :  { %5419 = vtanh.f32 %v4267_v32  ;;  %v4994_v54 = vmul.f32 -1.442695, %v4267_v32 }
0x3cc3   :  { %5421 = vpow2.f32 %v4994_v54 }
0x3cc7   :  { %v5420_v9 = vpop.eup %5419 }
0x3cc8   :  { %4291 = vrot.lane.b32.xlu0 %v5420_v9, %s5583_s30 }
0x3cc9   :  { %v5422_v22 = vpop.eup %5421 }
0x3cca   :  { %v4272_v59 = vadd.f32 1.0, %v5422_v22 }
0x3ccb   :  { %v4385_v25 = vpop.permute.xlu2 %4384 }
0x3ccc   :  { %v4387_v34 = vmul.f32 %v4385_v25, %v4379_v28  ;;  %5423 = vrcp.f32 %v4272_v59  ;;  %v4284_v18 = vand.u32 2147483648, %v4272_v59  ;;  %vm4278_vm5 = vweird.f32 %v4272_v59 }
0x3ccd   :  { %v4282_v40 = vand.u32 2147483647, %v4272_v59 }
0x3cce   :  { %4389 = vrot.lane.b32.xlu1 %v4387_v34, %s5584_s9  ;;  %v4285_v37 = vor.u32 1.1754944e-38, %v4284_v18 }
0x3ccf   :  { %vm4283_vm9 = vcmp.eq.f32.partialorder %v4282_v40, 8.507059e+37 }
0x3cd2   :  { %v5424_v24 = vpop.eup %5423 }
0x3cd3   :  { %v4274_v44 = vmul.f32 %v5424_v24, %v4272_v59  ;;  %vm4279_vm4 = vweird.f32 %v5424_v24 }
0x3cd4   :  { %vm4280_vm8 = vmor %vm4278_vm5, %vm4279_vm4 }
0x3cd5   :  { %v4275_v3 = vsub.f32 1.0, %v4274_v44 }
0x3cd7   :  { %v4276_v31 = vmul.f32 %v5424_v24, %v4275_v3 }
0x3cd9   :  { %v4277_v60 = vadd.f32 %v5424_v24, %v4276_v31 }
0x3cdb   :  { %v4281_v56 = vsel %vm4280_vm8, %v5424_v24, %v4277_v60 }
0x3cdc   :  { %v4286_v61 = vsel %vm4283_vm9, %v4285_v37, %v4281_v56 }
0x3cdd   :  { %v4289_v8 = vmul.f32 %v4286_v61, %v7070_v58 }
0x3d3a   :  { %v4292_v7 = vpop.permute.xlu0 %4291 }
0x3d3b   :  { %v4294_v46 = vmul.f32 %v4292_v7, %v4286_v61 }
0x3d3d   :  { %4296 = vrot.lane.b32.xlu2 %v4294_v46, %s5584_s9 }
0x3d40   :  { %v4390_v2 = vpop.permute.xlu1 %4389 }
0x3d41   :  { %v7094_v0 = vadd.f32 %v4390_v2, %v4382_v43 }
0x3d43   :  { %5425 = vtanh.f32 %v7094_v0 }
0x3d49   :  { %v5426_v13 = vpop.eup %5425 }
0x3d4a   :  { %4395 = vrot.lane.b32.xlu0 %v5426_v13, %s5583_s30 }
0x3d97   :  { %v4297_v52 = vpop.permute.xlu2 %4296 }
0x3d98   :  { %v7099_v11 = vadd.f32 %v4297_v52, %v4289_v8 }
0x3d9a   :  { %5427 = vtanh.f32 %v7099_v11 }
0x3da0   :  { %v5428_v48 = vpop.eup %5427 }
0x3da1   :  { %4302 = vrot.lane.b32.xlu1 %v5428_v48, %s5583_s30 }
0x3dbc   :  { %v4396_v55 = vpop.permute.xlu0 %4395 }
0x3dbd   :  { %v4398_v51 = vmul.f32 %v4396_v55, %v4379_v28 }
0x3dbf   :  { %4400 = vrot.lane.b32.xlu2 %v4398_v51, %s5584_s9 }
0x3e13   :  { %v4303_v17 = vpop.permute.xlu1 %4302 }
0x3e14   :  { %v7104_v15 = vmul.f32 %v4303_v17, %v4286_v61 }
0x3e16   :  { %4403 = vrot.lane.b32.xlu0 %v7104_v15, %s5583_s30 }
0x3e19   :  { %v4401_v36 = vpop.permute.xlu2 %4400 }
0x3e1a   :  { %5001 = vmatmul.msk.f32.vlgmr.msrb.gmra.mxu2 %vm305_vm6, %v4401_v36 }
0x3e88   :  { %v4404_v58 = vpop.permute.xlu0 %4403 }
0x3e89   :  { %v4406_v42 = vsel %vm305_vm6, %v4401_v36, %v4404_v58  ;;  %v5525_v36 = vld [vmem:[%s7198_s3] ss:$0 sm:$0xff] }
0x3e8a   :  { %4998 = vmatmul.msk.f32.vlgmr.msrb.gmra.mxu3 %vm384_vm7, %v4406_v42  ;;  %v270_v58 = vadd.f32 %v5525_v36, %v6942_v26 }
0x3e9d   :  { %v4519_v4 = vpop.f32.mrf.mxu2 }
0x3e9e   :  { %v4522_v19 = vadd.f32 %v4519_v4, %v267_v33 }
0x3ea0   :  { %5429 = vtanh.f32 %v4522_v19  ;;  %v5002_v38 = vmul.f32 -1.442695, %v4522_v19 }
0x3ea2   :  { %5431 = vpow2.f32 %v5002_v38 }
0x3ea6   :  { %v5430_v35 = vpop.eup %5429 }
0x3ea7   :  { %4545 = vrot.lane.b32.xlu1 %v5430_v35, %s5583_s30 }
0x3ea8   :  { %v5432_v6 = vpop.eup %5431 }
0x3ea9   :  { %v4526_v21 = vadd.f32 1.0, %v5432_v6 }
0x3eab   :  { %5433 = vrcp.f32 %v4526_v21  ;;  %v4538_v20 = vand.u32 2147483648, %v4526_v21  ;;  %vm4532_vm11 = vweird.f32 %v4526_v21  ;;  %v4536_v32 = vand.u32 2147483647, %v4526_v21 }
0x3ead   :  { %v4539_v50 = vor.u32 1.1754944e-38, %v4538_v20  ;;  %vm4537_vm12 = vcmp.eq.f32.partialorder %v4536_v32, 8.507059e+37 }
0x3eb1   :  { %v5434_v49 = vpop.eup %5433 }
0x3eb2   :  { %v4528_v57 = vmul.f32 %v5434_v49, %v4526_v21  ;;  %vm4533_vm10 = vweird.f32 %v5434_v49 }
0x3eb3   :  { %vm4534_vm1 = vmor %vm4532_vm11, %vm4533_vm10 }
0x3eb4   :  { %v4529_v1 = vsub.f32 1.0, %v4528_v57 }
0x3eb6   :  { %v4530_v39 = vmul.f32 %v5434_v49, %v4529_v1 }
0x3eb8   :  { %v4531_v10 = vadd.f32 %v5434_v49, %v4530_v39 }
0x3eba   :  { %v4535_v47 = vsel %vm4534_vm1, %v5434_v49, %v4531_v10 }
0x3ebb   :  { %v4540_v9 = vsel %vm4537_vm12, %v4539_v50, %v4535_v47 }
0x3ebc   :  { %v4543_v37 = vmul.f32 %v4540_v9, %v7094_v0 }
0x3f0d   :  { %v4427_v16 = vpop.f32.mrf.mxu3 }
0x3f0e   :  { %v4428_v45 = vadd.f32 %v6947_v27, %v4427_v16 }
0x3f10   :  { %5435 = vtanh.f32 %v4428_v45  ;;  %v4999_v14 = vmul.f32 -1.442695, %v4428_v45 }
0x3f12   :  { %5437 = vpow2.f32 %v4999_v14 }
0x3f16   :  { %v5436_v5 = vpop.eup %5435 }
0x3f17   :  { %4452 = vrot.lane.b32.xlu2 %v5436_v5, %s5583_s30 }
0x3f18   :  { %v5438_v28 = vpop.eup %5437 }
0x3f19   :  { %v4546_v62 = vpop.permute.xlu1 %4545  ;;  %v4433_v25 = vadd.f32 1.0, %v5438_v28 }
0x3f1a   :  { %v4548_v12 = vmul.f32 %v4546_v62, %v4540_v9 }
0x3f1b   :  { %5439 = vrcp.f32 %v4433_v25  ;;  %v4445_v44 = vand.u32 2147483648, %v4433_v25  ;;  %vm4439_vm14 = vweird.f32 %v4433_v25  ;;  %v4443_v3 = vand.u32 2147483647, %v4433_v25 }
0x3f1c   :  { %4550 = vrot.lane.b32.xlu0 %v4548_v12, %s5584_s9 }
0x3f1d   :  { %v4446_v60 = vor.u32 1.1754944e-38, %v4445_v44  ;;  %vm4444_vm0 = vcmp.eq.f32.partialorder %v4443_v3, 8.507059e+37 }
0x3f21   :  { %v5440_v34 = vpop.eup %5439 }
0x3f22   :  { %v4435_v54 = vmul.f32 %v5440_v34, %v4433_v25  ;;  %vm4440_vm13 = vweird.f32 %v5440_v34 }
0x3f23   :  { %vm4441_vm15 = vmor %vm4439_vm14, %vm4440_vm13 }
0x3f24   :  { %v4436_v22 = vsub.f32 1.0, %v4435_v54 }
0x3f26   :  { %v4437_v59 = vmul.f32 %v5440_v34, %v4436_v22 }
0x3f28   :  { %v4438_v24 = vadd.f32 %v5440_v34, %v4437_v59 }
0x3f2a   :  { %v4442_v31 = vsel %vm4441_vm15, %v5440_v34, %v4438_v24 }
0x3f2b   :  { %v4447_v40 = vsel %vm4444_vm0, %v4446_v60, %v4442_v31 }
0x3f2c   :  { %v4450_v43 = vmul.f32 %v4447_v40, %v7099_v11 }
0x3f71   :  { %v4453_v18 = vpop.permute.xlu2 %4452 }
0x3f72   :  { %v4455_v56 = vmul.f32 %v4453_v18, %v4447_v40 }
0x3f74   :  { %4457 = vrot.lane.b32.xlu1 %v4455_v56, %s5584_s9 }
0x3f8e   :  { %v4551_v7 = vpop.permute.xlu0 %4550 }
0x3f8f   :  { %v7119_v61 = vadd.f32 %v4551_v7, %v4543_v37 }
0x3f91   :  { %5441 = vtanh.f32 %v7119_v61 }
0x3f97   :  { %v5442_v46 = vpop.eup %5441 }
0x3f98   :  { %4556 = vrot.lane.b32.xlu2 %v5442_v46, %s5583_s30 }
0x3fe6   :  { %v4458_v2 = vpop.permute.xlu1 %4457 }
0x3fe7   :  { %v7124_v13 = vadd.f32 %v4458_v2, %v4450_v43 }
0x3fe9   :  { %5443 = vtanh.f32 %v7124_v13 }
0x3fef   :  { %v5444_v8 = vpop.eup %5443 }
0x3ff0   :  { %4463 = vrot.lane.b32.xlu0 %v5444_v8, %s5583_s30 }
0x3ff2   :  { %v4557_v52 = vpop.permute.xlu2 %4556 }
0x3ff3   :  { %v4559_v0 = vmul.f32 %v4557_v52, %v4540_v9 }
0x3ff5   :  { %4561 = vrot.lane.b32.xlu1 %v4559_v0, %s5584_s9  ;;  %v3504_v0 = vld [vmem:[#allocation3 + $0x270] sm:$0xff] }
0x4062   :  { %v4464_v48 = vpop.permute.xlu0 %4463 }
0x4063   :  { %v7129_v55 = vmul.f32 %v4464_v48, %v4447_v40  ;;  %v3503_v48 = vld [vmem:[#allocation3 + $0x268] sm:$0xff] }
0x4065   :  { %4564 = vrot.lane.b32.xlu2 %v7129_v55, %s5583_s30 }
0x4067   :  { %v4562_v51 = vpop.permute.xlu1 %4561 }
0x4068   :  { %5006 = vmatmul.msk.f32.vlgmr.msra.gmra.mxu2 %vm305_vm6, %v4562_v51 }
0x40bf   :  { %v4565_v11 = vpop.permute.xlu2 %4564 }
0x40c0   :  { %v4567_v17 = vsel %vm305_vm6, %v4562_v51, %v4565_v11  ;;  %v3502_v51 = vld [vmem:[#allocation3 + $0x260] sm:$0xff] }
0x40c1   :  { %5003 = vmatmul.msk.f32.vlgmr.msra.gmra.mxu0 %vm384_vm7, %v4567_v17 }
0x40eb   :  { %v4680_v42 = vpop.f32.mrf.mxu2 }
0x40ec   :  { %v4683_v33 = vadd.f32 %v4680_v42, %v270_v58 }
0x40ee   :  { %5445 = vtanh.f32 %v4683_v33  ;;  %v5007_v19 = vmul.f32 -1.442695, %v4683_v33 }
0x40f0   :  { %5447 = vpow2.f32 %v5007_v19 }
0x40f4   :  { %v5446_v4 = vpop.eup %5445 }
0x40f5   :  { %4706 = vrot.lane.b32.xlu1 %v5446_v4, %s5583_s30 }
0x40f6   :  { %v5448_v6 = vpop.eup %5447 }
0x40f7   :  { %v4687_v49 = vadd.f32 1.0, %v5448_v6  ;;  %v3666_v6 = vld [vmem:[#allocation3 + $0x298] sm:$0xff] }
0x40f9   :  { %v4699_v39 = vand.u32 2147483648, %v4687_v49  ;;  %vm4693_vm3 = vweird.f32 %v4687_v49  ;;  %v4697_v10 = vand.u32 2147483647, %v4687_v49 }
0x40fb   :  { %v4700_v32 = vor.u32 1.1754944e-38, %v4699_v39  ;;  %vm4698_vm5 = vcmp.eq.f32.partialorder %v4697_v10, 8.507059e+37 }
0x413e   :  { %v4588_v35 = vpop.f32.mrf.mxu0 }
0x413f   :  { %v4589_v38 = vadd.f32 %v6947_v27, %v4588_v35 }
0x4141   :  { %5449 = vtanh.f32 %v4589_v38  ;;  %v5004_v50 = vmul.f32 -1.442695, %v4589_v38 }
0x4142   :  { %5451 = vrcp.f32 %v4687_v49 }
0x4143   :  { %5453 = vpow2.f32 %v5004_v50  ;;  %v3826_v50 = vld [vmem:[#allocation3 + $0x2b0] sm:$0xff] }
0x4147   :  { %v5450_v21 = vpop.eup %5449 }
0x4148   :  { %4613 = vrot.lane.b32.xlu0 %v5450_v21, %s5583_s30  ;;  %v5452_v57 = vpop.eup %5451  ;;  %v3665_v21 = vld [vmem:[#allocation3 + $0x290] sm:$0xff] }
0x4149   :  { %v4689_v26 = vmul.f32 %v5452_v57, %v4687_v49  ;;  %vm4694_vm2 = vweird.f32 %v5452_v57  ;;  %v5454_v62 = vpop.eup %5453  ;;  %v3664_v49 = vld [vmem:[#allocation3 + $0x288] sm:$0xff] }
0x414a   :  { %vm4695_vm4 = vmor %vm4693_vm3, %vm4694_vm2  ;;  %v4594_v9 = vadd.f32 1.0, %v5454_v62  ;;  %v3825_v62 = vld [vmem:[#allocation3 + $0x2a8] sm:$0xff] }
0x414b   :  { %v4690_v1 = vsub.f32 1.0, %v4689_v26 }
0x414c   :  { %5455 = vrcp.f32 %v4594_v9  ;;  %v4606_v54 = vand.u32 2147483648, %v4594_v9  ;;  %vm4600_vm9 = vweird.f32 %v4594_v9  ;;  %v4604_v22 = vand.u32 2147483647, %v4594_v9 }
0x414d   :  { %v4691_v16 = vmul.f32 %v5452_v57, %v4690_v1 }
0x414e   :  { %v4607_v24 = vor.u32 1.1754944e-38, %v4606_v54  ;;  %vm4605_vm11 = vcmp.eq.f32.partialorder %v4604_v22, 8.507059e+37  ;;  %v4149_v54 = vld [vmem:[#allocation3 + $0x2f8] sm:$0xff] }
0x414f   :  { %v4692_v45 = vadd.f32 %v5452_v57, %v4691_v16 }
0x4151   :  { %v4696_v20 = vsel %vm4695_vm4, %v5452_v57, %v4692_v45  ;;  %v3663_v57 = vld [vmem:[#allocation3 + $0x280] sm:$0xff] }
0x4152   :  { %v4701_v5 = vsel %vm4698_vm5, %v4700_v32, %v4696_v20  ;;  %v5456_v12 = vpop.eup %5455 }
0x4153   :  { %v4596_v14 = vmul.f32 %v5456_v12, %v4594_v9  ;;  %vm4601_vm8 = vweird.f32 %v5456_v12  ;;  %v4704_v60 = vmul.f32 %v4701_v5, %v7119_v61  ;;  %v3824_v9 = vld [vmem:[#allocation3 + $0x2a0] sm:$0xff] }
0x4154   :  { %vm4602_vm10 = vmor %vm4600_vm9, %vm4601_vm8 }
0x4155   :  { %v4597_v28 = vsub.f32 1.0, %v4596_v14  ;;  %v3987_v14 = vld [vmem:[#allocation3 + $0x2d0] sm:$0xff] }
0x4157   :  { %v4598_v25 = vmul.f32 %v5456_v12, %v4597_v28  ;;  %v3986_v28 = vld [vmem:[#allocation3 + $0x2c8] sm:$0xff] }
0x4159   :  { %v4599_v34 = vadd.f32 %v5456_v12, %v4598_v25 }
0x415b   :  { %v4603_v59 = vsel %vm4602_vm10, %v5456_v12, %v4599_v34  ;;  %v3988_v12 = vld [vmem:[#allocation3 + $0x2d8] sm:$0xff] }
0x415c   :  { %v4608_v3 = vsel %vm4605_vm11, %v4607_v24, %v4603_v59  ;;  %v4148_v24 = vld [vmem:[#allocation3 + $0x2f0] sm:$0xff] }
0x415d   :  { %v4611_v37 = vmul.f32 %v4608_v3, %v7124_v13  ;;  %v3505_v13 = vld [vmem:[#allocation3 + $0x278] sm:$0xff] }
0x415e   :  { %3523 = vmatpush.msrb.mxu1 %v3505_v13  ;;  %v4631_v13 = vld [vmem:[#allocation3 + $0x350] sm:$0xff] }
0x4160   :  { %3524 = vmatpush.msrb.mxu1 %v3504_v0  ;;  %v4630_v0 = vld [vmem:[#allocation3 + $0x348] sm:$0xff] }
0x4162   :  { %3525 = vmatpush.msrb.mxu1 %v3503_v48  ;;  %v4629_v48 = vld [vmem:[#allocation3 + $0x340] sm:$0xff] }
0x4164   :  { %3526 = vmatpush.msrb.mxu1 %v3502_v51  ;;  %v4793_v51 = vld [vmem:[#allocation3 + $0x378] sm:$0xff] }
0x4166   :  { %3684 = vmatpush.msra.mxu1 %v3666_v6 }
0x4167   :  { %v4707_v27 = vpop.permute.xlu1 %4706 }
0x4168   :  { %v4709_v47 = vmul.f32 %v4707_v27, %v4701_v5  ;;  %3685 = vmatpush.msra.mxu1 %v3665_v21 }
0x416a   :  { %4711 = vrot.lane.b32.xlu0 %v4709_v47, %s5584_s9  ;;  %3686 = vmatpush.msra.mxu1 %v3664_v49  ;;  %v3827_v47 = vld [vmem:[#allocation3 + $0x2b8] sm:$0xff] }
0x416c   :  { %3687 = vmatpush.msra.mxu1 %v3663_v57 }
0x41ba   :  { %v4614_v44 = vpop.permute.xlu0 %4613 }
0x41bb   :  { %v4616_v31 = vmul.f32 %v4614_v44, %v4608_v3  ;;  %v4147_v44 = vld [vmem:[#allocation3 + $0x2e8] sm:$0xff] }
0x41bd   :  { %4618 = vrot.lane.b32.xlu2 %v4616_v31, %s5584_s9 }
0x41dc   :  { %v4712_v18 = vpop.permute.xlu0 %4711 }
0x41dd   :  { %v4714_v40 = vadd.f32 %v4712_v18, %v4704_v60  ;;  %v4310_v18 = vld [vmem:[#allocation3 + $0x318] sm:$0xff] }
0x41df   :  { %5457 = vtanh.f32 %v4714_v40  ;;  %v4309_v40 = vld [vmem:[#allocation3 + $0x310] sm:$0xff] }
0x41e5   :  { %v5458_v56 = vpop.eup %5457 }
0x41e6   :  { %4717 = vrot.lane.b32.xlu2 %v5458_v56, %s5583_s30  ;;  %v4308_v56 = vld [vmem:[#allocation3 + $0x308] sm:$0xff] }
0x4217   :  { %v4619_v7 = vpop.permute.xlu2 %4618 }
0x4218   :  { %v7148_v46 = vadd.f32 %v4619_v7, %v4611_v37  ;;  %v4307_v37 = vld [vmem:[#allocation3 + $0x300] sm:$0xff]  ;;  %v4471_v7 = vld [vmem:[#allocation3 + $0x338] sm:$0xff] }
0x421a   :  { %5459 = vtanh.f32 %v7148_v46 }
0x4220   :  { %v5460_v43 = vpop.eup %5459 }
0x4221   :  { %4624 = vrot.lane.b32.xlu1 %v5460_v43, %s5583_s30  ;;  %v4469_v43 = vld [vmem:[#allocation3 + $0x328] sm:$0xff] }
0x4240   :  { %v4718_v2 = vpop.permute.xlu2 %4717 }
0x4241   :  { %v4720_v8 = vmul.f32 %v4718_v2, %v4701_v5  ;;  %v4468_v2 = vld [vmem:[#allocation3 + $0x320] sm:$0xff] }
0x4243   :  { %4722 = vrot.lane.b32.xlu0 %v4720_v8, %s5584_s9 }
0x4293   :  { %v4625_v61 = vpop.permute.xlu1 %4624 }
0x4294   :  { %v4627_v52 = vmul.f32 %v4625_v61, %v4608_v3  ;;  %v4146_v3 = vld [vmem:[#allocation3 + $0x2e0] sm:$0xff]  ;;  %v4632_v61 = vld [vmem:[#allocation3 + $0x358] sm:$0xff] }
0x4296   :  { %4725 = vrot.lane.b32.xlu1 %v4627_v52, %s5583_s30 }
0x429e   :  { %3507 = vrot.lane.b32.xlu1 %v6862_v41, %s5584_s9  ;;  %v5526_v41 = vld [vmem:[%s7200_s5] ss:$0 sm:$0xff] }
0x42b5   :  { %v4723_v11 = vpop.permute.xlu0 %4722 }
0x4308   :  { %v4726_v17 = vpop.permute.xlu1 %4725 }
0x4309   :  { %v4728_v36 = vsel %vm305_vm6, %v4723_v11, %v4726_v17  ;;  %v4792_v17 = vld [vmem:[#allocation3 + $0x370] sm:$0xff] }
0x430a   :  { %5008 = vmatmul.msk.f32.vlgmr.msra.gmra.mxu3 %vm384_vm7, %v4728_v36  ;;  %v4791_v36 = vld [vmem:[#allocation3 + $0x368] sm:$0xff] }
0x4310   :  { %v3508_v58 = vpop.permute.xlu1 %3507 }
0x4311   :  { %4970 = vmatmul.msk.f32.vlgmr.msrb.gmra.mxu1 %vm305_vm6, %v3508_v58  ;;  %v4790_v58 = vld [vmem:[#allocation3 + $0x360] sm:$0xff] }
0x4312   :  { %3845 = vmatpush.msrb.mxu1 %v3827_v47 }
0x4314   :  { %3846 = vmatpush.msrb.mxu1 %v3826_v50 }
0x4316   :  { %3847 = vmatpush.msrb.mxu1 %v3825_v62 }
0x4318   :  { %3848 = vmatpush.msrb.mxu1 %v3824_v9 }
0x438d   :  { %v4749_v42 = vpop.f32.mrf.mxu3 }
0x438e   :  { %v4750_v33 = vadd.f32 %v5526_v41, %v4749_v42 }
0x4390   :  { %5461 = vtanh.f32 %v4750_v33  ;;  %v5009_v19 = vmul.f32 -1.442695, %v4750_v33  ;;  %v3528_v33 = vpop.f32.mrf.mxu1 }
0x4391   :  { %v3531_v49 = vadd.f32 %v3528_v33, %v6821_v29 }
0x4392   :  { %5463 = vpow2.f32 %v5009_v19 }
0x4396   :  { %v5462_v4 = vpop.eup %5461 }
0x4397   :  { %4774 = vrot.lane.b32.xlu2 %v5462_v4, %s5583_s30 }
0x4398   :  { %v5464_v35 = vpop.eup %5463 }
0x4399   :  { %v4755_v38 = vadd.f32 1.0, %v5464_v35 }
0x439b   :  { %5465 = vrcp.f32 %v4755_v38  ;;  %vm4761_vm1 = vweird.f32 %v4755_v38  ;;  %v4765_v45 = vand.u32 2147483647, %v4755_v38 }
0x439d   :  { %vm4766_vm13 = vcmp.eq.f32.partialorder %v4765_v45, 8.507059e+37 }
0x439f   :  { %3668 = vrot.lane.b32.xlu2 %v6964_v53, %s5584_s9 }
0x43a1   :  { %v5466_v53 = vpop.eup %5465 }
0x43a2   :  { %v4757_v26 = vmul.f32 %v5466_v53, %v4755_v38  ;;  %vm4762_vm7 = vweird.f32 %v5466_v53 }
0x43a3   :  { %vm4763_vm12 = vmor %vm4761_vm1, %vm4762_vm7 }
0x43a4   :  { %v4758_v1 = vsub.f32 1.0, %v4757_v26 }
0x43a7   :  { %3990 = vrot.lane.b32.xlu2 %v7038_v63, %s5584_s9  ;;  %v4759_v63 = vmul.f32 %v5466_v53, %v4758_v1 }
0x43a9   :  { %v4760_v16 = vadd.f32 %v5466_v53, %v4759_v63 }
0x43ab   :  { %v4764_v39 = vsel %vm4763_vm12, %v5466_v53, %v4760_v16 }
0x43af   :  { %4473 = vrot.lane.b32.xlu2 %v7129_v55, %s5584_s9  ;;  %v4767_v55 = vand.u32 2147483648, %v4755_v38 }
0x43b1   :  { %v4768_v10 = vor.u32 1.1754944e-38, %v4767_v55 }
0x43b3   :  { %v4769_v32 = vsel %vm4766_vm13, %v4768_v10, %v4764_v39  ;;  %v5020_v39 = vld [vmem:[%s7202_s7] ss:$0 sm:$0xff] }
0x43f1   :  { %v4775_v20 = vpop.permute.xlu2 %4774 }
0x43f2   :  { %v4777_v27 = vmul.f32 %v4775_v20, %v4769_v32 }
0x43f4   :  { %4779 = vrot.lane.b32.xlu0 %v4777_v27, %s5584_s9 }
0x43f9   :  { %v3669_v5 = vpop.permute.xlu2 %3668 }
0x43fa   :  { %4975 = vmatmul.msk.f32.vlgmr.msra.gmra.mxu1 %vm305_vm6, %v3669_v5 }
0x43fb   :  { %4006 = vmatpush.msra.mxu1 %v3988_v12 }
0x43fc   :  { %3829 = vrot.lane.b32.xlu0 %v7003_v23, %s5584_s9  ;;  %v3985_v23 = vld [vmem:[#allocation3 + $0x2c0] sm:$0xff] }
0x43fd   :  { %4007 = vmatpush.msra.mxu1 %v3987_v14 }
0x43ff   :  { %4008 = vmatpush.msra.mxu1 %v3986_v28 }
0x4401   :  { %4009 = vmatpush.msra.mxu1 %v3985_v23  ;;  %v3991_v31 = vpop.permute.xlu2 %3990 }
0x4404   :  { %4151 = vrot.lane.b32.xlu0 %v7075_v30, %s5584_s9  ;;  %v4772_v30 = vmul.f32 %v4769_v32, %v7148_v46  ;;  %v4470_v46 = vld [vmem:[#allocation3 + $0x330] sm:$0xff] }
0x4409   :  { %v4474_v11 = vpop.permute.xlu2 %4473 }
0x440c   :  { %4634 = vrot.lane.b32.xlu0 %v4627_v52, %s5584_s9 }
0x4466   :  { %v4780_v25 = vpop.permute.xlu0 %4779 }
0x4467   :  { %v4782_v34 = vadd.f32 %v4780_v25, %v4772_v30 }
0x4469   :  { %5467 = vtanh.f32 %v4782_v34 }
0x446e   :  { %v3830_v22 = vpop.permute.xlu0 %3829 }
0x446f   :  { %v5468_v59 = vpop.eup %5467  ;;  %4980 = vmatmul.msk.f32.vlgmr.msrb.gmra.mxu1 %vm305_vm6, %v3830_v22 }
0x4470   :  { %4785 = vrot.lane.b32.xlu1 %v5468_v59, %s5583_s30  ;;  %4167 = vmatpush.msrb.mxu1 %v4149_v54 }
0x4472   :  { %4168 = vmatpush.msrb.mxu1 %v4148_v24 }
0x4474   :  { %4169 = vmatpush.msrb.mxu1 %v4147_v44 }
0x4476   :  { %4170 = vmatpush.msrb.mxu1 %v4146_v3  ;;  %v4152_v60 = vpop.permute.xlu0 %4151 }
0x4477   :  { %4985 = vmatmul.msk.f32.vlgmr.msra.gmra.mxu1 %vm305_vm6, %v3991_v31  ;;  %v3689_v4 = vpop.f32.mrf.mxu1 }
0x4478   :  { %4312 = vrot.lane.b32.xlu1 %v7104_v15, %s5584_s9  ;;  %4328 = vmatpush.msra.mxu1 %v4310_v18  ;;  %v3692_v57 = vadd.f32 %v3689_v4, %v3531_v49 }
0x447a   :  { %4329 = vmatpush.msra.mxu1 %v4309_v40 }
0x447c   :  { %4330 = vmatpush.msra.mxu1 %v4308_v56 }
0x447e   :  { %4331 = vmatpush.msra.mxu1 %v4307_v37  ;;  %v4635_v42 = vpop.permute.xlu0 %4634 }
0x447f   :  { %4990 = vmatmul.msk.f32.vlgmr.msrb.gmra.mxu1 %vm305_vm6, %v4152_v60 }
0x4480   :  { %4489 = vmatpush.msrb.mxu1 %v4471_v7 }
0x4482   :  { %4490 = vmatpush.msrb.mxu1 %v4470_v46 }
0x4484   :  { %4491 = vmatpush.msrb.mxu1 %v4469_v43 }
0x4486   :  { %4492 = vmatpush.msrb.mxu1 %v4468_v2 }
0x44e2   :  { %v4786_v15 = vpop.permute.xlu1 %4785 }
0x44e3   :  { %v4788_v8 = vmul.f32 %v4786_v15, %v4769_v32 }
0x44e5   :  { %4795 = vrot.lane.b32.xlu1 %v4788_v8, %s5584_s9  ;;  %s5585_s9 = smov [#allocation6]  }
0x44e6   :  { %s4831_s6 = sshll.u32 %s5585_s9, 4  ;;  %s4832_s6 = int_to_ptr.vmem [resolvable:$true] %s4831_s6 }
0x44ea   :  { %v4313_v52 = vpop.permute.xlu1 %4312 }
0x44eb   :  { %4995 = vmatmul.msk.f32.vlgmr.msra.gmra.mxu1 %vm305_vm6, %v4313_v52 }
0x44ec   :  { %4650 = vmatpush.msra.mxu1 %v4632_v61  ;;  %v3850_v19 = vpop.f32.mrf.mxu1 }
0x44ed   :  { %v3853_v53 = vadd.f32 %v3850_v19, %v3692_v57 }
0x44ee   :  { %4651 = vmatpush.msra.mxu1 %v4631_v13 }
0x44f0   :  { %4652 = vmatpush.msra.mxu1 %v4630_v0 }
0x44f2   :  { %4653 = vmatpush.msra.mxu1 %v4629_v48 }
0x44f3   :  { %5000 = vmatmul.msk.f32.vlgmr.msrb.gmra.mxu1 %vm305_vm6, %v4474_v11 }
0x44f4   :  { %4811 = vmatpush.msrb.mxu1 %v4793_v51  ;;  %v4011_v35 = vpop.f32.mrf.mxu1 }
0x44f5   :  { %v4014_v26 = vadd.f32 %v4011_v35, %v3853_v53 }
0x44f6   :  { %4812 = vmatpush.msrb.mxu1 %v4792_v17 }
0x44f8   :  { %4813 = vmatpush.msrb.mxu1 %v4791_v36 }
0x44fa   :  { %4814 = vmatpush.msrb.mxu1 %v4790_v58 }
0x44fb   :  { %5005 = vmatmul.msk.f32.vlgmr.msra.gmra.mxu1 %vm305_vm6, %v4635_v42 }
0x44fc   :  { %v4172_v38 = vpop.f32.mrf.mxu1 }
0x44fd   :  { %v4175_v63 = vadd.f32 %v4172_v38, %v4014_v26 }
0x4557   :  { %v4796_v41 = vpop.permute.xlu1 %4795 }
0x4558   :  { %5010 = vmatmul.msk.f32.vlgmr.msrb.gmra.mxu1 %vm305_vm6, %v4796_v41 }
0x4568   :  { %v4333_v6 = vpop.f32.mrf.mxu1 }
0x4569   :  { %v4336_v16 = vadd.f32 %v4333_v6, %v4175_v63 }
0x4570   :  { %v4494_v21 = vpop.f32.mrf.mxu1 }
0x4571   :  { %v4497_v55 = vadd.f32 %v4494_v21, %v4336_v16 }
0x4578   :  { %v4655_v1 = vpop.f32.mrf.mxu1 }
0x4579   :  { %v4658_v45 = vadd.f32 %v4655_v1, %v4497_v55 }
0x45d5   :  { %v4816_v10 = vpop.f32.mrf.mxu1 }
0x45d6   :  { %v4819_v29 = vadd.f32 %v4816_v10, %v4658_v45 }
0x45d8   :  { %v4824_v20 = vadd.f32 %v5020_v39, %v4819_v29 }
0x45da   :  { %4825 = vst [vmem:[#allocation6] sm:$0xff] %v4824_v20 }
0x45db   :  { %4836 = dma.vmem_to_hbm [thread:$0]  %s4832_s6, 128, %s4834_s19, [#allocation5]  }
0x45dc   :  { %5577 = dma.done.wait [#allocation5], 128  }
0x45dd   :  { %5578 = vsyncadd [#allocation5], 4294967168 }
0x45de   :  { %4841 = vsyncpa [#allocation4], 1 }
0x45df   :  { %4842 = vsyncpa [#allocation5], 1 }

</bundles_post_ra>
